<compile_context>
chip_gen: v5e
topology: v5e:2x2
jax: 0.10.0
libtpu: 0.0.40
codegen_flags: <defaults>
</compile_context>

<pallas_src>
import functools

import jax
import jax.numpy as jnp
from jax.experimental import pallas as pl
from jax.experimental.pallas import tpu as pltpu


# ----------------------------------------------------------------------------
# Shared numerics
# ----------------------------------------------------------------------------
def _softplus(x):
    # Numerically stable softplus (matches F.softplus to ~1e-9), Mosaic-safe
    # (only exp/log/abs/max).
    return jnp.maximum(x, 0.0) + jnp.log(1.0 + jnp.exp(-jnp.abs(x)))


# ----------------------------------------------------------------------------
# Fused Pallas kernel: 3 heads x 5 convs + evidence epilogue
# ----------------------------------------------------------------------------
def _fused_heads_kernel(x_ref, w1_ref, b1_ref, w2_ref, b2_ref, w3_ref, b3_ref,
                        w4_ref, b4_ref, w5_ref, b5_ref, o_ref,
                        pad_in, pad_mid, *, H, W):
    """All 3 uncertainty heads, all 5 conv layers, for one batch element.

    x_ref   : (1, H, W, Cin)        NHWC input features
    wN_ref  : (9*CinN, CoutN)       im2col-packed conv weights (taps major)
    bN_ref  : (1, CoutN)            biases
    o_ref   : (1, H*W, 3)           evidence-transformed (la, alpha, beta)
    pad_in  : VMEM (H+2, W+2, Cin)  padded layer-1 input scratch
    pad_mid : VMEM (H+2, W+2, Cmid) padded mid-layer activation scratch
    """
    Cin = x_ref.shape[-1]
    Cmid = pad_mid.shape[-1]

    def im2col(pad_ref, C):
        # (H*W, 9*C) patch matrix; taps ordered (dy, dx), channels minor.
        cols = []
        for dy in range(3):
            for dx in range(3):
                cols.append(
                    pad_ref[pl.ds(dy, H), pl.ds(dx, W), :].reshape(H * W, C))
        return jnp.concatenate(cols, axis=-1)

    # In-kernel zero padding (borders stay zero; only interiors are rewritten).
    pad_in[...] = jnp.zeros_like(pad_in)
    pad_mid[...] = jnp.zeros_like(pad_mid)

    # conv1: Cin -> 96 (three heads concatenated along Cout), no ReLU.
    pad_in[pl.ds(1, H), pl.ds(1, W), :] = x_ref[0]
    act = jnp.dot(im2col(pad_in, Cin), w1_ref[...],
                  preferred_element_type=jnp.float32) + b1_ref[...]

    # conv2..conv4: block-diagonal 96 -> 96 (ReLU after conv2 and conv4).
    def mid_layer(a, w_ref, b_ref, relu):
        pad_mid[pl.ds(1, H), pl.ds(1, W), :] = a.reshape(H, W, Cmid)
        y = jnp.dot(im2col(pad_mid, Cmid), w_ref[...],
                    preferred_element_type=jnp.float32) + b_ref[...]
        return jnp.maximum(y, 0.0) if relu else y

    act = mid_layer(act, w2_ref, b2_ref, relu=True)
    act = mid_layer(act, w3_ref, b3_ref, relu=False)
    act = mid_layer(act, w4_ref, b4_ref, relu=True)

    # conv5: 96 -> 3 (one logit per head) + fused evidence epilogue.
    pad_mid[pl.ds(1, H), pl.ds(1, W), :] = act.reshape(H, W, Cmid)
    z = jnp.dot(im2col(pad_mid, Cmid), w5_ref[...],
                preferred_element_type=jnp.float32) + b5_ref[...]
    sp = _softplus(z)                                    # (H*W, 3)
    col = jax.lax.broadcasted_iota(jnp.int32, sp.shape, 1)
    ev = jnp.where(col == 1, sp + 1.0, sp)               # alpha = softplus + 1
    o_ref[...] = ev.reshape(1, H * W, sp.shape[-1])


def fused_uncertainty_heads(x_nhwc, packed):
    """Run the three fused uncertainty heads + evidence transform.

    Returns (N, H*W, 3) with columns (la, alpha, beta) at low resolution.
    """
    N, H, W, Cin = x_nhwc.shape
    w1, b1, w2, b2, w3, b3, w4, b4, w5, b5 = packed
    Cmid = w2.shape[-1]
    nout = w5.shape[-1]

    param_specs = [pl.BlockSpec(a.shape, lambda n: (0, 0))
                   for a in (w1, b1, w2, b2, w3, b3, w4, b4, w5, b5)]

    return pl.pallas_call(
        functools.partial(_fused_heads_kernel, H=H, W=W),
        out_shape=jax.ShapeDtypeStruct((N, H * W, nout), jnp.float32),
        grid=(N,),
        in_specs=[pl.BlockSpec((1, H, W, Cin), lambda n: (n, 0, 0, 0))]
                 + param_specs,
        out_specs=pl.BlockSpec((1, H * W, nout), lambda n: (n, 0, 0)),
        scratch_shapes=[
            pltpu.VMEM((H + 2, W + 2, Cin), jnp.float32),
            pltpu.VMEM((H + 2, W + 2, Cmid), jnp.float32),
        ],
        compiler_params=pltpu.CompilerParams(
            dimension_semantics=("parallel",)),  # batch shards across TCs (v7x)
    )(x_nhwc, w1, b1, w2, b2, w3, b3, w4, b4, w5, b5)


# ----------------------------------------------------------------------------
# Parameter construction (deterministic, matches module __init__ shapes)
# ----------------------------------------------------------------------------
def kaiming_conv(key, cout, cin):
    # kaiming_normal_(mode='fan_out', nonlinearity='relu'): std = sqrt(2/(cout*9))
    fan_out = cout * 9
    std = (2.0 / fan_out) ** 0.5
    return jax.random.normal(key, (cout, cin, 3, 3), jnp.float32) * std


def weight_norm_reparam(v):
    # PyTorch weight_norm (dim=0): w = g * v / ||v|| per output filter, g init
    # to ||v|| -> identity at init; eps guards against a zero-norm filter.
    norm = jnp.sqrt(jnp.sum(v * v, axis=(1, 2, 3), keepdims=True))
    g = norm
    return g * v / jnp.maximum(norm, 1e-12)


def make_head_params(key, input_dim=256, feature_dim=32):
    keys = jax.random.split(key, 5)
    dims = [(feature_dim, input_dim), (feature_dim, feature_dim),
            (feature_dim, feature_dim), (feature_dim, feature_dim),
            (1, feature_dim)]
    params = []
    for i, (co, ci) in enumerate(dims):
        wgt = kaiming_conv(keys[i], co, ci)
        if i < 4:                       # first four convs are weight-normed
            wgt = weight_norm_reparam(wgt)
        params.append((wgt, jnp.zeros((co,), jnp.float32)))
    return params


def _w_to_taps(w_oihw):
    # (Cout, Cin, 3, 3) -> (9, Cin, Cout), taps ordered (ky, kx).
    co, ci = w_oihw.shape[0], w_oihw.shape[1]
    return jnp.transpose(w_oihw, (2, 3, 1, 0)).reshape(9, ci, co)


def pack_fused_head_params(heads):
    """Pack per-head conv params into fused im2col matrices (done ONCE).

    heads: list of 3 per-head param lists (5 x (w_oihw, bias) each).
      layer 0 : Cout concatenated            (256 -> 96)
      layers 1-3: block-diagonal              (96 -> 96)
      layer 4 : one output column per head    (96 -> 3)
    """
    nh = len(heads)
    packed = []
    # layer 0: concat along Cout
    w0 = jnp.concatenate([_w_to_taps(hd[0][0]) for hd in heads], axis=-1)
    b0 = jnp.concatenate([hd[0][1] for hd in heads], axis=0)
    packed += [w0.reshape(9 * w0.shape[1], w0.shape[2]), b0.reshape(1, -1)]
    # layers 1..4: block diagonal
    for li in range(1, 5):
        taps = [_w_to_taps(hd[li][0]) for hd in heads]        # (9, ci, co) each
        ci, co = taps[0].shape[1], taps[0].shape[2]
        wf = jnp.zeros((9, nh * ci, nh * co), jnp.float32)
        for hidx, t in enumerate(taps):
            wf = wf.at[:, hidx * ci:(hidx + 1) * ci,
                       hidx * co:(hidx + 1) * co].set(t)
        bf = jnp.concatenate([hd[li][1] for hd in heads], axis=0)
        packed += [wf.reshape(9 * nh * ci, nh * co), bf.reshape(1, -1)]
    return tuple(packed)


# ----------------------------------------------------------------------------
# Plain-JAX glue (mirrors the torch ops exactly)
# ----------------------------------------------------------------------------
def split_and_reshape_feat(feat, bs):
    """torch.chunk(dim=1) + permute(2,1,0) + reshape + cat on the transformer
    output.  feat: (W', 2*bs*Hs, c)  ->  feat_cat NCHW (bs, 2c, Hs, W')."""
    hn2, c = feat.shape[1], feat.shape[2]
    hn = hn2 // 2
    feat_left = feat[:, :hn, :]
    feat_right = feat[:, hn:, :]
    # Faithful mirror of: feat_x.permute(2, 1, 0).reshape(bs, c, hn // bs, -1)
    feat_left = jnp.transpose(feat_left, (2, 1, 0)).reshape(bs, c, hn // bs, -1)
    feat_right = jnp.transpose(feat_right, (2, 1, 0)).reshape(bs, c, hn // bs, -1)
    return jnp.concatenate([feat_left, feat_right], axis=1)


def nearest_upsample(x_nhw, h, w):
    """F.interpolate(mode='nearest') on [N, Hs, Ws] -> [N, h, w] (index glue)."""
    N, Hs, Ws = x_nhw.shape
    ri = (jnp.arange(h) * Hs) // h
    ci = (jnp.arange(w) * Ws) // w
    return x_nhw[:, ri][:, :, ci]


# ----------------------------------------------------------------------------
# Pure-JAX reference (for correctness validation)
# ----------------------------------------------------------------------------
def ref_head(x_nchw, params):
    relu_after = [False, True, False, True, False]
    hcur = x_nchw
    for (wgt, b), r in zip(params, relu_after):
        hcur = jax.lax.conv_general_dilated(
            hcur, wgt, window_strides=(1, 1), padding=((1, 1), (1, 1)),
            dimension_numbers=("NCHW", "OIHW", "NCHW"))
        hcur = hcur + b.reshape(1, -1, 1, 1)
        if r:
            hcur = jnp.maximum(hcur, 0.0)
    return hcur[:, 0]                                    # (N, Hs, Ws)


def _assert_close(x, y, name, rtol=1e-3, atol=1e-3):
    diff = jnp.abs(x - y)
    tol = atol + rtol * jnp.abs(y)
    assert bool(jnp.all(diff <= tol)), (
        f"{name}: max abs err {float(jnp.max(diff)):.3e}")


# ----------------------------------------------------------------------------
if __name__ == "__main__":
    key = jax.random.PRNGKey(0)
    bs, c, Hs, Ws = 2, 128, 8, 8           # low-res (sampled) feature grid
    h, w = 16, 16                          # full input resolution

    k_feat, k1, k2, k3 = jax.random.split(key, 4)

    # Synthetic transformer output: (W', 2*bs*Hs, c).
    feat = jax.random.normal(k_feat, (Ws, 2 * bs * Hs, c), jnp.float32)

    feat_cat_nchw = split_and_reshape_feat(feat, bs)       # (bs, 256, Hs, Ws)
    x_nhwc = jnp.transpose(feat_cat_nchw, (0, 2, 3, 1))    # NHWC for the kernel

    p1 = make_head_params(k1)   # -> logla head
    p2 = make_head_params(k2)   # -> logalpha head
    p3 = make_head_params(k3)   # -> logbeta head
    packed = pack_fused_head_params([p1, p2, p3])          # packed once (hoisted)

    ev_low = fused_uncertainty_heads(x_nhwc, packed)       # (bs, Hs*Ws, 3)
    ev_low = ev_low.reshape(bs, Hs, Ws, 3)
    # softplus commutes with nearest replication, so upsampling the already
    # evidence-transformed maps == F.interpolate(nearest) followed by evidence.
    la = nearest_upsample(ev_low[..., 0], h, w)
    alpha = nearest_upsample(ev_low[..., 1], h, w)
    beta = nearest_upsample(ev_low[..., 2], h, w)
    jax.block_until_ready((la, alpha, beta))

    # ---- pure-JAX reference (same math, original torch op order) ----
    ref_la = _softplus(nearest_upsample(ref_head(feat_cat_nchw, p1), h, w))
    ref_alpha = _softplus(nearest_upsample(ref_head(feat_cat_nchw, p2), h, w)) + 1.0
    ref_beta = _softplus(nearest_upsample(ref_head(feat_cat_nchw, p3), h, w))

    assert la.shape == (bs, h, w)
    assert alpha.shape == (bs, h, w)
    assert beta.shape == (bs, h, w)
    # softplus >= 0 exactly, so alpha >= 1.  (Strict '>' can fail in f32 when
    # softplus underflows to 0 for very negative logits -- that is the correct
    # module behaviour, not a kernel error.)
    assert bool(jnp.all(alpha >= 1.0))
    assert bool(jnp.all(la >= 0.0)) and bool(jnp.all(beta >= 0.0))
    _assert_close(la, ref_la, "la")
    _assert_close(alpha, ref_alpha, "alpha")
    _assert_close(beta, ref_beta, "beta")

    print("KERNEL_OK")
</pallas_src>

<mosaic_0001>
module attributes {stable_mosaic.version = 11 : i64} {
  func.func @_fused_heads_kernel(%arg0: i32, %arg1: memref<1x8x8x256xf32, #tpu.memory_space<vmem>>, %arg2: memref<2304x96xf32, #tpu.memory_space<vmem>>, %arg3: memref<1x96xf32, #tpu.memory_space<vmem>>, %arg4: memref<864x96xf32, #tpu.memory_space<vmem>>, %arg5: memref<1x96xf32, #tpu.memory_space<vmem>>, %arg6: memref<864x96xf32, #tpu.memory_space<vmem>>, %arg7: memref<1x96xf32, #tpu.memory_space<vmem>>, %arg8: memref<864x96xf32, #tpu.memory_space<vmem>>, %arg9: memref<1x96xf32, #tpu.memory_space<vmem>>, %arg10: memref<864x3xf32, #tpu.memory_space<vmem>>, %arg11: memref<1x3xf32, #tpu.memory_space<vmem>>, %arg12: memref<1x64x3xf32, #tpu.memory_space<vmem>>, %arg13: memref<10x10x256xf32, #tpu.memory_space<vmem>>, %arg14: memref<10x10x96xf32, #tpu.memory_space<vmem>>) attributes {dimension_semantics = [#tpu.dimension_semantics<parallel>], iteration_bounds = array<i64: 2>, scalar_prefetch = 0 : i64, scratch_operands = 2 : i64, tpu.core_type = #tpu.core_type<tc>, window_params = [{transform_indices = @transform_0, window_bounds = array<i64: 1, 8, 8, 256>}, {pipeline_mode = #tpu.pipeline_mode<synchronous>, transform_indices = @transform_1, window_bounds = array<i64: 2304, 96>}, {pipeline_mode = #tpu.pipeline_mode<synchronous>, transform_indices = @transform_2, window_bounds = array<i64: 1, 96>}, {pipeline_mode = #tpu.pipeline_mode<synchronous>, transform_indices = @transform_3, window_bounds = array<i64: 864, 96>}, {pipeline_mode = #tpu.pipeline_mode<synchronous>, transform_indices = @transform_4, window_bounds = array<i64: 1, 96>}, {pipeline_mode = #tpu.pipeline_mode<synchronous>, transform_indices = @transform_5, window_bounds = array<i64: 864, 96>}, {pipeline_mode = #tpu.pipeline_mode<synchronous>, transform_indices = @transform_6, window_bounds = array<i64: 1, 96>}, {pipeline_mode = #tpu.pipeline_mode<synchronous>, transform_indices = @transform_7, window_bounds = array<i64: 864, 96>}, {pipeline_mode = #tpu.pipeline_mode<synchronous>, transform_indices = @transform_8, window_bounds = array<i64: 1, 96>}, {pipeline_mode = #tpu.pipeline_mode<synchronous>, transform_indices = @transform_9, window_bounds = array<i64: 864, 3>}, {pipeline_mode = #tpu.pipeline_mode<synchronous>, transform_indices = @transform_10, window_bounds = array<i64: 1, 3>}, {transform_indices = @transform_11, window_bounds = array<i64: 1, 64, 3>}]} {
    %cst = arith.constant 0.000000e+00 : f32
    %0 = vector.broadcast %cst : f32 to vector<10x10x256xf32>
    %c0 = arith.constant 0 : index
    %c0_0 = arith.constant 0 : index
    %c0_1 = arith.constant 0 : index
    %1 = vector.load %arg13[%c0, %c0_0, %c0_1] : memref<10x10x256xf32, #tpu.memory_space<vmem>>, vector<10x10x256xf32>
    tpu.vector_store %arg13[%c0, %c0_0, %c0_1], %0 {strides = array<i32>} : memref<10x10x256xf32, #tpu.memory_space<vmem>>, vector<10x10x256xf32>,
    %cst_2 = arith.constant 0.000000e+00 : f32
    %2 = vector.broadcast %cst_2 : f32 to vector<10x10x96xf32>
    %c0_3 = arith.constant 0 : index
    %c0_4 = arith.constant 0 : index
    %c0_5 = arith.constant 0 : index
    %3 = vector.load %arg14[%c0_3, %c0_4, %c0_5] : memref<10x10x96xf32, #tpu.memory_space<vmem>>, vector<10x10x96xf32>
    tpu.vector_store %arg14[%c0_3, %c0_4, %c0_5], %2 {strides = array<i32>} : memref<10x10x96xf32, #tpu.memory_space<vmem>>, vector<10x10x96xf32>,
    %c0_6 = arith.constant 0 : index
    %c0_7 = arith.constant 0 : index
    %c0_8 = arith.constant 0 : index
    %c0_9 = arith.constant 0 : index
    %4 = vector.load %arg1[%c0_6, %c0_7, %c0_8, %c0_9] : memref<1x8x8x256xf32, #tpu.memory_space<vmem>>, vector<1x8x8x256xf32>
    %5 = vector.shape_cast %4 : vector<1x8x8x256xf32> to vector<8x8x256xf32>
    %c1 = arith.constant 1 : index
    %c1_10 = arith.constant 1 : index
    %c0_11 = arith.constant 0 : index
    %6 = vector.load %arg13[%c1, %c1_10, %c0_11] : memref<10x10x256xf32, #tpu.memory_space<vmem>>, vector<8x8x256xf32>
    tpu.vector_store %arg13[%c1, %c1_10, %c0_11], %5 {strides = array<i32>} : memref<10x10x256xf32, #tpu.memory_space<vmem>>, vector<8x8x256xf32>,
    %c0_12 = arith.constant 0 : index
    %c0_13 = arith.constant 0 : index
    %c0_14 = arith.constant 0 : index
    %7 = vector.load %arg13[%c0_12, %c0_13, %c0_14] : memref<10x10x256xf32, #tpu.memory_space<vmem>>, vector<8x8x256xf32>
    %8 = vector.shape_cast %7 : vector<8x8x256xf32> to vector<64x256xf32>
    %c0_15 = arith.constant 0 : index
    %c1_16 = arith.constant 1 : index
    %c0_17 = arith.constant 0 : index
    %9 = vector.load %arg13[%c0_15, %c1_16, %c0_17] : memref<10x10x256xf32, #tpu.memory_space<vmem>>, vector<8x8x256xf32>
    %10 = vector.shape_cast %9 : vector<8x8x256xf32> to vector<64x256xf32>
    %c0_18 = arith.constant 0 : index
    %c2 = arith.constant 2 : index
    %c0_19 = arith.constant 0 : index
    %11 = vector.load %arg13[%c0_18, %c2, %c0_19] : memref<10x10x256xf32, #tpu.memory_space<vmem>>, vector<8x8x256xf32>
    %12 = vector.shape_cast %11 : vector<8x8x256xf32> to vector<64x256xf32>
    %c1_20 = arith.constant 1 : index
    %c0_21 = arith.constant 0 : index
    %c0_22 = arith.constant 0 : index
    %13 = vector.load %arg13[%c1_20, %c0_21, %c0_22] : memref<10x10x256xf32, #tpu.memory_space<vmem>>, vector<8x8x256xf32>
    %14 = vector.shape_cast %13 : vector<8x8x256xf32> to vector<64x256xf32>
    %c1_23 = arith.constant 1 : index
    %c1_24 = arith.constant 1 : index
    %c0_25 = arith.constant 0 : index
    %15 = vector.load %arg13[%c1_23, %c1_24, %c0_25] : memref<10x10x256xf32, #tpu.memory_space<vmem>>, vector<8x8x256xf32>
    %16 = vector.shape_cast %15 : vector<8x8x256xf32> to vector<64x256xf32>
    %c1_26 = arith.constant 1 : index
    %c2_27 = arith.constant 2 : index
    %c0_28 = arith.constant 0 : index
    %17 = vector.load %arg13[%c1_26, %c2_27, %c0_28] : memref<10x10x256xf32, #tpu.memory_space<vmem>>, vector<8x8x256xf32>
    %18 = vector.shape_cast %17 : vector<8x8x256xf32> to vector<64x256xf32>
    %c2_29 = arith.constant 2 : index
    %c0_30 = arith.constant 0 : index
    %c0_31 = arith.constant 0 : index
    %19 = vector.load %arg13[%c2_29, %c0_30, %c0_31] : memref<10x10x256xf32, #tpu.memory_space<vmem>>, vector<8x8x256xf32>
    %20 = vector.shape_cast %19 : vector<8x8x256xf32> to vector<64x256xf32>
    %c2_32 = arith.constant 2 : index
    %c1_33 = arith.constant 1 : index
    %c0_34 = arith.constant 0 : index
    %21 = vector.load %arg13[%c2_32, %c1_33, %c0_34] : memref<10x10x256xf32, #tpu.memory_space<vmem>>, vector<8x8x256xf32>
    %22 = vector.shape_cast %21 : vector<8x8x256xf32> to vector<64x256xf32>
    %c2_35 = arith.constant 2 : index
    %c2_36 = arith.constant 2 : index
    %c0_37 = arith.constant 0 : index
    %23 = vector.load %arg13[%c2_35, %c2_36, %c0_37] : memref<10x10x256xf32, #tpu.memory_space<vmem>>, vector<8x8x256xf32>
    %24 = vector.shape_cast %23 : vector<8x8x256xf32> to vector<64x256xf32>
    %25 = tpu.concatenate %8, %10, %12, %14, %16, %18, %20, %22, %24 in 1 : vector<64x256xf32>, vector<64x256xf32>, vector<64x256xf32>, vector<64x256xf32>, vector<64x256xf32>, vector<64x256xf32>, vector<64x256xf32>, vector<64x256xf32>, vector<64x256xf32> -> vector<64x2304xf32>
    %c0_38 = arith.constant 0 : index
    %c0_39 = arith.constant 0 : index
    %26 = vector.load %arg2[%c0_38, %c0_39] : memref<2304x96xf32, #tpu.memory_space<vmem>>, vector<2304x96xf32>
    %cst_40 = arith.constant dense<0.000000e+00> : vector<64x96xf32>
    %27 = tpu.matmul %25, %26, %cst_40 {dimension_numbers = #tpu.dot_dimension_numbers<[1], [0], [0], [1], [0, 0, 1, 1], [], []>} : vector<64x2304xf32>, vector<2304x96xf32>, vector<64x96xf32> -> vector<64x96xf32>
    %c0_41 = arith.constant 0 : index
    %c0_42 = arith.constant 0 : index
    %28 = vector.load %arg3[%c0_41, %c0_42] : memref<1x96xf32, #tpu.memory_space<vmem>>, vector<1x96xf32>
    %29 = vector.broadcast %28 : vector<1x96xf32> to vector<64x96xf32>
    %30 = arith.addf %27, %29 : vector<64x96xf32>
    %31 = vector.shape_cast %30 : vector<64x96xf32> to vector<8x8x96xf32>
    %c1_43 = arith.constant 1 : index
    %c1_44 = arith.constant 1 : index
    %c0_45 = arith.constant 0 : index
    %32 = vector.load %arg14[%c1_43, %c1_44, %c0_45] : memref<10x10x96xf32, #tpu.memory_space<vmem>>, vector<8x8x96xf32>
    tpu.vector_store %arg14[%c1_43, %c1_44, %c0_45], %31 {strides = array<i32>} : memref<10x10x96xf32, #tpu.memory_space<vmem>>, vector<8x8x96xf32>,
    %c0_46 = arith.constant 0 : index
    %c0_47 = arith.constant 0 : index
    %c0_48 = arith.constant 0 : index
    %33 = vector.load %arg14[%c0_46, %c0_47, %c0_48] : memref<10x10x96xf32, #tpu.memory_space<vmem>>, vector<8x8x96xf32>
    %34 = vector.shape_cast %33 : vector<8x8x96xf32> to vector<64x96xf32>
    %c0_49 = arith.constant 0 : index
    %c1_50 = arith.constant 1 : index
    %c0_51 = arith.constant 0 : index
    %35 = vector.load %arg14[%c0_49, %c1_50, %c0_51] : memref<10x10x96xf32, #tpu.memory_space<vmem>>, vector<8x8x96xf32>
    %36 = vector.shape_cast %35 : vector<8x8x96xf32> to vector<64x96xf32>
    %c0_52 = arith.constant 0 : index
    %c2_53 = arith.constant 2 : index
    %c0_54 = arith.constant 0 : index
    %37 = vector.load %arg14[%c0_52, %c2_53, %c0_54] : memref<10x10x96xf32, #tpu.memory_space<vmem>>, vector<8x8x96xf32>
    %38 = vector.shape_cast %37 : vector<8x8x96xf32> to vector<64x96xf32>
    %c1_55 = arith.constant 1 : index
    %c0_56 = arith.constant 0 : index
    %c0_57 = arith.constant 0 : index
    %39 = vector.load %arg14[%c1_55, %c0_56, %c0_57] : memref<10x10x96xf32, #tpu.memory_space<vmem>>, vector<8x8x96xf32>
    %40 = vector.shape_cast %39 : vector<8x8x96xf32> to vector<64x96xf32>
    %c1_58 = arith.constant 1 : index
    %c1_59 = arith.constant 1 : index
    %c0_60 = arith.constant 0 : index
    %41 = vector.load %arg14[%c1_58, %c1_59, %c0_60] : memref<10x10x96xf32, #tpu.memory_space<vmem>>, vector<8x8x96xf32>
    %42 = vector.shape_cast %41 : vector<8x8x96xf32> to vector<64x96xf32>
    %c1_61 = arith.constant 1 : index
    %c2_62 = arith.constant 2 : index
    %c0_63 = arith.constant 0 : index
    %43 = vector.load %arg14[%c1_61, %c2_62, %c0_63] : memref<10x10x96xf32, #tpu.memory_space<vmem>>, vector<8x8x96xf32>
    %44 = vector.shape_cast %43 : vector<8x8x96xf32> to vector<64x96xf32>
    %c2_64 = arith.constant 2 : index
    %c0_65 = arith.constant 0 : index
    %c0_66 = arith.constant 0 : index
    %45 = vector.load %arg14[%c2_64, %c0_65, %c0_66] : memref<10x10x96xf32, #tpu.memory_space<vmem>>, vector<8x8x96xf32>
    %46 = vector.shape_cast %45 : vector<8x8x96xf32> to vector<64x96xf32>
    %c2_67 = arith.constant 2 : index
    %c1_68 = arith.constant 1 : index
    %c0_69 = arith.constant 0 : index
    %47 = vector.load %arg14[%c2_67, %c1_68, %c0_69] : memref<10x10x96xf32, #tpu.memory_space<vmem>>, vector<8x8x96xf32>
    %48 = vector.shape_cast %47 : vector<8x8x96xf32> to vector<64x96xf32>
    %c2_70 = arith.constant 2 : index
    %c2_71 = arith.constant 2 : index
    %c0_72 = arith.constant 0 : index
    %49 = vector.load %arg14[%c2_70, %c2_71, %c0_72] : memref<10x10x96xf32, #tpu.memory_space<vmem>>, vector<8x8x96xf32>
    %50 = vector.shape_cast %49 : vector<8x8x96xf32> to vector<64x96xf32>
    %51 = tpu.concatenate %34, %36, %38, %40, %42, %44, %46, %48, %50 in 1 : vector<64x96xf32>, vector<64x96xf32>, vector<64x96xf32>, vector<64x96xf32>, vector<64x96xf32>, vector<64x96xf32>, vector<64x96xf32>, vector<64x96xf32>, vector<64x96xf32> -> vector<64x864xf32>
    %c0_73 = arith.constant 0 : index
    %c0_74 = arith.constant 0 : index
    %52 = vector.load %arg4[%c0_73, %c0_74] : memref<864x96xf32, #tpu.memory_space<vmem>>, vector<864x96xf32>
    %cst_75 = arith.constant dense<0.000000e+00> : vector<64x96xf32>
    %53 = tpu.matmul %51, %52, %cst_75 {dimension_numbers = #tpu.dot_dimension_numbers<[1], [0], [0], [1], [0, 0, 1, 1], [], []>} : vector<64x864xf32>, vector<864x96xf32>, vector<64x96xf32> -> vector<64x96xf32>
    %c0_76 = arith.constant 0 : index
    %c0_77 = arith.constant 0 : index
    %54 = vector.load %arg5[%c0_76, %c0_77] : memref<1x96xf32, #tpu.memory_space<vmem>>, vector<1x96xf32>
    %55 = vector.broadcast %54 : vector<1x96xf32> to vector<64x96xf32>
    %56 = arith.addf %53, %55 : vector<64x96xf32>
    %cst_78 = arith.constant 0.000000e+00 : f32
    %57 = vector.broadcast %cst_78 : f32 to vector<64x96xf32>
    %58 = arith.maximumf %56, %57 : vector<64x96xf32>
    %59 = vector.shape_cast %58 : vector<64x96xf32> to vector<8x8x96xf32>
    %c1_79 = arith.constant 1 : index
    %c1_80 = arith.constant 1 : index
    %c0_81 = arith.constant 0 : index
    %60 = vector.load %arg14[%c1_79, %c1_80, %c0_81] : memref<10x10x96xf32, #tpu.memory_space<vmem>>, vector<8x8x96xf32>
    tpu.vector_store %arg14[%c1_79, %c1_80, %c0_81], %59 {strides = array<i32>} : memref<10x10x96xf32, #tpu.memory_space<vmem>>, vector<8x8x96xf32>,
    %c0_82 = arith.constant 0 : index
    %c0_83 = arith.constant 0 : index
    %c0_84 = arith.constant 0 : index
    %61 = vector.load %arg14[%c0_82, %c0_83, %c0_84] : memref<10x10x96xf32, #tpu.memory_space<vmem>>, vector<8x8x96xf32>
    %62 = vector.shape_cast %61 : vector<8x8x96xf32> to vector<64x96xf32>
    %c0_85 = arith.constant 0 : index
    %c1_86 = arith.constant 1 : index
    %c0_87 = arith.constant 0 : index
    %63 = vector.load %arg14[%c0_85, %c1_86, %c0_87] : memref<10x10x96xf32, #tpu.memory_space<vmem>>, vector<8x8x96xf32>
    %64 = vector.shape_cast %63 : vector<8x8x96xf32> to vector<64x96xf32>
    %c0_88 = arith.constant 0 : index
    %c2_89 = arith.constant 2 : index
    %c0_90 = arith.constant 0 : index
    %65 = vector.load %arg14[%c0_88, %c2_89, %c0_90] : memref<10x10x96xf32, #tpu.memory_space<vmem>>, vector<8x8x96xf32>
    %66 = vector.shape_cast %65 : vector<8x8x96xf32> to vector<64x96xf32>
    %c1_91 = arith.constant 1 : index
    %c0_92 = arith.constant 0 : index
    %c0_93 = arith.constant 0 : index
    %67 = vector.load %arg14[%c1_91, %c0_92, %c0_93] : memref<10x10x96xf32, #tpu.memory_space<vmem>>, vector<8x8x96xf32>
    %68 = vector.shape_cast %67 : vector<8x8x96xf32> to vector<64x96xf32>
    %c1_94 = arith.constant 1 : index
    %c1_95 = arith.constant 1 : index
    %c0_96 = arith.constant 0 : index
    %69 = vector.load %arg14[%c1_94, %c1_95, %c0_96] : memref<10x10x96xf32, #tpu.memory_space<vmem>>, vector<8x8x96xf32>
    %70 = vector.shape_cast %69 : vector<8x8x96xf32> to vector<64x96xf32>
    %c1_97 = arith.constant 1 : index
    %c2_98 = arith.constant 2 : index
    %c0_99 = arith.constant 0 : index
    %71 = vector.load %arg14[%c1_97, %c2_98, %c0_99] : memref<10x10x96xf32, #tpu.memory_space<vmem>>, vector<8x8x96xf32>
    %72 = vector.shape_cast %71 : vector<8x8x96xf32> to vector<64x96xf32>
    %c2_100 = arith.constant 2 : index
    %c0_101 = arith.constant 0 : index
    %c0_102 = arith.constant 0 : index
    %73 = vector.load %arg14[%c2_100, %c0_101, %c0_102] : memref<10x10x96xf32, #tpu.memory_space<vmem>>, vector<8x8x96xf32>
    %74 = vector.shape_cast %73 : vector<8x8x96xf32> to vector<64x96xf32>
    %c2_103 = arith.constant 2 : index
    %c1_104 = arith.constant 1 : index
    %c0_105 = arith.constant 0 : index
    %75 = vector.load %arg14[%c2_103, %c1_104, %c0_105] : memref<10x10x96xf32, #tpu.memory_space<vmem>>, vector<8x8x96xf32>
    %76 = vector.shape_cast %75 : vector<8x8x96xf32> to vector<64x96xf32>
    %c2_106 = arith.constant 2 : index
    %c2_107 = arith.constant 2 : index
    %c0_108 = arith.constant 0 : index
    %77 = vector.load %arg14[%c2_106, %c2_107, %c0_108] : memref<10x10x96xf32, #tpu.memory_space<vmem>>, vector<8x8x96xf32>
    %78 = vector.shape_cast %77 : vector<8x8x96xf32> to vector<64x96xf32>
    %79 = tpu.concatenate %62, %64, %66, %68, %70, %72, %74, %76, %78 in 1 : vector<64x96xf32>, vector<64x96xf32>, vector<64x96xf32>, vector<64x96xf32>, vector<64x96xf32>, vector<64x96xf32>, vector<64x96xf32>, vector<64x96xf32>, vector<64x96xf32> -> vector<64x864xf32>
    %c0_109 = arith.constant 0 : index
    %c0_110 = arith.constant 0 : index
    %80 = vector.load %arg6[%c0_109, %c0_110] : memref<864x96xf32, #tpu.memory_space<vmem>>, vector<864x96xf32>
    %cst_111 = arith.constant dense<0.000000e+00> : vector<64x96xf32>
    %81 = tpu.matmul %79, %80, %cst_111 {dimension_numbers = #tpu.dot_dimension_numbers<[1], [0], [0], [1], [0, 0, 1, 1], [], []>} : vector<64x864xf32>, vector<864x96xf32>, vector<64x96xf32> -> vector<64x96xf32>
    %c0_112 = arith.constant 0 : index
    %c0_113 = arith.constant 0 : index
    %82 = vector.load %arg7[%c0_112, %c0_113] : memref<1x96xf32, #tpu.memory_space<vmem>>, vector<1x96xf32>
    %83 = vector.broadcast %82 : vector<1x96xf32> to vector<64x96xf32>
    %84 = arith.addf %81, %83 : vector<64x96xf32>
    %85 = vector.shape_cast %84 : vector<64x96xf32> to vector<8x8x96xf32>
    %c1_114 = arith.constant 1 : index
    %c1_115 = arith.constant 1 : index
    %c0_116 = arith.constant 0 : index
    %86 = vector.load %arg14[%c1_114, %c1_115, %c0_116] : memref<10x10x96xf32, #tpu.memory_space<vmem>>, vector<8x8x96xf32>
    tpu.vector_store %arg14[%c1_114, %c1_115, %c0_116], %85 {strides = array<i32>} : memref<10x10x96xf32, #tpu.memory_space<vmem>>, vector<8x8x96xf32>,
    %c0_117 = arith.constant 0 : index
    %c0_118 = arith.constant 0 : index
    %c0_119 = arith.constant 0 : index
    %87 = vector.load %arg14[%c0_117, %c0_118, %c0_119] : memref<10x10x96xf32, #tpu.memory_space<vmem>>, vector<8x8x96xf32>
    %88 = vector.shape_cast %87 : vector<8x8x96xf32> to vector<64x96xf32>
    %c0_120 = arith.constant 0 : index
    %c1_121 = arith.constant 1 : index
    %c0_122 = arith.constant 0 : index
    %89 = vector.load %arg14[%c0_120, %c1_121, %c0_122] : memref<10x10x96xf32, #tpu.memory_space<vmem>>, vector<8x8x96xf32>
    %90 = vector.shape_cast %89 : vector<8x8x96xf32> to vector<64x96xf32>
    %c0_123 = arith.constant 0 : index
    %c2_124 = arith.constant 2 : index
    %c0_125 = arith.constant 0 : index
    %91 = vector.load %arg14[%c0_123, %c2_124, %c0_125] : memref<10x10x96xf32, #tpu.memory_space<vmem>>, vector<8x8x96xf32>
    %92 = vector.shape_cast %91 : vector<8x8x96xf32> to vector<64x96xf32>
    %c1_126 = arith.constant 1 : index
    %c0_127 = arith.constant 0 : index
    %c0_128 = arith.constant 0 : index
    %93 = vector.load %arg14[%c1_126, %c0_127, %c0_128] : memref<10x10x96xf32, #tpu.memory_space<vmem>>, vector<8x8x96xf32>
    %94 = vector.shape_cast %93 : vector<8x8x96xf32> to vector<64x96xf32>
    %c1_129 = arith.constant 1 : index
    %c1_130 = arith.constant 1 : index
    %c0_131 = arith.constant 0 : index
    %95 = vector.load %arg14[%c1_129, %c1_130, %c0_131] : memref<10x10x96xf32, #tpu.memory_space<vmem>>, vector<8x8x96xf32>
    %96 = vector.shape_cast %95 : vector<8x8x96xf32> to vector<64x96xf32>
    %c1_132 = arith.constant 1 : index
    %c2_133 = arith.constant 2 : index
    %c0_134 = arith.constant 0 : index
    %97 = vector.load %arg14[%c1_132, %c2_133, %c0_134] : memref<10x10x96xf32, #tpu.memory_space<vmem>>, vector<8x8x96xf32>
    %98 = vector.shape_cast %97 : vector<8x8x96xf32> to vector<64x96xf32>
    %c2_135 = arith.constant 2 : index
    %c0_136 = arith.constant 0 : index
    %c0_137 = arith.constant 0 : index
    %99 = vector.load %arg14[%c2_135, %c0_136, %c0_137] : memref<10x10x96xf32, #tpu.memory_space<vmem>>, vector<8x8x96xf32>
    %100 = vector.shape_cast %99 : vector<8x8x96xf32> to vector<64x96xf32>
    %c2_138 = arith.constant 2 : index
    %c1_139 = arith.constant 1 : index
    %c0_140 = arith.constant 0 : index
    %101 = vector.load %arg14[%c2_138, %c1_139, %c0_140] : memref<10x10x96xf32, #tpu.memory_space<vmem>>, vector<8x8x96xf32>
    %102 = vector.shape_cast %101 : vector<8x8x96xf32> to vector<64x96xf32>
    %c2_141 = arith.constant 2 : index
    %c2_142 = arith.constant 2 : index
    %c0_143 = arith.constant 0 : index
    %103 = vector.load %arg14[%c2_141, %c2_142, %c0_143] : memref<10x10x96xf32, #tpu.memory_space<vmem>>, vector<8x8x96xf32>
    %104 = vector.shape_cast %103 : vector<8x8x96xf32> to vector<64x96xf32>
    %105 = tpu.concatenate %88, %90, %92, %94, %96, %98, %100, %102, %104 in 1 : vector<64x96xf32>, vector<64x96xf32>, vector<64x96xf32>, vector<64x96xf32>, vector<64x96xf32>, vector<64x96xf32>, vector<64x96xf32>, vector<64x96xf32>, vector<64x96xf32> -> vector<64x864xf32>
    %c0_144 = arith.constant 0 : index
    %c0_145 = arith.constant 0 : index
    %106 = vector.load %arg8[%c0_144, %c0_145] : memref<864x96xf32, #tpu.memory_space<vmem>>, vector<864x96xf32>
    %cst_146 = arith.constant dense<0.000000e+00> : vector<64x96xf32>
    %107 = tpu.matmul %105, %106, %cst_146 {dimension_numbers = #tpu.dot_dimension_numbers<[1], [0], [0], [1], [0, 0, 1, 1], [], []>} : vector<64x864xf32>, vector<864x96xf32>, vector<64x96xf32> -> vector<64x96xf32>
    %c0_147 = arith.constant 0 : index
    %c0_148 = arith.constant 0 : index
    %108 = vector.load %arg9[%c0_147, %c0_148] : memref<1x96xf32, #tpu.memory_space<vmem>>, vector<1x96xf32>
    %109 = vector.broadcast %108 : vector<1x96xf32> to vector<64x96xf32>
    %110 = arith.addf %107, %109 : vector<64x96xf32>
    %cst_149 = arith.constant 0.000000e+00 : f32
    %111 = vector.broadcast %cst_149 : f32 to vector<64x96xf32>
    %112 = arith.maximumf %110, %111 : vector<64x96xf32>
    %113 = vector.shape_cast %112 : vector<64x96xf32> to vector<8x8x96xf32>
    %c1_150 = arith.constant 1 : index
    %c1_151 = arith.constant 1 : index
    %c0_152 = arith.constant 0 : index
    %114 = vector.load %arg14[%c1_150, %c1_151, %c0_152] : memref<10x10x96xf32, #tpu.memory_space<vmem>>, vector<8x8x96xf32>
    tpu.vector_store %arg14[%c1_150, %c1_151, %c0_152], %113 {strides = array<i32>} : memref<10x10x96xf32, #tpu.memory_space<vmem>>, vector<8x8x96xf32>,
    %c0_153 = arith.constant 0 : index
    %c0_154 = arith.constant 0 : index
    %c0_155 = arith.constant 0 : index
    %115 = vector.load %arg14[%c0_153, %c0_154, %c0_155] : memref<10x10x96xf32, #tpu.memory_space<vmem>>, vector<8x8x96xf32>
    %116 = vector.shape_cast %115 : vector<8x8x96xf32> to vector<64x96xf32>
    %c0_156 = arith.constant 0 : index
    %c1_157 = arith.constant 1 : index
    %c0_158 = arith.constant 0 : index
    %117 = vector.load %arg14[%c0_156, %c1_157, %c0_158] : memref<10x10x96xf32, #tpu.memory_space<vmem>>, vector<8x8x96xf32>
    %118 = vector.shape_cast %117 : vector<8x8x96xf32> to vector<64x96xf32>
    %c0_159 = arith.constant 0 : index
    %c2_160 = arith.constant 2 : index
    %c0_161 = arith.constant 0 : index
    %119 = vector.load %arg14[%c0_159, %c2_160, %c0_161] : memref<10x10x96xf32, #tpu.memory_space<vmem>>, vector<8x8x96xf32>
    %120 = vector.shape_cast %119 : vector<8x8x96xf32> to vector<64x96xf32>
    %c1_162 = arith.constant 1 : index
    %c0_163 = arith.constant 0 : index
    %c0_164 = arith.constant 0 : index
    %121 = vector.load %arg14[%c1_162, %c0_163, %c0_164] : memref<10x10x96xf32, #tpu.memory_space<vmem>>, vector<8x8x96xf32>
    %122 = vector.shape_cast %121 : vector<8x8x96xf32> to vector<64x96xf32>
    %c1_165 = arith.constant 1 : index
    %c1_166 = arith.constant 1 : index
    %c0_167 = arith.constant 0 : index
    %123 = vector.load %arg14[%c1_165, %c1_166, %c0_167] : memref<10x10x96xf32, #tpu.memory_space<vmem>>, vector<8x8x96xf32>
    %124 = vector.shape_cast %123 : vector<8x8x96xf32> to vector<64x96xf32>
    %c1_168 = arith.constant 1 : index
    %c2_169 = arith.constant 2 : index
    %c0_170 = arith.constant 0 : index
    %125 = vector.load %arg14[%c1_168, %c2_169, %c0_170] : memref<10x10x96xf32, #tpu.memory_space<vmem>>, vector<8x8x96xf32>
    %126 = vector.shape_cast %125 : vector<8x8x96xf32> to vector<64x96xf32>
    %c2_171 = arith.constant 2 : index
    %c0_172 = arith.constant 0 : index
    %c0_173 = arith.constant 0 : index
    %127 = vector.load %arg14[%c2_171, %c0_172, %c0_173] : memref<10x10x96xf32, #tpu.memory_space<vmem>>, vector<8x8x96xf32>
    %128 = vector.shape_cast %127 : vector<8x8x96xf32> to vector<64x96xf32>
    %c2_174 = arith.constant 2 : index
    %c1_175 = arith.constant 1 : index
    %c0_176 = arith.constant 0 : index
    %129 = vector.load %arg14[%c2_174, %c1_175, %c0_176] : memref<10x10x96xf32, #tpu.memory_space<vmem>>, vector<8x8x96xf32>
    %130 = vector.shape_cast %129 : vector<8x8x96xf32> to vector<64x96xf32>
    %c2_177 = arith.constant 2 : index
    %c2_178 = arith.constant 2 : index
    %c0_179 = arith.constant 0 : index
    %131 = vector.load %arg14[%c2_177, %c2_178, %c0_179] : memref<10x10x96xf32, #tpu.memory_space<vmem>>, vector<8x8x96xf32>
    %132 = vector.shape_cast %131 : vector<8x8x96xf32> to vector<64x96xf32>
    %133 = tpu.concatenate %116, %118, %120, %122, %124, %126, %128, %130, %132 in 1 : vector<64x96xf32>, vector<64x96xf32>, vector<64x96xf32>, vector<64x96xf32>, vector<64x96xf32>, vector<64x96xf32>, vector<64x96xf32>, vector<64x96xf32>, vector<64x96xf32> -> vector<64x864xf32>
    %c0_180 = arith.constant 0 : index
    %c0_181 = arith.constant 0 : index
    %134 = vector.load %arg10[%c0_180, %c0_181] : memref<864x3xf32, #tpu.memory_space<vmem>>, vector<864x3xf32>
    %cst_182 = arith.constant dense<0.000000e+00> : vector<64x3xf32>
    %135 = tpu.matmul %133, %134, %cst_182 {dimension_numbers = #tpu.dot_dimension_numbers<[1], [0], [0], [1], [0, 0, 1, 1], [], []>} : vector<64x864xf32>, vector<864x3xf32>, vector<64x3xf32> -> vector<64x3xf32>
    %c0_183 = arith.constant 0 : index
    %c0_184 = arith.constant 0 : index
    %136 = vector.load %arg11[%c0_183, %c0_184] : memref<1x3xf32, #tpu.memory_space<vmem>>, vector<1x3xf32>
    %137 = vector.broadcast %136 : vector<1x3xf32> to vector<64x3xf32>
    %138 = arith.addf %135, %137 : vector<64x3xf32>
    %cst_185 = arith.constant 0.000000e+00 : f32
    %139 = vector.broadcast %cst_185 : f32 to vector<64x3xf32>
    %140 = arith.maximumf %138, %139 : vector<64x3xf32>
    %141 = math.absf %138 : vector<64x3xf32>
    %cst_186 = arith.constant 0.000000e+00 : f32
    %142 = vector.broadcast %cst_186 : f32 to vector<64x3xf32>
    %143 = arith.subf %142, %141 : vector<64x3xf32>
    %144 = math.exp %143 : vector<64x3xf32>
    %cst_187 = arith.constant 1.000000e+00 : f32
    %145 = vector.broadcast %cst_187 : f32 to vector<64x3xf32>
    %146 = arith.addf %145, %144 : vector<64x3xf32>
    %147 = math.log %146 : vector<64x3xf32>
    %148 = arith.addf %140, %147 : vector<64x3xf32>
    %149 = tpu.iota {dimensions = array<i32: 1>} : vector<64x3xi32>
    %c1_i32 = arith.constant 1 : i32
    %150 = vector.broadcast %c1_i32 : i32 to vector<64x3xi32>
    %151 = arith.cmpi eq, %149, %150 : vector<64x3xi32>
    %cst_188 = arith.constant 1.000000e+00 : f32
    %152 = vector.broadcast %cst_188 : f32 to vector<64x3xf32>
    %153 = arith.addf %148, %152 : vector<64x3xf32>
    %154 = arith.select %151, %153, %148 : vector<64x3xi1>, vector<64x3xf32>
    %155 = vector.shape_cast %154 : vector<64x3xf32> to vector<1x64x3xf32>
    %c0_189 = arith.constant 0 : index
    %c0_190 = arith.constant 0 : index
    %c0_191 = arith.constant 0 : index
    %156 = vector.load %arg12[%c0_189, %c0_190, %c0_191] : memref<1x64x3xf32, #tpu.memory_space<vmem>>, vector<1x64x3xf32>
    tpu.vector_store %arg12[%c0_189, %c0_190, %c0_191], %155 {strides = array<i32>} : memref<1x64x3xf32, #tpu.memory_space<vmem>>, vector<1x64x3xf32>,
    return
  }
  func.func @transform_0(%arg0: i32) -> (i32, i32, i32, i32) {
    %c0_i32 = arith.constant 0 : i32
    %c0_i32_0 = arith.constant 0 : i32
    %c0_i32_1 = arith.constant 0 : i32
    %c0_i32_2 = arith.constant 0 : i32
    return %arg0, %c0_i32, %c0_i32_0, %c0_i32_1 : i32, i32, i32, i32
  }
  func.func @transform_1(%arg0: i32) -> (i32, i32) {
    %c0_i32 = arith.constant 0 : i32
    %c0_i32_0 = arith.constant 0 : i32
    %c0_i32_1 = arith.constant 0 : i32
    return %c0_i32, %c0_i32_0 : i32, i32
  }
  func.func @transform_2(%arg0: i32) -> (i32, i32) {
    %c0_i32 = arith.constant 0 : i32
    %c0_i32_0 = arith.constant 0 : i32
    %c0_i32_1 = arith.constant 0 : i32
    return %c0_i32, %c0_i32_0 : i32, i32
  }
  func.func @transform_3(%arg0: i32) -> (i32, i32) {
    %c0_i32 = arith.constant 0 : i32
    %c0_i32_0 = arith.constant 0 : i32
    %c0_i32_1 = arith.constant 0 : i32
    return %c0_i32, %c0_i32_0 : i32, i32
  }
  func.func @transform_4(%arg0: i32) -> (i32, i32) {
    %c0_i32 = arith.constant 0 : i32
    %c0_i32_0 = arith.constant 0 : i32
    %c0_i32_1 = arith.constant 0 : i32
    return %c0_i32, %c0_i32_0 : i32, i32
  }
  func.func @transform_5(%arg0: i32) -> (i32, i32) {
    %c0_i32 = arith.constant 0 : i32
    %c0_i32_0 = arith.constant 0 : i32
    %c0_i32_1 = arith.constant 0 : i32
    return %c0_i32, %c0_i32_0 : i32, i32
  }
  func.func @transform_6(%arg0: i32) -> (i32, i32) {
    %c0_i32 = arith.constant 0 : i32
    %c0_i32_0 = arith.constant 0 : i32
    %c0_i32_1 = arith.constant 0 : i32
    return %c0_i32, %c0_i32_0 : i32, i32
  }
  func.func @transform_7(%arg0: i32) -> (i32, i32) {
    %c0_i32 = arith.constant 0 : i32
    %c0_i32_0 = arith.constant 0 : i32
    %c0_i32_1 = arith.constant 0 : i32
    return %c0_i32, %c0_i32_0 : i32, i32
  }
  func.func @transform_8(%arg0: i32) -> (i32, i32) {
    %c0_i32 = arith.constant 0 : i32
    %c0_i32_0 = arith.constant 0 : i32
    %c0_i32_1 = arith.constant 0 : i32
    return %c0_i32, %c0_i32_0 : i32, i32
  }
  func.func @transform_9(%arg0: i32) -> (i32, i32) {
    %c0_i32 = arith.constant 0 : i32
    %c0_i32_0 = arith.constant 0 : i32
    %c0_i32_1 = arith.constant 0 : i32
    return %c0_i32, %c0_i32_0 : i32, i32
  }
  func.func @transform_10(%arg0: i32) -> (i32, i32) {
    %c0_i32 = arith.constant 0 : i32
    %c0_i32_0 = arith.constant 0 : i32
    %c0_i32_1 = arith.constant 0 : i32
    return %c0_i32, %c0_i32_0 : i32, i32
  }
  func.func @transform_11(%arg0: i32) -> (i32, i32, i32) {
    %c0_i32 = arith.constant 0 : i32
    %c0_i32_0 = arith.constant 0 : i32
    %c0_i32_1 = arith.constant 0 : i32
    return %arg0, %c0_i32, %c0_i32_0 : i32, i32, i32
  }
}

</mosaic_0001>

<bundles_post_ra>
// kernel: tpu_custom_call.1
= control target key start
LH: loop header
LB: loop body
LE: loop exit
PB: predicated region body
PF: predicated region fallthrough
CT: control target
= control target key end

     0   :  { %s6076_s17 = smov 0   ;;  %s9926_s0 = inlined_call_operand.vmem [shape: f32[2,8,8,256], index: 0, kind: input, shape index: {}]   ;;  %s9927_s1 = inlined_call_operand.vmem [shape: f32[2304,96], index: 1, kind: input, shape index: {}]   ;;  %s9928_s2 = inlined_call_operand.vmem [shape: f32[1,96], index: 2, kind: input, shape index: {}]   ;;  %s9929_s3 = inlined_call_operand.vmem [shape: f32[864,96], index: 3, kind: input, shape index: {}]   ;;  %s9930_s4 = inlined_call_operand.vmem [shape: f32[1,96], index: 4, kind: input, shape index: {}]   ;;  %s9931_s5 = inlined_call_operand.vmem [shape: f32[864,96], index: 5, kind: input, shape index: {}]   ;;  %s9932_s6 = inlined_call_operand.vmem [shape: f32[1,96], index: 6, kind: input, shape index: {}]   ;;  %s9933_s7 = inlined_call_operand.vmem [shape: f32[864,96], index: 7, kind: input, shape index: {}]   ;;  %s9934_s8 = inlined_call_operand.vmem [shape: f32[1,96], index: 8, kind: input, shape index: {}]   ;;  %s9935_s9 = inlined_call_operand.vmem [shape: f32[864,3], index: 9, kind: input, shape index: {}]   ;;  %s9936_s10 = inlined_call_operand.vmem [shape: f32[1,3], index: 10, kind: input, shape index: {}]   ;;  %s9937_s11 = inlined_call_operand.vmem [shape: f32[2,64,3], index: 11, kind: output, shape index: {}]  }
   0x1 LB: > { %s5542_s18 = sadd.s32 4294967295, %s6010_s17   ;;  %p5546_p0 = scmp.ge.s32.totalorder %s6010_s17, 1  ;;  %s6010_s17 = sphi %s6076_s17, %s21_s17  }
   0x2   : > { %p337_p1 = scmp.lt.s32.totalorder %s6010_s17, 3 }
   0x4   : > { %p338_p2 = pnand %p5546_p0, %p337_p1 }
   0x6   : > { %341 = sbr.rel (%p338_p2) target bundleno = 1851 (0x73b), region = 64 }
   0xb   : > { %v1380_v0 = vld [vmem:[%s9927_s1 + $0x78] sm:$0xff]  ;;  %v1379_v1 = vld [vmem:[%s9927_s1 + $0x70] sm:$0xff]  ;;  %p377_p3 = scmp.lt.s32.totalorder %s5542_s18, 1  ;;  %v6012_v4 = vmov 0.0   ;;  %v1378_v5 = vld [vmem:[%s9927_s1 + $0x68] sm:$0xff]  ;;  %vm626_vm0 = vcmask 1046528  }
   0xc   : > { %v1396_v2 = vld [vmem:[%s9927_s1 + $0xf8] sm:$0xff]  ;;  %5587 = vmatpush.msra.mxu2 %v1380_v0  ;;  %v1395_v3 = vld [vmem:[%s9927_s1 + $0xf0] sm:$0xff]  ;;  %403 = vst [vmem:[#allocation2 + $0x128] sm:$0xff] %v6012_v4  ;;  %v1394_v6 = vld [vmem:[%s9927_s1 + $0xe8] sm:$0xff]  ;;  %1657 = vmatpush.msra.mxu0 %v1380_v0  ;;  %vm755_vm1 = vcmask 1045504   ;;  %vm427_vm2 = vcmask 785408  }
   0xd   : > { %5603 = vmatpush.msra.mxu3 %v1396_v2  ;;  %1698 = vmatpush.msra.mxu1 %v1396_v2  ;;  %s9951_s18 = smov (!%p377_p3, %s5542_s18), 1  ;;  %405 = vst [vmem:[#allocation2 + $0x8] sm:$0x3] %v6012_v4  ;;  %v1377_v7 = vld [vmem:[%s9927_s1 + $0x60] sm:$0xff]  ;;  %v1376_v9 = vld [vmem:[%s9927_s1 + $0x58] sm:$0xff]  ;;  %v1375_v11 = vld [vmem:[%s9927_s1 + $0x50] sm:$0xff] }
   0xe   : > { %5588 = vmatpush.msra.mxu2 %v1379_v1  ;;  %387 = vst [vmem:[#allocation2 + $0xb0] sm:$0xff] %v6012_v4  ;;  %v1393_v8 = vld [vmem:[%s9927_s1 + $0xe0] sm:$0xff]  ;;  %1658 = vmatpush.msra.mxu0 %v1379_v1  ;;  %s5585_s16 = sshll.u32 %s9951_s18, 7  ;;  %v1392_v10 = vld [vmem:[%s9927_s1 + $0xd8] sm:$0xff]  ;;  %v1391_v12 = vld [vmem:[%s9927_s1 + $0xd0] sm:$0xff]  ;;  %vm429_vm3 = vcmask 779264  }
   0xf   : > { %5604 = vmatpush.msra.mxu3 %v1395_v3  ;;  %1699 = vmatpush.msra.mxu1 %v1395_v3  ;;  %388 = vst [vmem:[#allocation2 + $0xd0] sm:$0xff] %v6012_v4  ;;  %s6126_s25 = scalar_lea.vmem %s9926_s0, %s5585_s16  ;;  %v1374_v13 = vld [vmem:[%s9927_s1 + $0x48] sm:$0xff]  ;;  %v1373_v16 = vld [vmem:[%s9927_s1 + $0x40] sm:$0xff]  ;;  %v1372_v19 = vld [vmem:[%s9927_s1 + $0x38] sm:$0xff]  ;;  %s6013_s30 = smov 96   ;;  %vm2677_vm4 = vcmask 523264  }
  0x10   : > { %5589 = vmatpush.msra.mxu2 %v1378_v5  ;;  %389 = vst [vmem:[#allocation2 + $0x10] sm:$0x3] %v6012_v4  ;;  %1659 = vmatpush.msra.mxu0 %v1378_v5  ;;  %v1390_v14 = vld [vmem:[%s9927_s1 + $0xc8] sm:$0xff]  ;;  %v455_v15 = vld [vmem:[%s6126_s25 + $0x30] sm:$0xff]  ;;  %v1389_v18 = vld [vmem:[%s9927_s1 + $0xc0] sm:$0xff]  ;;  %s6014_s12 = smov 64  }
  0x11   : > { %5605 = vmatpush.msra.mxu3 %v1394_v6  ;;  %1700 = vmatpush.msra.mxu1 %v1394_v6  ;;  %390 = vst [vmem:[#allocation2 + $0x48] sm:$0x3] %v6012_v4  ;;  %v487_v17 = vrot.slane %v455_v15, 7  ;;  %v1388_v20 = vld [vmem:[%s9927_s1 + $0xb8] sm:$0xff]  ;;  %v1371_v21 = vld [vmem:[%s9927_s1 + $0x30] sm:$0xff]  ;;  %v1370_v23 = vld [vmem:[%s9927_s1 + $0x28] sm:$0xff] }
  0x12   : > { %5590 = vmatpush.msra.mxu2 %v1377_v7  ;;  %391 = vst [vmem:[#allocation2 + $0x120] sm:$0xff] %v6012_v4  ;;  %1660 = vmatpush.msra.mxu0 %v1377_v7  ;;  %v1387_v22 = vld [vmem:[%s9927_s1 + $0xb0] sm:$0xff]  ;;  %v1386_v24 = vld [vmem:[%s9927_s1 + $0xa8] sm:$0xff]  ;;  %v1369_v25 = vld [vmem:[%s9927_s1 + $0x20] sm:$0xff]  ;;  %s6015_s13 = smov 32   ;;  %vm2686_vm5 = vcmask 261120  }
  0x13   : > { %5606 = vmatpush.msra.mxu3 %v1393_v8  ;;  %1701 = vmatpush.msra.mxu1 %v1393_v8  ;;  %392 = vst [vmem:[#allocation2 + $0x38] sm:$0xff] %v6012_v4  ;;  %v1385_v26 = vld [vmem:[%s9927_s1 + $0xa0] sm:$0xff]  ;;  %v1368_v27 = vld [vmem:[%s9927_s1 + $0x18] sm:$0xff]  ;;  %v1367_v29 = vld [vmem:[%s9927_s1 + $0x10] sm:$0xff]  ;;  %s5586_s15 = sshll.u32 %s9951_s18, 6  ;;  %vm5478_vm7 = vcmask 23552  }
  0x14   : > { %5591 = vmatpush.msra.mxu2 %v1376_v9  ;;  %393 = vst [vmem:[#allocation2 + $0xf8] sm:$0x3] %v6012_v4  ;;  %1661 = vmatpush.msra.mxu0 %v1376_v9  ;;  %v1384_v28 = vld [vmem:[%s9927_s1 + $0x98] sm:$0xff]  ;;  %v1383_v30 = vld [vmem:[%s9927_s1 + $0x90] sm:$0xff]  ;;  %v1366_v31 = vld [vmem:[%s9927_s1 + $0x8] sm:$0xff]  ;;  %s9873_s19 = scalar_lea.vmem %s9937_s11, %s5586_s15 }
  0x15   : > { %5607 = vmatpush.msra.mxu3 %v1392_v10  ;;  %1702 = vmatpush.msra.mxu1 %v1392_v10  ;;  %394 = vst [vmem:[#allocation2 + $0x100] sm:$0x3] %v6012_v4  ;;  %v1382_v32 = vld [vmem:[%s9927_s1 + $0x88] sm:$0xff]  ;;  %v1365_v33 = vld [vmem:[%s9927_s1] sm:$0xff]  ;;  %v1428_v36 = vld [vmem:[%s9927_s1 + $0x1f8] sm:$0xff] }
  0x16   : > { %5592 = vmatpush.msra.mxu2 %v1375_v11  ;;  %395 = vst [vmem:[#allocation2 + $0x80] sm:$0xff] %v6012_v4  ;;  %1662 = vmatpush.msra.mxu0 %v1375_v11  ;;  %v1381_v34 = vld [vmem:[%s9927_s1 + $0x80] sm:$0xff]  ;;  %v1412_v37 = vld [vmem:[%s9927_s1 + $0x178] sm:$0xff]  ;;  %v1427_v38 = vld [vmem:[%s9927_s1 + $0x1f0] sm:$0xff] }
  0x17   : > { %5608 = vmatpush.msra.mxu3 %v1391_v12  ;;  %1703 = vmatpush.msra.mxu1 %v1391_v12  ;;  %396 = vst [vmem:[#allocation2 + $0x108] sm:$0xff] %v6012_v4  ;;  %v1411_v39 = vld [vmem:[%s9927_s1 + $0x170] sm:$0xff]  ;;  %v1444_v40 = vld [vmem:[%s9927_s1 + $0x278] sm:$0xff]  ;;  %v1426_v41 = vld [vmem:[%s9927_s1 + $0x1e8] sm:$0xff] }
  0x18   : > { %5593 = vmatpush.msra.mxu2 %v1374_v13  ;;  %526 = vst [vmem:[#allocation2 + $0x128] sm:$0xfe] %v487_v17  ;;  %1663 = vmatpush.msra.mxu0 %v1374_v13  ;;  %v1410_v42 = vld [vmem:[%s9927_s1 + $0x168] sm:$0xff]  ;;  %v1425_v43 = vld [vmem:[%s9927_s1 + $0x1e0] sm:$0xff]  ;;  %v1443_v44 = vld [vmem:[%s9927_s1 + $0x270] sm:$0xff] }
  0x19   : > { %5609 = vmatpush.msra.mxu3 %v1390_v14  ;;  %1704 = vmatpush.msra.mxu1 %v1390_v14  ;;  %528 = vst [vmem:[#allocation2 + $0x8] sm:$0x1] %v487_v17  ;;  %v456_v45 = vld [vmem:[%s6126_s25 + $0x38] sm:$0xff]  ;;  %v1409_v46 = vld [vmem:[%s9927_s1 + $0x160] sm:$0xff]  ;;  %v1442_v49 = vld [vmem:[%s9927_s1 + $0x268] sm:$0xff] }
  0x1a   : > { %5594 = vmatpush.msra.mxu2 %v1373_v16  ;;  %397 = vst [vmem:[#allocation2 + $0x138] sm:$0x3] %v6012_v4  ;;  %1664 = vmatpush.msra.mxu0 %v1373_v16  ;;  %v1460_v47 = vld [vmem:[%s9927_s1 + $0x2f8] sm:$0xff]  ;;  %v457_v50 = vld [vmem:[%s6126_s25 + $0x40] sm:$0xff]  ;;  %v1459_v52 = vld [vmem:[%s9927_s1 + $0x2f0] sm:$0xff]  ;;  %v488_v53 = vrot.slane %v456_v45, 7 }
  0x1b   : > { %5610 = vmatpush.msra.mxu3 %v1389_v18  ;;  %1705 = vmatpush.msra.mxu1 %v1389_v18  ;;  %398 = vst [vmem:[#allocation2 + $0xf0] sm:$0x3] %v6012_v4  ;;  %v1424_v48 = vld [vmem:[%s9927_s1 + $0x1d8] sm:$0xff]  ;;  %v1423_v54 = vld [vmem:[%s9927_s1 + $0x1d0] sm:$0xff]  ;;  %v1441_v55 = vld [vmem:[%s9927_s1 + $0x260] sm:$0xff]  ;;  %v489_v59 = vrot.slane %v457_v50, 7 }
  0x1c   : > { %5595 = vmatpush.msra.mxu2 %v1372_v19  ;;  %399 = vst [vmem:[#allocation2 + $0x18] sm:$0xff] %v6012_v4  ;;  %1665 = vmatpush.msra.mxu0 %v1372_v19  ;;  %v1408_v51 = vld [vmem:[%s9927_s1 + $0x158] sm:$0xff]  ;;  %v458_v56 = vld [vmem:[%s6126_s25 + $0x48] sm:$0xff]  ;;  %v1407_v57 = vld [vmem:[%s9927_s1 + $0x150] sm:$0xff] }
  0x1d   : > { %5611 = vmatpush.msra.mxu3 %v1388_v20  ;;  %1706 = vmatpush.msra.mxu1 %v1388_v20  ;;  %400 = vst [vmem:[#allocation2 + $0xc8] sm:$0xff] %v6012_v4  ;;  %v1458_v58 = vld [vmem:[%s9927_s1 + $0x2e8] sm:$0xff]  ;;  %v1440_v61 = vld [vmem:[%s9927_s1 + $0x258] sm:$0xff]  ;;  %v459_v63 = vld [vmem:[%s6126_s25 + $0x50] sm:$0xff]  ;;  %v490_v1 = vrot.slane %v458_v56, 7 }
  0x1e   : > { %5596 = vmatpush.msra.mxu2 %v1371_v21  ;;  %401 = vst [vmem:[#allocation2 + $0x70] sm:$0x3] %v6012_v4  ;;  %1666 = vmatpush.msra.mxu0 %v1371_v21  ;;  %v1422_v60 = vld [vmem:[%s9927_s1 + $0x1c8] sm:$0xff]  ;;  %v1457_v0 = vld [vmem:[%s9927_s1 + $0x2e0] sm:$0xff]  ;;  %v1439_v3 = vld [vmem:[%s9927_s1 + $0x250] sm:$0xff]  ;;  %v491_v7 = vrot.slane %v459_v63, 7 }
  0x1f   : > { %5612 = vmatpush.msra.mxu3 %v1387_v22  ;;  %1707 = vmatpush.msra.mxu1 %v1387_v22  ;;  %402 = vst [vmem:[#allocation2 + $0x20] sm:$0x3] %v6012_v4  ;;  %v554_v35 = vld [vmem:[#allocation2 + $0x128] sm:$0xff]  ;;  %v1421_v2 = vld [vmem:[%s9927_s1 + $0x1c0] sm:$0xff]  ;;  %v1456_v6 = vld [vmem:[%s9927_s1 + $0x2d8] sm:$0xff] }
  0x20   : > { %5597 = vmatpush.msra.mxu2 %v1370_v23  ;;  %404 = vst [vmem:[#allocation2 + $0x110] sm:$0xff] %v6012_v4  ;;  %1667 = vmatpush.msra.mxu0 %v1370_v23  ;;  %v1406_v62 = vld [vmem:[%s9927_s1 + $0x148] sm:$0xff]  ;;  %v449_v5 = vld [vmem:[%s6126_s25] sm:$0xff]  ;;  %v1420_v8 = vld [vmem:[%s9927_s1 + $0x1b8] sm:$0xff] }
  0x21   : > { %5613 = vmatpush.msra.mxu3 %v1386_v24  ;;  %406 = vst [vmem:[#allocation2 + $0x98] sm:$0x3] %v6012_v4  ;;  %1708 = vmatpush.msra.mxu1 %v1386_v24  ;;  %v1438_v9 = vld [vmem:[%s9927_s1 + $0x248] sm:$0xff]  ;;  %v1404_v10 = vld [vmem:[%s9927_s1 + $0x138] sm:$0xff]  ;;  %v1455_v12 = vld [vmem:[%s9927_s1 + $0x2d0] sm:$0xff]  ;;  %v481_v13 = vrot.slane %v449_v5, 7 }
  0x22   : > { %5598 = vmatpush.msra.mxu2 %v1369_v25  ;;  %407 = vst [vmem:[#allocation2 + $0xa8] sm:$0xff] %v6012_v4  ;;  %1668 = vmatpush.msra.mxu0 %v1369_v25  ;;  %v460_v11 = vld [vmem:[%s6126_s25 + $0x58] sm:$0xff]  ;;  %v1419_v14 = vld [vmem:[%s9927_s1 + $0x1b0] sm:$0xff]  ;;  %v1437_v15 = vld [vmem:[%s9927_s1 + $0x240] sm:$0xff] }
  0x23   : > { %5614 = vmatpush.msra.mxu3 %v1385_v26  ;;  %408 = vst [vmem:[#allocation2 + $0x90] sm:$0xff] %v6012_v4  ;;  %1709 = vmatpush.msra.mxu1 %v1385_v26  ;;  %v1403_v16 = vld [vmem:[%s9927_s1 + $0x130] sm:$0xff]  ;;  %v450_v17 = vld [vmem:[%s6126_s25 + $0x8] sm:$0xff]  ;;  %v492_v18 = vrot.slane %v460_v11, 7  ;;  %v461_v22 = vld [vmem:[%s6126_s25 + $0x60] sm:$0xff] }
  0x24   : > { %5599 = vmatpush.msra.mxu2 %v1368_v27  ;;  %409 = vst [vmem:[#allocation2 + $0xe0] sm:$0x3] %v6012_v4  ;;  %1669 = vmatpush.msra.mxu0 %v1368_v27  ;;  %v1418_v19 = vld [vmem:[%s9927_s1 + $0x1a8] sm:$0xff]  ;;  %v1436_v23 = vld [vmem:[%s9927_s1 + $0x238] sm:$0xff]  ;;  %v482_v24 = vrot.slane %v450_v17, 7  ;;  %v1417_v26 = vld [vmem:[%s9927_s1 + $0x1a0] sm:$0xff] }
  0x25   : > { %5615 = vmatpush.msra.mxu3 %v1384_v28  ;;  %410 = vst [vmem:[#allocation2 + $0x88] sm:$0x3] %v6012_v4  ;;  %1710 = vmatpush.msra.mxu1 %v1384_v28  ;;  %v1454_v20 = vld [vmem:[%s9927_s1 + $0x2c8] sm:$0xff]  ;;  %v451_v27 = vld [vmem:[%s6126_s25 + $0x10] sm:$0xff]  ;;  %v453_v45 = vld [vmem:[%s6126_s25 + $0x20] sm:$0xff] }
  0x26   : > { %5600 = vmatpush.msra.mxu2 %v1367_v29  ;;  %411 = vst [vmem:[#allocation2 + $0xc0] sm:$0xff] %v6012_v4  ;;  %1670 = vmatpush.msra.mxu0 %v1367_v29  ;;  %v1402_v25 = vld [vmem:[%s9927_s1 + $0x128] sm:$0xff]  ;;  %v1453_v29 = vld [vmem:[%s9927_s1 + $0x2c0] sm:$0xff]  ;;  %v485_v56 = vrot.slane %v453_v45, 7  ;;  %v1491_v5 = vld [vmem:[%s9927_s1 + $0x3f0] sm:$0xff] }
  0x27   : > { %5616 = vmatpush.msra.mxu3 %v1383_v30  ;;  %412 = vst [vmem:[#allocation2 + $0x118] sm:$0xff] %v6012_v4  ;;  %1711 = vmatpush.msra.mxu1 %v1383_v30  ;;  %v1435_v30 = vld [vmem:[%s9927_s1 + $0x230] sm:$0xff]  ;;  %v1398_v50 = vld [vmem:[%s9927_s1 + $0x108] sm:$0xff]  ;;  %v1429_v11 = vld [vmem:[%s9927_s1 + $0x200] sm:$0xff] }
  0x28   : > { %5601 = vmatpush.msra.mxu2 %v1366_v31  ;;  %413 = vst [vmem:[#allocation2 + $0xd8] sm:$0x3] %v6012_v4  ;;  %1671 = vmatpush.msra.mxu0 %v1366_v31  ;;  %v1401_v31 = vld [vmem:[%s9927_s1 + $0x120] sm:$0xff]  ;;  %v1508_v17 = vld [vmem:[%s9927_s1 + $0x478] sm:$0xff]  ;;  %v1471_v45 = vld [vmem:[%s9927_s1 + $0x350] sm:$0xff] }
  0x29   : > { %5617 = vmatpush.msra.mxu3 %v1382_v32  ;;  %414 = vst [vmem:[#allocation2 + $0xa0] sm:$0x3] %v6012_v4  ;;  %1712 = vmatpush.msra.mxu1 %v1382_v32  ;;  %v493_v32 = vrot.slane %v461_v22, 7 }
  0x2a   : > { %5602 = vmatpush.msra.mxu2 %v1365_v33  ;;  %415 = vst [vmem:[#allocation2 + $0x68] sm:$0xff] %v6012_v4  ;;  %1672 = vmatpush.msra.mxu0 %v1365_v33  ;;  %v1416_v33 = vld [vmem:[%s9927_s1 + $0x198] sm:$0xff] }
  0x2b   : > { %5618 = vmatpush.msra.mxu3 %v1381_v34  ;;  %1685 = vmatmul.f32.vlgmr.msra.gmra.mxu2 %v554_v35  ;;  %416 = vst [vmem:[#allocation2 + $0x130] sm:$0xff] %v6012_v4  ;;  %v1452_v35 = vld [vmem:[%s9927_s1 + $0x2b8] sm:$0xff] }
  0x2c   : > { %417 = vst [vmem:[#allocation2 + $0x50] sm:$0x3] %v6012_v4  ;;  %1739 = vmatpush.msrb.mxu2 %v1412_v37  ;;  %1673 = vmatmul.f32.vlgmr.msra.gmra.mxu0 %v6012_v4  ;;  %v1400_v37 = vld [vmem:[%s9927_s1 + $0x118] sm:$0xff] }
  0x2d   : > { %1780 = vmatpush.msrb.mxu3 %v1428_v36  ;;  %418 = vst [vmem:[#allocation2 + $0xe8] sm:$0x3] %v6012_v4  ;;  %1821 = vmatpush.msrb.mxu0 %v1444_v40  ;;  %v1434_v36 = vld [vmem:[%s9927_s1 + $0x228] sm:$0xff] }
  0x2e   : > { %419 = vst [vmem:[#allocation2 + $0x58] sm:$0xff] %v6012_v4  ;;  %1740 = vmatpush.msrb.mxu2 %v1411_v39  ;;  %1713 = vmatpush.msra.mxu1 %v1381_v34  ;;  %v462_v34 = vld [vmem:[%s6126_s25 + $0x68] sm:$0xff]  ;;  %v1415_v39 = vld [vmem:[%s9927_s1 + $0x190] sm:$0xff] }
  0x2f   : > { %1781 = vmatpush.msrb.mxu3 %v1427_v38  ;;  %420 = vst [vmem:[#allocation2 + $0x78] sm:$0xff] %v6012_v4  ;;  %1714 = vmatmul.f32.vlgmr.msra.gmra.mxu1 %v6012_v4  ;;  %v483_v38 = vrot.slane %v451_v27, 7 }
  0x30   : > { %421 = vst [vmem:[#allocation2 + $0x30] sm:$0x3] %v6012_v4  ;;  %1741 = vmatpush.msrb.mxu2 %v1410_v42  ;;  %1822 = vmatpush.msrb.mxu0 %v1443_v44  ;;  %v494_v42 = vrot.slane %v462_v34, 7  ;;  %v1414_v44 = vld [vmem:[%s9927_s1 + $0x188] sm:$0xff]  ;;  %v1472_v34 = vld [vmem:[%s9927_s1 + $0x358] sm:$0xff] }
  0x31   : > { %1782 = vmatpush.msrb.mxu3 %v1426_v41  ;;  %422 = vst [vmem:[#allocation2 + $0x40] sm:$0x3] %v6012_v4  ;;  %1862 = vmatpush.msrb.mxu1 %v1460_v47  ;;  %v452_v41 = vld [vmem:[%s6126_s25 + $0x18] sm:$0xff] }
  0x32   : > { %423 = vst [vmem:[#allocation2 + $0x28] sm:$0xff] %v6012_v4  ;;  %1742 = vmatpush.msrb.mxu2 %v1409_v46  ;;  %1823 = vmatpush.msrb.mxu0 %v1442_v49  ;;  %v484_v49 = vrot.slane %v452_v41, 7  ;;  %v1523_v41 = vld [vmem:[%s9927_s1 + $0x4f0] sm:$0xff] }
  0x33   : > { %1783 = vmatpush.msrb.mxu3 %v1425_v43  ;;  %424 = vst [vmem:[#allocation2] sm:$0xff] %v6012_v4  ;;  %1863 = vmatpush.msrb.mxu1 %v1459_v52  ;;  %v1399_v43 = vld [vmem:[%s9927_s1 + $0x110] sm:$0xff]  ;;  %v1433_v52 = vld [vmem:[%s9927_s1 + $0x220] sm:$0xff] }
  0x34   : > { %425 = vst [vmem:[#allocation2 + $0xb8] sm:$0x3] %v6012_v4  ;;  %1743 = vmatpush.msrb.mxu2 %v1408_v51  ;;  %1824 = vmatpush.msrb.mxu0 %v1441_v55  ;;  %v1413_v51 = vld [vmem:[%s9927_s1 + $0x180] sm:$0xff]  ;;  %v1450_v55 = vld [vmem:[%s9927_s1 + $0x2a8] sm:$0xff] }
  0x35   : > { %1784 = vmatpush.msrb.mxu3 %v1424_v48  ;;  %426 = vst [vmem:[#allocation2 + $0x60] sm:$0x3] %v6012_v4  ;;  %1864 = vmatpush.msrb.mxu1 %v1458_v58  ;;  %v1405_v4 = vld [vmem:[%s9927_s1 + $0x140] sm:$0xff]  ;;  %v1451_v48 = vld [vmem:[%s9927_s1 + $0x2b0] sm:$0xff]  ;;  %v1476_v58 = vld [vmem:[%s9927_s1 + $0x378] sm:$0xff] }
  0x36   : > { %527 = vst [vmem:[#allocation2 + $0x110] sm:$0xfe] %v488_v53  ;;  %1744 = vmatpush.msrb.mxu2 %v1407_v57  ;;  %1825 = vmatpush.msrb.mxu0 %v1440_v61  ;;  %v1492_v61 = vld [vmem:[%s9927_s1 + $0x3f8] sm:$0xff] }
  0x37   : > { %1785 = vmatpush.msrb.mxu3 %v1423_v54  ;;  %529 = vst [vmem:[#allocation2 + $0x98] sm:$0x1] %v488_v53  ;;  %1865 = vmatpush.msrb.mxu1 %v1457_v0  ;;  %v454_v53 = vld [vmem:[%s6126_s25 + $0x28] sm:$0xff]  ;;  %v1397_v54 = vld [vmem:[%s9927_s1 + $0x100] sm:$0xff]  ;;  %v562_v0 = vld [vmem:[#allocation2 + $0xb0] sm:$0xfe] }
  0x38   : > { %530 = vst [vmem:[#allocation2 + $0xa8] sm:$0xfe] %v489_v59  ;;  %1745 = vmatpush.msrb.mxu2 %v1406_v62  ;;  %1826 = vmatpush.msrb.mxu0 %v1439_v3  ;;  %v486_v62 = vrot.slane %v454_v53, 7 }
  0x39   : > { %1786 = vmatpush.msrb.mxu3 %v1422_v60  ;;  %532 = vst [vmem:[#allocation2 + $0xe0] sm:$0x1] %v489_v59  ;;  %1866 = vmatpush.msrb.mxu1 %v1456_v6  ;;  %v1432_v59 = vld [vmem:[%s9927_s1 + $0x218] sm:$0xff]  ;;  %v1449_v60 = vld [vmem:[%s9927_s1 + $0x2a0] sm:$0xff]  ;;  %v564_v6 = vld [vmem:[#allocation2 + $0x10] sm:$0x1] }
  0x3a   : > { %531 = vst [vmem:[#allocation2 + $0x90] sm:$0xfe] %v490_v1  ;;  %1746 = vmatpush.msrb.mxu2 %v1405_v4  ;;  %1827 = vmatpush.msrb.mxu0 %v1438_v9  ;;  %v1490_v9 = vld [vmem:[%s9927_s1 + $0x3e8] sm:$0xff] }
  0x3b   : > { %1787 = vmatpush.msrb.mxu3 %v1421_v2  ;;  %533 = vst [vmem:[#allocation2 + $0x88] sm:$0x1] %v490_v1  ;;  %1867 = vmatpush.msrb.mxu1 %v1455_v12  ;;  %v1431_v1 = vld [vmem:[%s9927_s1 + $0x210] sm:$0xff]  ;;  %v1448_v2 = vld [vmem:[%s9927_s1 + $0x298] sm:$0xff] }
  0x3c   : > { %534 = vst [vmem:[#allocation2 + $0xc0] sm:$0xfe] %v491_v7  ;;  %1747 = vmatpush.msrb.mxu2 %v1404_v10  ;;  %1828 = vmatpush.msrb.mxu0 %v1437_v15  ;;  %v1447_v10 = vld [vmem:[%s9927_s1 + $0x290] sm:$0xff] }
  0x3d   : > { %1788 = vmatpush.msrb.mxu3 %v1420_v8  ;;  %v555_v21 = vld [vmem:[#allocation2 + $0x110] sm:$0xff]  ;;  %536 = vst [vmem:[#allocation2 + $0xd8] sm:$0x1] %v491_v7  ;;  %1868 = vmatpush.msrb.mxu1 %v1454_v20  ;;  %v1430_v8 = vld [vmem:[%s9927_s1 + $0x208] sm:$0xff]  ;;  %v1489_v20 = vld [vmem:[%s9927_s1 + $0x3e0] sm:$0xff] }
  0x3e   : > { %1726 = vmatmul.f32.vlgmr.msra.gmra.mxu3 %v555_v21  ;;  %514 = vst [vmem:[#allocation2 + $0x120] sm:$0xfe] %v481_v13  ;;  %1748 = vmatpush.msrb.mxu2 %v1403_v16  ;;  %v1475_v7 = vld [vmem:[%s9927_s1 + $0x370] sm:$0xff]  ;;  %v1474_v16 = vld [vmem:[%s9927_s1 + $0x368] sm:$0xff] }
  0x3f   : > { %1789 = vmatpush.msrb.mxu3 %v1419_v14  ;;  %v556_v28 = vld [vmem:[#allocation2 + $0xa8] sm:$0xff]  ;;  %516 = vst [vmem:[#allocation2 + $0xf8] sm:$0x1] %v481_v13  ;;  %1829 = vmatpush.msrb.mxu0 %v1436_v23  ;;  %v627_v13 = vrot.slane %v562_v0, 1  ;;  %v628_v14 = vrot.slane %v564_v6, 1 }
  0x40   : > { %1688 = vmatmul.f32.gmra.mxu2 %v556_v28  ;;  %535 = vst [vmem:[#allocation2 + $0x118] sm:$0xfe] %v492_v18  ;;  %1869 = vmatpush.msrb.mxu1 %v1453_v29  ;;  %v563_v15 = vld [vmem:[#allocation2 + $0xd0] sm:$0xfe]  ;;  %v1524_v29 = vld [vmem:[%s9927_s1 + $0x4f8] sm:$0xff] }
  0x41   : > { %1790 = vmatpush.msrb.mxu3 %v1418_v19  ;;  %537 = vst [vmem:[#allocation2 + $0xa0] sm:$0x1] %v492_v18  ;;  %1749 = vmatpush.msrb.mxu2 %v1402_v25  ;;  %v557_v40 = vld [vmem:[#allocation2 + $0x90] sm:$0xff]  ;;  %v565_v18 = vld [vmem:[#allocation2 + $0x48] sm:$0x1]  ;;  %v1445_v25 = vld [vmem:[%s9927_s1 + $0x280] sm:$0xff]  ;;  %v629_v27 = vsel %vm626_vm0, %v627_v13, %v628_v14 }
  0x42   : > { %515 = vst [vmem:[#allocation2 + $0x38] sm:$0xfe] %v482_v24  ;;  %1830 = vmatpush.msrb.mxu0 %v1435_v30  ;;  %1870 = vmatpush.msrb.mxu1 %v1452_v35  ;;  %v1446_v19 = vld [vmem:[%s9927_s1 + $0x288] sm:$0xff]  ;;  %v691_v23 = vld [vmem:[#allocation2 + $0xb0] sm:$0xfc]  ;;  %v630_v30 = vrot.slane %v563_v15, 1 }
  0x43   : > { %1791 = vmatpush.msrb.mxu3 %v1417_v26  ;;  %517 = vst [vmem:[#allocation2 + $0x100] sm:$0x1] %v482_v24  ;;  %1750 = vmatpush.msrb.mxu2 %v1401_v31  ;;  %v558_v46 = vld [vmem:[#allocation2 + $0xc0] sm:$0xff]  ;;  %v693_v24 = vld [vmem:[#allocation2 + $0x10] sm:$0x3]  ;;  %v631_v31 = vrot.slane %v565_v18, 1 }
  0x44   : > { %538 = vst [vmem:[#allocation2 + $0x68] sm:$0xfe] %v493_v32  ;;  %1831 = vmatpush.msrb.mxu0 %v1434_v36  ;;  %1871 = vmatpush.msrb.mxu1 %v1451_v48  ;;  %v1473_v26 = vld [vmem:[%s9927_s1 + $0x360] sm:$0xff]  ;;  %v756_v36 = vrot.slane %v691_v23, 2  ;;  %v1520_v13 = vld [vmem:[%s9927_s1 + $0x4d8] sm:$0xff]  ;;  %v1503_v14 = vld [vmem:[%s9927_s1 + $0x450] sm:$0xff] }
  0x45   : > { %1792 = vmatpush.msrb.mxu3 %v1416_v33  ;;  %v6390_v47 = vld [vmem:[#allocation2 + $0x120] sm:$0xff]  ;;  %540 = vst [vmem:[#allocation2 + $0x50] sm:$0x1] %v493_v32  ;;  %1751 = vmatpush.msrb.mxu2 %v1400_v37  ;;  %v1507_v33 = vld [vmem:[%s9927_s1 + $0x470] sm:$0xff]  ;;  %v757_v37 = vrot.slane %v693_v24, 2  ;;  %v1484_v18 = vld [vmem:[%s9927_s1 + $0x3b8] sm:$0xff] }
  0x46   : > { %1729 = vmatmul.f32.gmra.mxu3 %v557_v40  ;;  %1676 = vmatmul.f32.gmra.mxu0 %v6390_v47  ;;  %518 = vst [vmem:[#allocation2 + $0x80] sm:$0xfe] %v483_v38  ;;  %v566_v28 = vld [vmem:[#allocation2 + $0x120] sm:$0xfe]  ;;  %v568_v32 = vld [vmem:[#allocation2 + $0xf8] sm:$0x1] }
  0x47   : > { %1793 = vmatpush.msrb.mxu3 %v1415_v39  ;;  %520 = vst [vmem:[#allocation2 + $0x138] sm:$0x1] %v483_v38  ;;  %1752 = vmatpush.msrb.mxu2 %v1399_v43  ;;  %v559_v63 = vld [vmem:[#allocation2 + $0x118] sm:$0xff]  ;;  %v692_v38 = vld [vmem:[#allocation2 + $0xd0] sm:$0xfc]  ;;  %v633_v43 = vrot.slane %v566_v28, 1  ;;  %v758_v53 = vsel %vm755_vm1, %v756_v36, %v757_v37 }
  0x48   : > { %1691 = vmatmul.f32.gmra.mxu2 %v558_v46  ;;  %539 = vst [vmem:[#allocation2 + $0x130] sm:$0xfe] %v494_v42  ;;  %1832 = vmatpush.msrb.mxu0 %v1433_v52  ;;  %v1488_v39 = vld [vmem:[%s9927_s1 + $0x3d8] sm:$0xff]  ;;  %v694_v40 = vld [vmem:[#allocation2 + $0x48] sm:$0x3]  ;;  %v1487_v46 = vld [vmem:[%s9927_s1 + $0x3d0] sm:$0xff] }
  0x49   : > { %1794 = vmatpush.msrb.mxu3 %v1414_v44  ;;  %v6412_v57 = vld [vmem:[#allocation2 + $0x38] sm:$0xff]  ;;  %541 = vst [vmem:[#allocation2 + $0xe8] sm:$0x1] %v494_v42  ;;  %1753 = vmatpush.msrb.mxu2 %v1398_v50  ;;  %v1506_v42 = vld [vmem:[%s9927_s1 + $0x468] sm:$0xff]  ;;  %v634_v44 = vrot.slane %v568_v32, 1  ;;  %v1505_v50 = vld [vmem:[%s9927_s1 + $0x460] sm:$0xff] }
  0x4a   : > { %1717 = vmatmul.f32.gmra.mxu1 %v6412_v57  ;;  %519 = vst [vmem:[#allocation2 + $0x108] sm:$0xfe] %v484_v49  ;;  %1833 = vmatpush.msrb.mxu0 %v1432_v59  ;;  %v567_v48 = vld [vmem:[#allocation2 + $0x38] sm:$0xfe]  ;;  %v569_v52 = vld [vmem:[#allocation2 + $0x100] sm:$0x1] }
  0x4b   : > { %1795 = vmatpush.msrb.mxu3 %v1413_v51  ;;  %521 = vst [vmem:[#allocation2 + $0xf0] sm:$0x1] %v484_v49  ;;  %1754 = vmatpush.msrb.mxu2 %v1397_v54  ;;  %v560_v3 = vld [vmem:[#allocation2 + $0x68] sm:$0xff]  ;;  %v632_v51 = vsel %vm626_vm0, %v630_v30, %v631_v31  ;;  %v759_v54 = vrot.slane %v692_v38, 2  ;;  %v636_v0 = vrot.slane %v567_v48, 1  ;;  %v1467_v30 = vld [vmem:[%s9927_s1 + $0x330] sm:$0xff] }
  0x4c   : > { %1872 = vmatpush.msrb.mxu1 %v1450_v55  ;;  %522 = vst [vmem:[#allocation2 + $0x18] sm:$0xfe] %v485_v56  ;;  %1834 = vmatpush.msrb.mxu0 %v1431_v1  ;;  %v1522_v49 = vld [vmem:[%s9927_s1 + $0x4e8] sm:$0xff]  ;;  %v760_v55 = vrot.slane %v694_v40, 2  ;;  %v1501_v38 = vld [vmem:[%s9927_s1 + $0x440] sm:$0xff] }
  0x4d   : > { %1903 = vmatpush.msra.mxu2 %v1476_v58  ;;  %v6433_v4 = vld [vmem:[#allocation2 + $0x80] sm:$0xff]  ;;  %524 = vst [vmem:[#allocation2 + $0x70] sm:$0x1] %v485_v56  ;;  %1944 = vmatpush.msra.mxu3 %v1492_v61  ;;  %v697_v58 = vld [vmem:[#allocation2 + $0xf8] sm:$0x3]  ;;  %v1470_v59 = vld [vmem:[%s9927_s1 + $0x348] sm:$0xff]  ;;  %v635_v61 = vsel %vm626_vm0, %v633_v43, %v634_v44 }
  0x4e   : > { %1873 = vmatpush.msrb.mxu1 %v1449_v60  ;;  %1732 = vmatmul.f32.gmra.mxu3 %v559_v63  ;;  %523 = vst [vmem:[#allocation2 + $0xc8] sm:$0xfe] %v486_v62  ;;  %v695_v56 = vld [vmem:[#allocation2 + $0x120] sm:$0xfc]  ;;  %v1486_v63 = vld [vmem:[%s9927_s1 + $0x3c8] sm:$0xff]  ;;  %v761_v6 = vsel %vm755_vm1, %v759_v54, %v760_v55  ;;  %v1516_v55 = vld [vmem:[%s9927_s1 + $0x4b8] sm:$0xff] }
  0x4f   : > { %1679 = vmatmul.f32.gmra.mxu0 %v6433_v4  ;;  %525 = vst [vmem:[#allocation2 + $0x20] sm:$0x1] %v486_v62  ;;  %1945 = vmatpush.msra.mxu3 %v1491_v5  ;;  %v561_v21 = vld [vmem:[#allocation2 + $0x130] sm:$0xff]  ;;  %v1521_v60 = vld [vmem:[%s9927_s1 + $0x4e0] sm:$0xff]  ;;  %v572_v1 = vld [vmem:[#allocation2 + $0x138] sm:$0x1] }
  0x50   : > { %1874 = vmatpush.msrb.mxu1 %v1448_v2  ;;  %1694 = vmatmul.f32.gmra.mxu2 %v560_v3  ;;  %v570_v62 = vld [vmem:[#allocation2 + $0x80] sm:$0xfe]  ;;  %v1504_v2 = vld [vmem:[%s9927_s1 + $0x458] sm:$0xff]  ;;  %v637_v5 = vrot.slane %v569_v52, 1  ;;  %v1518_v31 = vld [vmem:[%s9927_s1 + $0x4c8] sm:$0xff] }
  0x51   : > { %v6454_v12 = vld [vmem:[#allocation2 + $0x108] sm:$0xff]  ;;  %1904 = vmatpush.msra.mxu2 %v1475_v7  ;;  %1835 = vmatpush.msrb.mxu0 %v1430_v8  ;;  %v1469_v3 = vld [vmem:[%s9927_s1 + $0x340] sm:$0xff]  ;;  %v762_v7 = vrot.slane %v695_v56, 2  ;;  %v763_v8 = vrot.slane %v697_v58, 2  ;;  %v639_v15 = vrot.slane %v570_v62, 1  ;;  %v1499_v56 = vld [vmem:[%s9927_s1 + $0x430] sm:$0xff] }
  0x52   : > { %1720 = vmatmul.f32.gmra.mxu1 %v6454_v12  ;;  %1946 = vmatpush.msra.mxu3 %v1490_v9  ;;  %v696_v9 = vld [vmem:[#allocation2 + $0x38] sm:$0xfc]  ;;  %v638_v23 = vsel %vm626_vm0, %v636_v0, %v637_v5  ;;  %v573_v24 = vld [vmem:[#allocation2 + $0xf0] sm:$0x1]  ;;  %v699_v28 = vld [vmem:[#allocation2 + $0x80] sm:$0xfc] }
  0x53   : > { %v6469_v22 = vld [vmem:[#allocation2 + $0x18] sm:$0xff]  ;;  %1875 = vmatpush.msrb.mxu1 %v1447_v10  ;;  %1836 = vmatpush.msrb.mxu0 %v1429_v11  ;;  %v1485_v10 = vld [vmem:[%s9927_s1 + $0x3c0] sm:$0xff]  ;;  %v643_v40 = vrot.slane %v573_v24, 1  ;;  %v700_v44 = vld [vmem:[#allocation2 + $0x108] sm:$0xfc] }
  0x54   : > { %1905 = vmatpush.msra.mxu2 %v1474_v16  ;;  %1947 = vmatpush.msra.mxu3 %v1489_v20  ;;  %v698_v11 = vld [vmem:[#allocation2 + $0x100] sm:$0x3]  ;;  %v640_v16 = vrot.slane %v572_v1, 1  ;;  %v1519_v20 = vld [vmem:[%s9927_s1 + $0x4d0] sm:$0xff]  ;;  %v1464_v1 = vld [vmem:[%s9927_s1 + $0x318] sm:$0xff] }
  0x55   : > { %1985 = vmatpush.msra.mxu0 %v1508_v17  ;;  %1876 = vmatpush.msrb.mxu1 %v1446_v19  ;;  %v6488_v35 = vld [vmem:[#allocation2 + $0xc8] sm:$0xff]  ;;  %v1468_v17 = vld [vmem:[%s9927_s1 + $0x338] sm:$0xff]  ;;  %v576_v37 = vld [vmem:[#allocation2 + $0x70] sm:$0x1] }
  0x56   : > { %1735 = vmatmul.f32.gmra.mxu3 %v561_v21  ;;  %1906 = vmatpush.msra.mxu2 %v1473_v26  ;;  %v571_v19 = vld [vmem:[#allocation2 + $0x108] sm:$0xfe]  ;;  %v765_v26 = vrot.slane %v696_v9, 2  ;;  %v641_v32 = vsel %vm626_vm0, %v639_v15, %v640_v16  ;;  %v1517_v48 = vld [vmem:[%s9927_s1 + $0x4c0] sm:$0xff]  ;;  %v705_v0 = vld [vmem:[#allocation2 + $0x70] sm:$0x3] }
  0x57   : > { %1682 = vmatmul.f32.gmra.mxu0 %v6469_v22  ;;  %1877 = vmatpush.msrb.mxu1 %v1445_v25  ;;  %v1502_v21 = vld [vmem:[%s9927_s1 + $0x448] sm:$0xff]  ;;  %v764_v25 = vsel %vm755_vm1, %v762_v7, %v763_v8  ;;  %v642_v36 = vrot.slane %v571_v19, 1  ;;  %v1465_v52 = vld [vmem:[%s9927_s1 + $0x320] sm:$0xff]  ;;  %v1480_v8 = vld [vmem:[%s9927_s1 + $0x398] sm:$0xff]  ;;  %v775_v15 = vrot.slane %v705_v0, 2 }
  0x58   : > { %1755 = vmatmul.f32.vlgmr.msrb.gmra.mxu2 %v629_v27  ;;  %1986 = vmatpush.msra.mxu0 %v1507_v33  ;;  %v766_v27 = vrot.slane %v698_v11, 2  ;;  %v574_v33 = vld [vmem:[#allocation2 + $0x18] sm:$0xfe]  ;;  %v575_v54 = vld [vmem:[#allocation2 + $0xc8] sm:$0xfe] }
  0x59   : > { %2026 = vmatpush.msra.mxu1 %v1524_v29  ;;  %1907 = vmatpush.msra.mxu2 %v1472_v34  ;;  %v701_v29 = vld [vmem:[#allocation2 + $0x138] sm:$0x3]  ;;  %v1483_v34 = vld [vmem:[%s9927_s1 + $0x3b0] sm:$0xff]  ;;  %v644_v58 = vsel %vm626_vm0, %v642_v36, %v643_v40  ;;  %v578_v5 = vld [vmem:[#allocation2 + $0x128] sm:$0xfe]  ;;  %v648_v7 = vrot.slane %v575_v54, 1 }
  0x5a   : > { %1723 = vmatmul.f32.gmra.mxu1 %v6488_v35  ;;  %1948 = vmatpush.msra.mxu3 %v1488_v39  ;;  %v1466_v39 = vld [vmem:[%s9927_s1 + $0x328] sm:$0xff]  ;;  %v769_v43 = vrot.slane %v701_v29, 2  ;;  %v713_v0 = vld [vmem:[#allocation2 + $0xe0] sm:$0x3] }
  0x5b   : > { %2027 = vmatpush.msra.mxu1 %v1523_v41  ;;  %1987 = vmatpush.msra.mxu0 %v1506_v42  ;;  %v767_v41 = vsel %vm755_vm1, %v765_v26, %v766_v27  ;;  %v768_v42 = vrot.slane %v699_v28, 2  ;;  %v1498_v9 = vld [vmem:[%s9927_s1 + $0x428] sm:$0xff]  ;;  %v579_v27 = vld [vmem:[#allocation2 + $0x110] sm:$0xfe] }
  0x5c   : > { %1908 = vmatpush.msra.mxu2 %v1471_v45  ;;  %1949 = vmatpush.msra.mxu3 %v1487_v46  ;;  %v1482_v45 = vld [vmem:[%s9927_s1 + $0x3a8] sm:$0xff]  ;;  %v702_v46 = vld [vmem:[#allocation2 + $0xf0] sm:$0x3] }
  0x5d   : > { %2028 = vmatpush.msra.mxu1 %v1522_v49  ;;  %1988 = vmatpush.msra.mxu0 %v1505_v50  ;;  %v1500_v49 = vld [vmem:[%s9927_s1 + $0x438] sm:$0xff]  ;;  %v645_v50 = vrot.slane %v574_v33, 1  ;;  %v772_v62 = vrot.slane %v702_v46, 2  ;;  %v704_v16 = vld [vmem:[#allocation2 + $0xc8] sm:$0xfc] }
  0x5e   : > { %1796 = vmatmul.f32.vlgmr.msrb.gmra.mxu3 %v632_v51  ;;  %1909 = vmatpush.msra.mxu2 %v1470_v59  ;;  %v646_v51 = vrot.slane %v576_v37, 1  ;;  %v577_v59 = vld [vmem:[#allocation2 + $0x20] sm:$0x1]  ;;  %v1514_v19 = vld [vmem:[%s9927_s1 + $0x4a8] sm:$0xff]  ;;  %v777_v29 = vrot.slane %v704_v16, 2 }
  0x5f   : > { %1837 = vmatmul.f32.vlgmr.msrb.gmra.mxu0 %v758_v53  ;;  %2029 = vmatpush.msra.mxu1 %v1521_v60  ;;  %v1481_v53 = vld [vmem:[%s9927_s1 + $0x3a0] sm:$0xff]  ;;  %v770_v60 = vsel %vm755_vm1, %v768_v42, %v769_v43  ;;  %v649_v11 = vrot.slane %v577_v59, 1  ;;  %v1462_v24 = vld [vmem:[%s9927_s1 + $0x308] sm:$0xff] }
  0x60   : > { %1758 = vmatmul.f32.gmra.mxu2 %v635_v61  ;;  %1950 = vmatpush.msra.mxu3 %v1486_v63  ;;  %v771_v61 = vrot.slane %v700_v44, 2  ;;  %v703_v63 = vld [vmem:[#allocation2 + $0x18] sm:$0xfc]  ;;  %v709_v33 = vld [vmem:[#allocation2 + $0x8] sm:$0x3]  ;;  %v1461_v42 = vld [vmem:[%s9927_s1 + $0x300] sm:$0xff] }
  0x61   : > { %1989 = vmatpush.msra.mxu0 %v1504_v2  ;;  %1910 = vmatpush.msra.mxu2 %v1469_v3  ;;  %v1515_v2 = vld [vmem:[%s9927_s1 + $0x4b0] sm:$0xff]  ;;  %v647_v3 = vsel %vm626_vm0, %v645_v50, %v646_v51  ;;  %v650_v26 = vsel %vm626_vm0, %v648_v7, %v649_v11  ;;  %v582_v36 = vld [vmem:[#allocation2 + $0xa8] sm:$0xfe]  ;;  %v584_v37 = vld [vmem:[#allocation2 + $0xe0] sm:$0x1]  ;;  %v781_v46 = vrot.slane %v709_v33, 2 }
  0x62   : > { %1878 = vmatmul.f32.vlgmr.msrb.gmra.mxu1 %v761_v6  ;;  %1951 = vmatpush.msra.mxu3 %v1485_v10  ;;  %v580_v6 = vld [vmem:[#allocation2 + $0x8] sm:$0x1]  ;;  %v1463_v10 = vld [vmem:[%s9927_s1 + $0x310] sm:$0xff]  ;;  %v710_v51 = vld [vmem:[#allocation2 + $0x98] sm:$0x3]  ;;  %v657_v54 = vrot.slane %v582_v36, 1 }
  0x63   : > { %2030 = vmatpush.msra.mxu1 %v1520_v13  ;;  %1990 = vmatpush.msra.mxu0 %v1503_v14  ;;  %v773_v13 = vsel %vm755_vm1, %v771_v61, %v772_v62  ;;  %v774_v14 = vrot.slane %v703_v63, 2  ;;  %v1478_v40 = vld [vmem:[%s9927_s1 + $0x388] sm:$0xff]  ;;  %v1495_v50 = vld [vmem:[%s9927_s1 + $0x410] sm:$0xff]  ;;  %v784_v61 = vrot.slane %v710_v51, 2  ;;  %v1493_v16 = vld [vmem:[%s9927_s1 + $0x400] sm:$0xff] }
  0x64   : > { %1911 = vmatpush.msra.mxu2 %v1468_v17  ;;  %1952 = vmatpush.msra.mxu3 %v1484_v18  ;;  %v1479_v17 = vld [vmem:[%s9927_s1 + $0x390] sm:$0xff]  ;;  %v706_v18 = vld [vmem:[#allocation2 + $0x20] sm:$0x3]  ;;  %v585_v62 = vld [vmem:[#allocation2 + $0x88] sm:$0x1] }
  0x65   : > { %2031 = vmatpush.msra.mxu1 %v1519_v20  ;;  %1991 = vmatpush.msra.mxu0 %v1502_v21  ;;  %v1497_v20 = vld [vmem:[%s9927_s1 + $0x420] sm:$0xff]  ;;  %v651_v21 = vrot.slane %v578_v5, 1  ;;  %v776_v28 = vsel %vm755_vm1, %v774_v14, %v775_v15  ;;  %v711_v63 = vld [vmem:[#allocation2 + $0xa8] sm:$0xfc]  ;;  %v787_v14 = vrot.slane %v713_v0, 2  ;;  %v1539_v15 = vld [vmem:[%s9927_s1 + $0x570] sm:$0xff] }
  0x66   : > { %1799 = vmatmul.f32.gmra.mxu3 %v638_v23  ;;  %1912 = vmatpush.msra.mxu2 %v1467_v30  ;;  %v652_v23 = vrot.slane %v580_v6, 1  ;;  %v778_v30 = vrot.slane %v706_v18, 2  ;;  %v712_v6 = vld [vmem:[#allocation2 + $0x90] sm:$0xfc]  ;;  %v1494_v7 = vld [vmem:[%s9927_s1 + $0x408] sm:$0xff] }
  0x67   : > { %1840 = vmatmul.f32.gmra.mxu0 %v764_v25  ;;  %2032 = vmatpush.msra.mxu1 %v1518_v31  ;;  %v1513_v25 = vld [vmem:[%s9927_s1 + $0x4a0] sm:$0xff]  ;;  %v581_v31 = vld [vmem:[#allocation2 + $0x98] sm:$0x1]  ;;  %v714_v18 = vld [vmem:[#allocation2 + $0x88] sm:$0x3] }
  0x68   : > { %1761 = vmatmul.f32.gmra.mxu2 %v641_v32  ;;  %1953 = vmatpush.msra.mxu3 %v1483_v34  ;;  %v707_v32 = vld [vmem:[#allocation2 + $0x128] sm:$0xfc]  ;;  %v653_v34 = vsel %vm626_vm0, %v651_v21, %v652_v23  ;;  %v655_v43 = vrot.slane %v581_v31, 1  ;;  %v779_v44 = vsel %vm755_vm1, %v777_v29, %v778_v30  ;;  %v589_v29 = vld [vmem:[#allocation2 + $0xa0] sm:$0x1]  ;;  %v1587_v51 = vld [vmem:[%s9927_s1 + $0x6f0] sm:$0xff] }
  0x69   : > { %1992 = vmatpush.msra.mxu0 %v1501_v38  ;;  %1913 = vmatpush.msra.mxu2 %v1466_v39  ;;  %v654_v38 = vrot.slane %v579_v27, 1  ;;  %v708_v39 = vld [vmem:[#allocation2 + $0x110] sm:$0xfc]  ;;  %v789_v27 = vrot.slane %v712_v6, 2  ;;  %v715_v30 = vld [vmem:[#allocation2 + $0xc0] sm:$0xfc] }
  0x6a   : > { %1881 = vmatmul.f32.gmra.mxu1 %v767_v41  ;;  %1954 = vmatpush.msra.mxu3 %v1482_v45  ;;  %v1496_v41 = vld [vmem:[%s9927_s1 + $0x418] sm:$0xff]  ;;  %v780_v45 = vrot.slane %v707_v32, 2  ;;  %v590_v33 = vld [vmem:[#allocation2 + $0x68] sm:$0xfe] }
  0x6b   : > { %2033 = vmatpush.msra.mxu1 %v1517_v48  ;;  %1993 = vmatpush.msra.mxu0 %v1500_v49  ;;  %v1512_v48 = vld [vmem:[%s9927_s1 + $0x498] sm:$0xff]  ;;  %v1477_v49 = vld [vmem:[%s9927_s1 + $0x380] sm:$0xff] }
  0x6c   : > { %1914 = vmatpush.msra.mxu2 %v1465_v52  ;;  %1955 = vmatpush.msra.mxu3 %v1481_v53  ;;  %v1511_v52 = vld [vmem:[%s9927_s1 + $0x490] sm:$0xff]  ;;  %v1540_v53 = vld [vmem:[%s9927_s1 + $0x578] sm:$0xff]  ;;  %v782_v59 = vsel %vm755_vm1, %v780_v45, %v781_v46  ;;  %v1553_v46 = vld [vmem:[%s9927_s1 + $0x5e0] sm:$0xff] }
  0x6d   : > { %2034 = vmatpush.msra.mxu1 %v1516_v55  ;;  %1994 = vmatpush.msra.mxu0 %v1499_v56  ;;  %v658_v55 = vrot.slane %v584_v37, 1  ;;  %v656_v56 = vsel %vm626_vm0, %v654_v38, %v655_v43  ;;  %v717_v31 = vld [vmem:[#allocation2 + $0xd8] sm:$0x3]  ;;  %v716_v37 = vld [vmem:[#allocation2 + $0x118] sm:$0xfc]  ;;  %v1554_v38 = vld [vmem:[%s9927_s1 + $0x5e8] sm:$0xff] }
  0x6e   : > { %1802 = vmatmul.f32.gmra.mxu3 %v644_v58  ;;  %1915 = vmatpush.msra.mxu2 %v1464_v1  ;;  %v583_v58 = vld [vmem:[#allocation2 + $0x90] sm:$0xfe]  ;;  %v792_v43 = vrot.slane %v715_v30, 2  ;;  %v1588_v45 = vld [vmem:[%s9927_s1 + $0x6f8] sm:$0xff] }
  0x6f   : > { %1843 = vmatmul.f32.gmra.mxu0 %v770_v60  ;;  %2035 = vmatpush.msra.mxu1 %v1515_v2  ;;  %v783_v60 = vrot.slane %v708_v39, 2  ;;  %v659_v1 = vsel %vm626_vm0, %v657_v54, %v658_v55  ;;  %v586_v2 = vld [vmem:[#allocation2 + $0xc0] sm:$0xfe]  ;;  %v660_v5 = vrot.slane %v583_v58, 1  ;;  %v1572_v39 = vld [vmem:[%s9927_s1 + $0x678] sm:$0xff]  ;;  %v795_v58 = vrot.slane %v716_v37, 2 }
  0x70   : > { %1764 = vmatmul.f32.gmra.mxu2 %v647_v3  ;;  %1956 = vmatpush.msra.mxu3 %v1480_v8  ;;  %v588_v3 = vld [vmem:[#allocation2 + $0xd8] sm:$0x1]  ;;  %v663_v21 = vrot.slane %v586_v2, 1  ;;  %v591_v55 = vld [vmem:[#allocation2 + $0x130] sm:$0xfe] }
  0x71   : > { %1995 = vmatpush.msra.mxu0 %v1498_v9  ;;  %1916 = vmatpush.msra.mxu2 %v1463_v10  ;;  %v1556_v8 = vld [vmem:[%s9927_s1 + $0x5f8] sm:$0xff]  ;;  %v1510_v9 = vld [vmem:[%s9927_s1 + $0x488] sm:$0xff]  ;;  %v661_v10 = vrot.slane %v585_v62, 1  ;;  %v785_v11 = vsel %vm755_vm1, %v783_v60, %v784_v61  ;;  %v664_v23 = vrot.slane %v588_v3, 1  ;;  %v721_v62 = vld [vmem:[#allocation2 + $0x50] sm:$0x3] }
  0x72   : > { %1884 = vmatmul.f32.gmra.mxu1 %v773_v13  ;;  %1957 = vmatpush.msra.mxu3 %v1479_v17  ;;  %v786_v13 = vrot.slane %v711_v63, 2  ;;  %v1555_v17 = vld [vmem:[%s9927_s1 + $0x5f0] sm:$0xff]  ;;  %v593_v60 = vld [vmem:[#allocation2 + $0xe8] sm:$0x1]  ;;  %v719_v61 = vld [vmem:[#allocation2 + $0x68] sm:$0xfc] }
  0x73   : > { %2036 = vmatpush.msra.mxu1 %v1514_v19  ;;  %1996 = vmatpush.msra.mxu0 %v1497_v20  ;;  %v1509_v19 = vld [vmem:[%s9927_s1 + $0x480] sm:$0xff]  ;;  %v1538_v20 = vld [vmem:[%s9927_s1 + $0x568] sm:$0xff]  ;;  %v665_v32 = vsel %vm626_vm0, %v663_v21, %v664_v23  ;;  %v672_v0 = vrot.slane %v591_v55, 1  ;;  %v1552_v2 = vld [vmem:[%s9927_s1 + $0x5d8] sm:$0xff]  ;;  %v673_v6 = vrot.slane %v593_v60, 1 }
  0x74   : > { %1917 = vmatpush.msra.mxu2 %v1462_v24  ;;  %1958 = vmatpush.msra.mxu3 %v1478_v40  ;;  %v662_v24 = vsel %vm626_vm0, %v660_v5, %v661_v10  ;;  %v1537_v40 = vld [vmem:[%s9927_s1 + $0x560] sm:$0xff]  ;;  %v1570_v3 = vld [vmem:[%s9927_s1 + $0x668] sm:$0xff]  ;;  %v1535_v5 = vld [vmem:[%s9927_s1 + $0x550] sm:$0xff] }
  0x75   : > { %2037 = vmatpush.msra.mxu1 %v1513_v25  ;;  %1997 = vmatpush.msra.mxu0 %v1496_v41  ;;  %v587_v25 = vld [vmem:[#allocation2 + $0x118] sm:$0xfe]  ;;  %v667_v41 = vrot.slane %v589_v29, 1  ;;  %v1586_v10 = vld [vmem:[%s9927_s1 + $0x6e8] sm:$0xff]  ;;  %v836_v21 = vld [vmem:[#allocation2 + $0x120] sm:$0xfe] }
  0x76   : > { %1805 = vmatmul.f32.gmra.mxu3 %v650_v26  ;;  %1918 = vmatpush.msra.mxu2 %v1461_v42  ;;  %v788_v26 = vsel %vm755_vm1, %v786_v13, %v787_v14  ;;  %v666_v36 = vrot.slane %v587_v25, 1  ;;  %v1569_v13 = vld [vmem:[%s9927_s1 + $0x660] sm:$0xff]  ;;  %v722_v14 = vld [vmem:[#allocation2 + $0xe8] sm:$0x3]  ;;  %v838_v23 = vld [vmem:[#allocation2 + $0xf8] sm:$0x1] }
  0x77   : > { %1846 = vmatmul.f32.gmra.mxu0 %v776_v28  ;;  %2038 = vmatpush.msra.mxu1 %v1512_v48  ;;  %v790_v28 = vrot.slane %v714_v18, 2  ;;  %v1571_v48 = vld [vmem:[%s9927_s1 + $0x670] sm:$0xff]  ;;  %v1550_v25 = vld [vmem:[%s9927_s1 + $0x5c8] sm:$0xff]  ;;  %v900_v29 = vrot.slane %v836_v21, 1  ;;  %v901_v30 = vrot.slane %v838_v23, 1 }
  0x78   : > { %1767 = vmatmul.f32.gmra.mxu2 %v653_v34  ;;  %1959 = vmatpush.msra.mxu3 %v1477_v49  ;;  %v592_v34 = vld [vmem:[#allocation2 + $0x50] sm:$0x1]  ;;  %v718_v49 = vld [vmem:[#allocation2 + $0xa0] sm:$0x3]  ;;  %v668_v54 = vsel %vm626_vm0, %v666_v36, %v667_v41  ;;  %v1532_v36 = vld [vmem:[%s9927_s1 + $0x538] sm:$0xff] }
  0x79   : > { %1998 = vmatpush.msra.mxu0 %v1495_v50  ;;  %2039 = vmatpush.msra.mxu1 %v1511_v52  ;;  %v791_v42 = vsel %vm755_vm1, %v789_v27, %v790_v28  ;;  %v1536_v50 = vld [vmem:[%s9927_s1 + $0x558] sm:$0xff]  ;;  %v669_v52 = vrot.slane %v590_v33, 1  ;;  %v1533_v27 = vld [vmem:[%s9927_s1 + $0x540] sm:$0xff]  ;;  %v1567_v33 = vld [vmem:[%s9927_s1 + $0x650] sm:$0xff] }
  0x7a   : > { %1887 = vmatmul.f32.gmra.mxu1 %v779_v44  ;;  %2067 = vmatpush.msrb.mxu2 %v1540_v53  ;;  %v793_v44 = vrot.slane %v717_v31, 2  ;;  %v670_v53 = vrot.slane %v592_v34, 1  ;;  %v1584_v31 = vld [vmem:[%s9927_s1 + $0x6d8] sm:$0xff]  ;;  %v839_v34 = vld [vmem:[#allocation2 + $0x100] sm:$0x1]  ;;  %v1583_v37 = vld [vmem:[%s9927_s1 + $0x6d0] sm:$0xff] }
  0x7b   : > { %1999 = vmatpush.msra.mxu0 %v1494_v7  ;;  %2108 = vmatpush.msrb.mxu3 %v1556_v8  ;;  %v798_v8 = vrot.slane %v719_v61, 2  ;;  %v842_v41 = vld [vmem:[#allocation2 + $0x138] sm:$0x1]  ;;  %v1546_v60 = vld [vmem:[%s9927_s1 + $0x5a8] sm:$0xff] }
  0x7c   : > { %2040 = vmatpush.msra.mxu1 %v1510_v9  ;;  %2068 = vmatpush.msrb.mxu2 %v1539_v15  ;;  %v671_v63 = vsel %vm626_vm0, %v669_v52, %v670_v53  ;;  %v799_v9 = vrot.slane %v721_v62, 2  ;;  %v1534_v15 = vld [vmem:[%s9927_s1 + $0x548] sm:$0xff]  ;;  %v1565_v52 = vld [vmem:[%s9927_s1 + $0x640] sm:$0xff]  ;;  %v1564_v61 = vld [vmem:[%s9927_s1 + $0x638] sm:$0xff] }
  0x7d   : > { %2000 = vmatpush.msra.mxu0 %v1493_v16  ;;  %2109 = vmatpush.msrb.mxu3 %v1555_v17  ;;  %v1585_v16 = vld [vmem:[%s9927_s1 + $0x6e0] sm:$0xff]  ;;  %v674_v17 = vsel %vm626_vm0, %v672_v0, %v673_v6 }
  0x7e   : > { %1808 = vmatmul.f32.gmra.mxu3 %v656_v56  ;;  %2041 = vmatpush.msra.mxu1 %v1509_v19  ;;  %v794_v56 = vsel %vm755_vm1, %v792_v43, %v793_v44  ;;  %v800_v18 = vsel %vm755_vm1, %v798_v8, %v799_v9  ;;  %v1566_v43 = vld [vmem:[%s9927_s1 + $0x648] sm:$0xff]  ;;  %v1529_v62 = vld [vmem:[%s9927_s1 + $0x520] sm:$0xff] }
  0x7f   : > { %1849 = vmatmul.f32.gmra.mxu0 %v782_v59  ;;  %2069 = vmatpush.msrb.mxu2 %v1538_v20  ;;  %v796_v59 = vrot.slane %v718_v49, 2  ;;  %v802_v20 = vrot.slane %v722_v14, 2  ;;  %v841_v49 = vld [vmem:[#allocation2 + $0x108] sm:$0xfe]  ;;  %v1545_v6 = vld [vmem:[%s9927_s1 + $0x5a0] sm:$0xff] }
  0x80   : > { %1770 = vmatmul.f32.gmra.mxu2 %v659_v1  ;;  %2110 = vmatpush.msrb.mxu3 %v1554_v38  ;;  %v720_v1 = vld [vmem:[#allocation2 + $0x130] sm:$0xfc]  ;;  %v902_v38 = vsel %vm626_vm0, %v900_v29, %v901_v30  ;;  %v848_v14 = vld [vmem:[#allocation2 + $0x128] sm:$0xfe]  ;;  %v1561_v29 = vld [vmem:[%s9927_s1 + $0x620] sm:$0xff] }
  0x81   : > { %2149 = vmatpush.msrb.mxu0 %v1572_v39  ;;  %2190 = vmatpush.msrb.mxu1 %v1588_v45  ;;  %v797_v7 = vsel %vm755_vm1, %v795_v58, %v796_v59  ;;  %v801_v19 = vrot.slane %v720_v1, 2  ;;  %v844_v58 = vld [vmem:[#allocation2 + $0x18] sm:$0xfe]  ;;  %v846_v59 = vld [vmem:[#allocation2 + $0x70] sm:$0x1]  ;;  %v918_v23 = vrot.slane %v848_v14, 1 }
  0x82   : > { %1890 = vmatmul.f32.gmra.mxu1 %v785_v11  ;;  %2070 = vmatpush.msrb.mxu2 %v1537_v40  ;;  %v1551_v11 = vld [vmem:[%s9927_s1 + $0x5d0] sm:$0xff]  ;;  %v904_v40 = vrot.slane %v839_v34, 1  ;;  %v912_v0 = vrot.slane %v844_v58, 1  ;;  %v913_v1 = vrot.slane %v846_v59, 1  ;;  %v1526_v30 = vld [vmem:[%s9927_s1 + $0x508] sm:$0xff] }
  0x83   : > { %2111 = vmatpush.msrb.mxu3 %v1553_v46  ;;  %2150 = vmatpush.msrb.mxu0 %v1571_v48  ;;  %v803_v28 = vsel %vm755_vm1, %v801_v19, %v802_v20  ;;  %v907_v46 = vrot.slane %v842_v41, 1  ;;  %v1531_v48 = vld [vmem:[%s9927_s1 + $0x530] sm:$0xff]  ;;  %v1562_v19 = vld [vmem:[%s9927_s1 + $0x628] sm:$0xff]  ;;  %v1525_v41 = vld [vmem:[%s9927_s1 + $0x500] sm:$0xff] }
  0x84   : > { %2071 = vmatpush.msrb.mxu2 %v1536_v50  ;;  %2191 = vmatpush.msrb.mxu1 %v1587_v51  ;;  %v843_v50 = vld [vmem:[#allocation2 + $0xf0] sm:$0x1]  ;;  %v914_v9 = vsel %vm626_vm0, %v912_v0, %v913_v1  ;;  %v856_v58 = vld [vmem:[#allocation2 + $0xc0] sm:$0xfe]  ;;  %v858_v59 = vld [vmem:[#allocation2 + $0xd8] sm:$0x1] }
  0x85   : > { %2112 = vmatpush.msrb.mxu3 %v1552_v2  ;;  %2151 = vmatpush.msrb.mxu0 %v1570_v3  ;;  %v1547_v51 = vld [vmem:[%s9927_s1 + $0x5b0] sm:$0xff]  ;;  %v910_v55 = vrot.slane %v843_v50, 1  ;;  %v845_v2 = vld [vmem:[#allocation2 + $0xc8] sm:$0xfe]  ;;  %v847_v3 = vld [vmem:[#allocation2 + $0x20] sm:$0x1] }
  0x86   : > { %1811 = vmatmul.f32.gmra.mxu3 %v662_v24  ;;  %2192 = vmatpush.msrb.mxu1 %v1586_v10  ;;  %v837_v24 = vld [vmem:[#allocation2 + $0x38] sm:$0xfe]  ;;  %v915_v10 = vrot.slane %v845_v2, 1  ;;  %v1527_v20 = vld [vmem:[%s9927_s1 + $0x510] sm:$0xff]  ;;  %v1541_v50 = vld [vmem:[%s9927_s1 + $0x580] sm:$0xff]  ;;  %v931_v2 = vrot.slane %v858_v59, 1 }
  0x87   : > { %1852 = vmatmul.f32.gmra.mxu0 %v788_v26  ;;  %2072 = vmatpush.msrb.mxu2 %v1535_v5  ;;  %v1568_v26 = vld [vmem:[%s9927_s1 + $0x658] sm:$0xff]  ;;  %v903_v39 = vrot.slane %v837_v24, 1  ;;  %v463_v5 = vld [vmem:[%s6126_s25 + $0x70] sm:$0xff]  ;;  %v1574_v0 = vld [vmem:[%s9927_s1 + $0x688] sm:$0xff] }
  0x88   : > { %1773 = vmatmul.f32.gmra.mxu2 %v665_v32  ;;  %2113 = vmatpush.msrb.mxu3 %v1551_v11  ;;  %v1549_v32 = vld [vmem:[%s9927_s1 + $0x5c0] sm:$0xff]  ;;  %v495_v8 = vrot.slane %v463_v5, 7  ;;  %v1528_v11 = vld [vmem:[%s9927_s1 + $0x518] sm:$0xff] }
  0x89   : > { %2152 = vmatpush.msrb.mxu0 %v1569_v13  ;;  %2073 = vmatpush.msrb.mxu2 %v1534_v15  ;;  %v905_v44 = vsel %vm626_vm0, %v903_v39, %v904_v40  ;;  %v1579_v13 = vld [vmem:[%s9927_s1 + $0x6b0] sm:$0xff]  ;;  %v850_v15 = vld [vmem:[#allocation2 + $0x8] sm:$0x1]  ;;  %v857_v5 = vld [vmem:[#allocation2 + $0x118] sm:$0xfe] }
  0x8a   : > { %1893 = vmatmul.f32.gmra.mxu1 %v791_v42  ;;  %2114 = vmatpush.msrb.mxu3 %v1550_v25  ;;  %v1548_v42 = vld [vmem:[%s9927_s1 + $0x5b8] sm:$0xff]  ;;  %542 = vst [vmem:[#allocation2 + $0x58] sm:$0xfe] %v495_v8  ;;  %v919_v24 = vrot.slane %v850_v15, 1  ;;  %v6857_v39 = vld [vmem:[#allocation2 + $0xa8] sm:$0xff]  ;;  %v933_v15 = vrot.slane %v857_v5, 1 }
  0x8b   : > { %2193 = vmatpush.msrb.mxu1 %v1585_v16  ;;  %2153 = vmatpush.msrb.mxu0 %v1568_v26  ;;  %v6824_v16 = vld [vmem:[#allocation2 + $0x128] sm:$0xff]  ;;  %544 = vst [vmem:[#allocation2 + $0x30] sm:$0x1] %v495_v8  ;;  %v849_v26 = vld [vmem:[#allocation2 + $0x110] sm:$0xfe] }
  0x8c   : > { %2074 = vmatpush.msrb.mxu2 %v1533_v27  ;;  %2115 = vmatpush.msrb.mxu3 %v1549_v32  ;;  %v851_v27 = vld [vmem:[#allocation2 + $0x98] sm:$0x1]  ;;  %v920_v32 = vsel %vm626_vm0, %v918_v23, %v919_v24  ;;  %v1542_v40 = vld [vmem:[%s9927_s1 + $0x588] sm:$0xff]  ;;  %v6917_v8 = vld [vmem:[%s9928_s2] ss:$0 sm:$0xff] }
  0x8d   : > { %2194 = vmatpush.msrb.mxu1 %v1584_v31  ;;  %2154 = vmatpush.msrb.mxu0 %v1567_v33  ;;  %v6851_v31 = vld [vmem:[#allocation2 + $0x110] sm:$0xff]  ;;  %v921_v33 = vrot.slane %v849_v26, 1  ;;  %v922_v34 = vrot.slane %v851_v27, 1  ;;  %v6936_v23 = vld [vmem:[#allocation2 + $0x68] sm:$0xff] }
  0x8e   : > { %1814 = vmatmul.f32.gmra.mxu3 %v668_v54  ;;  %2075 = vmatpush.msrb.mxu2 %v1532_v36  ;;  %v909_v54 = vrot.slane %v841_v49, 1  ;;  %v1577_v36 = vld [vmem:[%s9927_s1 + $0x6a0] sm:$0xff] }
  0x8f   : > { %1855 = vmatmul.f32.gmra.mxu0 %v794_v56  ;;  %2195 = vmatpush.msrb.mxu1 %v1583_v37  ;;  %v1581_v56 = vld [vmem:[%s9927_s1 + $0x6c0] sm:$0xff]  ;;  %v852_v37 = vld [vmem:[#allocation2 + $0xa8] sm:$0xfe] }
  0x90   : > { %1776 = vmatmul.f32.gmra.mxu2 %v671_v63  ;;  %2116 = vmatpush.msrb.mxu3 %v1548_v42  ;;  %v911_v63 = vsel %vm626_vm0, %v909_v54, %v910_v55  ;;  %v923_v42 = vsel %vm626_vm0, %v921_v33, %v922_v34  ;;  %v861_v33 = vld [vmem:[#allocation2 + $0x130] sm:$0xfe]  ;;  %v863_v34 = vld [vmem:[#allocation2 + $0xe8] sm:$0x1] }
  0x91   : > { %2155 = vmatpush.msrb.mxu0 %v1566_v43  ;;  %2076 = vmatpush.msrb.mxu2 %v1531_v48  ;;  %v924_v43 = vrot.slane %v852_v37, 1  ;;  %v855_v48 = vld [vmem:[#allocation2 + $0x88] sm:$0x1] }
  0x92   : > { %1896 = vmatmul.f32.gmra.mxu1 %v797_v7  ;;  %2117 = vmatpush.msrb.mxu3 %v1547_v51  ;;  %v1563_v7 = vld [vmem:[%s9927_s1 + $0x630] sm:$0xff] }
  0x93   : > { %2156 = vmatpush.msrb.mxu0 %v1565_v52  ;;  %v1559_v51 = vld [vmem:[%s9927_s1 + $0x610] sm:$0xff] }
  0x94   : > { %2118 = vmatpush.msrb.mxu3 %v1546_v60  ;;  %v1575_v52 = vld [vmem:[%s9927_s1 + $0x690] sm:$0xff]  ;;  %v6893_v60 = vld [vmem:[#allocation2 + $0xc0] sm:$0xff] }
  0x95   : > { %2157 = vmatpush.msrb.mxu0 %v1564_v61 }
  0x96   : > { %1817 = vmatmul.f32.gmra.mxu3 %v674_v17  ;;  %v464_v17 = vld [vmem:[%s6126_s25 + $0x78] sm:$0xff] }
  0x97   : > { %1858 = vmatmul.f32.gmra.mxu0 %v800_v18  ;;  %2119 = vmatpush.msrb.mxu3 %v1545_v6  ;;  %v1544_v18 = vld [vmem:[%s9927_s1 + $0x598] sm:$0xff]  ;;  %v496_v25 = vrot.slane %v464_v17, 7  ;;  %v859_v6 = vld [vmem:[#allocation2 + $0xa0] sm:$0x1] }
  0x98   : > { %1919 = vmatmul.f32.vlgmr.msra.gmra.mxu2 %v6390_v47  ;;  %v840_v47 = vld [vmem:[#allocation2 + $0x80] sm:$0xfe]  ;;  %2158 = vmatpush.msrb.mxu0 %v1563_v7  ;;  %v934_v17 = vrot.slane %v859_v6, 1 }
  0x99   : > { %v906_v45 = vrot.slane %v840_v47, 1  ;;  %2120 = vmatpush.msrb.mxu3 %v1544_v18  ;;  %543 = vst [vmem:[#allocation2 + $0x78] sm:$0xfe] %v496_v25  ;;  %v1560_v47 = vld [vmem:[%s9927_s1 + $0x618] sm:$0xff]  ;;  %v860_v18 = vld [vmem:[#allocation2 + $0x68] sm:$0xfe] }
  0x9a   : > { %1899 = vmatmul.f32.gmra.mxu1 %v803_v28  ;;  %2159 = vmatpush.msrb.mxu0 %v1562_v19  ;;  %v1543_v28 = vld [vmem:[%s9927_s1 + $0x590] sm:$0xff]  ;;  %545 = vst [vmem:[#allocation2 + $0x40] sm:$0x1] %v496_v25  ;;  %v1636_v25 = vld [vmem:[%s9927_s1 + $0x878] sm:$0xff]  ;;  %v935_v27 = vsel %vm626_vm0, %v933_v15, %v934_v17 }
  0x9b   : > { %v908_v53 = vsel %vm626_vm0, %v906_v45, %v907_v46  ;;  %2121 = vmatpush.msrb.mxu3 %v1543_v28  ;;  %v1576_v45 = vld [vmem:[%s9927_s1 + $0x698] sm:$0xff]  ;;  %v853_v46 = vld [vmem:[#allocation2 + $0x90] sm:$0xfe]  ;;  %v862_v19 = vld [vmem:[#allocation2 + $0x50] sm:$0x1]  ;;  %v936_v28 = vrot.slane %v860_v18, 1 }
  0x9c   : > { %2160 = vmatpush.msrb.mxu0 %v1561_v29  ;;  %v927_v55 = vrot.slane %v853_v46, 1  ;;  %v937_v29 = vrot.slane %v862_v19, 1  ;;  %v864_v46 = vld [vmem:[#allocation2 + $0x58] sm:$0xfe] }
  0x9d   : > { %2122 = vmatpush.msrb.mxu3 %v1542_v40  ;;  %v1635_v40 = vld [vmem:[%s9927_s1 + $0x870] sm:$0xff] }
  0x9e   : > { %1960 = vmatmul.f32.vlgmr.msra.gmra.mxu3 %v6412_v57  ;;  %v1582_v57 = vld [vmem:[%s9927_s1 + $0x6c8] sm:$0xff]  ;;  %2161 = vmatpush.msrb.mxu0 %v1560_v47  ;;  %v6964_v47 = vld [vmem:[#allocation2 + $0x130] sm:$0xff] }
  0x9f   : > { %2001 = vmatmul.f32.vlgmr.msra.gmra.mxu0 %v902_v38  ;;  %2196 = vmatpush.msrb.mxu1 %v1582_v57  ;;  %v854_v38 = vld [vmem:[#allocation2 + $0xe0] sm:$0x1] }
  0xa0   : > { %1922 = vmatmul.f32.gmra.mxu2 %v6433_v4  ;;  %v1530_v4 = vld [vmem:[%s9927_s1 + $0x528] sm:$0xff]  ;;  %2123 = vmatpush.msrb.mxu3 %v1541_v50  ;;  %v1600_v50 = vld [vmem:[%s9927_s1 + $0x758] sm:$0xff] }
  0xa1   : > { %2077 = vmatpush.msrb.mxu2 %v1530_v4  ;;  %2197 = vmatpush.msrb.mxu1 %v1581_v56  ;;  %v928_v4 = vrot.slane %v855_v48, 1  ;;  %v1604_v56 = vld [vmem:[%s9927_s1 + $0x778] sm:$0xff]  ;;  %v866_v48 = vld [vmem:[#allocation2 + $0x30] sm:$0x1] }
  0xa2   : > { %2042 = vmatmul.f32.vlgmr.msra.gmra.mxu1 %v905_v44  ;;  %v925_v44 = vrot.slane %v854_v38, 1  ;;  %2162 = vmatpush.msrb.mxu0 %v1559_v51  ;;  %v1617_v38 = vld [vmem:[%s9927_s1 + $0x7e0] sm:$0xff]  ;;  %v1651_v51 = vld [vmem:[%s9927_s1 + $0x8f0] sm:$0xff]  ;;  %v7003_v15 = vld [vmem:[#allocation2 + $0x78] sm:$0xff] }
  0xa3   : > { %2078 = vmatpush.msrb.mxu2 %v1529_v62  ;;  %v1558_v62 = vld [vmem:[%s9927_s1 + $0x608] sm:$0xff]  ;;  %v929_v1 = vsel %vm626_vm0, %v927_v55, %v928_v4  ;;  %v966_v4 = vld [vmem:[#allocation2 + $0xf8] sm:$0x3] }
  0xa4   : > { %v926_v54 = vsel %vm626_vm0, %v924_v43, %v925_v44  ;;  %2163 = vmatpush.msrb.mxu0 %v1558_v62  ;;  %v938_v43 = vsel %vm626_vm0, %v936_v28, %v937_v29  ;;  %v939_v44 = vrot.slane %v861_v33, 1  ;;  %v968_v29 = vld [vmem:[#allocation2 + $0x80] sm:$0xfc]  ;;  %v1614_v33 = vld [vmem:[%s9927_s1 + $0x7c8] sm:$0xff] }
  0xa5   : > { %2079 = vmatpush.msrb.mxu2 %v1528_v11 }
  0xa6   : > { %1963 = vmatmul.f32.gmra.mxu3 %v6454_v12  ;;  %v1580_v12 = vld [vmem:[%s9927_s1 + $0x6b8] sm:$0xff] }
  0xa7   : > { %2004 = vmatmul.f32.gmra.mxu0 %v908_v53  ;;  %2198 = vmatpush.msrb.mxu1 %v1580_v12  ;;  %v6887_v53 = vld [vmem:[#allocation2 + $0x90] sm:$0xff]  ;;  %v930_v12 = vrot.slane %v856_v58, 1  ;;  %v1634_v58 = vld [vmem:[%s9927_s1 + $0x868] sm:$0xff] }
  0xa8   : > { %1925 = vmatmul.f32.gmra.mxu2 %v6469_v22  ;;  %v916_v22 = vrot.slane %v847_v3, 1  ;;  %v1603_v3 = vld [vmem:[%s9927_s1 + $0x770] sm:$0xff] }
  0xa9   : > { %2199 = vmatpush.msrb.mxu1 %v1579_v13  ;;  %2080 = vmatpush.msrb.mxu2 %v1527_v20  ;;  %v6876_v49 = vpop.f32.mrf.mxu0  ;;  %v932_v14 = vsel %vm626_vm0, %v930_v12, %v931_v2  ;;  %v1573_v20 = vld [vmem:[%s9927_s1 + $0x680] sm:$0xff]  ;;  %v1650_v12 = vld [vmem:[%s9927_s1 + $0x8e8] sm:$0xff]  ;;  %v865_v2 = vld [vmem:[#allocation2 + $0x78] sm:$0xfe] }
  0xaa   : > { %2045 = vmatmul.f32.gmra.mxu1 %v911_v63  ;;  %v917_v21 = vsel %vm626_vm0, %v915_v10, %v916_v22  ;;  %v1620_v63 = vld [vmem:[%s9927_s1 + $0x7f8] sm:$0xff]  ;;  %v1619_v10 = vld [vmem:[%s9927_s1 + $0x7f0] sm:$0xff] }
  0xab   : > { %2081 = vmatpush.msrb.mxu2 %v1526_v30  ;;  %2272 = vmatpush.msra.mxu3 %v1620_v63  ;;  %v6925_v22 = vld [vmem:[#allocation2 + $0x118] sm:$0xff]  ;;  %v1601_v30 = vld [vmem:[%s9927_s1 + $0x760] sm:$0xff]  ;;  %v942_v63 = vrot.slane %v864_v46, 1 }
  0xac   : > { %v6895_v61 = vpop.f32.mrf.mxu1 }
  0xad   : > { %2082 = vmatpush.msrb.mxu2 %v1525_v41  ;;  %2273 = vmatpush.msra.mxu3 %v1619_v10 }
  0xae   : > { %1966 = vmatmul.f32.gmra.mxu3 %v6488_v35  ;;  %v1578_v35 = vld [vmem:[%s9927_s1 + $0x6a8] sm:$0xff]  ;;  %v6874_v57 = vpop.f32.mrf.mxu2 }
  0xaf   : > { %2007 = vmatmul.f32.gmra.mxu0 %v914_v9  ;;  %2200 = vmatpush.msrb.mxu1 %v1578_v35  ;;  %v1557_v9 = vld [vmem:[%s9927_s1 + $0x600] sm:$0xff]  ;;  %v1618_v35 = vld [vmem:[%s9927_s1 + $0x7e8] sm:$0xff] }
  0xb0   : > { %1928 = vmatmul.f32.gmra.mxu2 %v6824_v16  ;;  %2164 = vmatpush.msrb.mxu0 %v1557_v9  ;;  %v1029_v9 = vrot.slane %v966_v4, 2 }
  0xb1   : > { %2201 = vmatpush.msrb.mxu1 %v1577_v36  ;;  %2231 = vmatpush.msra.mxu2 %v1604_v56  ;;  %v1616_v56 = vld [vmem:[%s9927_s1 + $0x7d8] sm:$0xff] }
  0xb2   : > { %2048 = vmatmul.f32.gmra.mxu1 %v917_v21  ;;  %v1602_v21 = vld [vmem:[%s9927_s1 + $0x768] sm:$0xff]  ;;  %2274 = vmatpush.msra.mxu3 %v1618_v35  ;;  %v967_v35 = vld [vmem:[#allocation2 + $0x100] sm:$0x3] }
  0xb3   : > { %2202 = vmatpush.msrb.mxu1 %v1576_v45  ;;  %2232 = vmatpush.msra.mxu2 %v1603_v3  ;;  %v940_v45 = vrot.slane %v863_v34, 1  ;;  %v867_v3 = vld [vmem:[#allocation2 + $0x40] sm:$0x1]  ;;  %v1632_v34 = vld [vmem:[%s9927_s1 + $0x858] sm:$0xff] }
  0xb4   : > { %2313 = vmatpush.msra.mxu0 %v1636_v25  ;;  %2275 = vmatpush.msra.mxu3 %v1617_v38  ;;  %v1598_v25 = vld [vmem:[%s9927_s1 + $0x748] sm:$0xff] }
  0xb5   : > { %2203 = vmatpush.msrb.mxu1 %v1575_v52  ;;  %2233 = vmatpush.msra.mxu2 %v1602_v21  ;;  %v6975_v52 = vld [vmem:[#allocation2 + $0x58] sm:$0xff]  ;;  %v941_v62 = vsel %vm626_vm0, %v939_v44, %v940_v45  ;;  %v945_v21 = vrot.slane %v865_v2, 1  ;;  %v1675_v45 = vadd.f32 %v6917_v8, %v6876_v49 }
  0xb6   : > { %1969 = vmatmul.f32.gmra.mxu3 %v6851_v31  ;;  %2314 = vmatpush.msra.mxu0 %v1635_v40  ;;  %v1648_v44 = vld [vmem:[%s9927_s1 + $0x8d8] sm:$0xff] }
  0xb7   : > { %2010 = vmatmul.f32.gmra.mxu0 %v920_v32  ;;  %2204 = vmatpush.msrb.mxu1 %v1574_v0  ;;  %v1652_v32 = vld [vmem:[%s9927_s1 + $0x8f8] sm:$0xff]  ;;  %v943_v0 = vrot.slane %v866_v48, 1  ;;  %v1034_v48 = vrot.slane %v968_v29, 2  ;;  %v1611_v29 = vld [vmem:[%s9927_s1 + $0x7b0] sm:$0xff] }
  0xb8   : > { %1931 = vmatmul.f32.gmra.mxu2 %v6857_v39  ;;  %2276 = vmatpush.msra.mxu3 %v1616_v56 }
  0xb9   : > { %2205 = vmatpush.msrb.mxu1 %v1573_v20  ;;  %2234 = vmatpush.msra.mxu2 %v1601_v30  ;;  %v944_v19 = vsel %vm626_vm0, %v942_v63, %v943_v0  ;;  %v965_v20 = vld [vmem:[#allocation2 + $0x38] sm:$0xfc]  ;;  %v970_v30 = vld [vmem:[#allocation2 + $0x138] sm:$0x3]  ;;  %v1716_v63 = vadd.f32 %v6895_v61, %v1675_v45  ;;  %v971_v0 = vld [vmem:[#allocation2 + $0xf0] sm:$0x3] }
  0xba   : > { %2051 = vmatmul.f32.gmra.mxu1 %v923_v42  ;;  %2315 = vmatpush.msra.mxu0 %v1634_v58  ;;  %v1031_v40 = vrot.slane %v965_v20, 2  ;;  %v969_v58 = vld [vmem:[#allocation2 + $0x108] sm:$0xfc]  ;;  %v1612_v61 = vld [vmem:[%s9927_s1 + $0x7b8] sm:$0xff]  ;;  %v1645_v45 = vld [vmem:[%s9927_s1 + $0x8c0] sm:$0xff] }
  0xbb   : > { %2354 = vmatpush.msra.mxu1 %v1652_v32  ;;  %2235 = vmatpush.msra.mxu2 %v1600_v50  ;;  %v1035_v50 = vrot.slane %v970_v30, 2  ;;  %v1094_v20 = vld [vmem:[#allocation2 + $0x108] sm:$0xff]  ;;  %v1629_v30 = vld [vmem:[%s9927_s1 + $0x840] sm:$0xff] }
  0xbd   : > { %2355 = vmatpush.msra.mxu1 %v1651_v51  ;;  %v1036_v2 = vsel %vm755_vm1, %v1034_v48, %v1035_v50  ;;  %v976_v48 = vld [vmem:[#allocation2 + $0x128] sm:$0xfc]  ;;  %v978_v50 = vld [vmem:[#allocation2 + $0x8] sm:$0x3] }
  0xbe   : > { %1972 = vmatmul.f32.gmra.mxu3 %v6887_v53 }
  0xbf   : > { %2013 = vmatmul.f32.gmra.mxu0 %v926_v54  ;;  %v964_v54 = vld [vmem:[#allocation2 + $0x120] sm:$0xfc]  ;;  %2356 = vmatpush.msra.mxu1 %v1650_v12  ;;  %v1647_v12 = vld [vmem:[%s9927_s1 + $0x8d0] sm:$0xff] }
  0xc0   : > { %1934 = vmatmul.f32.gmra.mxu2 %v6893_v60  ;;  %v1028_v6 = vrot.slane %v964_v54, 2  ;;  %v1613_v54 = vld [vmem:[%s9927_s1 + $0x7c0] sm:$0xff] }
  0xc1   : > { %v6912_v7 = vpop.f32.mrf.mxu3 }
  0xc2   : > { %2054 = vmatmul.f32.gmra.mxu1 %v929_v1  ;;  %v1599_v1 = vld [vmem:[%s9927_s1 + $0x750] sm:$0xff]  ;;  %v1030_v28 = vsel %vm755_vm1, %v1028_v6, %v1029_v9  ;;  %v1630_v9 = vld [vmem:[%s9927_s1 + $0x848] sm:$0xff] }
  0xc3   : > { %v1689_v11 = vpop.f32.mrf.mxu2  ;;  %v6927_v13 = vpop.f32.mrf.mxu0  ;;  %2236 = vmatpush.msra.mxu2 %v1599_v1  ;;  %v1596_v1 = vld [vmem:[%s9927_s1 + $0x738] sm:$0xff] }
  0xc4   : > { %v1690_v24 = vadd.f32 %v6917_v8, %v1689_v11  ;;  %v1615_v11 = vld [vmem:[%s9927_s1 + $0x7d0] sm:$0xff] }
  0xc5   : > { %2277 = vmatpush.msra.mxu3 %v1615_v11  ;;  %2237 = vmatpush.msra.mxu2 %v1598_v25  ;;  %v1595_v11 = vld [vmem:[%s9927_s1 + $0x730] sm:$0xff] }
  0xc6   : > { %1975 = vmatmul.f32.gmra.mxu3 %v6925_v22 }
  0xc7   : > { %2016 = vmatmul.f32.gmra.mxu0 %v932_v14  ;;  %v6946_v26 = vpop.f32.mrf.mxu1  ;;  %v1633_v14 = vld [vmem:[%s9927_s1 + $0x860] sm:$0xff]  ;;  %2278 = vmatpush.msra.mxu3 %v1614_v33 }
  0xc8   : > { %1937 = vmatmul.f32.gmra.mxu2 %v6936_v23  ;;  %2316 = vmatpush.msra.mxu0 %v1633_v14 }
  0xc9   : > { %v1730_v36 = vpop.f32.mrf.mxu3  ;;  %2279 = vmatpush.msra.mxu3 %v1613_v54 }
  0xca   : > { %v6956_v37 = vadd.f32 %v1730_v36, %v1690_v24  ;;  %2057 = vmatmul.f32.gmra.mxu1 %v935_v27  ;;  %v946_v24 = vrot.slane %v867_v3, 1  ;;  %v1649_v27 = vld [vmem:[%s9927_s1 + $0x8e0] sm:$0xff]  ;;  %2317 = vmatpush.msra.mxu0 %v1632_v34  ;;  %v972_v3 = vld [vmem:[#allocation2 + $0x18] sm:$0xfc]  ;;  %v973_v34 = vld [vmem:[#allocation2 + $0xc8] sm:$0xfc] }
  0xcb   : > { %v1692_v41 = vpop.f32.mrf.mxu2  ;;  %2357 = vmatpush.msra.mxu1 %v1649_v27  ;;  %v1597_v36 = vld [vmem:[%s9927_s1 + $0x740] sm:$0xff]  ;;  %2280 = vmatpush.msra.mxu3 %v1612_v61  ;;  %v1040_v25 = vrot.slane %v972_v3, 2  ;;  %v1047_v3 = vrot.slane %v978_v50, 2  ;;  %v1627_v61 = vld [vmem:[%s9927_s1 + $0x830] sm:$0xff] }
  0xcc   : > { %v6966_v42 = vpop.f32.mrf.mxu0  ;;  %v1693_v55 = vadd.f32 %v6917_v8, %v1692_v41  ;;  %v1032_v41 = vrot.slane %v967_v35, 2  ;;  %2238 = vmatpush.msra.mxu2 %v1597_v36  ;;  %v1095_v36 = vld [vmem:[#allocation2 + $0x18] sm:$0xff] }
  0xcd   : > { %2358 = vmatpush.msra.mxu1 %v1648_v44  ;;  %2281 = vmatpush.msra.mxu3 %v1611_v29  ;;  %v1594_v44 = vld [vmem:[%s9927_s1 + $0x728] sm:$0xff]  ;;  %v1608_v29 = vld [vmem:[%s9927_s1 + $0x798] sm:$0xff] }
  0xce   : > { %1978 = vmatmul.f32.gmra.mxu3 %v6964_v47  ;;  %v1033_v4 = vsel %vm755_vm1, %v1031_v40, %v1032_v41  ;;  %2239 = vmatpush.msra.mxu2 %v1596_v1  ;;  %v1681_v1 = vadd.f32 %v6917_v8, %v6966_v42 }
  0xcf   : > { %2019 = vmatmul.f32.gmra.mxu0 %v938_v43  ;;  %v6985_v59 = vpop.f32.mrf.mxu1  ;;  %v947_v43 = vsel %vm626_vm0, %v945_v21, %v946_v24  ;;  %2359 = vmatpush.msra.mxu1 %v1647_v12  ;;  %v1646_v21 = vld [vmem:[%s9927_s1 + $0x8c8] sm:$0xff]  ;;  %v1678_v24 = vadd.f32 %v6917_v8, %v6927_v13 }
  0xd0   : > { %1940 = vmatmul.f32.gmra.mxu2 %v6975_v52 }
  0xd1   : > { %v1733_v5 = vpop.f32.mrf.mxu3  ;;  %2360 = vmatpush.msra.mxu1 %v1646_v21  ;;  %2240 = vmatpush.msra.mxu2 %v1595_v11  ;;  %v1719_v40 = vadd.f32 %v6946_v26, %v1678_v24  ;;  %v1592_v21 = vld [vmem:[%s9927_s1 + $0x718] sm:$0xff]  ;;  %v1643_v24 = vld [vmem:[%s9927_s1 + $0x8b0] sm:$0xff] }
  0xd2   : > { %v6995_v10 = vadd.f32 %v1733_v5, %v1693_v55  ;;  %2060 = vmatmul.f32.gmra.mxu1 %v941_v62  ;;  %v1631_v55 = vld [vmem:[%s9927_s1 + $0x850] sm:$0xff]  ;;  %v1093_v62 = vld [vmem:[#allocation2 + $0x80] sm:$0xff] }
  0xd3   : > { %v1695_v17 = vpop.f32.mrf.mxu2  ;;  %2318 = vmatpush.msra.mxu0 %v1631_v55  ;;  %v974_v5 = vld [vmem:[#allocation2 + $0x70] sm:$0x3]  ;;  %2241 = vmatpush.msra.mxu2 %v1594_v44  ;;  %v1610_v55 = vld [vmem:[%s9927_s1 + $0x7a8] sm:$0xff] }
  0xd4   : > { %v7005_v18 = vpop.f32.mrf.mxu0  ;;  %v1696_v32 = vadd.f32 %v6917_v8, %v1695_v17  ;;  %v1037_v17 = vrot.slane %v969_v58, 2  ;;  %v1041_v27 = vrot.slane %v974_v5, 2  ;;  %2361 = vmatpush.msra.mxu1 %v1645_v45  ;;  %v1043_v58 = vrot.slane %v973_v34, 2  ;;  %2282 = vmatpush.msra.mxu3 %v1610_v55  ;;  %v1607_v45 = vld [vmem:[%s9927_s1 + $0x790] sm:$0xff] }
  0xd5   : > { %2319 = vmatpush.msra.mxu0 %v1630_v9 }
  0xd6   : > { %1981 = vmatmul.f32.gmra.mxu3 %v7003_v15 }
  0xd7   : > { %2022 = vmatmul.f32.gmra.mxu0 %v944_v19  ;;  %v7026_v38 = vpop.f32.mrf.mxu1  ;;  %v1038_v19 = vrot.slane %v971_v0, 2  ;;  %v1644_v0 = vld [vmem:[%s9927_s1 + $0x8b8] sm:$0xff] }
  0xd8   : > { %2083 = vmatmul.f32.vlgmr.msrb.gmra.mxu2 %v1030_v28  ;;  %2320 = vmatpush.msra.mxu0 %v1629_v30  ;;  %v1626_v30 = vld [vmem:[%s9927_s1 + $0x828] sm:$0xff] }
  0xd9   : > { %v1736_v46 = vpop.f32.mrf.mxu3  ;;  %2362 = vmatpush.msra.mxu1 %v1644_v0  ;;  %v1687_v0 = vadd.f32 %v6917_v8, %v6874_v57 }
  0xda   : > { %v7034_v51 = vadd.f32 %v1736_v46, %v1696_v32  ;;  %2063 = vmatmul.f32.gmra.mxu1 %v947_v43  ;;  %v1039_v32 = vsel %vm755_vm1, %v1037_v17, %v1038_v19  ;;  %v975_v43 = vld [vmem:[#allocation2 + $0x20] sm:$0x3]  ;;  %v1042_v46 = vsel %vm755_vm1, %v1040_v25, %v1041_v27  ;;  %v1722_v17 = vadd.f32 %v6985_v59, %v1681_v1  ;;  %v980_v25 = vld [vmem:[#allocation2 + $0xa8] sm:$0xfc] }
  0xdb   : > { %v1756_v49 = vpop.f32.mrf.mxu2  ;;  %v982_v27 = vld [vmem:[#allocation2 + $0xe0] sm:$0x3]  ;;  %2363 = vmatpush.msra.mxu1 %v1643_v24 }
  0xdc   : > { %v1838_v56 = vpop.f32.mrf.mxu0  ;;  %v1757_v6 = vadd.f32 %v1756_v49, %v1716_v63  ;;  %v1593_v49 = vld [vmem:[%s9927_s1 + $0x720] sm:$0xff]  ;;  %v1096_v63 = vld [vmem:[#allocation2 + $0xc8] sm:$0xff] }
  0xdd   : > { %2242 = vmatpush.msra.mxu2 %v1593_v49  ;;  %v983_v49 = vld [vmem:[#allocation2 + $0x88] sm:$0x3] }
  0xde   : > { %2124 = vmatmul.f32.vlgmr.msrb.gmra.mxu3 %v1033_v4  ;;  %v1628_v4 = vld [vmem:[%s9927_s1 + $0x838] sm:$0xff] }
  0xdf   : > { %2165 = vmatmul.f32.vlgmr.msrb.gmra.mxu0 %v1093_v62  ;;  %v1879_v14 = vpop.f32.mrf.mxu1  ;;  %v1044_v62 = vrot.slane %v975_v43, 2  ;;  %2243 = vmatpush.msra.mxu2 %v1592_v21  ;;  %v1053_v43 = vrot.slane %v982_v27, 2 }
  0xe0   : > { %2086 = vmatmul.f32.gmra.mxu2 %v1036_v2  ;;  %2321 = vmatpush.msra.mxu0 %v1628_v4  ;;  %v1046_v2 = vrot.slane %v976_v48, 2 }
  0xe1   : > { %v1797_v35 = vpop.f32.mrf.mxu3  ;;  %v1045_v9 = vsel %vm755_vm1, %v1043_v58, %v1044_v62  ;;  %v984_v62 = vld [vmem:[#allocation2 + $0xc0] sm:$0xfc] }
  0xe2   : > { %v1798_v28 = vadd.f32 %v1797_v35, %v1757_v6  ;;  %2206 = vmatmul.f32.vlgmr.msrb.gmra.mxu1 %v1094_v20  ;;  %v1609_v6 = vld [vmem:[%s9927_s1 + $0x7a0] sm:$0xff]  ;;  %2322 = vmatpush.msra.mxu0 %v1627_v61  ;;  %v979_v20 = vld [vmem:[#allocation2 + $0x98] sm:$0x3]  ;;  %v1048_v35 = vsel %vm755_vm1, %v1046_v2, %v1047_v3  ;;  %v1058_v61 = vrot.slane %v984_v62, 2 }
  0xe3   : > { %v1759_v33 = vpop.f32.mrf.mxu2  ;;  %2283 = vmatpush.msra.mxu3 %v1609_v6  ;;  %v1050_v34 = vrot.slane %v979_v20, 2  ;;  %v1624_v2 = vld [vmem:[%s9927_s1 + $0x818] sm:$0xff]  ;;  %v1589_v3 = vld [vmem:[%s9927_s1 + $0x700] sm:$0xff] }
  0xe4   : > { %v1841_v13 = vpop.f32.mrf.mxu0  ;;  %v1839_v41 = vadd.f32 %v1838_v56, %v1798_v28  ;;  %v1760_v26 = vadd.f32 %v1759_v33, %v1719_v40  ;;  %2323 = vmatpush.msra.mxu0 %v1626_v30  ;;  %v990_v30 = vld [vmem:[#allocation2 + $0x50] sm:$0x3] }
  0xe5   : > { %2284 = vmatpush.msra.mxu3 %v1608_v29 }
  0xe6   : > { %v7080_v54 = vadd.f32 %v1879_v14, %v1839_v41  ;;  %2127 = vmatmul.f32.gmra.mxu3 %v1039_v32  ;;  %v977_v14 = vld [vmem:[#allocation2 + $0x110] sm:$0xfc]  ;;  %v1052_v41 = vrot.slane %v980_v25, 2  ;;  %v987_v25 = vld [vmem:[#allocation2 + $0xa0] sm:$0x3] }
  0xe7   : > { %2168 = vmatmul.f32.gmra.mxu0 %v1095_v36  ;;  %v1882_v56 = vpop.f32.mrf.mxu1  ;;  %v1591_v32 = vld [vmem:[%s9927_s1 + $0x710] sm:$0xff]  ;;  %v1684_v36 = vadd.f32 %v6917_v8, %v7005_v18  ;;  %2285 = vmatpush.msra.mxu3 %v1607_v45  ;;  %v1056_v8 = vrot.slane %v983_v49, 2  ;;  %v992_v49 = vld [vmem:[#allocation2 + $0x58] sm:$0xfc] }
  0xe8   : > { %2089 = vmatmul.f32.gmra.mxu2 %v1042_v46  ;;  %v1625_v46 = vld [vmem:[%s9927_s1 + $0x820] sm:$0xff]  ;;  %v1054_v58 = vsel %vm755_vm1, %v1052_v41, %v1053_v43  ;;  %v1065_v41 = vrot.slane %v990_v30, 2 }
  0xe9   : > { %v1800_v12 = vpop.f32.mrf.mxu3  ;;  %2244 = vmatpush.msra.mxu2 %v1591_v32  ;;  %2324 = vmatpush.msra.mxu0 %v1625_v46  ;;  %v1725_v55 = vadd.f32 %v7026_v38, %v1684_v36  ;;  %v1622_v32 = vld [vmem:[%s9927_s1 + $0x808] sm:$0xff] }
  0xea   : > { %v1801_v5 = vadd.f32 %v1800_v12, %v1760_v26  ;;  %2209 = vmatmul.f32.gmra.mxu1 %v1096_v63  ;;  %v981_v26 = vld [vmem:[#allocation2 + $0x90] sm:$0xfc]  ;;  %v986_v63 = vld [vmem:[#allocation2 + $0xd8] sm:$0x3]  ;;  %v1606_v12 = vld [vmem:[%s9927_s1 + $0x788] sm:$0xff] }
  0xeb   : > { %v1762_v11 = vpop.f32.mrf.mxu2  ;;  %v1055_v57 = vrot.slane %v981_v26, 2  ;;  %2286 = vmatpush.msra.mxu3 %v1606_v12  ;;  %2325 = vmatpush.msra.mxu0 %v1624_v2  ;;  %v991_v26 = vld [vmem:[#allocation2 + $0xe8] sm:$0x3] }
  0xec   : > { %v1844_v42 = vpop.f32.mrf.mxu0  ;;  %v1842_v19 = vadd.f32 %v1841_v13, %v1801_v5  ;;  %v1763_v59 = vadd.f32 %v1762_v11, %v1722_v17  ;;  %v1049_v13 = vrot.slane %v977_v14, 2  ;;  %v1728_v11 = vadd.f32 %v6912_v7, %v1687_v0  ;;  %v1605_v14 = vld [vmem:[%s9927_s1 + $0x780] sm:$0xff]  ;;  %v1623_v17 = vld [vmem:[%s9927_s1 + $0x810] sm:$0xff]  ;;  %v985_v7 = vld [vmem:[#allocation2 + $0x118] sm:$0xfc] }
  0xed   : > { %2287 = vmatpush.msra.mxu3 %v1605_v14  ;;  %2326 = vmatpush.msra.mxu0 %v1623_v17  ;;  %v1068_v62 = vrot.slane %v991_v26, 2 }
  0xee   : > { %v7111_v28 = vadd.f32 %v1882_v56, %v1842_v19  ;;  %2130 = vmatmul.f32.gmra.mxu3 %v1045_v9  ;;  %v1051_v48 = vsel %vm755_vm1, %v1049_v13, %v1050_v34  ;;  %v1641_v56 = vld [vmem:[%s9927_s1 + $0x8a0] sm:$0xff]  ;;  %v1059_v9 = vrot.slane %v986_v63, 2  ;;  %v1057_v19 = vsel %vm755_vm1, %v1055_v57, %v1056_v8 }
  0xef   : > { %2171 = vmatmul.f32.gmra.mxu0 %v6824_v16  ;;  %v1885_v33 = vpop.f32.mrf.mxu1  ;;  %v1642_v16 = vld [vmem:[%s9927_s1 + $0x8a8] sm:$0xff]  ;;  %v1061_v34 = vrot.slane %v985_v7, 2  ;;  %v1070_v63 = vrot.slane %v992_v49, 2  ;;  %v995_v8 = vld [vmem:[#allocation2 + $0x40] sm:$0x3] }
  0xf0   : > { %2092 = vmatmul.f32.gmra.mxu2 %v1048_v35  ;;  %2364 = vmatpush.msra.mxu1 %v1642_v16  ;;  %v1060_v27 = vsel %vm755_vm1, %v1058_v61, %v1059_v9  ;;  %v1062_v16 = vrot.slane %v987_v25, 2  ;;  %v1109_v61 = vld [vmem:[#allocation2 + $0x80] sm:$0xfe]  ;;  %v1111_v9 = vld [vmem:[#allocation2 + $0x138] sm:$0x1] }
  0xf1   : > { %v1803_v40 = vpop.f32.mrf.mxu3  ;;  %2327 = vmatpush.msra.mxu0 %v1622_v32  ;;  %v1173_v17 = vrot.slane %v1109_v61, 1  ;;  %v1112_v25 = vld [vmem:[#allocation2 + $0xf0] sm:$0x1] }
  0xf2   : > { %v1804_v44 = vadd.f32 %v1803_v40, %v1763_v59  ;;  %2212 = vmatmul.f32.gmra.mxu1 %v6851_v31  ;;  %v1590_v31 = vld [vmem:[%s9927_s1 + $0x708] sm:$0xff]  ;;  %v7209_v32 = vld [vmem:[#allocation2 + $0xb0] sm:$0xff] }
  0xf3   : > { %v1765_v18 = vpop.f32.mrf.mxu2  ;;  %2245 = vmatpush.msra.mxu2 %v1590_v31  ;;  %2365 = vmatpush.msra.mxu1 %v1641_v56  ;;  %v988_v59 = vld [vmem:[#allocation2 + $0x68] sm:$0xfc]  ;;  %v994_v31 = vld [vmem:[#allocation2 + $0x30] sm:$0x3]  ;;  %431 = vst.msk [vmem:[#allocation3 + $0x10] sm:$0xff] %vm427_vm2, %v7209_v32 }
  0xf4   : > { %v1847_v50 = vpop.f32.mrf.mxu0  ;;  %v1845_v4 = vadd.f32 %v1844_v42, %v1804_v44  ;;  %v1766_v1 = vadd.f32 %v1765_v18, %v1725_v55  ;;  %v1064_v40 = vrot.slane %v988_v59, 2  ;;  %v1063_v44 = vsel %vm755_vm1, %v1061_v34, %v1062_v16  ;;  %v1637_v55 = vld [vmem:[%s9927_s1 + $0x880] sm:$0xff]  ;;  %432 = vst.msk [vmem:[#allocation3 + $0x18] sm:$0x3] %vm429_vm3, %v7209_v32 }
  0xf5   : > { %2246 = vmatpush.msra.mxu2 %v1589_v3  ;;  %v1071_v0 = vrot.slane %v994_v31, 2  ;;  %v1177_v16 = vrot.slane %v1112_v25, 1  ;;  %v1116_v31 = vld [vmem:[#allocation2 + $0x20] sm:$0x1]  ;;  %428 = vst.msk [vmem:[#allocation3] sm:$0xff] %vm427_vm2, %v7209_v32 }
  0xf6   : > { %v7146_v38 = vadd.f32 %v1885_v33, %v1845_v4  ;;  %2133 = vmatmul.f32.gmra.mxu3 %v1051_v48  ;;  %v1638_v33 = vld [vmem:[%s9927_s1 + $0x888] sm:$0xff]  ;;  %v1123_v25 = vld [vmem:[#allocation2 + $0xe0] sm:$0x1]  ;;  %430 = vst.msk [vmem:[#allocation3 + $0x8] sm:$0x3] %vm429_vm3, %v7209_v32 }
  0xf7   : > { %2174 = vmatmul.f32.gmra.mxu0 %v6857_v39  ;;  %v1888_v5 = vpop.f32.mrf.mxu1  ;;  %v1640_v39 = vld [vmem:[%s9927_s1 + $0x898] sm:$0xff]  ;;  %433 = vst.msk [vmem:[#allocation3 + $0x20] sm:$0xff] %vm427_vm2, %v7209_v32 }
  0xf8   : > { %2095 = vmatmul.f32.gmra.mxu2 %v1054_v58  ;;  %2366 = vmatpush.msra.mxu1 %v1640_v39  ;;  %v1072_v39 = vsel %vm755_vm1, %v1070_v63, %v1071_v0  ;;  %v1117_v0 = vld [vmem:[#allocation2 + $0x128] sm:$0xfe]  ;;  %434 = vst.msk [vmem:[#allocation3 + $0x28] sm:$0x3] %vm429_vm3, %v7209_v32 }
  0xf9   : > { %v1806_v6 = vpop.f32.mrf.mxu3  ;;  %v1185_v61 = vrot.slane %v1117_v0, 1  ;;  %435 = vst.msk [vmem:[#allocation3 + $0x30] sm:$0xff] %vm427_vm2, %v7209_v32 }
  0xfa   : > { %v1807_v42 = vadd.f32 %v1806_v6, %v1766_v1  ;;  %2215 = vmatmul.f32.gmra.mxu1 %v6887_v53  ;;  %v1639_v53 = vld [vmem:[%s9927_s1 + $0x890] sm:$0xff]  ;;  %436 = vst.msk [vmem:[#allocation3 + $0x38] sm:$0x3] %vm429_vm3, %v7209_v32 }
  0xfb   : > { %v1768_v20 = vpop.f32.mrf.mxu2  ;;  %2367 = vmatpush.msra.mxu1 %v1639_v53  ;;  %v1237_v53 = vld [vmem:[#allocation2 + $0x80] sm:$0xfc]  ;;  %437 = vst.msk [vmem:[#allocation3 + $0x40] sm:$0xff] %vm427_vm2, %v7209_v32 }
  0xfc   : > { %v1850_v21 = vpop.f32.mrf.mxu0  ;;  %v1848_v24 = vadd.f32 %v1847_v50, %v1807_v42  ;;  %v1769_v35 = vadd.f32 %v1768_v20, %v1728_v11  ;;  %v989_v50 = vld [vmem:[#allocation2 + $0x130] sm:$0xfc]  ;;  %v1074_v42 = vrot.slane %v995_v8, 2  ;;  %v1244_v8 = vld [vmem:[#allocation2 + $0x20] sm:$0x3]  ;;  %439 = vst.msk [vmem:[#allocation3 + $0x50] sm:$0xff] %vm427_vm2, %v7209_v32 }
  0xfd   : > { %2368 = vmatpush.msra.mxu1 %v1638_v33  ;;  %v1067_v58 = vrot.slane %v989_v50, 2  ;;  %v1115_v33 = vld [vmem:[#allocation2 + $0x70] sm:$0x1]  ;;  %v1114_v50 = vld [vmem:[#allocation2 + $0xc8] sm:$0xfe]  ;;  %441 = vst.msk [vmem:[#allocation3 + $0x60] sm:$0xff] %vm427_vm2, %v7209_v32 }
  0xfe   : > { %v7174_v29 = vadd.f32 %v1888_v5, %v1848_v24  ;;  %2136 = vmatmul.f32.gmra.mxu3 %v1057_v19  ;;  %v1174_v19 = vrot.slane %v1111_v9, 1  ;;  %v1182_v63 = vrot.slane %v1114_v50, 1  ;;  %v1124_v50 = vld [vmem:[#allocation2 + $0x88] sm:$0x1]  ;;  %438 = vst.msk [vmem:[#allocation3 + $0x48] sm:$0x3] %vm429_vm3, %v7209_v32 }
  0xff   : > { %2177 = vmatmul.f32.gmra.mxu0 %v6893_v60  ;;  %v1891_v13 = vpop.f32.mrf.mxu1  ;;  %v1621_v60 = vld [vmem:[%s9927_s1 + $0x800] sm:$0xff]  ;;  %2369 = vmatpush.msra.mxu1 %v1637_v55  ;;  %v1069_v12 = vsel %vm755_vm1, %v1067_v58, %v1068_v62  ;;  %v1243_v58 = vld [vmem:[#allocation2 + $0x70] sm:$0x3]  ;;  %440 = vst.msk [vmem:[#allocation3 + $0x58] sm:$0x3] %vm429_vm3, %v7209_v32 }
 0x100   : > { %2098 = vmatmul.f32.gmra.mxu2 %v1060_v27  ;;  %2328 = vmatpush.msra.mxu0 %v1621_v60  ;;  %v1239_v27 = vld [vmem:[#allocation2 + $0x138] sm:$0x3]  ;;  %v1175_v59 = vsel %vm626_vm0, %v1173_v17, %v1174_v19  ;;  %442 = vst.msk [vmem:[#allocation3 + $0x68] sm:$0x3] %vm429_vm3, %v7209_v32 }
 0x101   : > { %v1809_v36 = vpop.f32.mrf.mxu3  ;;  %443 = vst.msk [vmem:[#allocation3 + $0x70] sm:$0xff] %vm427_vm2, %v7209_v32 }
 0x102   : > { %v1810_v43 = vadd.f32 %v1809_v36, %v1769_v35  ;;  %2218 = vmatmul.f32.gmra.mxu1 %v6925_v22  ;;  %v1066_v22 = vsel %vm755_vm1, %v1064_v40, %v1065_v41  ;;  %v1110_v35 = vld [vmem:[#allocation2 + $0x108] sm:$0xfe]  ;;  %v1301_v36 = vrot.slane %v1237_v53, 2  ;;  %v1302_v40 = vrot.slane %v1239_v27, 2  ;;  %v1240_v41 = vld [vmem:[#allocation2 + $0xf0] sm:$0x3] }
 0x103   : > { %v1771_v45 = vpop.f32.mrf.mxu2  ;;  %v1176_v34 = vrot.slane %v1110_v35, 1  ;;  %444 = vst.msk [vmem:[#allocation3 + $0x78] sm:$0x3] %vm429_vm3, %v7209_v32 }
 0x104   : > { %v1853_v46 = vpop.f32.mrf.mxu0  ;;  %v1851_v48 = vadd.f32 %v1850_v21, %v1810_v43  ;;  %v1772_v18 = vadd.f32 %v1771_v45, %v6956_v37  ;;  %v1303_v26 = vsel %vm755_vm1, %v1301_v36, %v1302_v40  ;;  %v1192_v40 = vrot.slane %v1123_v25, 1  ;;  %445 = vst.msk [vmem:[#allocation3 + $0x80] sm:$0xff] %vm427_vm2, %v7209_v32 }
 0x105   : > { %446 = vst.msk [vmem:[#allocation3 + $0x88] sm:$0x3] %vm429_vm3, %v7209_v32 }
 0x106   : > { %v7193_v4 = vadd.f32 %v1891_v13, %v1851_v48  ;;  %2139 = vmatmul.f32.gmra.mxu3 %v1063_v44  ;;  %v1180_v44 = vrot.slane %v1115_v33, 1  ;;  %447 = vst.msk [vmem:[#allocation3 + $0x90] sm:$0xff] %vm427_vm2, %v7209_v32 }
 0x107   : > { %2180 = vmatmul.f32.gmra.mxu0 %v6936_v23  ;;  %v1894_v56 = vpop.f32.mrf.mxu1  ;;  %v993_v23 = vld [vmem:[#allocation2 + $0x78] sm:$0xfc]  ;;  %448 = vst.msk [vmem:[#allocation3 + $0x98] sm:$0x3] %vm429_vm3, %v7209_v32 }
 0x108   : > { %2101 = vmatmul.f32.gmra.mxu2 %v1066_v22  ;;  %v1305_v22 = vrot.slane %v1240_v41, 2 }
 0x109   : > { %v1812_v37 = vpop.f32.mrf.mxu3 }
 0x10a   : > { %v1813_v1 = vadd.f32 %v1812_v37, %v1772_v18  ;;  %2221 = vmatmul.f32.gmra.mxu1 %v6964_v47  ;;  %v1073_v47 = vrot.slane %v993_v23, 2  ;;  %v1242_v23 = vld [vmem:[#allocation2 + $0xc8] sm:$0xfc] }
 0x10b   : > { %v1774_v2 = vpop.f32.mrf.mxu2  ;;  %v1310_v19 = vrot.slane %v1242_v23, 2 }
 0x10c   : > { %v1856_v3 = vpop.f32.mrf.mxu0  ;;  %v1854_v5 = vadd.f32 %v1853_v46, %v1813_v1  ;;  %v1775_v57 = vadd.f32 %v1774_v2, %v6995_v10  ;;  %v1075_v10 = vsel %vm755_vm1, %v1073_v47, %v1074_v42  ;;  %v1178_v46 = vsel %vm626_vm0, %v1176_v34, %v1177_v16  ;;  %v1119_v1 = vld [vmem:[#allocation2 + $0x8] sm:$0x1]  ;;  %v1248_v34 = vld [vmem:[#allocation2 + $0x98] sm:$0x3] }
 0x10d   : > { %v1183_v2 = vrot.slane %v1116_v31, 1  ;;  %v1186_v9 = vrot.slane %v1119_v1, 1  ;;  %v1125_v31 = vld [vmem:[#allocation2 + $0xc0] sm:$0xfe] }
 0x10e   : > { %v7200_v6 = vadd.f32 %v1894_v56, %v1854_v5  ;;  %2142 = vmatmul.f32.gmra.mxu3 %v1069_v12  ;;  %v1241_v56 = vld [vmem:[#allocation2 + $0x18] sm:$0xfc] }
 0x10f   : > { %2183 = vmatmul.f32.gmra.mxu0 %v6975_v52  ;;  %v1897_v11 = vpop.f32.mrf.mxu1  ;;  %v1307_v5 = vrot.slane %v1241_v56, 2  ;;  %v1187_v35 = vsel %vm626_vm0, %v1185_v61, %v1186_v9  ;;  %v1127_v56 = vld [vmem:[#allocation2 + $0xd8] sm:$0x1] }
 0x110   : > { %2104 = vmatmul.f32.gmra.mxu2 %v1072_v39  ;;  %v1198_v23 = vrot.slane %v1127_v56, 1 }
 0x111   : > { %v1815_v14 = vpop.f32.mrf.mxu3 }
 0x112   : > { %v1816_v20 = vadd.f32 %v1815_v14, %v1775_v57  ;;  %2224 = vmatmul.f32.gmra.mxu1 %v7003_v15  ;;  %v1113_v15 = vld [vmem:[#allocation2 + $0x18] sm:$0xfe]  ;;  %v1308_v57 = vrot.slane %v1243_v58, 2  ;;  %v1118_v14 = vld [vmem:[#allocation2 + $0x110] sm:$0xfe] }
 0x113   : > { %v1777_v21 = vpop.f32.mrf.mxu2  ;;  %v1179_v60 = vrot.slane %v1113_v15, 1 }
 0x114   : > { %v1859_v24 = vpop.f32.mrf.mxu0  ;;  %v1857_v7 = vadd.f32 %v1856_v3, %v1816_v20  ;;  %v1778_v52 = vadd.f32 %v1777_v21, %v7034_v51  ;;  %v1238_v51 = vld [vmem:[#allocation2 + $0x108] sm:$0xfc]  ;;  %v1309_v17 = vsel %vm755_vm1, %v1307_v5, %v1308_v57  ;;  %v1311_v20 = vrot.slane %v1244_v8, 2 }
 0x115   : > { %v1304_v55 = vrot.slane %v1238_v51, 2  ;;  %v1181_v62 = vsel %vm626_vm0, %v1179_v60, %v1180_v44  ;;  %v1245_v21 = vld [vmem:[#allocation2 + $0x128] sm:$0xfc]  ;;  %v1122_v60 = vld [vmem:[#allocation2 + $0x90] sm:$0xfe]  ;;  %v1197_v57 = vrot.slane %v1125_v31, 1 }
 0x116   : > { %v7207_v30 = vadd.f32 %v1897_v11, %v1857_v7  ;;  %2145 = vmatmul.f32.gmra.mxu3 %v1075_v10  ;;  %v1184_v11 = vsel %vm626_vm0, %v1182_v63, %v1183_v2  ;;  %v1120_v10 = vld [vmem:[#allocation2 + $0x98] sm:$0x1]  ;;  %v1188_v7 = vrot.slane %v1118_v14, 1  ;;  %v1313_v15 = vrot.slane %v1245_v21, 2  ;;  %v1250_v2 = vld [vmem:[#allocation2 + $0x90] sm:$0xfc] }
 0x117   : > { %2186 = vmatmul.f32.gmra.mxu0 %v7209_v32  ;;  %v1900_v13 = vpop.f32.mrf.mxu1  ;;  %v1306_v3 = vsel %vm755_vm1, %v1304_v55, %v1305_v22  ;;  %v1189_v27 = vrot.slane %v1120_v10, 1  ;;  %v1251_v55 = vld [vmem:[#allocation2 + $0xe0] sm:$0x3]  ;;  %v1253_v10 = vld [vmem:[#allocation2 + $0xc0] sm:$0xfc] }
 0x118   : > { %2247 = vmatmul.f32.vlgmr.msra.gmra.mxu2 %v1175_v59  ;;  %v1312_v59 = vsel %vm755_vm1, %v1310_v19, %v1311_v20  ;;  %v1320_v1 = vrot.slane %v1251_v55, 2  ;;  %v1128_v20 = vld [vmem:[#allocation2 + $0xa0] sm:$0x1]  ;;  %v1255_v21 = vld [vmem:[#allocation2 + $0xd8] sm:$0x3] }
 0x119   : > { %v1818_v43 = vpop.f32.mrf.mxu3  ;;  %v1190_v51 = vsel %vm626_vm0, %v1188_v7, %v1189_v27  ;;  %v1129_v7 = vld [vmem:[#allocation2 + $0x68] sm:$0xfe]  ;;  %v1201_v27 = vrot.slane %v1128_v20, 1  ;;  %v1259_v31 = vld [vmem:[#allocation2 + $0x50] sm:$0x3] }
 0x11a   : > { %v1819_v45 = vadd.f32 %v1818_v43, %v1778_v52  ;;  %2227 = vmatmul.f32.gmra.mxu1 %v7209_v32  ;;  %v1121_v52 = vld [vmem:[#allocation2 + $0xa8] sm:$0xfe] }
 0x11b   : > { %v7214_v48 = vpop.f32.mrf.mxu2  ;;  %v1191_v36 = vrot.slane %v1121_v52, 1  ;;  %v1131_v52 = vld [vmem:[#allocation2 + $0x50] sm:$0x1] }
 0x11c   : > { %v7216_v18 = vpop.f32.mrf.mxu0  ;;  %v1860_v49 = vadd.f32 %v1859_v24, %v1819_v45  ;;  %v1247_v24 = vld [vmem:[#allocation2 + $0x8] sm:$0x3] }
 0x11d   : > { %v1314_v33 = vrot.slane %v1247_v24, 2  ;;  %v1193_v22 = vsel %vm626_vm0, %v1191_v36, %v1192_v40  ;;  %v1199_v24 = vsel %vm626_vm0, %v1197_v57, %v1198_v23  ;;  %v1203_v40 = vrot.slane %v1129_v7, 1 }
 0x11e   : > { %v7220_v37 = vadd.f32 %v1900_v13, %v1860_v49  ;;  %2288 = vmatmul.f32.vlgmr.msra.gmra.mxu3 %v1178_v46  ;;  %v1246_v13 = vld [vmem:[#allocation2 + $0x110] sm:$0xfc]  ;;  %v1317_v46 = vrot.slane %v1248_v34, 2  ;;  %v1194_v49 = vrot.slane %v1122_v60, 1  ;;  %v1256_v34 = vld [vmem:[#allocation2 + $0xa0] sm:$0x3] }
 0x11f   : > { %2329 = vmatmul.f32.vlgmr.msra.gmra.mxu0 %v1303_v26  ;;  %v7222_v12 = vpop.f32.mrf.mxu1  ;;  %v1315_v44 = vsel %vm755_vm1, %v1313_v15, %v1314_v33  ;;  %v1316_v45 = vrot.slane %v1246_v13, 2  ;;  %v1249_v26 = vld [vmem:[#allocation2 + $0xa8] sm:$0xfc]  ;;  %v1325_v15 = vrot.slane %v1253_v10, 2  ;;  %v1326_v33 = vrot.slane %v1255_v21, 2 }
 0x120   : > { %2250 = vmatmul.f32.gmra.mxu2 %v1181_v62  ;;  %v1195_v62 = vrot.slane %v1124_v50, 1  ;;  %v1319_v0 = vrot.slane %v1249_v26, 2  ;;  %v1254_v13 = vld [vmem:[#allocation2 + $0x118] sm:$0xfc]  ;;  %v1329_v55 = vrot.slane %v1256_v34, 2  ;;  %v1332_v23 = vrot.slane %v1259_v31, 2 }
 0x121   : > { %v7225_v39 = vpop.f32.mrf.mxu3  ;;  %v1318_v63 = vsel %vm755_vm1, %v1316_v45, %v1317_v46  ;;  %v1130_v46 = vld [vmem:[#allocation2 + $0x130] sm:$0xfe]  ;;  %v1327_v50 = vsel %vm755_vm1, %v1325_v15, %v1326_v33  ;;  %v1328_v26 = vrot.slane %v1254_v13, 2  ;;  %v1137_v34 = vld [vmem:[#allocation2 + $0x28] sm:$0xfe] }
 0x122   : > { %2370 = vmatmul.f32.vlgmr.msra.gmra.mxu1 %v1306_v3  ;;  %v1252_v3 = vld [vmem:[#allocation2 + $0x88] sm:$0x3]  ;;  %v1196_v8 = vsel %vm626_vm0, %v1194_v49, %v1195_v62  ;;  %v1321_v14 = vsel %vm755_vm1, %v1319_v0, %v1320_v1  ;;  %v1257_v49 = vld [vmem:[#allocation2 + $0x68] sm:$0xfc]  ;;  %v1206_v62 = vrot.slane %v1130_v46, 1  ;;  %v1215_v31 = vrot.slane %v1137_v34, 1 }
 0x123   : > { %v7228_v47 = vpop.f32.mrf.mxu2  ;;  %v1323_v19 = vrot.slane %v1252_v3, 2  ;;  %v1135_v0 = vld [vmem:[#allocation2 + $0x30] sm:$0x1]  ;;  %v1330_v3 = vsel %vm755_vm1, %v1328_v26, %v1329_v55  ;;  %v1331_v57 = vrot.slane %v1257_v49, 2  ;;  %v1262_v55 = vld [vmem:[#allocation2 + $0x78] sm:$0xfc] }
 0x124   : > { %v7230_v42 = vpop.f32.mrf.mxu0  ;;  %v1263_v15 = vld [vmem:[#allocation2 + $0x30] sm:$0x3] }
 0x125   : > { %v1338_v26 = vrot.slane %v1263_v15, 2  ;;  %v1268_v15 = vld [vmem:[#allocation2 + $0x60] sm:$0x3] }
 0x126   : > { %2291 = vmatmul.f32.gmra.mxu3 %v1184_v11  ;;  %v1126_v11 = vld [vmem:[#allocation2 + $0x118] sm:$0xfe] }
 0x127   : > { %2332 = vmatmul.f32.gmra.mxu0 %v1309_v17  ;;  %v7234_v53 = vpop.f32.mrf.mxu1  ;;  %v1322_v17 = vrot.slane %v1250_v2, 2 }
 0x128   : > { %2253 = vmatmul.f32.gmra.mxu2 %v1187_v35  ;;  %v1200_v35 = vrot.slane %v1126_v11, 1  ;;  %v1260_v11 = vld [vmem:[#allocation2 + $0xe8] sm:$0x3] }
 0x129   : > { %v7237_v16 = vpop.f32.mrf.mxu3 }
 0x12a   : > { %2373 = vmatmul.f32.gmra.mxu1 %v1312_v59  ;;  %v1324_v59 = vsel %vm755_vm1, %v1322_v17, %v1323_v19  ;;  %v1202_v60 = vsel %vm626_vm0, %v1200_v35, %v1201_v27  ;;  %v1210_v19 = vrot.slane %v1135_v0, 1  ;;  %v1333_v35 = vsel %vm755_vm1, %v1331_v57, %v1332_v23  ;;  %v1136_v27 = vld [vmem:[#allocation2 + $0x40] sm:$0x1] }
 0x12b   : > { %v7240_v41 = vpop.f32.mrf.mxu2  ;;  %v1340_v57 = vrot.slane %v1262_v55, 2 }
 0x12c   : > { %v7242_v43 = vpop.f32.mrf.mxu0 }
 0x12e   : > { %2294 = vmatmul.f32.gmra.mxu3 %v1190_v51  ;;  %v1204_v51 = vrot.slane %v1131_v52, 1  ;;  %v1335_v52 = vrot.slane %v1260_v11, 2  ;;  %v1265_v11 = vld [vmem:[#allocation2 + $0x28] sm:$0xfc] }
 0x12f   : > { %2335 = vmatmul.f32.gmra.mxu0 %v1315_v44  ;;  %v7246_v58 = vpop.f32.mrf.mxu1 }
 0x130   : > { %2256 = vmatmul.f32.gmra.mxu2 %v1193_v22  ;;  %v1132_v22 = vld [vmem:[#allocation2 + $0xe8] sm:$0x1]  ;;  %v1205_v56 = vsel %vm626_vm0, %v1203_v40, %v1204_v51  ;;  %v1139_v40 = vld [vmem:[#allocation2 + $0xb8] sm:$0x1] }
 0x131   : > { %v7249_v5 = vpop.f32.mrf.mxu3  ;;  %v1207_v2 = vrot.slane %v1132_v22, 1  ;;  %v1264_v22 = vld [vmem:[#allocation2 + $0x40] sm:$0x3] }
 0x132   : > { %2376 = vmatmul.f32.gmra.mxu1 %v1318_v63  ;;  %v1133_v63 = vld [vmem:[#allocation2 + $0x58] sm:$0xfe]  ;;  %v1341_v23 = vrot.slane %v1264_v22, 2 }
 0x133   : > { %v7252_v61 = vpop.f32.mrf.mxu2  ;;  %v1209_v17 = vrot.slane %v1133_v63, 1  ;;  %v1208_v20 = vsel %vm626_vm0, %v1206_v62, %v1207_v2  ;;  %v1138_v2 = vld [vmem:[#allocation2] sm:$0xfe] }
 0x134   : > { %v7254_v9 = vpop.f32.mrf.mxu0 }
 0x135   : > { %v1211_v33 = vsel %vm626_vm0, %v1209_v17, %v1210_v19  ;;  %v1267_v17 = vld [vmem:[#allocation2 + $0xb8] sm:$0x3] }
 0x136   : > { %2297 = vmatmul.f32.gmra.mxu3 %v1196_v8  ;;  %v1258_v8 = vld [vmem:[#allocation2 + $0x130] sm:$0xfc] }
 0x137   : > { %2338 = vmatmul.f32.gmra.mxu0 %v1321_v14  ;;  %v7258_v25 = vpop.f32.mrf.mxu1  ;;  %v1334_v7 = vrot.slane %v1258_v8, 2  ;;  %v1140_v8 = vld [vmem:[#allocation2 + $0x60] sm:$0x1] }
 0x138   : > { %2259 = vmatmul.f32.gmra.mxu2 %v1199_v24  ;;  %v1134_v24 = vld [vmem:[#allocation2 + $0x78] sm:$0xfe] }
 0x139   : > { %v7261_v36 = vpop.f32.mrf.mxu3  ;;  %v1212_v13 = vrot.slane %v1134_v24, 1  ;;  %v1336_v46 = vsel %vm755_vm1, %v1334_v7, %v1335_v52  ;;  %v1342_v7 = vsel %vm755_vm1, %v1340_v57, %v1341_v23  ;;  %v1343_v52 = vrot.slane %v1265_v11, 2 }
 0x13a   : > { %2379 = vmatmul.f32.gmra.mxu1 %v1324_v59  ;;  %v1261_v59 = vld [vmem:[#allocation2 + $0x58] sm:$0xfc] }
 0x13b   : > { %v7264_v44 = vpop.f32.mrf.mxu2 }
 0x13c   : > { %v7266_v45 = vpop.f32.mrf.mxu0 }
 0x13e   : > { %2300 = vmatmul.f32.gmra.mxu3 %v1202_v60  ;;  %v1213_v60 = vrot.slane %v1136_v27, 1  ;;  %v1344_v27 = vrot.slane %v1267_v17, 2 }
 0x13f   : > { %2341 = vmatmul.f32.gmra.mxu0 %v1327_v50  ;;  %v7270_v1 = vpop.f32.mrf.mxu1  ;;  %v1337_v50 = vrot.slane %v1261_v59, 2  ;;  %v1266_v59 = vld [vmem:[#allocation2] sm:$0xfc] }
 0x140   : > { %2262 = vmatmul.f32.gmra.mxu2 %v1205_v56  ;;  %v1216_v56 = vrot.slane %v1139_v40, 1  ;;  %v1214_v62 = vsel %vm626_vm0, %v1212_v13, %v1213_v60  ;;  %v1345_v60 = vsel %vm755_vm1, %v1343_v52, %v1344_v27 }
 0x141   : > { %v7273_v14 = vpop.f32.mrf.mxu3 }
 0x142   : > { %2382 = vmatmul.f32.gmra.mxu1 %v1330_v3  ;;  %v1339_v3 = vsel %vm755_vm1, %v1337_v50, %v1338_v26  ;;  %v1217_v19 = vsel %vm626_vm0, %v1215_v31, %v1216_v56  ;;  %v1347_v50 = vrot.slane %v1268_v15, 2 }
 0x143   : > { %v7276_v10 = vpop.f32.mrf.mxu2 }
 0x144   : > { %v7278_v21 = vpop.f32.mrf.mxu0 }
 0x146   : > { %2303 = vmatmul.f32.gmra.mxu3 %v1208_v20  ;;  %v1218_v20 = vrot.slane %v1138_v2, 1 }
 0x147   : > { %2344 = vmatmul.f32.gmra.mxu0 %v1333_v35  ;;  %v7282_v51 = vpop.f32.mrf.mxu1  ;;  %v1219_v35 = vrot.slane %v1140_v8, 1 }
 0x148   : > { %2265 = vmatmul.f32.gmra.mxu2 %v1211_v33 }
 0x149   : > { %v7285_v49 = vpop.f32.mrf.mxu3  ;;  %v1220_v13 = vsel %vm626_vm0, %v1218_v20, %v1219_v35 }
 0x14a   : > { %2385 = vmatmul.f32.gmra.mxu1 %v1336_v46  ;;  %v1346_v46 = vrot.slane %v1266_v59, 2 }
 0x14b   : > { %v7288_v63 = vpop.f32.mrf.mxu2 }
 0x14c   : > { %v7290_v0 = vpop.f32.mrf.mxu0  ;;  %v1348_v55 = vsel %vm755_vm1, %v1346_v46, %v1347_v50  ;;  %v1921_v46 = vadd.f32 %v7214_v48, %v7080_v54 }
 0x14e   : > { %2306 = vmatmul.f32.gmra.mxu3 %v1214_v62 }
 0x14f   : > { %2347 = vmatmul.f32.gmra.mxu0 %v1339_v3  ;;  %v7294_v24 = vpop.f32.mrf.mxu1 }
 0x150   : > { %2268 = vmatmul.f32.gmra.mxu2 %v1217_v19 }
 0x151   : > { %v7297_v33 = vpop.f32.mrf.mxu3 }
 0x152   : > { %2388 = vmatmul.f32.gmra.mxu1 %v1342_v7 }
 0x153   : > { %v7300_v34 = vpop.f32.mrf.mxu2 }
 0x154   : > { %v7302_v40 = vpop.f32.mrf.mxu0 }
 0x155   : > { %9938 = vst [vmem:[#allocation4_spill] sm:$0xff] %v7302_v40 }
 0x156   : > { %2309 = vmatmul.f32.gmra.mxu3 %v1220_v13 }
 0x157   : > { %2350 = vmatmul.f32.gmra.mxu0 %v1345_v60  ;;  %v7305_v26 = vpop.f32.mrf.mxu1 }
 0x158   : > { %9939 = vst [vmem:[#allocation5_spill] sm:$0xff] %v7305_v26  ;;  %v1962_v26 = vadd.f32 %v7225_v39, %v1921_v46  ;;  %v1924_v39 = vadd.f32 %v7228_v47, %v7111_v28 }
 0x159   : > { %v7308_v22 = vpop.f32.mrf.mxu3 }
 0x15a   : > { %2391 = vmatmul.f32.gmra.mxu1 %v1348_v55  ;;  %v2003_v48 = vadd.f32 %v7216_v18, %v1962_v26  ;;  %v1965_v28 = vadd.f32 %v7237_v16, %v1924_v39  ;;  %v1927_v16 = vadd.f32 %v7240_v41, %v7146_v38 }
 0x15b   : > { %v2084_v31 = vpop.f32.mrf.mxu2 }
 0x15c   : > { %v7310_v56 = vpop.f32.mrf.mxu0  ;;  %v2044_v18 = vadd.f32 %v7222_v12, %v2003_v48  ;;  %v2006_v12 = vadd.f32 %v7230_v42, %v1965_v28  ;;  %v1968_v38 = vadd.f32 %v7249_v5, %v1927_v16  ;;  %v1930_v5 = vadd.f32 %v7252_v61, %v7174_v29 }
 0x15d   : > { %v1933_v29 = vadd.f32 %v7264_v44, %v7193_v4 }
 0x15e   : > { %v2085_v26 = vadd.f32 %v2084_v31, %v2044_v18  ;;  %v2047_v42 = vadd.f32 %v7234_v53, %v2006_v12  ;;  %v2009_v53 = vadd.f32 %v7242_v43, %v1968_v38 }
 0x15f   : > { %v7312_v62 = vpop.f32.mrf.mxu1 }
 0x161   : > { %v2125_v2 = vpop.f32.mrf.mxu3 }
 0x162   : > { %v2126_v31 = vadd.f32 %v2125_v2, %v2085_v26 }
 0x163   : > { %v2087_v3 = vpop.f32.mrf.mxu2 }
 0x164   : > { %v7314_v57 = vpop.f32.mrf.mxu0  ;;  %v2167_v2 = vadd.f32 %v7310_v56, %v2126_v31  ;;  %v2088_v18 = vadd.f32 %v2087_v3, %v2047_v42  ;;  %v1971_v56 = vadd.f32 %v7261_v36, %v1930_v5 }
 0x166   : > { %v2208_v16 = vadd.f32 %v7312_v62, %v2167_v2  ;;  %v2012_v38 = vadd.f32 %v7254_v9, %v1971_v56 }
 0x167   : > { %v7316_v23 = vpop.f32.mrf.mxu1 }
 0x169   : > { %v7318_v8 = vpop.f32.mrf.mxu3 }
 0x16b   : > { %v7320_v11 = vpop.f32.mrf.mxu2 }
 0x16c   : > { %v7322_v17 = vpop.f32.mrf.mxu0 }
 0x16f   : > { %v7324_v19 = vpop.f32.mrf.mxu1 }
 0x171   : > { %v7326_v20 = vpop.f32.mrf.mxu3 }
 0x173   : > { %v7328_v35 = vpop.f32.mrf.mxu2 }
 0x174   : > { %v7330_v7 = vpop.f32.mrf.mxu0 }
 0x177   : > { %v7332_v52 = vpop.f32.mrf.mxu1 }
 0x179   : > { %v7334_v27 = vpop.f32.mrf.mxu3 }
 0x17b   : > { %v7336_v59 = vpop.f32.mrf.mxu2 }
 0x17c   : > { %v7338_v15 = vpop.f32.mrf.mxu0 }
 0x17f   : > { %v7340_v13 = vpop.f32.mrf.mxu1 }
 0x181   : > { %v7342_v60 = vpop.f32.mrf.mxu3 }
 0x183   : > { %v7346_v50 = vpop.f32.mrf.mxu2 }
 0x184   : > { %v7348_v55 = vpop.f32.mrf.mxu0 }
 0x187   : > { %v7355_v40 = vpop.f32.mrf.mxu1 }
 0x188   : > { %9940 = vst [vmem:[#allocation6_spill] sm:$0xff] %v7355_v40 }
 0x189   : > { %v7361_v54 = vpop.f32.mrf.mxu3 }
 0x18b   : > { %v7370_v46 = vpop.f32.mrf.mxu2 }
 0x18c   : > { %v7372_v40 = vpop.f32.mrf.mxu0 }
 0x18d   : > { %9941 = vst [vmem:[#allocation7_spill] sm:$0xff] %v7372_v40 }
 0x18f   : > { %v7384_v47 = vpop.f32.mrf.mxu1 }
 0x191   : > { %v7390_v40 = vpop.f32.mrf.mxu3 }
 0x193   : > { %v7399_v48 = vpop.f32.mrf.mxu2 }
 0x194   : > { %v7401_v39 = vpop.f32.mrf.mxu0 }
 0x195   : > { %9942 = vst [vmem:[#allocation8_spill] sm:$0xff] %v7401_v39  ;;  %v2050_v39 = vadd.f32 %v7246_v58, %v2009_v53 }
 0x197   : > { %v7413_v41 = vpop.f32.mrf.mxu1  ;;  %v2091_v42 = vadd.f32 %v7320_v11, %v2050_v39 }
 0x198   : > { %9943 = vst [vmem:[#allocation9_spill] sm:$0xff] %v7413_v41  ;;  %v2129_v41 = vadd.f32 %v7318_v8, %v2088_v18  ;;  %v2053_v18 = vadd.f32 %v7258_v25, %v2012_v38 }
 0x199   : > { %v7420_v28 = vpop.f32.mrf.mxu3  ;;  %v2132_v58 = vadd.f32 %v7326_v20, %v2091_v42 }
 0x19a   : > { %v2170_v32 = vadd.f32 %v7314_v57, %v2129_v41  ;;  %v1974_v57 = vadd.f32 %v7273_v14, %v1933_v29  ;;  %v2094_v53 = vadd.f32 %v7328_v35, %v2053_v18  ;;  %v2420_v29 = vld [vmem:[#allocation3 + $0x2] sm:$0xff] }
 0x19b   : > { %v2248_v26 = vpop.f32.mrf.mxu2  ;;  %v2173_v9 = vadd.f32 %v7322_v17, %v2132_v58 }
 0x19c   : > { %v2330_v12 = vpop.f32.mrf.mxu0  ;;  %v2249_v3 = vadd.f32 %v2248_v26, %v2208_v16  ;;  %v2211_v8 = vadd.f32 %v7316_v23, %v2170_v32  ;;  %v2015_v44 = vadd.f32 %v7266_v45, %v1974_v57  ;;  %v1936_v23 = vadd.f32 %v7276_v10, %v7200_v6  ;;  %v2412_v16 = vld [vmem:[#allocation3 + $0x1] sm:$0xff] }
 0x19d   : > { %v2214_v14 = vadd.f32 %v7324_v19, %v2173_v9  ;;  %v2135_v26 = vadd.f32 %v7334_v27, %v2094_v53  ;;  %v1942_v57 = vadd.f32 %v7300_v34, %v7220_v37 }
 0x19e   : > { %v2056_v17 = vadd.f32 %v7270_v1, %v2015_v44  ;;  %v1977_v35 = vadd.f32 %v7285_v49, %v1936_v23  ;;  %v1939_v1 = vadd.f32 %v7288_v63, %v7207_v30 }
 0x19f   : > { %v2371_v31 = vpop.f32.mrf.mxu1  ;;  %v2176_v6 = vadd.f32 %v7330_v7, %v2135_v26 }
 0x1a0   : > { %v2097_v10 = vadd.f32 %v7336_v59, %v2056_v17  ;;  %v2018_v32 = vadd.f32 %v7278_v21, %v1977_v35  ;;  %v1980_v21 = vadd.f32 %v7297_v33, %v1939_v1  ;;  %v9947_v1 = vld [vmem:[#allocation7_spill] sm:$0xff] }
 0x1a1   : > { %v2289_v43 = vpop.f32.mrf.mxu3  ;;  %v2217_v7 = vadd.f32 %v7332_v52, %v2176_v6 }
 0x1a2   : > { %v2290_v61 = vadd.f32 %v2289_v43, %v2249_v3  ;;  %v2138_v59 = vadd.f32 %v7342_v60, %v2097_v10  ;;  %v2021_v33 = vadd.f32 %v7290_v0, %v1980_v21  ;;  %v1983_v0 = vadd.f32 %v7308_v22, %v1942_v57 }
 0x1a3   : > { %v2251_v62 = vpop.f32.mrf.mxu2 }
 0x1a4   : > { %v2333_v2 = vpop.f32.mrf.mxu0  ;;  %v2331_v36 = vadd.f32 %v2330_v12, %v2290_v61  ;;  %v2252_v11 = vadd.f32 %v2251_v62, %v2211_v8  ;;  %v2059_v62 = vadd.f32 %v7282_v51, %v2018_v32  ;;  %v2062_v53 = vadd.f32 %v7294_v24, %v2021_v33  ;;  %v9948_v33 = vld [vmem:[#allocation8_spill] sm:$0xff] }
 0x1a6   : > { %v2372_v41 = vadd.f32 %v2371_v31, %v2331_v36  ;;  %v2179_v36 = vadd.f32 %v7338_v15, %v2138_v59  ;;  %v2100_v52 = vadd.f32 %v7346_v50, %v2059_v62 }
 0x1a7   : > { %v2374_v39 = vpop.f32.mrf.mxu1 }
 0x1a8   : > { %2396 = vst.msk [vmem:[#allocation3 + $0x11] sm:$0xff] %vm427_vm2, %v2372_v41 }
 0x1a9   : > { %v2292_v4 = vpop.f32.mrf.mxu3 }
 0x1aa   : > { %v2293_v20 = vadd.f32 %v2292_v4, %v2252_v11  ;;  %v2220_v11 = vadd.f32 %v7340_v13, %v2179_v36 }
 0x1ab   : > { %v2254_v5 = vpop.f32.mrf.mxu2 }
 0x1ac   : > { %v2336_v25 = vpop.f32.mrf.mxu0  ;;  %v2334_v12 = vadd.f32 %v2333_v2, %v2293_v20  ;;  %v2255_v3 = vadd.f32 %v2254_v5, %v2214_v14  ;;  %v9944_v14 = vld [vmem:[#allocation4_spill] sm:$0xff] }
 0x1ad   : > { %v2024_v26 = vadd.f32 %v9944_v14, %v1983_v0  ;;  %v9949_v0 = vld [vmem:[#allocation9_spill] sm:$0xff] }
 0x1ae   : > { %v2375_v56 = vadd.f32 %v2374_v39, %v2334_v12  ;;  %v2141_v39 = vadd.f32 %v7361_v54, %v2100_v52  ;;  %v2103_v54 = vadd.f32 %v7370_v46, %v2062_v53  ;;  %v9945_v46 = vld [vmem:[#allocation6_spill] sm:$0xff]  ;;  %v2748_v53 = vld [vmem:[%s9929_s3 + $0xe8] sm:$0xff] }
 0x1af   : > { %v7448_v31 = vld [vmem:[#allocation3 + $0x11] sm:$0xff]  ;;  %v2377_v45 = vpop.f32.mrf.mxu1 }
 0x1b0   : > { %2397 = vst.msk [vmem:[#allocation3 + $0x21] sm:$0xff] %vm427_vm2, %v2375_v56  ;;  %v5631_v19 = vpack.i.bf16 %v7448_v31, %v2412_v16  ;;  %v7460_v61 = vld [vmem:[#allocation3 + $0x12] sm:$0xff]  ;;  %v2182_v13 = vadd.f32 %v7348_v55, %v2141_v39  ;;  %v2144_v17 = vadd.f32 %v7390_v40, %v2103_v54 }
 0x1b1   : > { %v2295_v27 = vpop.f32.mrf.mxu3  ;;  %v7464_v63 = vld [vmem:[#allocation3 + $0x10] sm:$0xff]  ;;  %v5636_v60 = vpack.i.bf16 %v7460_v61, %v2420_v29  ;;  %v2750_v29 = vld [vmem:[%s9929_s3 + $0xf8] sm:$0xff] }
 0x1b2   : > { %v2296_v49 = vadd.f32 %v2295_v27, %v2255_v3  ;;  %5632 = vrot.lane.b32.xlu0 %v5631_v19, %s6013_s30  ;;  %v2223_v16 = vadd.f32 %v9945_v46, %v2182_v13  ;;  %v9946_v3 = vld [vmem:[#allocation5_spill] sm:$0xff]  ;;  %2896 = vmatpush.msrb.mxu3 %v2750_v29  ;;  %v2749_v39 = vld [vmem:[%s9929_s3 + $0xf0] sm:$0xff]  ;;  %v2731_v13 = vld [vmem:[%s9929_s3 + $0x60] sm:$0xff] }
 0x1b3   : > { %v2257_v42 = vpop.f32.mrf.mxu2  ;;  %v2728_v29 = vld [vmem:[%s9929_s3 + $0x48] sm:$0xff] }
 0x1b4   : > { %v2339_v43 = vpop.f32.mrf.mxu0  ;;  %v2337_v38 = vadd.f32 %v2336_v25, %v2296_v49  ;;  %v2258_v30 = vadd.f32 %v2257_v42, %v2217_v7  ;;  %v2185_v49 = vadd.f32 %v9947_v1, %v2144_v17  ;;  %2897 = vmatpush.msrb.mxu3 %v2749_v39  ;;  %v2747_v17 = vld [vmem:[%s9929_s3 + $0xe0] sm:$0xff] }
 0x1b5   : > { %v2759_v39 = vld [vmem:[%s9929_s3 + $0x140] sm:$0xff] }
 0x1b6   : > { %v2378_v2 = vadd.f32 %v2377_v45, %v2337_v38  ;;  %v2065_v45 = vadd.f32 %v9946_v3, %v2024_v26  ;;  %v2734_v38 = vld [vmem:[%s9929_s3 + $0x78] sm:$0xff]  ;;  %v2226_v62 = vadd.f32 %v7384_v47, %v2185_v49  ;;  %2898 = vmatpush.msrb.mxu3 %v2748_v53 }
 0x1b7   : > { %v7466_v8 = vld [vmem:[#allocation3 + $0x20] sm:$0xff]  ;;  %v2380_v58 = vpop.f32.mrf.mxu1  ;;  %2855 = vmatpush.msrb.mxu2 %v2734_v38  ;;  %v2758_v53 = vld [vmem:[%s9929_s3 + $0x138] sm:$0xff] }
 0x1b8   : > { %2398 = vst.msk [vmem:[#allocation3 + $0x31] sm:$0xff] %vm427_vm2, %v2378_v2  ;;  %v5641_v51 = vpack.i.bf16 %v7466_v8, %v7464_v63  ;;  %v7483_v34 = vld [vmem:[#allocation3 + $0x22] sm:$0xff]  ;;  %v2106_v42 = vadd.f32 %v7399_v48, %v2065_v45  ;;  %v2733_v48 = vld [vmem:[%s9929_s3 + $0x70] sm:$0xff]  ;;  %2899 = vmatpush.msrb.mxu3 %v2747_v17  ;;  %v2746_v45 = vld [vmem:[%s9929_s3 + $0xd8] sm:$0xff] }
 0x1b9   : > { %v2298_v18 = vpop.f32.mrf.mxu3  ;;  %v7487_v23 = vld [vmem:[#allocation3 + $0x21] sm:$0xff]  ;;  %2856 = vmatpush.msrb.mxu2 %v2733_v48 }
 0x1ba   : > { %v2299_v41 = vadd.f32 %v2298_v18, %v2258_v30  ;;  %5637 = vrot.lane.b32.xlu0 %v5636_v60, %s6014_s12  ;;  %5642 = vrot.lane.b32.xlu1 %v5641_v51, %s6015_s13  ;;  %v2147_v21 = vadd.f32 %v7420_v28, %v2106_v42  ;;  %v2763_v38 = vld [vmem:[%s9929_s3 + $0x160] sm:$0xff]  ;;  %v2744_v48 = vld [vmem:[%s9929_s3 + $0xc8] sm:$0xff] }
 0x1bb   : > { %v2260_v15 = vpop.f32.mrf.mxu2  ;;  %2900 = vmatpush.msrb.mxu3 %v2746_v45  ;;  %v2736_v17 = vld [vmem:[%s9929_s3 + $0x88] sm:$0xff] }
 0x1bc   : > { %v2342_v50 = vpop.f32.mrf.mxu0  ;;  %v2340_v9 = vadd.f32 %v2339_v43, %v2299_v41  ;;  %v2261_v37 = vadd.f32 %v2260_v15, %v2220_v11  ;;  %v2188_v57 = vadd.f32 %v9948_v33, %v2147_v21  ;;  %v2727_v21 = vld [vmem:[%s9929_s3 + $0x40] sm:$0xff]  ;;  %v2752_v45 = vld [vmem:[%s9929_s3 + $0x108] sm:$0xff] }
 0x1be   : > { %v2381_v4 = vadd.f32 %v2380_v58, %v2340_v9  ;;  %v2732_v9 = vld [vmem:[%s9929_s3 + $0x68] sm:$0xff] }
 0x1bf   : > { %v7485_v44 = vld [vmem:[#allocation3 + $0x32] sm:$0xff]  ;;  %v2383_v5 = vpop.f32.mrf.mxu1  ;;  %2857 = vmatpush.msrb.mxu2 %v2732_v9  ;;  %v2724_v9 = vld [vmem:[%s9929_s3 + $0x28] sm:$0xff] }
 0x1c0   : > { %v7489_v20 = vld [vmem:[#allocation3 + $0x31] sm:$0xff]  ;;  %2399 = vst.msk [vmem:[#allocation3 + $0x41] sm:$0xff] %vm427_vm2, %v2381_v4  ;;  %v5651_v24 = vpack.i.bf16 %v7485_v44, %v7483_v34  ;;  %v2229_v4 = vadd.f32 %v9949_v0, %v2188_v57  ;;  %v2743_v57 = vld [vmem:[%s9929_s3 + $0xc0] sm:$0xff] }
 0x1c1   : > { %v7498_v22 = vpack.i.bf16 %v7489_v20, %v7487_v23  ;;  %v2301_v25 = vpop.f32.mrf.mxu3  ;;  %v7507_v19 = vld [vmem:[#allocation3 + $0x30] sm:$0xff]  ;;  %2858 = vmatpush.msrb.mxu2 %v2731_v13  ;;  %v2723_v0 = vld [vmem:[%s9929_s3 + $0x20] sm:$0xff]  ;;  %v2738_v13 = vld [vmem:[%s9929_s3 + $0x98] sm:$0xff] }
 0x1c2   : > { %v2302_v12 = vadd.f32 %v2301_v25, %v2261_v37  ;;  %5652 = vrot.lane.b32.xlu2 %v5651_v24, %s6014_s12  ;;  %v5691_v33 = vpack.i.bf16 %v7507_v19, %v7466_v8 }
 0x1c3   : > { %5647 = vrot.lane.b32.xlu1 %v7498_v22, %s6013_s30  ;;  %v2263_v55 = vpop.f32.mrf.mxu2 }
 0x1c4   : > { %v2343_v35 = vadd.f32 %v2342_v50, %v2302_v12  ;;  %v2345_v56 = vpop.f32.mrf.mxu0  ;;  %v2264_v10 = vadd.f32 %v2263_v55, %v2223_v16 }
 0x1c6   : > { %v2384_v6 = vadd.f32 %v2383_v5, %v2343_v35  ;;  %v2766_v5 = vld [vmem:[%s9929_s3 + $0x178] sm:$0xff]  ;;  %v2765_v35 = vld [vmem:[%s9929_s3 + $0x170] sm:$0xff] }
 0x1c7   : > { %v7509_v27 = vld [vmem:[#allocation3 + $0x40] sm:$0xff]  ;;  %v2386_v32 = vpop.f32.mrf.mxu1  ;;  %2937 = vmatpush.msrb.mxu0 %v2766_v5  ;;  %v2722_v5 = vld [vmem:[%s9929_s3 + $0x18] sm:$0xff] }
 0x1c8   : > { %2400 = vst.msk [vmem:[#allocation3 + $0x51] sm:$0xff] %vm427_vm2, %v2384_v6  ;;  %v5656_v40 = vpack.i.bf16 %v7509_v27, %v7507_v19  ;;  %v7528_v36 = vld [vmem:[#allocation3 + $0x41] sm:$0xff] }
 0x1c9   : > { %v2304_v43 = vpop.f32.mrf.mxu3  ;;  %v7532_v60 = vld [vmem:[#allocation3 + $0x42] sm:$0xff]  ;;  %2938 = vmatpush.msrb.mxu0 %v2765_v35  ;;  %v2754_v35 = vld [vmem:[%s9929_s3 + $0x118] sm:$0xff] }
 0x1ca   : > { %v2305_v7 = vadd.f32 %v2304_v43, %v2264_v10  ;;  %5657 = vrot.lane.b32.xlu2 %v5656_v40, %s6015_s13  ;;  %v2764_v6 = vld [vmem:[%s9929_s3 + $0x168] sm:$0xff]  ;;  %v2729_v10 = vld [vmem:[%s9929_s3 + $0x50] sm:$0xff] }
 0x1cb   : > { %v2266_v59 = vpop.f32.mrf.mxu2  ;;  %2939 = vmatpush.msrb.mxu0 %v2764_v6  ;;  %v2798_v6 = vld [vmem:[%s9929_s3 + $0x278] sm:$0xff] }
 0x1cc   : > { %v2346_v2 = vadd.f32 %v2345_v56, %v2305_v7  ;;  %v2267_v58 = vadd.f32 %v2266_v59, %v2226_v62  ;;  %v2348_v18 = vpop.f32.mrf.mxu0  ;;  %v2730_v56 = vld [vmem:[%s9929_s3 + $0x58] sm:$0xff]  ;;  %v2745_v59 = vld [vmem:[%s9929_s3 + $0xd0] sm:$0xff] }
 0x1cd   : > { %2859 = vmatpush.msrb.mxu2 %v2730_v56  ;;  %2901 = vmatpush.msrb.mxu3 %v2745_v59  ;;  %v2762_v62 = vld [vmem:[%s9929_s3 + $0x158] sm:$0xff]  ;;  %v2753_v56 = vld [vmem:[%s9929_s3 + $0x110] sm:$0xff] }
 0x1ce   : > { %v2387_v30 = vadd.f32 %v2386_v32, %v2346_v2  ;;  %2940 = vmatpush.msrb.mxu0 %v2763_v38  ;;  %v2797_v59 = vld [vmem:[%s9929_s3 + $0x270] sm:$0xff] }
 0x1cf   : > { %v7530_v52 = vld [vmem:[#allocation3 + $0x51] sm:$0xff]  ;;  %v2389_v15 = vpop.f32.mrf.mxu1  ;;  %2860 = vmatpush.msrb.mxu2 %v2729_v10  ;;  %2902 = vmatpush.msrb.mxu3 %v2744_v48  ;;  %v2751_v10 = vld [vmem:[%s9929_s3 + $0x100] sm:$0xff] }
 0x1d0   : > { %v7534_v51 = vld [vmem:[#allocation3 + $0x52] sm:$0xff]  ;;  %2401 = vst.msk [vmem:[#allocation3 + $0x61] sm:$0xff] %vm427_vm2, %v2387_v30  ;;  %v5661_v47 = vpack.i.bf16 %v7530_v52, %v7528_v36  ;;  %2941 = vmatpush.msrb.mxu0 %v2762_v62  ;;  %v2796_v62 = vld [vmem:[%s9929_s3 + $0x268] sm:$0xff] }
 0x1d1   : > { %v5666_v28 = vpack.i.bf16 %v7534_v51, %v7532_v60  ;;  %v2307_v41 = vpop.f32.mrf.mxu3  ;;  %v7560_v25 = vld [vmem:[#allocation3 + $0x50] sm:$0xff]  ;;  %2861 = vmatpush.msrb.mxu2 %v2728_v29  ;;  %2903 = vmatpush.msrb.mxu3 %v2743_v57  ;;  %v2795_v57 = vld [vmem:[%s9929_s3 + $0x260] sm:$0xff] }
 0x1d2   : > { %v2308_v50 = vadd.f32 %v2307_v41, %v2267_v58  ;;  %5662 = vrot.lane.b32.xlu0 %v5661_v47, %s6013_s30  ;;  %v5686_v58 = vpack.i.bf16 %v7483_v34, %v7460_v61  ;;  %v2761_v61 = vld [vmem:[%s9929_s3 + $0x150] sm:$0xff]  ;;  %v2726_v47 = vld [vmem:[%s9929_s3 + $0x38] sm:$0xff]  ;;  %v2760_v41 = vld [vmem:[%s9929_s3 + $0x148] sm:$0xff] }
 0x1d3   : > { %5667 = vrot.lane.b32.xlu1 %v5666_v28, %s6014_s12  ;;  %v2269_v11 = vpop.f32.mrf.mxu2  ;;  %2862 = vmatpush.msrb.mxu2 %v2727_v21  ;;  %v2742_v28 = vld [vmem:[%s9929_s3 + $0xb8] sm:$0xff]  ;;  %v2813_v29 = vld [vmem:[%s9929_s3 + $0x2f0] sm:$0xff] }
 0x1d4   : > { %v2349_v37 = vadd.f32 %v2348_v18, %v2308_v50  ;;  %v2270_v24 = vadd.f32 %v2269_v11, %v2229_v4  ;;  %v2351_v55 = vpop.f32.mrf.mxu0  ;;  %2942 = vmatpush.msrb.mxu0 %v2761_v61  ;;  %2904 = vmatpush.msrb.mxu3 %v2742_v28  ;;  %v5706_v50 = vpack.i.bf16 %v7532_v60, %v7485_v44  ;;  %v2741_v11 = vld [vmem:[%s9929_s3 + $0xb0] sm:$0xff]  ;;  %v2739_v4 = vld [vmem:[%s9929_s3 + $0xa0] sm:$0xff]  ;;  %v2794_v28 = vld [vmem:[%s9929_s3 + $0x258] sm:$0xff] }
 0x1d5   : > { %2863 = vmatpush.msrb.mxu2 %v2726_v47  ;;  %v2781_v48 = vld [vmem:[%s9929_s3 + $0x1f0] sm:$0xff]  ;;  %v2811_v61 = vld [vmem:[%s9929_s3 + $0x2e0] sm:$0xff] }
 0x1d6   : > { %v2390_v54 = vadd.f32 %v2389_v15, %v2349_v37  ;;  %v2725_v15 = vld [vmem:[%s9929_s3 + $0x30] sm:$0xff]  ;;  %2943 = vmatpush.msrb.mxu0 %v2760_v41  ;;  %2905 = vmatpush.msrb.mxu3 %v2741_v11  ;;  %v2779_v47 = vld [vmem:[%s9929_s3 + $0x1e0] sm:$0xff] }
 0x1d7   : > { %v7562_v14 = vld [vmem:[#allocation3 + $0x60] sm:$0xff]  ;;  %v2392_v16 = vpop.f32.mrf.mxu1  ;;  %2864 = vmatpush.msrb.mxu2 %v2725_v15  ;;  %v2757_v37 = vld [vmem:[%s9929_s3 + $0x130] sm:$0xff]  ;;  %v2810_v15 = vld [vmem:[%s9929_s3 + $0x2d8] sm:$0xff] }
 0x1d8   : > { %2402 = vst.msk [vmem:[#allocation3 + $0x71] sm:$0xff] %vm427_vm2, %v2390_v54  ;;  %v5671_v26 = vpack.i.bf16 %v7562_v14, %v7560_v25  ;;  %v7586_v1 = vld [vmem:[#allocation3 + $0x61] sm:$0xff]  ;;  %2944 = vmatpush.msrb.mxu0 %v2759_v39  ;;  %v2460_v21 = vld [vmem:[#allocation3 + $0x90] sm:$0xff] }
 0x1d9   : > { %v2310_v12 = vpop.f32.mrf.mxu3  ;;  %v7590_v42 = vld [vmem:[#allocation3 + $0x62] sm:$0xff]  ;;  %2865 = vmatpush.msrb.mxu2 %v2724_v9  ;;  %v2825_v41 = vld [vmem:[%s9929_s3 + $0x350] sm:$0xff] }
 0x1da   : > { %v2311_v46 = vadd.f32 %v2310_v12, %v2270_v24  ;;  %5672 = vrot.lane.b32.xlu2 %v5671_v26, %s6015_s13  ;;  %2945 = vmatpush.msrb.mxu0 %v2758_v53  ;;  %v2756_v54 = vld [vmem:[%s9929_s3 + $0x128] sm:$0xff]  ;;  %v2721_v24 = vld [vmem:[%s9929_s3 + $0x10] sm:$0xff]  ;;  %v2755_v12 = vld [vmem:[%s9929_s3 + $0x120] sm:$0xff] }
 0x1db   : > { %2866 = vmatpush.msrb.mxu2 %v2723_v0  ;;  %v2737_v26 = vld [vmem:[%s9929_s3 + $0x90] sm:$0xff]  ;;  %v2824_v39 = vld [vmem:[%s9929_s3 + $0x348] sm:$0xff]  ;;  %v2404_v53 = vld [vmem:[#allocation3] sm:$0xff] }
 0x1dc   : > { %v2352_v3 = vadd.f32 %v2351_v55, %v2311_v46  ;;  %2946 = vmatpush.msrb.mxu0 %v2757_v37  ;;  %v5711_v55 = vpack.i.bf16 %v7590_v42, %v7534_v51  ;;  %v2720_v46 = vld [vmem:[%s9929_s3 + $0x8] sm:$0xff]  ;;  %v2793_v11 = vld [vmem:[%s9929_s3 + $0x250] sm:$0xff] }
 0x1dd   : > { %2867 = vmatpush.msrb.mxu2 %v2722_v5  ;;  %v2809_v9 = vld [vmem:[%s9929_s3 + $0x2d0] sm:$0xff]  ;;  %v2792_v37 = vld [vmem:[%s9929_s3 + $0x248] sm:$0xff] }
 0x1de   : > { %v2393_v32 = vadd.f32 %v2392_v16, %v2352_v3  ;;  %2947 = vmatpush.msrb.mxu0 %v2756_v54  ;;  %v2719_v16 = vld [vmem:[%s9929_s3] sm:$0xff] }
 0x1df   : > { %v7588_v49 = vld [vmem:[#allocation3 + $0x71] sm:$0xff]  ;;  %2868 = vmatpush.msrb.mxu2 %v2721_v24  ;;  %v2735_v3 = vld [vmem:[%s9929_s3 + $0x80] sm:$0xff]  ;;  %v2776_v24 = vld [vmem:[%s9929_s3 + $0x1c8] sm:$0xff] }
 0x1e0   : > { %v7592_v40 = vld [vmem:[#allocation3 + $0x72] sm:$0xff]  ;;  %2403 = vst.msk [vmem:[#allocation3 + $0x81] sm:$0xff] %vm427_vm2, %v2393_v32  ;;  %v5676_v43 = vpack.i.bf16 %v7588_v49, %v7586_v1  ;;  %2948 = vmatpush.msrb.mxu0 %v2755_v12  ;;  %v2823_v54 = vld [vmem:[%s9929_s3 + $0x340] sm:$0xff] }
 0x1e1   : > { %v5681_v7 = vpack.i.bf16 %v7592_v40, %v7590_v42  ;;  %v7619_v2 = vld [vmem:[#allocation3 + $0x70] sm:$0xff]  ;;  %2869 = vmatpush.msrb.mxu2 %v2720_v46  ;;  %v2807_v12 = vld [vmem:[%s9929_s3 + $0x2c0] sm:$0xff] }
 0x1e2   : > { %5677 = vrot.lane.b32.xlu0 %v5676_v43, %s6013_s30  ;;  %2949 = vmatpush.msrb.mxu0 %v2754_v35  ;;  %v2814_v43 = vld [vmem:[%s9929_s3 + $0x2f8] sm:$0xff] }
 0x1e3   : > { %5682 = vrot.lane.b32.xlu1 %v5681_v7, %s6014_s12  ;;  %2870 = vmatpush.msrb.mxu2 %v2719_v16  ;;  %v2782_v7 = vld [vmem:[%s9929_s3 + $0x1f8] sm:$0xff] }
 0x1e4   : > { %2950 = vmatpush.msrb.mxu0 %v2753_v56  ;;  %2978 = vmatpush.msrb.mxu1 %v2782_v7  ;;  %v2775_v56 = vld [vmem:[%s9929_s3 + $0x1c0] sm:$0xff] }
 0x1e5   : > { %3019 = vmatpush.msra.mxu2 %v2798_v6 }
 0x1e6   : > { %2951 = vmatpush.msrb.mxu0 %v2752_v45  ;;  %2979 = vmatpush.msrb.mxu1 %v2781_v48  ;;  %v2822_v45 = vld [vmem:[%s9929_s3 + $0x338] sm:$0xff]  ;;  %v2773_v48 = vld [vmem:[%s9929_s3 + $0x1b0] sm:$0xff] }
 0x1e7   : > { %v7621_v30 = vld [vmem:[#allocation3 + $0x80] sm:$0xff]  ;;  %3020 = vmatpush.msra.mxu2 %v2797_v59  ;;  %v2806_v59 = vld [vmem:[%s9929_s3 + $0x2b8] sm:$0xff] }
 0x1e8   : > { %v5696_v18 = vpack.i.bf16 %v7621_v30, %v7619_v2  ;;  %v7745_v32 = vld [vmem:[#allocation3 + $0x81] sm:$0xff]  ;;  %2952 = vmatpush.msrb.mxu0 %v2751_v10 }
 0x1e9   : > { %v7760_v38 = vld [vmem:[#allocation3 + $0x82] sm:$0xff]  ;;  %3021 = vmatpush.msra.mxu2 %v2796_v62  ;;  %v2821_v62 = vld [vmem:[%s9929_s3 + $0x330] sm:$0xff] }
 0x1ea   : > { %5687 = vrot.lane.b32.xlu0 %v5686_v58, %s6013_s30  ;;  %5697 = vrot.lane.b32.xlu2 %v5696_v18, %s6015_s13  ;;  %v2812_v58 = vld [vmem:[%s9929_s3 + $0x2e8] sm:$0xff]  ;;  %v2826_v18 = vld [vmem:[%s9929_s3 + $0x358] sm:$0xff] }
 0x1eb   : > { %5692 = vrot.lane.b32.xlu1 %v5691_v33, %s6014_s12  ;;  %v2780_v33 = vld [vmem:[%s9929_s3 + $0x1e8] sm:$0xff]  ;;  %3105 = vmatpush.msra.mxu0 %v2826_v18 }
 0x1ec   : > { %2980 = vmatpush.msrb.mxu1 %v2780_v33  ;;  %3022 = vmatpush.msra.mxu2 %v2795_v57  ;;  %v2772_v57 = vld [vmem:[%s9929_s3 + $0x1a8] sm:$0xff] }
 0x1ed   : > { %3106 = vmatpush.msra.mxu0 %v2825_v41 }
 0x1ee   : > { %2981 = vmatpush.msrb.mxu1 %v2779_v47  ;;  %3023 = vmatpush.msra.mxu2 %v2794_v28  ;;  %v2771_v47 = vld [vmem:[%s9929_s3 + $0x1a0] sm:$0xff] }
 0x1ef   : > { %3107 = vmatpush.msra.mxu0 %v2824_v39  ;;  %v2820_v39 = vld [vmem:[%s9929_s3 + $0x328] sm:$0xff] }
 0x1f0   : > { %3024 = vmatpush.msra.mxu2 %v2793_v11  ;;  %v2804_v11 = vld [vmem:[%s9929_s3 + $0x2a8] sm:$0xff] }
 0x1f1   : > { %3108 = vmatpush.msra.mxu0 %v2823_v54 }
 0x1f2   : > { %5707 = vrot.lane.b32.xlu0 %v5706_v50, %s6013_s30  ;;  %5702 = vrot.lane.b32.xlu2 %v7498_v22, %s6015_s13  ;;  %v2740_v22 = vld [vmem:[%s9929_s3 + $0xa8] sm:$0xff]  ;;  %v2778_v50 = vld [vmem:[%s9929_s3 + $0x1d8] sm:$0xff] }
 0x1f3   : > { %2617 = vrot.lane.b32.xlu1 %v7509_v27, %s6014_s12  ;;  %2906 = vmatpush.msrb.mxu3 %v2740_v22 }
 0x1f4   : > { %2982 = vmatpush.msrb.mxu1 %v2778_v50  ;;  %3025 = vmatpush.msra.mxu2 %v2792_v37 }
 0x1f5   : > { %2907 = vmatpush.msrb.mxu3 %v2739_v4  ;;  %v2777_v4 = vld [vmem:[%s9929_s3 + $0x1d0] sm:$0xff]  ;;  %3109 = vmatpush.msra.mxu0 %v2822_v45 }
 0x1f6   : > { %2983 = vmatpush.msrb.mxu1 %v2777_v4 }
 0x1f7   : > { %2908 = vmatpush.msrb.mxu3 %v2738_v13  ;;  %v2808_v13 = vld [vmem:[%s9929_s3 + $0x2c8] sm:$0xff]  ;;  %3110 = vmatpush.msra.mxu0 %v2821_v62 }
 0x1f8   : > { %2984 = vmatpush.msrb.mxu1 %v2776_v24 }
 0x1f9   : > { %2909 = vmatpush.msrb.mxu3 %v2737_v26  ;;  %v2791_v26 = vld [vmem:[%s9929_s3 + $0x240] sm:$0xff]  ;;  %3111 = vmatpush.msra.mxu0 %v2820_v39 }
 0x1fa   : > { %2619 = vrot.lane.b32.xlu0 %v7560_v25, %s6014_s12  ;;  %2649 = vrot.lane.b32.xlu2 %v7528_v36, %s6015_s13 }
 0x1fb   : > { %2651 = vrot.lane.b32.xlu1 %v7530_v52, %s6015_s13  ;;  %2910 = vmatpush.msrb.mxu3 %v2736_v17 }
 0x1fc   : > { %3026 = vmatpush.msra.mxu2 %v2791_v26  ;;  %2985 = vmatpush.msrb.mxu1 %v2775_v56  ;;  %v2819_v26 = vld [vmem:[%s9929_s3 + $0x320] sm:$0xff] }
 0x1fd   : > { %2911 = vmatpush.msrb.mxu3 %v2735_v3  ;;  %v2790_v3 = vld [vmem:[%s9929_s3 + $0x238] sm:$0xff]  ;;  %3112 = vmatpush.msra.mxu0 %v2819_v26 }
 0x1fe   : > { %3027 = vmatpush.msra.mxu2 %v2790_v3 }
 0x1ff   : > { %3060 = vmatpush.msra.mxu3 %v2814_v43 }
 0x201   : > { %3061 = vmatpush.msra.mxu3 %v2813_v29  ;;  %v2774_v29 = vld [vmem:[%s9929_s3 + $0x1b8] sm:$0xff] }
 0x202   : > { %2621 = vrot.lane.b32.xlu0 %v7562_v14, %s6014_s12  ;;  %5712 = vrot.lane.b32.xlu2 %v5711_v55, %s6013_s30 }
 0x203   : > { %2653 = vrot.lane.b32.xlu1 %v7586_v1, %s6015_s13  ;;  %3062 = vmatpush.msra.mxu3 %v2812_v58 }
 0x204   : > { %2986 = vmatpush.msrb.mxu1 %v2774_v29 }
 0x205   : > { %3063 = vmatpush.msra.mxu3 %v2811_v61  ;;  %v2788_v61 = vld [vmem:[%s9929_s3 + $0x228] sm:$0xff] }
 0x206   : > { %2987 = vmatpush.msrb.mxu1 %v2773_v48  ;;  %v2817_v48 = vld [vmem:[%s9929_s3 + $0x310] sm:$0xff] }
 0x207   : > { %3064 = vmatpush.msra.mxu3 %v2810_v15 }
 0x208   : > { %2988 = vmatpush.msrb.mxu1 %v2772_v57 }
 0x209   : > { %3065 = vmatpush.msra.mxu3 %v2809_v9  ;;  %v2787_v9 = vld [vmem:[%s9929_s3 + $0x220] sm:$0xff] }
 0x20a   : > { %2655 = vrot.lane.b32.xlu0 %v7588_v49, %s6015_s13  ;;  %2623 = vrot.lane.b32.xlu2 %v7619_v2, %s6014_s12 }
 0x20b   : > { %2593 = vrot.lane.b32.xlu1 %v7592_v40, %s6013_s30  ;;  %3066 = vmatpush.msra.mxu3 %v2808_v13  ;;  %v2786_v13 = vld [vmem:[%s9929_s3 + $0x218] sm:$0xff] }
 0x20c   : > { %2989 = vmatpush.msrb.mxu1 %v2771_v47 }
 0x20d   : > { %3067 = vmatpush.msra.mxu3 %v2807_v12  ;;  %v2767_v12 = vld [vmem:[%s9929_s3 + $0x180] sm:$0xff] }
 0x20f   : > { %3068 = vmatpush.msra.mxu3 %v2806_v59 }
 0x212   : > { %2657 = vrot.lane.b32.xlu0 %v7745_v32, %s6015_s13  ;;  %2625 = vrot.lane.b32.xlu2 %v7621_v30, %s6014_s12  ;;  %v2468_v30 = vld [vmem:[#allocation3 + $0x91] sm:$0xff] }
 0x213   : > { %2595 = vrot.lane.b32.xlu1 %v7760_v38, %s6013_s30 }
 0x21a   : > { %2627 = vrot.lane.b32.xlu2 %v2460_v21, %s6014_s12  ;;  %2659 = vrot.lane.b32.xlu0 %v2468_v30, %s6015_s13  ;;  %v2805_v21 = vld [vmem:[%s9929_s3 + $0x2b0] sm:$0xff] }
 0x21b   : > { %3069 = vmatpush.msra.mxu3 %v2805_v21 }
 0x21c   : > { %v7849_v6 = vpop.permute.xlu2 %5652 }
 0x21d   : > { %3070 = vmatpush.msra.mxu3 %v2804_v11  ;;  %v5654_v37 = vunpack.i.l.bf16 %v7849_v6  ;;  %v5655_v3 = vunpack.i.h.bf16 %v7849_v6 }
 0x224   : > { %v7814_v22 = vpop.permute.xlu0 %5632  ;;  %v5658_v50 = vpop.permute.xlu2 %5657 }
 0x225   : > { %v5634_v0 = vunpack.i.l.bf16 %v7814_v22  ;;  %v5635_v55 = vunpack.i.h.bf16 %v7814_v22  ;;  %v2769_v22 = vld [vmem:[%s9929_s3 + $0x190] sm:$0xff]  ;;  %v5659_v4 = vunpack.i.l.bf16 %v5658_v50 }
 0x227   : > { %v2669_v5 = vsel %vm427_vm2, %v2404_v53, %v5634_v0  ;;  %v2670_v10 = vsel %vm427_vm2, %v7464_v63, %v5635_v55  ;;  %v2789_v63 = vld [vmem:[%s9929_s3 + $0x230] sm:$0xff]  ;;  %v2803_v53 = vld [vmem:[%s9929_s3 + $0x2a0] sm:$0xff] }
 0x228   : > { %2871 = vmatmul.f32.vlgmr.msrb.gmra.mxu2 %v2669_v5  ;;  %3071 = vmatpush.msra.mxu3 %v2803_v53  ;;  %v2768_v5 = vld [vmem:[%s9929_s3 + $0x188] sm:$0xff] }
 0x229   : > { %3028 = vmatpush.msra.mxu2 %v2789_v63  ;;  %v2800_v63 = vld [vmem:[%s9929_s3 + $0x288] sm:$0xff] }
 0x22b   : > { %3029 = vmatpush.msra.mxu2 %v2788_v61  ;;  %v2815_v61 = vld [vmem:[%s9929_s3 + $0x300] sm:$0xff] }
 0x22c   : > { %v5638_v46 = vpop.permute.xlu0 %5637  ;;  %v5643_v16 = vpop.permute.xlu1 %5642 }
 0x22d   : > { %v5639_v17 = vunpack.i.l.bf16 %v5638_v46  ;;  %v5644_v35 = vunpack.i.l.bf16 %v5643_v16  ;;  %v5640_v30 = vunpack.i.h.bf16 %v5638_v46  ;;  %v5645_v58 = vunpack.i.h.bf16 %v5643_v16  ;;  %3030 = vmatpush.msra.mxu2 %v2787_v9  ;;  %v2785_v46 = vld [vmem:[%s9929_s3 + $0x210] sm:$0xff]  ;;  %v2818_v16 = vld [vmem:[%s9929_s3 + $0x318] sm:$0xff] }
 0x22e   : > { %3113 = vmatpush.msra.mxu0 %v2818_v16 }
 0x22f   : > { %v2678_v43 = vsel %vm2677_vm4, %v5634_v0, %v5639_v17  ;;  %v2687_v7 = vsel %vm2686_vm5, %v5639_v17, %v5644_v35  ;;  %v2679_v41 = vsel %vm2677_vm4, %v5635_v55, %v5640_v30  ;;  %v2688_v15 = vsel %vm2686_vm5, %v5640_v30, %v5645_v58  ;;  %3031 = vmatpush.msra.mxu2 %v2786_v13  ;;  %v2801_v17 = vld [vmem:[%s9929_s3 + $0x290] sm:$0xff]  ;;  %v2816_v58 = vld [vmem:[%s9929_s3 + $0x308] sm:$0xff] }
 0x230   : > { %2874 = vmatmul.f32.gmra.mxu2 %v2670_v10  ;;  %2912 = vmatmul.f32.vlgmr.msrb.gmra.mxu3 %v2678_v43  ;;  %v2689_v55 = vsel %vm2686_vm5, %v5654_v37, %v5659_v4  ;;  %v5660_v35 = vunpack.i.h.bf16 %v5658_v50  ;;  %v2784_v10 = vld [vmem:[%s9929_s3 + $0x208] sm:$0xff]  ;;  %v2783_v43 = vld [vmem:[%s9929_s3 + $0x200] sm:$0xff] }
 0x231   : > { %2953 = vmatmul.f32.vlgmr.msrb.gmra.mxu0 %v2687_v7  ;;  %3032 = vmatpush.msra.mxu2 %v2785_v46 }
 0x232   : > { %v2690_v6 = vsel %vm2686_vm5, %v5655_v3, %v5660_v35  ;;  %3114 = vmatpush.msra.mxu0 %v2817_v48 }
 0x233   : > { %3033 = vmatpush.msra.mxu2 %v2784_v10 }
 0x234   : > { %v5673_v62 = vpop.permute.xlu2 %5672  ;;  %3115 = vmatpush.msra.mxu0 %v2816_v58 }
 0x235   : > { %v7873_v18 = vpop.permute.xlu1 %5647  ;;  %3034 = vmatpush.msra.mxu2 %v2783_v43  ;;  %v5675_v50 = vunpack.i.h.bf16 %v5673_v62 }
 0x236   : > { %v5649_v33 = vunpack.i.l.bf16 %v7873_v18  ;;  %v5650_v0 = vunpack.i.h.bf16 %v7873_v18  ;;  %v5674_v18 = vunpack.i.l.bf16 %v5673_v62  ;;  %3116 = vmatpush.msra.mxu0 %v2815_v61 }
 0x238   : > { %v2671_v28 = vsel %vm427_vm2, %v7466_v8, %v5649_v33  ;;  %2915 = vmatmul.f32.gmra.mxu3 %v2679_v41  ;;  %v2770_v8 = vld [vmem:[%s9929_s3 + $0x198] sm:$0xff]  ;;  %v2672_v54 = vsel %vm427_vm2, %v7507_v19, %v5650_v0  ;;  %v2680_v24 = vsel %vm2677_vm4, %v5649_v33, %v5654_v37  ;;  %v2681_v59 = vsel %vm2677_vm4, %v5650_v0, %v5655_v3 }
 0x239   : > { %2877 = vmatmul.f32.gmra.mxu2 %v2671_v28  ;;  %2956 = vmatmul.f32.gmra.mxu0 %v2688_v15  ;;  %v2802_v19 = vld [vmem:[%s9929_s3 + $0x298] sm:$0xff] }
 0x23a   : > { %2990 = vmatpush.msrb.mxu1 %v2770_v8  ;;  %3072 = vmatpush.msra.mxu3 %v2802_v19 }
 0x23c   : > { %2991 = vmatpush.msrb.mxu1 %v2769_v22  ;;  %3073 = vmatpush.msra.mxu3 %v2801_v17 }
 0x23e   : > { %2992 = vmatpush.msrb.mxu1 %v2768_v5  ;;  %3074 = vmatpush.msra.mxu3 %v2800_v63 }
 0x240   : > { %2918 = vmatmul.f32.gmra.mxu3 %v2680_v24  ;;  %2993 = vmatpush.msrb.mxu1 %v2767_v12 }
 0x241   : > { %2880 = vmatmul.f32.gmra.mxu2 %v2672_v54  ;;  %2959 = vmatmul.f32.gmra.mxu0 %v2689_v55 }
 0x244   : > { %v5663_v56 = vpop.permute.xlu0 %5662  ;;  %v5698_v9 = vpop.permute.xlu2 %5697 }
 0x245   : > { %v5664_v45 = vunpack.i.l.bf16 %v5663_v56  ;;  %v5668_v29 = vpop.permute.xlu1 %5667  ;;  %v5665_v21 = vunpack.i.h.bf16 %v5663_v56  ;;  %v5699_v37 = vunpack.i.l.bf16 %v5698_v9  ;;  %v5700_v46 = vunpack.i.h.bf16 %v5698_v9 }
 0x246   : > { %v5669_v30 = vunpack.i.l.bf16 %v5668_v29  ;;  %v5670_v28 = vunpack.i.h.bf16 %v5668_v29 }
 0x247   : > { %v2673_v7 = vsel %vm427_vm2, %v7509_v27, %v5664_v45  ;;  %v2799_v27 = vld [vmem:[%s9929_s3 + $0x280] sm:$0xff]  ;;  %v2674_v33 = vsel %vm427_vm2, %v7560_v25, %v5665_v21 }
 0x248   : > { %2921 = vmatmul.f32.gmra.mxu3 %v2681_v59  ;;  %v2682_v57 = vsel %vm2677_vm4, %v5664_v45, %v5669_v30  ;;  %v2691_v47 = vsel %vm2686_vm5, %v5669_v30, %v5674_v18  ;;  %v2683_v39 = vsel %vm2677_vm4, %v5665_v21, %v5670_v28  ;;  %v2692_v8 = vsel %vm2686_vm5, %v5670_v28, %v5675_v50 }
 0x249   : > { %2883 = vmatmul.f32.gmra.mxu2 %v2673_v7  ;;  %2962 = vmatmul.f32.gmra.mxu0 %v2690_v6 }
 0x24a   : > { %3075 = vmatpush.msra.mxu3 %v2799_v27 }
 0x24c   : > { %v5703_v19 = vpop.permute.xlu2 %5702 }
 0x24d   : > { %v5704_v45 = vunpack.i.l.bf16 %v5703_v19  ;;  %v5705_v6 = vunpack.i.h.bf16 %v5703_v19 }
 0x250   : > { %2924 = vmatmul.f32.gmra.mxu3 %v2682_v57 }
 0x251   : > { %2886 = vmatmul.f32.gmra.mxu2 %v2674_v33  ;;  %2965 = vmatmul.f32.gmra.mxu0 %v2691_v47 }
 0x254   : > { %v5678_v41 = vpop.permute.xlu0 %5677  ;;  %v2650_v43 = vpop.permute.xlu2 %2649 }
 0x255   : > { %v5679_v15 = vunpack.i.l.bf16 %v5678_v41  ;;  %v5683_v11 = vpop.permute.xlu1 %5682  ;;  %v5680_v22 = vunpack.i.h.bf16 %v5678_v41 }
 0x256   : > { %v5684_v53 = vunpack.i.l.bf16 %v5683_v11  ;;  %v5685_v26 = vunpack.i.h.bf16 %v5683_v11 }
 0x257   : > { %v2675_v25 = vsel %vm427_vm2, %v7562_v14, %v5679_v15  ;;  %v2676_v5 = vsel %vm427_vm2, %v7619_v2, %v5680_v22 }
 0x258   : > { %2927 = vmatmul.f32.gmra.mxu3 %v2683_v39  ;;  %v2684_v13 = vsel %vm2677_vm4, %v5679_v15, %v5684_v53  ;;  %v2693_v24 = vsel %vm2686_vm5, %v5684_v53, %v5699_v37  ;;  %v2685_v16 = vsel %vm2677_vm4, %v5680_v22, %v5685_v26  ;;  %v2694_v17 = vsel %vm2686_vm5, %v5685_v26, %v5700_v46  ;;  %v2476_v53 = vld [vmem:[#allocation3 + $0x92] sm:$0xff] }
 0x259   : > { %2889 = vmatmul.f32.gmra.mxu2 %v2675_v25  ;;  %2968 = vmatmul.f32.gmra.mxu0 %v2692_v8 }
 0x25c   : > { %v5688_v0 = vpop.permute.xlu0 %5687  ;;  %v5713_v21 = vpop.permute.xlu2 %5712 }
 0x25d   : > { %v5689_v4 = vunpack.i.l.bf16 %v5688_v0  ;;  %v5693_v54 = vpop.permute.xlu1 %5692  ;;  %v5690_v55 = vunpack.i.h.bf16 %v5688_v0  ;;  %v5714_v30 = vunpack.i.l.bf16 %v5713_v21 }
 0x25e   : > { %v5694_v12 = vunpack.i.l.bf16 %v5693_v54  ;;  %v5695_v56 = vunpack.i.h.bf16 %v5693_v54 }
 0x25f   : > { %v2695_v14 = vsel %vm427_vm2, %v7448_v31, %v5689_v4  ;;  %v2696_v31 = vsel %vm427_vm2, %v7487_v23, %v5690_v55  ;;  %v2699_v18 = vsel %vm427_vm2, %v7530_v52, %v5714_v30 }
 0x260   : > { %2930 = vmatmul.f32.gmra.mxu3 %v2684_v13  ;;  %2994 = vmatmul.f32.vlgmr.msrb.gmra.mxu1 %v2695_v14  ;;  %v2703_v2 = vsel %vm2677_vm4, %v5689_v4, %v5694_v12  ;;  %v2704_v7 = vsel %vm2677_vm4, %v5690_v55, %v5695_v56  ;;  %v2711_v59 = vsel %vm2686_vm5, %v5694_v12, %v5704_v45 }
 0x261   : > { %2892 = vmatmul.f32.gmra.mxu2 %v2676_v5  ;;  %2971 = vmatmul.f32.gmra.mxu0 %v2693_v24  ;;  %v2712_v27 = vsel %vm2686_vm5, %v5695_v56, %v5705_v6 }
 0x264   : > { %v5708_v35 = vpop.permute.xlu0 %5707  ;;  %v2624_v52 = vpop.permute.xlu2 %2623 }
 0x265   : > { %v5709_v3 = vunpack.i.l.bf16 %v5708_v35  ;;  %v2618_v10 = vpop.permute.xlu1 %2617  ;;  %v5710_v23 = vunpack.i.h.bf16 %v5708_v35 }
 0x266   : > { %v2713_v58 = vsel %vm2686_vm5, %v2618_v10, %v2650_v43 }
 0x267   : > { %v2697_v29 = vsel %vm427_vm2, %v7489_v20, %v5709_v3  ;;  %v2705_v48 = vsel %vm2677_vm4, %v5709_v3, %v2618_v10  ;;  %v2698_v62 = vsel %vm427_vm2, %v7528_v36, %v5710_v23  ;;  %v5715_v36 = vunpack.i.h.bf16 %v5713_v21  ;;  %v8049_v10 = vld [vmem:[%s9930_s4] ss:$0 sm:$0xff] }
 0x268   : > { %2933 = vmatmul.f32.gmra.mxu3 %v2685_v16  ;;  %2997 = vmatmul.f32.gmra.mxu1 %v2696_v31 }
 0x269   : > { %3035 = vmatmul.f32.vlgmr.msra.gmra.mxu2 %v2703_v2  ;;  %2974 = vmatmul.f32.gmra.mxu0 %v2694_v17  ;;  %v2700_v47 = vsel %vm427_vm2, %v7586_v1, %v5715_v36  ;;  %v2708_v41 = vsel %vm2677_vm4, %v5715_v36, %v2624_v52 }
 0x26c   : > { %v2620_v20 = vpop.permute.xlu0 %2619  ;;  %v2626_v50 = vpop.permute.xlu2 %2625 }
 0x26d   : > { %v2652_v63 = vpop.permute.xlu1 %2651 }
 0x26e   : > { %v2714_v61 = vsel %vm2686_vm5, %v2620_v20, %v2652_v63 }
 0x270   : > { %3076 = vmatmul.f32.vlgmr.msra.gmra.mxu3 %v2711_v59  ;;  %3000 = vmatmul.f32.gmra.mxu1 %v2697_v29 }
 0x271   : > { %3038 = vmatmul.f32.gmra.mxu2 %v2704_v7  ;;  %5551 = vmatmul.msk.f32.vlgmr.msra.gmra.mxu0 %vm427_vm2, %v7483_v34  ;;  %v2706_v34 = vsel %vm2677_vm4, %v5710_v23, %v2620_v20 }
 0x274   : > { %v2622_v57 = vpop.permute.xlu0 %2621  ;;  %v2628_v8 = vpop.permute.xlu2 %2627 }
 0x275   : > { %v2654_v33 = vpop.permute.xlu1 %2653 }
 0x278   : > { %3079 = vmatmul.f32.gmra.mxu3 %v2712_v27  ;;  %3003 = vmatmul.f32.gmra.mxu1 %v2698_v62 }
 0x279   : > { %3041 = vmatmul.f32.gmra.mxu2 %v2705_v48  ;;  %5552 = vmatmul.msk.f32.gmra.mxu0 %vm427_vm2, %v7485_v44  ;;  %v2707_v44 = vsel %vm2677_vm4, %v5714_v30, %v2622_v57 }
 0x27c   : > { %v2656_v1 = vpop.permute.xlu0 %2655 }
 0x27d   : > { %v2594_v28 = vpop.permute.xlu1 %2593  ;;  %v2716_v25 = vsel %vm2686_vm5, %v2624_v52, %v2656_v1 }
 0x27e   : > { %v2701_v15 = vsel %vm427_vm2, %v7588_v49, %v2594_v28 }
 0x280   : > { %3082 = vmatmul.f32.gmra.mxu3 %v2713_v58  ;;  %3006 = vmatmul.f32.gmra.mxu1 %v2699_v18 }
 0x281   : > { %3044 = vmatmul.f32.gmra.mxu2 %v2706_v34  ;;  %5553 = vmatmul.msk.f32.gmra.mxu0 %vm427_vm2, %v7532_v60  ;;  %v2715_v60 = vsel %vm2686_vm5, %v2622_v57, %v2654_v33 }
 0x284   : > { %v2658_v49 = vpop.permute.xlu0 %2657 }
 0x285   : > { %v2596_v11 = vpop.permute.xlu1 %2595  ;;  %v2717_v9 = vsel %vm2686_vm5, %v2626_v50, %v2658_v49 }
 0x286   : > { %v2702_v39 = vsel %vm427_vm2, %v7745_v32, %v2596_v11 }
 0x288   : > { %3085 = vmatmul.f32.gmra.mxu3 %v2714_v61  ;;  %3009 = vmatmul.f32.gmra.mxu1 %v2700_v47 }
 0x289   : > { %3047 = vmatmul.f32.gmra.mxu2 %v2707_v44  ;;  %5554 = vmatmul.msk.f32.gmra.mxu0 %vm427_vm2, %v7534_v51  ;;  %v2709_v51 = vsel %vm2677_vm4, %v2594_v28, %v2626_v50 }
 0x28c   : > { %v2660_v22 = vpop.permute.xlu0 %2659 }
 0x28d   : > { %v2718_v32 = vsel %vm2686_vm5, %v2628_v8, %v2660_v22 }
 0x290   : > { %3088 = vmatmul.f32.gmra.mxu3 %v2715_v60  ;;  %3012 = vmatmul.f32.gmra.mxu1 %v2701_v15 }
 0x291   : > { %3050 = vmatmul.f32.gmra.mxu2 %v2708_v41  ;;  %5555 = vmatmul.msk.f32.gmra.mxu0 %vm427_vm2, %v7590_v42  ;;  %v2710_v42 = vsel %vm2677_vm4, %v2596_v11, %v2628_v8 }
 0x298   : > { %3091 = vmatmul.f32.gmra.mxu3 %v2716_v25  ;;  %3015 = vmatmul.f32.gmra.mxu1 %v2702_v39  ;;  %v3174_v25 = vld [vmem:[#allocation3 + $0x2] sm:$0xff] }
 0x299   : > { %3053 = vmatmul.f32.gmra.mxu2 %v2709_v51  ;;  %5556 = vmatmul.msk.f32.gmra.mxu0 %vm427_vm2, %v7592_v40  ;;  %v3166_v39 = vld [vmem:[#allocation3 + $0x1] sm:$0xff] }
 0x2a0   : > { %3094 = vmatmul.f32.gmra.mxu3 %v2717_v9 }
 0x2a1   : > { %3056 = vmatmul.f32.gmra.mxu2 %v2710_v42  ;;  %5557 = vmatmul.msk.f32.gmra.mxu0 %vm427_vm2, %v7760_v38 }
 0x2a8   : > { %3097 = vmatmul.f32.gmra.mxu3 %v2718_v32 }
 0x2a9   : > { %5558 = vmatmul.msk.f32.gmra.mxu0 %vm427_vm2, %v2476_v53 }
 0x2ab   : > { %v2872_v0 = vpop.f32.mrf.mxu2 }
 0x2ac   : > { %v2873_v7 = vadd.f32 %v8049_v10, %v2872_v0 }
 0x2ae   : > { %v2954_v40 = vpop.f32.mrf.mxu0 }
 0x2b3   : > { %v2875_v4 = vpop.f32.mrf.mxu2  ;;  %v2913_v37 = vpop.f32.mrf.mxu3 }
 0x2b4   : > { %v2914_v29 = vadd.f32 %v2913_v37, %v2873_v7  ;;  %v2876_v27 = vadd.f32 %v8049_v10, %v2875_v4 }
 0x2b6   : > { %v2957_v5 = vpop.f32.mrf.mxu0  ;;  %v2955_v63 = vadd.f32 %v2954_v40, %v2914_v29 }
 0x2bb   : > { %v2916_v14 = vpop.f32.mrf.mxu3 }
 0x2bc   : > { %v2878_v13 = vpop.f32.mrf.mxu2  ;;  %v2917_v21 = vadd.f32 %v2916_v14, %v2876_v27 }
 0x2bd   : > { %v2879_v44 = vadd.f32 %v8049_v10, %v2878_v13 }
 0x2be   : > { %v2960_v54 = vpop.f32.mrf.mxu0  ;;  %v2958_v33 = vadd.f32 %v2957_v5, %v2917_v21 }
 0x2c3   : > { %v2919_v26 = vpop.f32.mrf.mxu3 }
 0x2c4   : > { %v2881_v24 = vpop.f32.mrf.mxu2  ;;  %v2920_v52 = vadd.f32 %v2919_v26, %v2879_v44 }
 0x2c5   : > { %v2882_v49 = vadd.f32 %v8049_v10, %v2881_v24 }
 0x2c6   : > { %v8024_v12 = vpop.f32.mrf.mxu0  ;;  %v2961_v50 = vadd.f32 %v2960_v54, %v2920_v52 }
 0x2cb   : > { %v2922_v55 = vpop.f32.mrf.mxu3 }
 0x2cc   : > { %v8026_v38 = vpop.f32.mrf.mxu2  ;;  %v2923_v53 = vadd.f32 %v2922_v55, %v2882_v49 }
 0x2cd   : > { %v2885_v26 = vadd.f32 %v8049_v10, %v8026_v38 }
 0x2ce   : > { %v8028_v19 = vpop.f32.mrf.mxu0  ;;  %v2964_v13 = vadd.f32 %v8024_v12, %v2923_v53  ;;  %v3485_v53 = vld [vmem:[%s9931_s5 + $0x78] sm:$0xff] }
 0x2cf   : > { %3606 = vmatpush.msra.mxu1 %v3485_v53  ;;  %v3495_v53 = vld [vmem:[%s9931_s5 + $0xc8] sm:$0xff] }
 0x2d3   : > { %v8032_v16 = vpop.f32.mrf.mxu3 }
 0x2d4   : > { %v8030_v46 = vpop.f32.mrf.mxu2  ;;  %v2926_v29 = vadd.f32 %v8032_v16, %v2885_v26 }
 0x2d6   : > { %v8034_v2 = vpop.f32.mrf.mxu0  ;;  %v2967_v38 = vadd.f32 %v8028_v19, %v2926_v29 }
 0x2db   : > { %v8038_v31 = vpop.f32.mrf.mxu3 }
 0x2dc   : > { %v8036_v17 = vpop.f32.mrf.mxu2 }
 0x2dd   : > { %v2995_v56 = vpop.f32.mrf.mxu1 }
 0x2de   : > { %v8040_v35 = vpop.f32.mrf.mxu0  ;;  %v2996_v62 = vadd.f32 %v2995_v56, %v2955_v63 }
 0x2e3   : > { %v8044_v45 = vpop.f32.mrf.mxu3 }
 0x2e4   : > { %v8042_v3 = vpop.f32.mrf.mxu2 }
 0x2e5   : > { %v2998_v59 = vpop.f32.mrf.mxu1 }
 0x2e6   : > { %v8051_v43 = vpop.f32.mrf.mxu0  ;;  %v2999_v61 = vadd.f32 %v2998_v59, %v2958_v33 }
 0x2eb   : > { %v8054_v23 = vpop.f32.mrf.mxu3 }
 0x2ec   : > { %v3036_v6 = vpop.f32.mrf.mxu2 }
 0x2ed   : > { %v3037_v20 = vadd.f32 %v3036_v6, %v2996_v62  ;;  %v3001_v30 = vpop.f32.mrf.mxu1 }
 0x2ee   : > { %v3118_v48 = vpop.f32.mrf.mxu0  ;;  %v3002_v8 = vadd.f32 %v3001_v30, %v2961_v50 }
 0x2f3   : > { %v3077_v58 = vpop.f32.mrf.mxu3 }
 0x2f4   : > { %v3039_v34 = vpop.f32.mrf.mxu2  ;;  %v3078_v18 = vadd.f32 %v3077_v58, %v3037_v20  ;;  %v2888_v20 = vadd.f32 %v8049_v10, %v8030_v46 }
 0x2f5   : > { %v3040_v28 = vadd.f32 %v3039_v34, %v2999_v61  ;;  %v3004_v1 = vpop.f32.mrf.mxu1 }
 0x2f6   : > { %v3119_v36 = vadd.f32 %v3118_v48, %v3078_v18  ;;  %v3121_v57 = vpop.f32.mrf.mxu0  ;;  %v3005_v55 = vadd.f32 %v3004_v1, %v2964_v13 }
 0x2f8   : > { %v3142_v47 = vmax.f32 %v3119_v36, 0.0 }
 0x2fa   : > { %3150 = vst.msk [vmem:[#allocation3 + $0x11] sm:$0xff] %vm427_vm2, %v3142_v47 }
 0x2fb   : > { %v3080_v60 = vpop.f32.mrf.mxu3 }
 0x2fc   : > { %v3042_v41 = vpop.f32.mrf.mxu2  ;;  %v3081_v15 = vadd.f32 %v3080_v60, %v3040_v28 }
 0x2fd   : > { %v3043_v32 = vadd.f32 %v3042_v41, %v3002_v8  ;;  %v3007_v24 = vpop.f32.mrf.mxu1  ;;  %v2891_v41 = vadd.f32 %v8049_v10, %v8036_v17 }
 0x2fe   : > { %v3122_v11 = vadd.f32 %v3121_v57, %v3081_v15  ;;  %v3124_v51 = vpop.f32.mrf.mxu0  ;;  %v3008_v30 = vadd.f32 %v3007_v24, %v2967_v38  ;;  %v2929_v57 = vadd.f32 %v8038_v31, %v2888_v20  ;;  %v3515_v38 = vld [vmem:[%s9931_s5 + $0x168] sm:$0xff] }
 0x300   : > { %v3143_v42 = vmax.f32 %v3122_v11, 0.0  ;;  %v2970_v31 = vadd.f32 %v8034_v2, %v2929_v57 }
 0x301   : > { %v8060_v9 = vld [vmem:[#allocation3 + $0x12] sm:$0xff] }
 0x302   : > { %v8062_v22 = vld [vmem:[#allocation3 + $0x11] sm:$0xff]  ;;  %3151 = vst.msk [vmem:[#allocation3 + $0x21] sm:$0xff] %vm427_vm2, %v3143_v42  ;;  %v5721_v0 = vpack.i.bf16 %v8060_v9, %v3174_v25 }
 0x303   : > { %v5716_v40 = vpack.i.bf16 %v8062_v22, %v3166_v39  ;;  %v3083_v37 = vpop.f32.mrf.mxu3  ;;  %v8072_v7 = vld [vmem:[#allocation3 + $0x10] sm:$0xff]  ;;  %v3501_v42 = vld [vmem:[%s9931_s5 + $0xf8] sm:$0xff] }
 0x304   : > { %v3045_v4 = vpop.f32.mrf.mxu2  ;;  %v3084_v5 = vadd.f32 %v3083_v37, %v3043_v32  ;;  %5722 = vrot.lane.b32.xlu2 %v5721_v0, %s6014_s12  ;;  %3647 = vmatpush.msrb.mxu2 %v3501_v42  ;;  %v3512_v42 = vld [vmem:[%s9931_s5 + $0x150] sm:$0xff] }
 0x305   : > { %5717 = vrot.lane.b32.xlu1 %v5716_v40, %s6013_s30  ;;  %v3046_v6 = vadd.f32 %v3045_v4, %v3005_v55  ;;  %v3010_v58 = vpop.f32.mrf.mxu1  ;;  %v3500_v40 = vld [vmem:[%s9931_s5 + $0xf0] sm:$0xff]  ;;  %v2894_v4 = vadd.f32 %v8049_v10, %v8042_v3 }
 0x306   : > { %v3125_v14 = vadd.f32 %v3124_v51, %v3084_v5  ;;  %v3127_v54 = vpop.f32.mrf.mxu0  ;;  %v3011_v60 = vadd.f32 %v3010_v58, %v2970_v31  ;;  %v2932_v51 = vadd.f32 %v8044_v45, %v2891_v41  ;;  %v3517_v45 = vld [vmem:[%s9931_s5 + $0x178] sm:$0xff]  ;;  %3648 = vmatpush.msrb.mxu2 %v3500_v40  ;;  %v3482_v31 = vld [vmem:[%s9931_s5 + $0x60] sm:$0xff] }
 0x307   : > { %3688 = vmatpush.msrb.mxu3 %v3517_v45  ;;  %v2935_v24 = vadd.f32 %v8054_v23, %v2894_v4  ;;  %v3516_v23 = vld [vmem:[%s9931_s5 + $0x170] sm:$0xff]  ;;  %v3494_v40 = vld [vmem:[%s9931_s5 + $0xc0] sm:$0xff] }
 0x308   : > { %v3144_v56 = vmax.f32 %v3125_v14, 0.0  ;;  %v2973_v32 = vadd.f32 %v8040_v35, %v2932_v51  ;;  %v3480_v45 = vld [vmem:[%s9931_s5 + $0x50] sm:$0xff] }
 0x309   : > { %v8074_v59 = vld [vmem:[#allocation3 + $0x20] sm:$0xff]  ;;  %3689 = vmatpush.msrb.mxu3 %v3516_v23  ;;  %v3508_v23 = vld [vmem:[%s9931_s5 + $0x130] sm:$0xff] }
 0x30a   : > { %3152 = vst.msk [vmem:[#allocation3 + $0x31] sm:$0xff] %vm427_vm2, %v3144_v56  ;;  %v5726_v12 = vpack.i.bf16 %v8074_v59, %v8072_v7  ;;  %v8084_v34 = vld [vmem:[#allocation3 + $0x22] sm:$0xff] }
 0x30b   : > { %v3086_v48 = vpop.f32.mrf.mxu3  ;;  %v8088_v33 = vld [vmem:[#allocation3 + $0x21] sm:$0xff]  ;;  %3690 = vmatpush.msrb.mxu3 %v3515_v38 }
 0x30c   : > { %v3048_v63 = vpop.f32.mrf.mxu2  ;;  %v3087_v27 = vadd.f32 %v3086_v48, %v3046_v6  ;;  %5727 = vrot.lane.b32.xlu0 %v5726_v12, %s6015_s13  ;;  %v3484_v12 = vld [vmem:[%s9931_s5 + $0x70] sm:$0xff]  ;;  %v2976_v48 = vadd.f32 %v8051_v43, %v2935_v24  ;;  %v3506_v38 = vld [vmem:[%s9931_s5 + $0x120] sm:$0xff] }
 0x30d   : > { %v3049_v44 = vadd.f32 %v3048_v63, %v3008_v30  ;;  %v3013_v2 = vpop.f32.mrf.mxu1  ;;  %v3499_v63 = vld [vmem:[%s9931_s5 + $0xe8] sm:$0xff]  ;;  %3607 = vmatpush.msra.mxu1 %v3484_v12 }
 0x30e   : > { %v3128_v62 = vadd.f32 %v3127_v54, %v3087_v27  ;;  %v3130_v21 = vpop.f32.mrf.mxu0  ;;  %v3014_v37 = vadd.f32 %v3013_v2, %v2973_v32  ;;  %3649 = vmatpush.msrb.mxu2 %v3499_v63  ;;  %v3511_v32 = vld [vmem:[%s9931_s5 + $0x148] sm:$0xff] }
 0x30f   : > { %v3491_v12 = vld [vmem:[%s9931_s5 + $0xa8] sm:$0xff] }
 0x310   : > { %v3145_v16 = vmax.f32 %v3128_v62, 0.0  ;;  %v3483_v62 = vld [vmem:[%s9931_s5 + $0x68] sm:$0xff] }
 0x311   : > { %v8086_v18 = vld [vmem:[#allocation3 + $0x32] sm:$0xff]  ;;  %3608 = vmatpush.msra.mxu1 %v3483_v62  ;;  %v3507_v63 = vld [vmem:[%s9931_s5 + $0x128] sm:$0xff]  ;;  %v3474_v62 = vld [vmem:[%s9931_s5 + $0x20] sm:$0xff] }
 0x312   : > { %v8090_v36 = vld [vmem:[#allocation3 + $0x31] sm:$0xff]  ;;  %3153 = vst.msk [vmem:[#allocation3 + $0x41] sm:$0xff] %vm427_vm2, %v3145_v16  ;;  %v5736_v19 = vpack.i.bf16 %v8086_v18, %v8084_v34 }
 0x313   : > { %v8098_v46 = vpack.i.bf16 %v8090_v36, %v8088_v33  ;;  %v3089_v47 = vpop.f32.mrf.mxu3  ;;  %v8106_v50 = vld [vmem:[#allocation3 + $0x30] sm:$0xff]  ;;  %3609 = vmatpush.msra.mxu1 %v3482_v31  ;;  %v3486_v31 = vld [vmem:[%s9931_s5 + $0x80] sm:$0xff] }
 0x314   : > { %v3051_v61 = vpop.f32.mrf.mxu2  ;;  %v3090_v52 = vadd.f32 %v3089_v47, %v3049_v44  ;;  %5737 = vrot.lane.b32.xlu2 %v5736_v19, %s6014_s12  ;;  %v5776_v24 = vpack.i.bf16 %v8106_v50, %v8074_v59 }
 0x315   : > { %5732 = vrot.lane.b32.xlu1 %v8098_v46, %s6013_s30  ;;  %v3052_v25 = vadd.f32 %v3051_v61, %v3011_v60  ;;  %v3016_v6 = vpop.f32.mrf.mxu1  ;;  %v3513_v60 = vld [vmem:[%s9931_s5 + $0x158] sm:$0xff] }
 0x316   : > { %v3131_v28 = vadd.f32 %v3130_v21, %v3090_v52  ;;  %v3133_v1 = vpop.f32.mrf.mxu0  ;;  %v3498_v21 = vld [vmem:[%s9931_s5 + $0xe0] sm:$0xff]  ;;  %v3017_v30 = vadd.f32 %v3016_v6, %v2976_v48  ;;  %v3475_v48 = vld [vmem:[%s9931_s5 + $0x28] sm:$0xff] }
 0x317   : > { %3650 = vmatpush.msrb.mxu2 %v3498_v21  ;;  %v3514_v52 = vld [vmem:[%s9931_s5 + $0x160] sm:$0xff]  ;;  %v3489_v21 = vld [vmem:[%s9931_s5 + $0x98] sm:$0xff] }
 0x318   : > { %v3146_v15 = vmax.f32 %v3131_v28, 0.0  ;;  %v3497_v28 = vld [vmem:[%s9931_s5 + $0xd8] sm:$0xff]  ;;  %3691 = vmatpush.msrb.mxu3 %v3514_v52  ;;  %v3470_v52 = vld [vmem:[%s9931_s5] sm:$0xff] }
 0x319   : > { %v8108_v11 = vld [vmem:[#allocation3 + $0x40] sm:$0xff]  ;;  %3651 = vmatpush.msrb.mxu2 %v3497_v28  ;;  %v3503_v28 = vld [vmem:[%s9931_s5 + $0x108] sm:$0xff] }
 0x31a   : > { %3154 = vst.msk [vmem:[#allocation3 + $0x51] sm:$0xff] %vm427_vm2, %v3146_v15  ;;  %v5741_v39 = vpack.i.bf16 %v8108_v11, %v8106_v50  ;;  %v8130_v13 = vld [vmem:[#allocation3 + $0x42] sm:$0xff]  ;;  %v3481_v15 = vld [vmem:[%s9931_s5 + $0x58] sm:$0xff]  ;;  %3692 = vmatpush.msrb.mxu3 %v3513_v60 }
 0x31b   : > { %v3092_v49 = vpop.f32.mrf.mxu3  ;;  %v8134_v54 = vld [vmem:[#allocation3 + $0x41] sm:$0xff]  ;;  %3610 = vmatpush.msra.mxu1 %v3481_v15  ;;  %v3565_v60 = vld [vmem:[%s9931_s5 + $0x2f8] sm:$0xff] }
 0x31c   : > { %v3093_v8 = vadd.f32 %v3092_v49, %v3052_v25  ;;  %5742 = vrot.lane.b32.xlu0 %v5741_v39, %s6015_s13  ;;  %v3054_v17 = vpop.f32.mrf.mxu2  ;;  %3693 = vmatpush.msrb.mxu3 %v3512_v42  ;;  %v3213_v42 = vld [vmem:[#allocation3 + $0x90] sm:$0xff] }
 0x31d   : > { %v3055_v26 = vadd.f32 %v3054_v17, %v3014_v37  ;;  %3611 = vmatpush.msra.mxu1 %v3480_v45  ;;  %v3532_v45 = vld [vmem:[%s9931_s5 + $0x1f0] sm:$0xff] }
 0x31e   : > { %v3134_v0 = vadd.f32 %v3133_v1, %v3093_v8  ;;  %v3136_v10 = vpop.f32.mrf.mxu0  ;;  %v3496_v1 = vld [vmem:[%s9931_s5 + $0xd0] sm:$0xff]  ;;  %3694 = vmatpush.msrb.mxu3 %v3511_v32  ;;  %v3563_v32 = vld [vmem:[%s9931_s5 + $0x2e8] sm:$0xff] }
 0x31f   : > { %3652 = vmatpush.msrb.mxu2 %v3496_v1  ;;  %v3533_v1 = vld [vmem:[%s9931_s5 + $0x1f8] sm:$0xff] }
 0x320   : > { %v3147_v5 = vmax.f32 %v3134_v0, 0.0  ;;  %v3479_v0 = vld [vmem:[%s9931_s5 + $0x48] sm:$0xff]  ;;  %3729 = vmatpush.msrb.mxu0 %v3533_v1  ;;  %v3557_v1 = vld [vmem:[%s9931_s5 + $0x2b8] sm:$0xff] }
 0x321   : > { %v8132_v14 = vld [vmem:[#allocation3 + $0x52] sm:$0xff]  ;;  %3653 = vmatpush.msrb.mxu2 %v3495_v53  ;;  %3612 = vmatpush.msra.mxu1 %v3479_v0 }
 0x322   : > { %v8136_v35 = vld [vmem:[#allocation3 + $0x51] sm:$0xff]  ;;  %3155 = vst.msk [vmem:[#allocation3 + $0x61] sm:$0xff] %vm427_vm2, %v3147_v5  ;;  %v5751_v55 = vpack.i.bf16 %v8132_v14, %v8130_v13  ;;  %3730 = vmatpush.msrb.mxu0 %v3532_v45  ;;  %v3571_v45 = vld [vmem:[%s9931_s5 + $0x328] sm:$0xff] }
 0x323   : > { %v5746_v3 = vpack.i.bf16 %v8136_v35, %v8134_v54  ;;  %v3095_v56 = vpop.f32.mrf.mxu3  ;;  %v8165_v43 = vld [vmem:[#allocation3 + $0x50] sm:$0xff]  ;;  %3654 = vmatpush.msrb.mxu2 %v3494_v40 }
 0x324   : > { %v3096_v29 = vadd.f32 %v3095_v56, %v3055_v26  ;;  %5752 = vrot.lane.b32.xlu2 %v5751_v55, %s6014_s12  ;;  %v3057_v20 = vpop.f32.mrf.mxu2  ;;  %v3510_v26 = vld [vmem:[%s9931_s5 + $0x140] sm:$0xff]  ;;  %v3492_v56 = vld [vmem:[%s9931_s5 + $0xb0] sm:$0xff]  ;;  %v5791_v6 = vpack.i.bf16 %v8165_v43, %v8108_v11 }
 0x325   : > { %5747 = vrot.lane.b32.xlu1 %v5746_v3, %s6013_s30  ;;  %v3058_v57 = vadd.f32 %v3057_v20, %v3017_v30  ;;  %3695 = vmatpush.msrb.mxu3 %v3510_v26  ;;  %v3478_v55 = vld [vmem:[%s9931_s5 + $0x40] sm:$0xff]  ;;  %v3493_v3 = vld [vmem:[%s9931_s5 + $0xb8] sm:$0xff]  ;;  %v3548_v53 = vld [vmem:[%s9931_s5 + $0x270] sm:$0xff] }
 0x326   : > { %v3137_v27 = vadd.f32 %v3136_v10, %v3096_v29  ;;  %v3139_v61 = vpop.f32.mrf.mxu0  ;;  %v3509_v10 = vld [vmem:[%s9931_s5 + $0x138] sm:$0xff]  ;;  %3613 = vmatpush.msra.mxu1 %v3478_v55  ;;  %3655 = vmatpush.msrb.mxu2 %v3493_v3  ;;  %v5786_v29 = vpack.i.bf16 %v8084_v34, %v8060_v9  ;;  %v3476_v9 = vld [vmem:[%s9931_s5 + $0x30] sm:$0xff]  ;;  %v3575_v55 = vld [vmem:[%s9931_s5 + $0x348] sm:$0xff] }
 0x327   : > { %3696 = vmatpush.msrb.mxu3 %v3509_v10  ;;  %v3505_v20 = vld [vmem:[%s9931_s5 + $0x118] sm:$0xff]  ;;  %v3576_v0 = vld [vmem:[%s9931_s5 + $0x350] sm:$0xff]  ;;  %v3530_v3 = vld [vmem:[%s9931_s5 + $0x1e0] sm:$0xff] }
 0x328   : > { %v3148_v16 = vmax.f32 %v3137_v27, 0.0  ;;  %3656 = vmatpush.msrb.mxu2 %v3492_v56  ;;  %v3490_v27 = vld [vmem:[%s9931_s5 + $0xa0] sm:$0xff]  ;;  %v3473_v30 = vld [vmem:[%s9931_s5 + $0x18] sm:$0xff] }
 0x329   : > { %v8167_v58 = vld [vmem:[#allocation3 + $0x60] sm:$0xff]  ;;  %3697 = vmatpush.msrb.mxu3 %v3508_v23  ;;  %v3221_v40 = vld [vmem:[#allocation3 + $0x91] sm:$0xff] }
 0x32a   : > { %3156 = vst.msk [vmem:[#allocation3 + $0x71] sm:$0xff] %vm427_vm2, %v3148_v16  ;;  %v5756_v44 = vpack.i.bf16 %v8167_v58, %v8165_v43  ;;  %v8191_v25 = vld [vmem:[#allocation3 + $0x62] sm:$0xff]  ;;  %3657 = vmatpush.msrb.mxu2 %v3491_v12  ;;  %v3488_v16 = vld [vmem:[%s9931_s5 + $0x90] sm:$0xff]  ;;  %v3529_v56 = vld [vmem:[%s9931_s5 + $0x1d8] sm:$0xff] }
 0x32b   : > { %v3098_v19 = vpop.f32.mrf.mxu3  ;;  %v8195_v2 = vld [vmem:[#allocation3 + $0x61] sm:$0xff]  ;;  %3698 = vmatpush.msrb.mxu3 %v3507_v63  ;;  %v3528_v12 = vld [vmem:[%s9931_s5 + $0x1d0] sm:$0xff] }
 0x32c   : > { %v3099_v47 = vadd.f32 %v3098_v19, %v3058_v57  ;;  %5757 = vrot.lane.b32.xlu0 %v5756_v44, %s6015_s13  ;;  %3658 = vmatpush.msrb.mxu2 %v3490_v27  ;;  %v3504_v57 = vld [vmem:[%s9931_s5 + $0x110] sm:$0xff]  ;;  %v3546_v10 = vld [vmem:[%s9931_s5 + $0x260] sm:$0xff] }
 0x32d   : > { %3699 = vmatpush.msrb.mxu3 %v3506_v38  ;;  %v3472_v19 = vld [vmem:[%s9931_s5 + $0x10] sm:$0xff] }
 0x32e   : > { %v3140_v41 = vadd.f32 %v3139_v61, %v3099_v47  ;;  %3659 = vmatpush.msrb.mxu2 %v3489_v21  ;;  %v3471_v61 = vld [vmem:[%s9931_s5 + $0x8] sm:$0xff] }
 0x32f   : > { %3700 = vmatpush.msrb.mxu3 %v3505_v20  ;;  %v3487_v47 = vld [vmem:[%s9931_s5 + $0x88] sm:$0xff]  ;;  %v3573_v20 = vld [vmem:[%s9931_s5 + $0x338] sm:$0xff] }
 0x330   : > { %v3149_v51 = vmax.f32 %v3140_v41, 0.0  ;;  %3660 = vmatpush.msrb.mxu2 %v3488_v16  ;;  %v3502_v41 = vld [vmem:[%s9931_s5 + $0x100] sm:$0xff]  ;;  %v3559_v21 = vld [vmem:[%s9931_s5 + $0x2c8] sm:$0xff] }
 0x331   : > { %v8193_v39 = vld [vmem:[#allocation3 + $0x72] sm:$0xff]  ;;  %3701 = vmatpush.msrb.mxu3 %v3504_v57  ;;  %v3527_v57 = vld [vmem:[%s9931_s5 + $0x1c8] sm:$0xff] }
 0x332   : > { %v8197_v49 = vld [vmem:[#allocation3 + $0x71] sm:$0xff]  ;;  %3157 = vst.msk [vmem:[#allocation3 + $0x81] sm:$0xff] %vm427_vm2, %v3149_v51  ;;  %v5766_v8 = vpack.i.bf16 %v8193_v39, %v8191_v25  ;;  %3661 = vmatpush.msrb.mxu2 %v3487_v47  ;;  %v3526_v47 = vld [vmem:[%s9931_s5 + $0x1c0] sm:$0xff] }
 0x333   : > { %v5761_v17 = vpack.i.bf16 %v8197_v49, %v8195_v2  ;;  %v8224_v4 = vld [vmem:[#allocation3 + $0x70] sm:$0xff]  ;;  %3702 = vmatpush.msrb.mxu3 %v3503_v28  ;;  %v3577_v51 = vld [vmem:[%s9931_s5 + $0x358] sm:$0xff] }
 0x334   : > { %5767 = vrot.lane.b32.xlu2 %v5766_v8, %s6014_s12  ;;  %v5796_v44 = vpack.i.bf16 %v8224_v4, %v8167_v58  ;;  %3662 = vmatpush.msrb.mxu2 %v3486_v31  ;;  %v3549_v8 = vld [vmem:[%s9931_s5 + $0x278] sm:$0xff] }
 0x335   : > { %5762 = vrot.lane.b32.xlu1 %v5761_v17, %s6013_s30  ;;  %3703 = vmatpush.msrb.mxu3 %v3502_v41  ;;  %v3564_v17 = vld [vmem:[%s9931_s5 + $0x2f0] sm:$0xff] }
 0x336   : > { %3811 = vmatpush.msra.mxu2 %v3565_v60  ;;  %v3542_v60 = vld [vmem:[%s9931_s5 + $0x240] sm:$0xff] }
 0x337   : > { %3856 = vmatpush.msra.mxu3 %v3577_v51 }
 0x338   : > { %3812 = vmatpush.msra.mxu2 %v3564_v17 }
 0x339   : > { %v8226_v37 = vld [vmem:[#allocation3 + $0x80] sm:$0xff]  ;;  %3857 = vmatpush.msra.mxu3 %v3576_v0  ;;  %v3524_v0 = vld [vmem:[%s9931_s5 + $0x1b0] sm:$0xff] }
 0x33a   : > { %v5771_v5 = vpack.i.bf16 %v8226_v37, %v8224_v4  ;;  %v8344_v15 = vld [vmem:[#allocation3 + $0x81] sm:$0xff]  ;;  %3813 = vmatpush.msra.mxu2 %v3563_v32  ;;  %v3556_v32 = vld [vmem:[%s9931_s5 + $0x2b0] sm:$0xff] }
 0x33b   : > { %v8384_v26 = vld [vmem:[#allocation3 + $0x82] sm:$0xff]  ;;  %3858 = vmatpush.msra.mxu3 %v3575_v55  ;;  %v3540_v55 = vld [vmem:[%s9931_s5 + $0x230] sm:$0xff] }
 0x33c   : > { %5772 = vrot.lane.b32.xlu0 %v5771_v5, %s6015_s13  ;;  %5782 = vrot.lane.b32.xlu2 %v8098_v46, %s6015_s13  ;;  %v3477_v46 = vld [vmem:[%s9931_s5 + $0x38] sm:$0xff]  ;;  %v3547_v5 = vld [vmem:[%s9931_s5 + $0x268] sm:$0xff] }
 0x33d   : > { %5777 = vrot.lane.b32.xlu1 %v5776_v24, %s6014_s12  ;;  %3614 = vmatpush.msra.mxu1 %v3477_v46  ;;  %v3562_v24 = vld [vmem:[%s9931_s5 + $0x2e0] sm:$0xff]  ;;  %v3561_v46 = vld [vmem:[%s9931_s5 + $0x2d8] sm:$0xff] }
 0x33e   : > { %3814 = vmatpush.msra.mxu2 %v3562_v24 }
 0x33f   : > { %3615 = vmatpush.msra.mxu1 %v3476_v9  ;;  %v3560_v9 = vld [vmem:[%s9931_s5 + $0x2d0] sm:$0xff] }
 0x340   : > { %3815 = vmatpush.msra.mxu2 %v3561_v46 }
 0x341   : > { %3616 = vmatpush.msra.mxu1 %v3475_v48  ;;  %v3158_v48 = vld [vmem:[#allocation3] sm:$0xff] }
 0x342   : > { %3816 = vmatpush.msra.mxu2 %v3560_v9  ;;  %v3569_v9 = vld [vmem:[%s9931_s5 + $0x318] sm:$0xff] }
 0x343   : > { %3617 = vmatpush.msra.mxu1 %v3474_v62  ;;  %v3544_v62 = vld [vmem:[%s9931_s5 + $0x250] sm:$0xff] }
 0x344   : > { %5787 = vrot.lane.b32.xlu0 %v5786_v29, %s6013_s30  ;;  %3402 = vrot.lane.b32.xlu2 %v8134_v54, %s6015_s13  ;;  %v3574_v29 = vld [vmem:[%s9931_s5 + $0x340] sm:$0xff] }
 0x345   : > { %5792 = vrot.lane.b32.xlu1 %v5791_v6, %s6014_s12  ;;  %3618 = vmatpush.msra.mxu1 %v3473_v30  ;;  %v3545_v6 = vld [vmem:[%s9931_s5 + $0x258] sm:$0xff] }
 0x346   : > { %3859 = vmatpush.msra.mxu3 %v3574_v29  ;;  %3817 = vmatpush.msra.mxu2 %v3559_v21  ;;  %v3553_v21 = vld [vmem:[%s9931_s5 + $0x298] sm:$0xff] }
 0x347   : > { %3619 = vmatpush.msra.mxu1 %v3472_v19  ;;  %v3558_v19 = vld [vmem:[%s9931_s5 + $0x2c0] sm:$0xff] }
 0x348   : > { %3860 = vmatpush.msra.mxu3 %v3573_v20  ;;  %3818 = vmatpush.msra.mxu2 %v3558_v19 }
 0x349   : > { %3620 = vmatpush.msra.mxu1 %v3471_v61  ;;  %v3572_v61 = vld [vmem:[%s9931_s5 + $0x330] sm:$0xff] }
 0x34a   : > { %3861 = vmatpush.msra.mxu3 %v3572_v61  ;;  %3819 = vmatpush.msra.mxu2 %v3557_v1  ;;  %v3552_v61 = vld [vmem:[%s9931_s5 + $0x290] sm:$0xff]  ;;  %v3519_v1 = vld [vmem:[%s9931_s5 + $0x188] sm:$0xff] }
 0x34b   : > { %3621 = vmatpush.msra.mxu1 %v3470_v52 }
 0x34c   : > { %3338 = vrot.lane.b32.xlu0 %v8086_v18, %s6013_s30  ;;  %3340 = vrot.lane.b32.xlu2 %v8130_v13, %s6013_s30 }
 0x34d   : > { %3404 = vrot.lane.b32.xlu1 %v8136_v35, %s6015_s13  ;;  %3770 = vmatpush.msrb.mxu1 %v3549_v8 }
 0x34e   : > { %3862 = vmatpush.msra.mxu3 %v3571_v45  ;;  %3820 = vmatpush.msra.mxu2 %v3556_v32  ;;  %v3567_v45 = vld [vmem:[%s9931_s5 + $0x308] sm:$0xff]  ;;  %v3550_v32 = vld [vmem:[%s9931_s5 + $0x280] sm:$0xff] }
 0x34f   : > { %3771 = vmatpush.msrb.mxu1 %v3548_v53  ;;  %v3541_v53 = vld [vmem:[%s9931_s5 + $0x238] sm:$0xff] }
 0x351   : > { %3772 = vmatpush.msrb.mxu1 %v3547_v5 }
 0x353   : > { %3773 = vmatpush.msrb.mxu1 %v3546_v10  ;;  %v3570_v10 = vld [vmem:[%s9931_s5 + $0x320] sm:$0xff] }
 0x354   : > { %5797 = vrot.lane.b32.xlu0 %v5796_v44, %s6014_s12  ;;  %3342 = vrot.lane.b32.xlu2 %v8132_v14, %s6013_s30  ;;  %v3543_v44 = vld [vmem:[%s9931_s5 + $0x248] sm:$0xff] }
 0x355   : > { %3406 = vrot.lane.b32.xlu1 %v8195_v2, %s6015_s13  ;;  %3774 = vmatpush.msrb.mxu1 %v3545_v6  ;;  %v3523_v6 = vld [vmem:[%s9931_s5 + $0x1a8] sm:$0xff] }
 0x356   : > { %3863 = vmatpush.msra.mxu3 %v3570_v10 }
 0x357   : > { %3775 = vmatpush.msrb.mxu1 %v3544_v62  ;;  %v3538_v62 = vld [vmem:[%s9931_s5 + $0x220] sm:$0xff] }
 0x358   : > { %3864 = vmatpush.msra.mxu3 %v3569_v9 }
 0x359   : > { %3776 = vmatpush.msrb.mxu1 %v3543_v44  ;;  %v3568_v44 = vld [vmem:[%s9931_s5 + $0x310] sm:$0xff] }
 0x35a   : > { %3865 = vmatpush.msra.mxu3 %v3568_v44 }
 0x35b   : > { %3777 = vmatpush.msrb.mxu1 %v3542_v60 }
 0x35c   : > { %3408 = vrot.lane.b32.xlu0 %v8197_v49, %s6015_s13  ;;  %3378 = vrot.lane.b32.xlu2 %v8226_v37, %s6014_s12  ;;  %v3531_v37 = vld [vmem:[%s9931_s5 + $0x1e8] sm:$0xff] }
 0x35d   : > { %3344 = vrot.lane.b32.xlu1 %v8191_v25, %s6013_s30  ;;  %3731 = vmatpush.msrb.mxu0 %v3531_v37 }
 0x35e   : > { %v8410_v23 = vpop.permute.xlu2 %5722  ;;  %3778 = vmatpush.msrb.mxu1 %v3541_v53  ;;  %3866 = vmatpush.msra.mxu3 %v3567_v45 }
 0x35f   : > { %3732 = vmatpush.msrb.mxu0 %v3530_v3  ;;  %v5724_v27 = vunpack.i.l.bf16 %v8410_v23  ;;  %v5725_v28 = vunpack.i.h.bf16 %v8410_v23  ;;  %v3555_v3 = vld [vmem:[%s9931_s5 + $0x2a8] sm:$0xff] }
 0x360   : > { %3779 = vmatpush.msrb.mxu1 %v3540_v55  ;;  %3821 = vmatpush.msra.mxu2 %v3555_v3  ;;  %v3539_v23 = vld [vmem:[%s9931_s5 + $0x228] sm:$0xff] }
 0x361   : > { %3733 = vmatpush.msrb.mxu0 %v3529_v56 }
 0x362   : > { %3780 = vmatpush.msrb.mxu1 %v3539_v23 }
 0x363   : > { %3734 = vmatpush.msrb.mxu0 %v3528_v12  ;;  %v3522_v12 = vld [vmem:[%s9931_s5 + $0x1a0] sm:$0xff] }
 0x364   : > { %3410 = vrot.lane.b32.xlu0 %v8344_v15, %s6015_s13  ;;  %3380 = vrot.lane.b32.xlu2 %v3213_v42, %s6014_s12  ;;  %v3525_v42 = vld [vmem:[%s9931_s5 + $0x1b8] sm:$0xff] }
 0x365   : > { %3346 = vrot.lane.b32.xlu1 %v8193_v39, %s6013_s30  ;;  %3735 = vmatpush.msrb.mxu0 %v3527_v57  ;;  %v3521_v57 = vld [vmem:[%s9931_s5 + $0x198] sm:$0xff] }
 0x366   : > { %3781 = vmatpush.msrb.mxu1 %v3538_v62 }
 0x367   : > { %3736 = vmatpush.msrb.mxu0 %v3526_v47  ;;  %v3520_v47 = vld [vmem:[%s9931_s5 + $0x190] sm:$0xff] }
 0x369   : > { %3737 = vmatpush.msrb.mxu0 %v3525_v42  ;;  %v3551_v42 = vld [vmem:[%s9931_s5 + $0x288] sm:$0xff] }
 0x36b   : > { %3738 = vmatpush.msrb.mxu0 %v3524_v0  ;;  %v3566_v0 = vld [vmem:[%s9931_s5 + $0x300] sm:$0xff] }
 0x36c   : > { %3412 = vrot.lane.b32.xlu0 %v3221_v40, %s6015_s13  ;;  %3867 = vmatpush.msra.mxu3 %v3566_v0 }
 0x36d   : > { %3348 = vrot.lane.b32.xlu1 %v8384_v26, %s6013_s30  ;;  %3739 = vmatpush.msrb.mxu0 %v3523_v6 }
 0x36f   : > { %3740 = vmatpush.msrb.mxu0 %v3522_v12 }
 0x371   : > { %3741 = vmatpush.msrb.mxu0 %v3521_v57 }
 0x373   : > { %3742 = vmatpush.msrb.mxu0 %v3520_v47 }
 0x375   : > { %3743 = vmatpush.msrb.mxu0 %v3519_v1 }
 0x377   : > { %v5718_v63 = vpop.permute.xlu1 %5717 }
 0x378   : > { %v5719_v38 = vunpack.i.l.bf16 %v5718_v63  ;;  %v5720_v52 = vunpack.i.h.bf16 %v5718_v63 }
 0x37a   : > { %v3422_v30 = vsel %vm427_vm2, %v3158_v48, %v5719_v38  ;;  %v3430_v16 = vsel %vm2677_vm4, %v5719_v38, %v5724_v27  ;;  %v3423_v51 = vsel %vm427_vm2, %v8072_v7, %v5720_v52  ;;  %v3431_v8 = vsel %vm2677_vm4, %v5720_v52, %v5725_v28  ;;  %v8465_v7 = vpop.permute.xlu2 %5737  ;;  %v3536_v52 = vld [vmem:[%s9931_s5 + $0x210] sm:$0xff] }
 0x37b   : > { %3622 = vmatmul.f32.vlgmr.msra.gmra.mxu1 %v3422_v30  ;;  %3663 = vmatmul.f32.vlgmr.msrb.gmra.mxu2 %v3430_v16  ;;  %v5739_v5 = vunpack.i.l.bf16 %v8465_v7 }
 0x37e   : > { %v5728_v31 = vpop.permute.xlu0 %5727 }
 0x37f   : > { %v5729_v41 = vunpack.i.l.bf16 %v5728_v31  ;;  %v5730_v40 = vunpack.i.h.bf16 %v5728_v31 }
 0x381   : > { %v3438_v17 = vsel %vm2686_vm5, %v5724_v27, %v5729_v41  ;;  %v3439_v29 = vsel %vm2686_vm5, %v5725_v28, %v5730_v40  ;;  %v5740_v27 = vunpack.i.h.bf16 %v8465_v7  ;;  %v3518_v7 = vld [vmem:[%s9931_s5 + $0x180] sm:$0xff] }
 0x382   : > { %3704 = vmatmul.f32.vlgmr.msrb.gmra.mxu3 %v3438_v17  ;;  %v5753_v19 = vpop.permute.xlu2 %5752  ;;  %3744 = vmatpush.msrb.mxu0 %v3518_v7 }
 0x383   : > { %3625 = vmatmul.f32.gmra.mxu1 %v3423_v51  ;;  %3666 = vmatmul.f32.gmra.mxu2 %v3431_v8  ;;  %v5754_v41 = vunpack.i.l.bf16 %v5753_v19  ;;  %v3535_v51 = vld [vmem:[%s9931_s5 + $0x208] sm:$0xff] }
 0x387   : > { %v5733_v37 = vpop.permute.xlu1 %5732 }
 0x388   : > { %v5734_v24 = vunpack.i.l.bf16 %v5733_v37  ;;  %v5735_v63 = vunpack.i.h.bf16 %v5733_v37 }
 0x38a   : > { %v3424_v46 = vsel %vm427_vm2, %v8074_v59, %v5734_v24  ;;  %v3432_v56 = vsel %vm2677_vm4, %v5734_v24, %v5739_v5  ;;  %3707 = vmatmul.f32.gmra.mxu3 %v3439_v29  ;;  %v3554_v59 = vld [vmem:[%s9931_s5 + $0x2a0] sm:$0xff]  ;;  %v3425_v20 = vsel %vm427_vm2, %v8106_v50, %v5735_v63  ;;  %v3433_v30 = vsel %vm2677_vm4, %v5735_v63, %v5740_v27  ;;  %v3537_v50 = vld [vmem:[%s9931_s5 + $0x218] sm:$0xff] }
 0x38b   : > { %3628 = vmatmul.f32.gmra.mxu1 %v3424_v46  ;;  %3669 = vmatmul.f32.gmra.mxu2 %v3432_v56 }
 0x38c   : > { %3822 = vmatpush.msra.mxu2 %v3554_v59  ;;  %3782 = vmatpush.msrb.mxu1 %v3537_v50 }
 0x38e   : > { %v5743_v48 = vpop.permute.xlu0 %5742  ;;  %3823 = vmatpush.msra.mxu2 %v3553_v21  ;;  %3783 = vmatpush.msrb.mxu1 %v3536_v52  ;;  %v5768_v46 = vpop.permute.xlu2 %5767 }
 0x38f   : > { %v5744_v38 = vunpack.i.l.bf16 %v5743_v48  ;;  %v5745_v31 = vunpack.i.h.bf16 %v5743_v48  ;;  %v5769_v6 = vunpack.i.l.bf16 %v5768_v46  ;;  %v5770_v48 = vunpack.i.h.bf16 %v5768_v46 }
 0x390   : > { %3824 = vmatpush.msra.mxu2 %v3552_v61  ;;  %3784 = vmatpush.msrb.mxu1 %v3535_v51 }
 0x391   : > { %v3440_v16 = vsel %vm2686_vm5, %v5739_v5, %v5744_v38  ;;  %v3441_v53 = vsel %vm2686_vm5, %v5740_v27, %v5745_v31  ;;  %v5755_v5 = vunpack.i.h.bf16 %v5753_v19 }
 0x392   : > { %3710 = vmatmul.f32.gmra.mxu3 %v3440_v16  ;;  %3825 = vmatpush.msra.mxu2 %v3551_v42 }
 0x393   : > { %3631 = vmatmul.f32.gmra.mxu1 %v3425_v20  ;;  %3672 = vmatmul.f32.gmra.mxu2 %v3433_v30 }
 0x394   : > { %3826 = vmatpush.msra.mxu2 %v3550_v32 }
 0x397   : > { %v5748_v28 = vpop.permute.xlu1 %5747 }
 0x398   : > { %v5749_v60 = vunpack.i.l.bf16 %v5748_v28  ;;  %v5750_v40 = vunpack.i.h.bf16 %v5748_v28 }
 0x39a   : > { %v3426_v8 = vsel %vm427_vm2, %v8108_v11, %v5749_v60  ;;  %v3434_v17 = vsel %vm2677_vm4, %v5749_v60, %v5754_v41  ;;  %v3534_v11 = vld [vmem:[%s9931_s5 + $0x200] sm:$0xff]  ;;  %3713 = vmatmul.f32.gmra.mxu3 %v3441_v53  ;;  %v3427_v55 = vsel %vm427_vm2, %v8165_v43, %v5750_v40  ;;  %v3435_v3 = vsel %vm2677_vm4, %v5750_v40, %v5755_v5 }
 0x39b   : > { %3634 = vmatmul.f32.gmra.mxu1 %v3426_v8  ;;  %3675 = vmatmul.f32.gmra.mxu2 %v3434_v17 }
 0x39c   : > { %3785 = vmatpush.msrb.mxu1 %v3534_v11 }
 0x39e   : > { %v5758_v37 = vpop.permute.xlu0 %5757 }
 0x39f   : > { %v5759_v24 = vunpack.i.l.bf16 %v5758_v37  ;;  %v5760_v56 = vunpack.i.h.bf16 %v5758_v37 }
 0x3a1   : > { %v3442_v10 = vsel %vm2686_vm5, %v5754_v41, %v5759_v24  ;;  %v3443_v43 = vsel %vm2686_vm5, %v5755_v5, %v5760_v56 }
 0x3a2   : > { %3716 = vmatmul.f32.gmra.mxu3 %v3442_v10 }
 0x3a3   : > { %3637 = vmatmul.f32.gmra.mxu1 %v3427_v55  ;;  %3678 = vmatmul.f32.gmra.mxu2 %v3435_v3 }
 0x3a7   : > { %v5763_v29 = vpop.permute.xlu1 %5762 }
 0x3a8   : > { %v5764_v23 = vunpack.i.l.bf16 %v5763_v29  ;;  %v5765_v12 = vunpack.i.h.bf16 %v5763_v29 }
 0x3aa   : > { %v3428_v59 = vsel %vm427_vm2, %v8167_v58, %v5764_v23  ;;  %v3436_v9 = vsel %vm2677_vm4, %v5764_v23, %v5769_v6  ;;  %3719 = vmatmul.f32.gmra.mxu3 %v3443_v43  ;;  %v3429_v38 = vsel %vm427_vm2, %v8224_v4, %v5765_v12  ;;  %v3437_v62 = vsel %vm2677_vm4, %v5765_v12, %v5770_v48  ;;  %v5783_v58 = vpop.permute.xlu2 %5782 }
 0x3ab   : > { %3640 = vmatmul.f32.gmra.mxu1 %v3428_v59  ;;  %3681 = vmatmul.f32.gmra.mxu2 %v3436_v9  ;;  %v5784_v50 = vunpack.i.l.bf16 %v5783_v58  ;;  %v5785_v41 = vunpack.i.h.bf16 %v5783_v58 }
 0x3ae   : > { %v5773_v63 = vpop.permute.xlu0 %5772 }
 0x3af   : > { %v5774_v27 = vunpack.i.l.bf16 %v5773_v63  ;;  %v5778_v20 = vpop.permute.xlu1 %5777  ;;  %v5775_v30 = vunpack.i.h.bf16 %v5773_v63 }
 0x3b0   : > { %v5779_v16 = vunpack.i.l.bf16 %v5778_v20  ;;  %v5780_v28 = vunpack.i.h.bf16 %v5778_v20 }
 0x3b1   : > { %v3444_v21 = vsel %vm2686_vm5, %v5769_v6, %v5774_v27  ;;  %v3445_v4 = vsel %vm2686_vm5, %v5770_v48, %v5775_v30  ;;  %v3229_v48 = vld [vmem:[#allocation3 + $0x92] sm:$0xff] }
 0x3b2   : > { %3722 = vmatmul.f32.gmra.mxu3 %v3444_v21  ;;  %v3462_v47 = vsel %vm2686_vm5, %v5779_v16, %v5784_v50  ;;  %v3463_v51 = vsel %vm2686_vm5, %v5780_v28, %v5785_v41 }
 0x3b3   : > { %3643 = vmatmul.f32.gmra.mxu1 %v3429_v38  ;;  %3684 = vmatmul.f32.gmra.mxu2 %v3437_v62 }
 0x3b6   : > { %v5788_v57 = vpop.permute.xlu0 %5787 }
 0x3b7   : > { %v5789_v44 = vunpack.i.l.bf16 %v5788_v57  ;;  %v5793_v52 = vpop.permute.xlu1 %5792  ;;  %v5790_v31 = vunpack.i.h.bf16 %v5788_v57 }
 0x3b8   : > { %v5794_v8 = vunpack.i.l.bf16 %v5793_v52  ;;  %v5795_v11 = vunpack.i.h.bf16 %v5793_v52 }
 0x3b9   : > { %v3446_v19 = vsel %vm427_vm2, %v8062_v22, %v5789_v44  ;;  %v3454_v61 = vsel %vm2677_vm4, %v5789_v44, %v5779_v16  ;;  %v3447_v60 = vsel %vm427_vm2, %v8088_v33, %v5790_v31  ;;  %v3455_v1 = vsel %vm2677_vm4, %v5790_v31, %v5780_v28  ;;  %v3403_v22 = vpop.permute.xlu2 %3402  ;;  %v8640_v28 = vld [vmem:[%s9932_s6] ss:$0 sm:$0xff] }
 0x3ba   : > { %3745 = vmatmul.f32.vlgmr.msrb.gmra.mxu0 %v3446_v19  ;;  %3725 = vmatmul.f32.gmra.mxu3 %v3445_v4  ;;  %v3464_v33 = vsel %vm2686_vm5, %v5794_v8, %v3403_v22 }
 0x3bb   : > { %3786 = vmatmul.f32.vlgmr.msrb.gmra.mxu1 %v3454_v61  ;;  %3827 = vmatmul.f32.vlgmr.msra.gmra.mxu2 %v3462_v47 }
 0x3be   : > { %v3339_v17 = vpop.permute.xlu0 %3338 }
 0x3bf   : > { %v3405_v42 = vpop.permute.xlu1 %3404  ;;  %v3448_v45 = vsel %vm427_vm2, %v8090_v36, %v3339_v17  ;;  %v3456_v53 = vsel %vm2677_vm4, %v3339_v17, %v5794_v8 }
 0x3c0   : > { %v3465_v36 = vsel %vm2686_vm5, %v5795_v11, %v3405_v42 }
 0x3c1   : > { %v3341_v7 = vpop.permute.xlu2 %3340 }
 0x3c2   : > { %3748 = vmatmul.f32.gmra.mxu0 %v3447_v60  ;;  %5559 = vmatmul.msk.f32.vlgmr.msra.gmra.mxu3 %vm427_vm2, %v8084_v34  ;;  %v3449_v0 = vsel %vm427_vm2, %v8134_v54, %v3341_v7  ;;  %v3457_v40 = vsel %vm2677_vm4, %v3341_v7, %v5795_v11 }
 0x3c3   : > { %3789 = vmatmul.f32.gmra.mxu1 %v3455_v1  ;;  %3830 = vmatmul.f32.gmra.mxu2 %v3463_v51 }
 0x3c6   : > { %v5798_v34 = vpop.permute.xlu0 %5797 }
 0x3c7   : > { %v3407_v32 = vpop.permute.xlu1 %3406  ;;  %v5799_v37 = vunpack.i.l.bf16 %v5798_v34  ;;  %v5800_v10 = vunpack.i.h.bf16 %v5798_v34 }
 0x3c9   : > { %v3343_v5 = vpop.permute.xlu2 %3342  ;;  %v3466_v54 = vsel %vm2686_vm5, %v5799_v37, %v3407_v32 }
 0x3ca   : > { %3751 = vmatmul.f32.gmra.mxu0 %v3448_v45  ;;  %5560 = vmatmul.msk.f32.gmra.mxu3 %vm427_vm2, %v8086_v18  ;;  %v3450_v18 = vsel %vm427_vm2, %v8136_v35, %v3343_v5  ;;  %v3458_v24 = vsel %vm2677_vm4, %v3343_v5, %v5799_v37 }
 0x3cb   : > { %3792 = vmatmul.f32.gmra.mxu1 %v3456_v53  ;;  %3833 = vmatmul.f32.gmra.mxu2 %v3464_v33 }
 0x3ce   : > { %v3409_v3 = vpop.permute.xlu0 %3408 }
 0x3cf   : > { %v3345_v55 = vpop.permute.xlu1 %3344  ;;  %v3467_v35 = vsel %vm2686_vm5, %v5800_v10, %v3409_v3 }
 0x3d0   : > { %v3459_v46 = vsel %vm2677_vm4, %v3345_v55, %v5800_v10 }
 0x3d1   : > { %v3379_v6 = vpop.permute.xlu2 %3378 }
 0x3d2   : > { %3754 = vmatmul.f32.gmra.mxu0 %v3449_v0  ;;  %5561 = vmatmul.msk.f32.gmra.mxu3 %vm427_vm2, %v8130_v13  ;;  %v3451_v13 = vsel %vm427_vm2, %v8195_v2, %v3345_v55 }
 0x3d3   : > { %3795 = vmatmul.f32.gmra.mxu1 %v3457_v40  ;;  %3836 = vmatmul.f32.gmra.mxu2 %v3465_v36 }
 0x3d6   : > { %v3411_v29 = vpop.permute.xlu0 %3410 }
 0x3d7   : > { %v3347_v56 = vpop.permute.xlu1 %3346  ;;  %v3468_v2 = vsel %vm2686_vm5, %v3379_v6, %v3411_v29  ;;  %v3917_v29 = vld [vmem:[#allocation3 + $0x2] sm:$0xff] }
 0x3d8   : > { %v3460_v23 = vsel %vm2677_vm4, %v3347_v56, %v3379_v6  ;;  %v3909_v6 = vld [vmem:[#allocation3 + $0x1] sm:$0xff] }
 0x3d9   : > { %v3381_v9 = vpop.permute.xlu2 %3380 }
 0x3da   : > { %3757 = vmatmul.f32.gmra.mxu0 %v3450_v18  ;;  %5562 = vmatmul.msk.f32.gmra.mxu3 %vm427_vm2, %v8132_v14  ;;  %v3452_v14 = vsel %vm427_vm2, %v8197_v49, %v3347_v56 }
 0x3db   : > { %3798 = vmatmul.f32.gmra.mxu1 %v3458_v24  ;;  %3839 = vmatmul.f32.gmra.mxu2 %v3466_v54 }
 0x3de   : > { %v3413_v59 = vpop.permute.xlu0 %3412 }
 0x3df   : > { %v3349_v43 = vpop.permute.xlu1 %3348 }
 0x3e0   : > { %v3453_v12 = vsel %vm427_vm2, %v8344_v15, %v3349_v43  ;;  %v3461_v49 = vsel %vm2677_vm4, %v3349_v43, %v3381_v9 }
 0x3e2   : > { %3760 = vmatmul.f32.gmra.mxu0 %v3451_v13  ;;  %5563 = vmatmul.msk.f32.gmra.mxu3 %vm427_vm2, %v8191_v25  ;;  %v3469_v25 = vsel %vm2686_vm5, %v3381_v9, %v3413_v59 }
 0x3e3   : > { %3801 = vmatmul.f32.gmra.mxu1 %v3459_v46  ;;  %3842 = vmatmul.f32.gmra.mxu2 %v3467_v35 }
 0x3ea   : > { %3763 = vmatmul.f32.gmra.mxu0 %v3452_v14  ;;  %5564 = vmatmul.msk.f32.gmra.mxu3 %vm427_vm2, %v8193_v39 }
 0x3eb   : > { %3804 = vmatmul.f32.gmra.mxu1 %v3460_v23  ;;  %3845 = vmatmul.f32.gmra.mxu2 %v3468_v2 }
 0x3f2   : > { %3766 = vmatmul.f32.gmra.mxu0 %v3453_v12  ;;  %5565 = vmatmul.msk.f32.gmra.mxu3 %vm427_vm2, %v8384_v26 }
 0x3f3   : > { %3807 = vmatmul.f32.gmra.mxu1 %v3461_v49  ;;  %3848 = vmatmul.f32.gmra.mxu2 %v3469_v25 }
 0x3f8   : > { %v3623_v63 = vpop.f32.mrf.mxu1 }
 0x3f9   : > { %v3624_v51 = vadd.f32 %v8640_v28, %v3623_v63 }
 0x3fa   : > { %5566 = vmatmul.msk.f32.gmra.mxu3 %vm427_vm2, %v3229_v48 }
 0x3fe   : > { %v3664_v39 = vpop.f32.mrf.mxu2 }
 0x3ff   : > { %v3665_v8 = vadd.f32 %v3664_v39, %v3624_v51 }
 0x400   : > { %v3626_v27 = vpop.f32.mrf.mxu1 }
 0x401   : > { %v3627_v11 = vadd.f32 %v8640_v28, %v3626_v27 }
 0x405   : > { %v3705_v62 = vpop.f32.mrf.mxu3 }
 0x406   : > { %v3667_v38 = vpop.f32.mrf.mxu2  ;;  %v3706_v17 = vadd.f32 %v3705_v62, %v3665_v8 }
 0x407   : > { %v3668_v32 = vadd.f32 %v3667_v38, %v3627_v11 }
 0x408   : > { %v3629_v21 = vpop.f32.mrf.mxu1 }
 0x409   : > { %v3630_v54 = vadd.f32 %v8640_v28, %v3629_v21 }
 0x40d   : > { %v3708_v58 = vpop.f32.mrf.mxu3 }
 0x40e   : > { %v3670_v20 = vpop.f32.mrf.mxu2  ;;  %v3709_v0 = vadd.f32 %v3708_v58, %v3668_v32 }
 0x40f   : > { %v3671_v3 = vadd.f32 %v3670_v20, %v3630_v54 }
 0x410   : > { %v3632_v15 = vpop.f32.mrf.mxu1 }
 0x411   : > { %v3633_v43 = vadd.f32 %v8640_v28, %v3632_v15 }
 0x415   : > { %v3711_v16 = vpop.f32.mrf.mxu3 }
 0x416   : > { %v3673_v30 = vpop.f32.mrf.mxu2  ;;  %v3712_v13 = vadd.f32 %v3711_v16, %v3671_v3 }
 0x417   : > { %v3674_v63 = vadd.f32 %v3673_v30, %v3633_v43 }
 0x418   : > { %v8619_v57 = vpop.f32.mrf.mxu1 }
 0x41d   : > { %v3714_v50 = vpop.f32.mrf.mxu3 }
 0x41e   : > { %v8621_v44 = vpop.f32.mrf.mxu2  ;;  %v3715_v39 = vadd.f32 %v3714_v50, %v3674_v63 }
 0x420   : > { %v8623_v26 = vpop.f32.mrf.mxu1 }
 0x425   : > { %v8627_v61 = vpop.f32.mrf.mxu3 }
 0x426   : > { %v8625_v19 = vpop.f32.mrf.mxu2 }
 0x428   : > { %v8629_v4 = vpop.f32.mrf.mxu1 }
 0x42d   : > { %v8633_v52 = vpop.f32.mrf.mxu3 }
 0x42e   : > { %v8631_v47 = vpop.f32.mrf.mxu2 }
 0x430   : > { %v8635_v31 = vpop.f32.mrf.mxu1 }
 0x435   : > { %v8644_v60 = vpop.f32.mrf.mxu3 }
 0x436   : > { %v8642_v41 = vpop.f32.mrf.mxu2 }
 0x437   : > { %v3746_v1 = vpop.f32.mrf.mxu0 }
 0x438   : > { %v3787_v22 = vpop.f32.mrf.mxu1  ;;  %v3747_v53 = vadd.f32 %v3746_v1, %v3706_v17  ;;  %v3636_v1 = vadd.f32 %v8640_v28, %v8619_v57 }
 0x43a   : > { %v3788_v34 = vadd.f32 %v3787_v22, %v3747_v53  ;;  %v3677_v50 = vadd.f32 %v8621_v44, %v3636_v1  ;;  %v3639_v44 = vadd.f32 %v8640_v28, %v8623_v26  ;;  %v4243_v1 = vld [vmem:[%s9933_s7 + $0xf0] sm:$0xff] }
 0x43c   : > { %v3718_v8 = vadd.f32 %v8627_v61, %v3677_v50  ;;  %v4226_v50 = vld [vmem:[%s9933_s7 + $0x68] sm:$0xff] }
 0x43d   : > { %v8647_v42 = vpop.f32.mrf.mxu3 }
 0x43e   : > { %v3828_v45 = vpop.f32.mrf.mxu2 }
 0x43f   : > { %v3749_v33 = vpop.f32.mrf.mxu0  ;;  %v3829_v40 = vadd.f32 %v3828_v45, %v3788_v34 }
 0x440   : > { %v3790_v7 = vpop.f32.mrf.mxu1  ;;  %v3750_v5 = vadd.f32 %v3749_v33, %v3709_v0 }
 0x442   : > { %v3791_v10 = vadd.f32 %v3790_v7, %v3750_v5 }
 0x445   : > { %v3869_v37 = vpop.f32.mrf.mxu3 }
 0x446   : > { %v3831_v36 = vpop.f32.mrf.mxu2  ;;  %v3870_v18 = vadd.f32 %v3869_v37, %v3829_v40 }
 0x447   : > { %v3752_v24 = vpop.f32.mrf.mxu0  ;;  %v3832_v46 = vadd.f32 %v3831_v36, %v3791_v10  ;;  %v3680_v36 = vadd.f32 %v8625_v19, %v3639_v44  ;;  %v3642_v19 = vadd.f32 %v8640_v28, %v8629_v4  ;;  %v4257_v44 = vld [vmem:[%s9933_s7 + $0x160] sm:$0xff] }
 0x448   : > { %v3793_v55 = vpop.f32.mrf.mxu1  ;;  %3893 = vst.msk [vmem:[#allocation3 + $0x11] sm:$0xff] %vm427_vm2, %v3870_v18  ;;  %v3753_v14 = vadd.f32 %v3752_v24, %v3712_v13 }
 0x449   : > { %v3721_v5 = vadd.f32 %v8633_v52, %v3680_v36  ;;  %v3683_v52 = vadd.f32 %v8631_v47, %v3642_v19  ;;  %v4241_v36 = vld [vmem:[%s9933_s7 + $0xe0] sm:$0xff] }
 0x44a   : > { %v3794_v48 = vadd.f32 %v3793_v55, %v3753_v14 }
 0x44b   : > { %v3724_v4 = vadd.f32 %v8644_v60, %v3683_v52  ;;  %v4255_v52 = vld [vmem:[%s9933_s7 + $0x150] sm:$0xff] }
 0x44d   : > { %v3872_v56 = vpop.f32.mrf.mxu3 }
 0x44e   : > { %v3834_v35 = vpop.f32.mrf.mxu2  ;;  %v3873_v23 = vadd.f32 %v3872_v56, %v3832_v46 }
 0x44f   : > { %v3755_v2 = vpop.f32.mrf.mxu0  ;;  %v8652_v59 = vld [vmem:[#allocation3 + $0x12] sm:$0xff]  ;;  %v3835_v27 = vadd.f32 %v3834_v35, %v3794_v48 }
 0x450   : > { %v8654_v9 = vld [vmem:[#allocation3 + $0x11] sm:$0xff]  ;;  %3894 = vst.msk [vmem:[#allocation3 + $0x21] sm:$0xff] %vm427_vm2, %v3873_v23  ;;  %v3796_v25 = vpop.f32.mrf.mxu1  ;;  %v5801_v12 = vpack.i.bf16 %v8652_v59, %v3917_v29  ;;  %v3756_v21 = vadd.f32 %v3755_v2, %v3715_v39  ;;  %v3645_v39 = vadd.f32 %v8640_v28, %v8635_v31 }
 0x451   : > { %v5811_v49 = vpack.i.bf16 %v8654_v9, %v3909_v6  ;;  %v8662_v15 = vld [vmem:[#allocation3 + $0x10] sm:$0xff]  ;;  %v4260_v29 = vld [vmem:[%s9933_s7 + $0x178] sm:$0xff] }
 0x452   : > { %5802 = vrot.lane.b32.xlu2 %v5801_v12, %s6014_s12  ;;  %v3797_v22 = vadd.f32 %v3796_v25, %v3756_v21  ;;  %v4228_v6 = vld [vmem:[%s9933_s7 + $0x78] sm:$0xff]  ;;  %4431 = vmatpush.msrb.mxu2 %v4260_v29  ;;  %v4259_v28 = vld [vmem:[%s9933_s7 + $0x170] sm:$0xff] }
 0x453   : > { %5812 = vrot.lane.b32.xlu1 %v5811_v49, %s6013_s30  ;;  %4349 = vmatpush.msra.mxu0 %v4228_v6  ;;  %v4244_v31 = vld [vmem:[%s9933_s7 + $0xf8] sm:$0xff]  ;;  %v4239_v29 = vld [vmem:[%s9933_s7 + $0xd0] sm:$0xff]  ;;  %v4254_v6 = vld [vmem:[%s9933_s7 + $0x148] sm:$0xff] }
 0x454   : > { %4390 = vmatpush.msra.mxu1 %v4244_v31  ;;  %4432 = vmatpush.msrb.mxu2 %v4259_v28  ;;  %v4251_v31 = vld [vmem:[%s9933_s7 + $0x130] sm:$0xff] }
 0x455   : > { %v3875_v62 = vpop.f32.mrf.mxu3  ;;  %v4219_v28 = vld [vmem:[%s9933_s7 + $0x30] sm:$0xff] }
 0x456   : > { %v3837_v38 = vpop.f32.mrf.mxu2  ;;  %v3876_v20 = vadd.f32 %v3875_v62, %v3835_v27  ;;  %4391 = vmatpush.msra.mxu1 %v4243_v1  ;;  %v4234_v1 = vld [vmem:[%s9933_s7 + $0xa8] sm:$0xff] }
 0x457   : > { %v3758_v58 = vpop.f32.mrf.mxu0  ;;  %v8664_v16 = vld [vmem:[#allocation3 + $0x20] sm:$0xff]  ;;  %v3838_v17 = vadd.f32 %v3837_v38, %v3797_v22  ;;  %v3686_v38 = vadd.f32 %v8642_v41, %v3645_v39 }
 0x458   : > { %3895 = vst.msk [vmem:[#allocation3 + $0x31] sm:$0xff] %vm427_vm2, %v3876_v20  ;;  %v5806_v30 = vpack.i.bf16 %v8664_v16, %v8662_v15  ;;  %v3799_v51 = vpop.f32.mrf.mxu1  ;;  %v3759_v33 = vadd.f32 %v3758_v58, %v3718_v8  ;;  %v8674_v11 = vld [vmem:[#allocation3 + $0x22] sm:$0xff]  ;;  %v4227_v20 = vld [vmem:[%s9933_s7 + $0x70] sm:$0xff] }
 0x459   : > { %v8678_v34 = vld [vmem:[#allocation3 + $0x21] sm:$0xff]  ;;  %v3727_v41 = vadd.f32 %v8647_v42, %v3686_v38  ;;  %4350 = vmatpush.msra.mxu0 %v4227_v20  ;;  %v4235_v20 = vld [vmem:[%s9933_s7 + $0xb0] sm:$0xff] }
 0x45a   : > { %5807 = vrot.lane.b32.xlu0 %v5806_v30, %s6015_s13  ;;  %v3800_v37 = vadd.f32 %v3799_v51, %v3759_v33  ;;  %v4258_v30 = vld [vmem:[%s9933_s7 + $0x168] sm:$0xff]  ;;  %v4237_v39 = vld [vmem:[%s9933_s7 + $0xc0] sm:$0xff] }
 0x45b   : > { %4433 = vmatpush.msrb.mxu2 %v4258_v30  ;;  %4351 = vmatpush.msra.mxu0 %v4226_v50  ;;  %v4249_v30 = vld [vmem:[%s9933_s7 + $0x120] sm:$0xff] }
 0x45c   : > { %v4217_v50 = vld [vmem:[%s9933_s7 + $0x20] sm:$0xff] }
 0x45d   : > { %v3878_v53 = vpop.f32.mrf.mxu3  ;;  %4434 = vmatpush.msrb.mxu2 %v4257_v44  ;;  %v4214_v44 = vld [vmem:[%s9933_s7 + $0x8] sm:$0xff] }
 0x45e   : > { %v3840_v45 = vpop.f32.mrf.mxu2  ;;  %v3879_v7 = vadd.f32 %v3878_v53, %v3838_v17 }
 0x45f   : > { %v3761_v57 = vpop.f32.mrf.mxu0  ;;  %v8676_v32 = vld [vmem:[#allocation3 + $0x32] sm:$0xff]  ;;  %v3841_v18 = vadd.f32 %v3840_v45, %v3800_v37 }
 0x460   : > { %v8680_v0 = vld [vmem:[#allocation3 + $0x31] sm:$0xff]  ;;  %3896 = vst.msk [vmem:[#allocation3 + $0x41] sm:$0xff] %vm427_vm2, %v3879_v7  ;;  %v5816_v61 = vpack.i.bf16 %v8676_v32, %v8674_v11  ;;  %v3802_v24 = vpop.f32.mrf.mxu1  ;;  %v3762_v54 = vadd.f32 %v3761_v57, %v3721_v5  ;;  %v4242_v57 = vld [vmem:[%s9933_s7 + $0xe8] sm:$0xff] }
 0x461   : > { %v5826_v40 = vpack.i.bf16 %v8680_v0, %v8678_v34  ;;  %v8693_v10 = vld [vmem:[#allocation3 + $0x30] sm:$0xff]  ;;  %4392 = vmatpush.msra.mxu1 %v4242_v57  ;;  %v4256_v37 = vld [vmem:[%s9933_s7 + $0x158] sm:$0xff] }
 0x462   : > { %5817 = vrot.lane.b32.xlu2 %v5816_v61, %s6014_s12  ;;  %v3803_v56 = vadd.f32 %v3802_v24, %v3762_v54  ;;  %v4225_v61 = vld [vmem:[%s9933_s7 + $0x60] sm:$0xff]  ;;  %v4224_v5 = vld [vmem:[%s9933_s7 + $0x58] sm:$0xff]  ;;  %4435 = vmatpush.msrb.mxu2 %v4256_v37  ;;  %v5866_v38 = vpack.i.bf16 %v8693_v10, %v8664_v16  ;;  %v4231_v57 = vld [vmem:[%s9933_s7 + $0x90] sm:$0xff] }
 0x463   : > { %5827 = vrot.lane.b32.xlu1 %v5826_v40, %s6013_s30  ;;  %4352 = vmatpush.msra.mxu0 %v4225_v61  ;;  %v4230_v61 = vld [vmem:[%s9933_s7 + $0x88] sm:$0xff] }
 0x464   : > { %4393 = vmatpush.msra.mxu1 %v4241_v36  ;;  %4436 = vmatpush.msrb.mxu2 %v4255_v52  ;;  %v4229_v36 = vld [vmem:[%s9933_s7 + $0x80] sm:$0xff]  ;;  %v4246_v37 = vld [vmem:[%s9933_s7 + $0x108] sm:$0xff]  ;;  %v4272_v52 = vld [vmem:[%s9933_s7 + $0x1d8] sm:$0xff] }
 0x465   : > { %v3881_v55 = vpop.f32.mrf.mxu3  ;;  %4353 = vmatpush.msra.mxu0 %v4224_v5  ;;  %v4276_v5 = vld [vmem:[%s9933_s7 + $0x1f8] sm:$0xff] }
 0x466   : > { %v3843_v26 = vpop.f32.mrf.mxu2  ;;  %v3882_v3 = vadd.f32 %v3881_v55, %v3841_v18  ;;  %4437 = vmatpush.msrb.mxu2 %v4254_v6  ;;  %4472 = vmatpush.msrb.mxu3 %v4276_v5  ;;  %v4308_v6 = vld [vmem:[%s9933_s7 + $0x2f8] sm:$0xff]  ;;  %v4303_v5 = vld [vmem:[%s9933_s7 + $0x2d0] sm:$0xff] }
 0x467   : > { %v8695_v13 = vld [vmem:[#allocation3 + $0x40] sm:$0xff]  ;;  %v3764_v35 = vpop.f32.mrf.mxu0  ;;  %v3844_v14 = vadd.f32 %v3843_v26, %v3803_v56  ;;  %v4223_v56 = vld [vmem:[%s9933_s7 + $0x50] sm:$0xff] }
 0x468   : > { %3897 = vst.msk [vmem:[#allocation3 + $0x51] sm:$0xff] %vm427_vm2, %v3882_v3  ;;  %v5821_v46 = vpack.i.bf16 %v8695_v13, %v8693_v10  ;;  %v3765_v2 = vadd.f32 %v3764_v35, %v3724_v4  ;;  %v8711_v47 = vld [vmem:[#allocation3 + $0x42] sm:$0xff]  ;;  %v3805_v25 = vpop.f32.mrf.mxu1  ;;  %v4240_v35 = vld [vmem:[%s9933_s7 + $0xd8] sm:$0xff]  ;;  %4354 = vmatpush.msra.mxu0 %v4223_v56 }
 0x469   : > { %v8715_v63 = vld [vmem:[#allocation3 + $0x41] sm:$0xff]  ;;  %4394 = vmatpush.msra.mxu1 %v4240_v35  ;;  %v4320_v35 = vld [vmem:[%s9933_s7 + $0x358] sm:$0xff] }
 0x46a   : > { %5822 = vrot.lane.b32.xlu0 %v5821_v46, %s6015_s13  ;;  %v3806_v62 = vadd.f32 %v3805_v25, %v3765_v2  ;;  %v4222_v4 = vld [vmem:[%s9933_s7 + $0x48] sm:$0xff]  ;;  %v4292_v56 = vld [vmem:[%s9933_s7 + $0x278] sm:$0xff] }
 0x46b   : > { %4395 = vmatpush.msra.mxu1 %v4239_v29  ;;  %4355 = vmatpush.msra.mxu0 %v4222_v4  ;;  %v4238_v25 = vld [vmem:[%s9933_s7 + $0xc8] sm:$0xff]  ;;  %v4271_v4 = vld [vmem:[%s9933_s7 + $0x1d0] sm:$0xff] }
 0x46d   : > { %v3884_v23 = vpop.f32.mrf.mxu3  ;;  %4396 = vmatpush.msra.mxu1 %v4238_v25  ;;  %v3956_v25 = vld [vmem:[#allocation3 + $0x90] sm:$0xff] }
 0x46e   : > { %v3885_v43 = vadd.f32 %v3884_v23, %v3844_v14  ;;  %v3846_v12 = vpop.f32.mrf.mxu2 }
 0x46f   : > { %v8713_v49 = vld [vmem:[#allocation3 + $0x52] sm:$0xff]  ;;  %v3767_v21 = vpop.f32.mrf.mxu0  ;;  %v3847_v58 = vadd.f32 %v3846_v12, %v3806_v62  ;;  %v4253_v12 = vld [vmem:[%s9933_s7 + $0x140] sm:$0xff]  ;;  %4397 = vmatpush.msra.mxu1 %v4237_v39  ;;  %v5871_v62 = vpack.i.bf16 %v8711_v47, %v8676_v32 }
 0x470   : > { %v8717_v48 = vld [vmem:[#allocation3 + $0x51] sm:$0xff]  ;;  %3898 = vst.msk [vmem:[#allocation3 + $0x61] sm:$0xff] %vm427_vm2, %v3885_v43  ;;  %v5831_v60 = vpack.i.bf16 %v8713_v49, %v8711_v47  ;;  %v3768_v51 = vadd.f32 %v3767_v21, %v3727_v41  ;;  %v3808_v53 = vpop.f32.mrf.mxu1  ;;  %v5861_v43 = vpack.i.bf16 %v8674_v11, %v8652_v59  ;;  %4438 = vmatpush.msrb.mxu2 %v4253_v12  ;;  %v4221_v59 = vld [vmem:[%s9933_s7 + $0x40] sm:$0xff]  ;;  %v4250_v41 = vld [vmem:[%s9933_s7 + $0x128] sm:$0xff] }
 0x471   : > { %v5841_v27 = vpack.i.bf16 %v8717_v48, %v8715_v63  ;;  %v8748_v42 = vld [vmem:[#allocation3 + $0x50] sm:$0xff]  ;;  %4356 = vmatpush.msra.mxu0 %v4221_v59  ;;  %v4236_v21 = vld [vmem:[%s9933_s7 + $0xb8] sm:$0xff]  ;;  %v4269_v12 = vld [vmem:[%s9933_s7 + $0x1c0] sm:$0xff] }
 0x472   : > { %5832 = vrot.lane.b32.xlu2 %v5831_v60, %s6014_s12  ;;  %v3809_v7 = vadd.f32 %v3808_v53, %v3768_v51  ;;  %v4252_v60 = vld [vmem:[%s9933_s7 + $0x138] sm:$0xff]  ;;  %4398 = vmatpush.msra.mxu1 %v4236_v21  ;;  %v4247_v53 = vld [vmem:[%s9933_s7 + $0x110] sm:$0xff] }
 0x473   : > { %5842 = vrot.lane.b32.xlu1 %v5841_v27, %s6013_s30  ;;  %v4220_v27 = vld [vmem:[%s9933_s7 + $0x38] sm:$0xff]  ;;  %4439 = vmatpush.msrb.mxu2 %v4252_v60  ;;  %v4307_v39 = vld [vmem:[%s9933_s7 + $0x2f0] sm:$0xff]  ;;  %v4290_v60 = vld [vmem:[%s9933_s7 + $0x268] sm:$0xff] }
 0x474   : > { %4357 = vmatpush.msra.mxu0 %v4220_v27  ;;  %4399 = vmatpush.msra.mxu1 %v4235_v20  ;;  %v4248_v51 = vld [vmem:[%s9933_s7 + $0x118] sm:$0xff]  ;;  %v4267_v21 = vld [vmem:[%s9933_s7 + $0x1b0] sm:$0xff] }
 0x475   : > { %v3887_v22 = vpop.f32.mrf.mxu3  ;;  %4440 = vmatpush.msrb.mxu2 %v4251_v31  ;;  %v4268_v27 = vld [vmem:[%s9933_s7 + $0x1b8] sm:$0xff]  ;;  %v4289_v31 = vld [vmem:[%s9933_s7 + $0x260] sm:$0xff] }
 0x476   : > { %v3888_v8 = vadd.f32 %v3887_v22, %v3847_v58  ;;  %v3849_v33 = vpop.f32.mrf.mxu2  ;;  %v4218_v58 = vld [vmem:[%s9933_s7 + $0x28] sm:$0xff]  ;;  %4358 = vmatpush.msra.mxu0 %v4219_v28  ;;  %4400 = vmatpush.msra.mxu1 %v4234_v1  ;;  %v4233_v22 = vld [vmem:[%s9933_s7 + $0xa0] sm:$0xff]  ;;  %v3964_v20 = vld [vmem:[#allocation3 + $0x91] sm:$0xff] }
 0x477   : > { %v8750_v17 = vld [vmem:[#allocation3 + $0x60] sm:$0xff]  ;;  %v3850_v40 = vadd.f32 %v3849_v33, %v3809_v7  ;;  %4441 = vmatpush.msrb.mxu2 %v4250_v41  ;;  %v4215_v7 = vld [vmem:[%s9933_s7 + $0x10] sm:$0xff]  ;;  %v4266_v28 = vld [vmem:[%s9933_s7 + $0x1a8] sm:$0xff] }
 0x478   : > { %3899 = vst.msk [vmem:[#allocation3 + $0x71] sm:$0xff] %vm427_vm2, %v3888_v8  ;;  %v5836_v45 = vpack.i.bf16 %v8750_v17, %v8748_v42  ;;  %v8774_v26 = vld [vmem:[#allocation3 + $0x62] sm:$0xff]  ;;  %4359 = vmatpush.msra.mxu0 %v4218_v58  ;;  %4401 = vmatpush.msra.mxu1 %v4233_v22  ;;  %v4216_v8 = vld [vmem:[%s9933_s7 + $0x18] sm:$0xff] }
 0x479   : > { %v8778_v54 = vld [vmem:[#allocation3 + $0x61] sm:$0xff]  ;;  %4442 = vmatpush.msrb.mxu2 %v4249_v30  ;;  %v5876_v33 = vpack.i.bf16 %v8774_v26, %v8713_v49  ;;  %v4288_v22 = vld [vmem:[%s9933_s7 + $0x258] sm:$0xff] }
 0x47a   : > { %5837 = vrot.lane.b32.xlu0 %v5836_v45, %s6015_s13  ;;  %4360 = vmatpush.msra.mxu0 %v4217_v50  ;;  %v4232_v45 = vld [vmem:[%s9933_s7 + $0x98] sm:$0xff]  ;;  %v4265_v41 = vld [vmem:[%s9933_s7 + $0x1a0] sm:$0xff] }
 0x47b   : > { %4443 = vmatpush.msrb.mxu2 %v4248_v51  ;;  %4402 = vmatpush.msra.mxu1 %v4232_v45  ;;  %v4305_v58 = vld [vmem:[%s9933_s7 + $0x2e0] sm:$0xff]  ;;  %v4264_v50 = vld [vmem:[%s9933_s7 + $0x198] sm:$0xff] }
 0x47c   : > { %4361 = vmatpush.msra.mxu0 %v4216_v8  ;;  %v4317_v1 = vld [vmem:[%s9933_s7 + $0x340] sm:$0xff]  ;;  %v4304_v51 = vld [vmem:[%s9933_s7 + $0x2d8] sm:$0xff] }
 0x47d   : > { %v3890_v18 = vpop.f32.mrf.mxu3  ;;  %4444 = vmatpush.msrb.mxu2 %v4247_v53  ;;  %4403 = vmatpush.msra.mxu1 %v4231_v57  ;;  %v3901_v45 = vld [vmem:[#allocation3] sm:$0xff]  ;;  %v4263_v53 = vld [vmem:[%s9933_s7 + $0x190] sm:$0xff] }
 0x47e   : > { %v3891_v24 = vadd.f32 %v3890_v18, %v3850_v40  ;;  %4362 = vmatpush.msra.mxu0 %v4215_v7  ;;  %v4213_v40 = vld [vmem:[%s9933_s7] sm:$0xff]  ;;  %v4275_v18 = vld [vmem:[%s9933_s7 + $0x1f0] sm:$0xff] }
 0x47f   : > { %v8776_v55 = vld [vmem:[#allocation3 + $0x72] sm:$0xff]  ;;  %4404 = vmatpush.msra.mxu1 %v4230_v61  ;;  %4445 = vmatpush.msrb.mxu2 %v4246_v37  ;;  %v4262_v61 = vld [vmem:[%s9933_s7 + $0x188] sm:$0xff]  ;;  %v4261_v37 = vld [vmem:[%s9933_s7 + $0x180] sm:$0xff] }
 0x480   : > { %v8780_v3 = vld [vmem:[#allocation3 + $0x71] sm:$0xff]  ;;  %3900 = vst.msk [vmem:[#allocation3 + $0x81] sm:$0xff] %vm427_vm2, %v3891_v24  ;;  %v5846_v19 = vpack.i.bf16 %v8776_v55, %v8774_v26  ;;  %4363 = vmatpush.msra.mxu0 %v4214_v44  ;;  %v4245_v24 = vld [vmem:[%s9933_s7 + $0x100] sm:$0xff]  ;;  %4473 = vmatpush.msrb.mxu3 %v4275_v18  ;;  %v4286_v18 = vld [vmem:[%s9933_s7 + $0x248] sm:$0xff] }
 0x481   : > { %v5856_v46 = vpack.i.bf16 %v8780_v3, %v8778_v54  ;;  %v8807_v14 = vld [vmem:[#allocation3 + $0x70] sm:$0xff]  ;;  %4405 = vmatpush.msra.mxu1 %v4229_v36  ;;  %4446 = vmatpush.msrb.mxu2 %v4245_v24  ;;  %v4316_v44 = vld [vmem:[%s9933_s7 + $0x338] sm:$0xff] }
 0x482   : > { %5847 = vrot.lane.b32.xlu2 %v5846_v19, %s6014_s12  ;;  %4364 = vmatpush.msra.mxu0 %v4213_v40  ;;  %v4274_v19 = vld [vmem:[%s9933_s7 + $0x1e8] sm:$0xff]  ;;  %v4287_v57 = vld [vmem:[%s9933_s7 + $0x250] sm:$0xff] }
 0x483   : > { %5857 = vrot.lane.b32.xlu1 %v5856_v46, %s6013_s30  ;;  %v4273_v46 = vld [vmem:[%s9933_s7 + $0x1e0] sm:$0xff]  ;;  %4474 = vmatpush.msrb.mxu3 %v4274_v19  ;;  %v4315_v24 = vld [vmem:[%s9933_s7 + $0x330] sm:$0xff]  ;;  %v4302_v19 = vld [vmem:[%s9933_s7 + $0x2c8] sm:$0xff] }
 0x484   : > { %4599 = vmatpush.msra.mxu2 %v4320_v35  ;;  %4513 = vmatpush.msrb.mxu0 %v4292_v56 }
 0x485   : > { %4475 = vmatpush.msrb.mxu3 %v4273_v46  ;;  %4554 = vmatpush.msrb.mxu1 %v4308_v6 }
 0x487   : > { %v8809_v23 = vld [vmem:[#allocation3 + $0x80] sm:$0xff]  ;;  %4476 = vmatpush.msrb.mxu3 %v4272_v52  ;;  %4555 = vmatpush.msrb.mxu1 %v4307_v39  ;;  %v4284_v39 = vld [vmem:[%s9933_s7 + $0x238] sm:$0xff] }
 0x488   : > { %v5851_v2 = vpack.i.bf16 %v8809_v23, %v8807_v14  ;;  %v8955_v29 = vld [vmem:[#allocation3 + $0x81] sm:$0xff] }
 0x489   : > { %4477 = vmatpush.msrb.mxu3 %v4271_v4  ;;  %v8977_v59 = vld [vmem:[#allocation3 + $0x82] sm:$0xff] }
 0x48a   : > { %5852 = vrot.lane.b32.xlu0 %v5851_v2, %s6015_s13  ;;  %5862 = vrot.lane.b32.xlu2 %v5861_v43, %s6013_s30  ;;  %v4291_v2 = vld [vmem:[%s9933_s7 + $0x270] sm:$0xff]  ;;  %v4285_v4 = vld [vmem:[%s9933_s7 + $0x240] sm:$0xff] }
 0x48b   : > { %4141 = vrot.lane.b32.xlu1 %v8678_v34, %s6015_s13  ;;  %v4319_v43 = vld [vmem:[%s9933_s7 + $0x350] sm:$0xff]  ;;  %4514 = vmatpush.msrb.mxu0 %v4291_v2 }
 0x48c   : > { %4600 = vmatpush.msra.mxu2 %v4319_v43 }
 0x48d   : > { %4515 = vmatpush.msrb.mxu0 %v4290_v60 }
 0x48f   : > { %4516 = vmatpush.msrb.mxu0 %v4289_v31  ;;  %v4283_v31 = vld [vmem:[%s9933_s7 + $0x230] sm:$0xff] }
 0x491   : > { %4517 = vmatpush.msrb.mxu0 %v4288_v22 }
 0x492   : > { %5867 = vrot.lane.b32.xlu0 %v5866_v38, %s6014_s12  ;;  %5872 = vrot.lane.b32.xlu2 %v5871_v62, %s6013_s30  ;;  %v4318_v38 = vld [vmem:[%s9933_s7 + $0x348] sm:$0xff] }
 0x493   : > { %4113 = vrot.lane.b32.xlu1 %v8695_v13, %s6014_s12  ;;  %v4306_v62 = vld [vmem:[%s9933_s7 + $0x2e8] sm:$0xff]  ;;  %4601 = vmatpush.msra.mxu2 %v4318_v38 }
 0x494   : > { %4556 = vmatpush.msrb.mxu1 %v4306_v62  ;;  %4518 = vmatpush.msrb.mxu0 %v4287_v57 }
 0x495   : > { %4602 = vmatpush.msra.mxu2 %v4317_v1  ;;  %v4299_v1 = vld [vmem:[%s9933_s7 + $0x2b0] sm:$0xff] }
 0x496   : > { %4557 = vmatpush.msrb.mxu1 %v4305_v58  ;;  %4519 = vmatpush.msrb.mxu0 %v4286_v18 }
 0x497   : > { %4603 = vmatpush.msra.mxu2 %v4316_v44 }
 0x498   : > { %4558 = vmatpush.msrb.mxu1 %v4304_v51  ;;  %4520 = vmatpush.msrb.mxu0 %v4285_v4  ;;  %v4310_v4 = vld [vmem:[%s9933_s7 + $0x308] sm:$0xff] }
 0x499   : > { %4604 = vmatpush.msra.mxu2 %v4315_v24 }
 0x49a   : > { %4143 = vrot.lane.b32.xlu0 %v8680_v0, %s6015_s13  ;;  %4145 = vrot.lane.b32.xlu2 %v8715_v63, %s6015_s13 }
 0x49b   : > { %4115 = vrot.lane.b32.xlu1 %v8748_v42, %s6014_s12  ;;  %4559 = vmatpush.msrb.mxu1 %v4303_v5  ;;  %v4295_v5 = vld [vmem:[%s9933_s7 + $0x290] sm:$0xff] }
 0x49c   : > { %4521 = vmatpush.msrb.mxu0 %v4284_v39  ;;  %v4309_v39 = vld [vmem:[%s9933_s7 + $0x300] sm:$0xff] }
 0x49d   : > { %4560 = vmatpush.msrb.mxu1 %v4302_v19 }
 0x49e   : > { %4522 = vmatpush.msrb.mxu0 %v4283_v31 }
 0x4a2   : > { %5877 = vrot.lane.b32.xlu0 %v5876_v33, %s6013_s30  ;;  %4147 = vrot.lane.b32.xlu2 %v8717_v48, %s6015_s13 }
 0x4a3   : > { %4149 = vrot.lane.b32.xlu1 %v8778_v54, %s6015_s13 }
 0x4aa   : > { %4117 = vrot.lane.b32.xlu0 %v8750_v17, %s6014_s12  ;;  %4089 = vrot.lane.b32.xlu2 %v8776_v55, %s6013_s30 }
 0x4ab   : > { %4151 = vrot.lane.b32.xlu1 %v8780_v3, %s6015_s13 }
 0x4ac   : > { %v9015_v30 = vpop.permute.xlu2 %5802 }
 0x4ad   : > { %v5804_v33 = vunpack.i.l.bf16 %v9015_v30  ;;  %v5805_v56 = vunpack.i.h.bf16 %v9015_v30  ;;  %v4282_v30 = vld [vmem:[%s9933_s7 + $0x228] sm:$0xff] }
 0x4ae   : > { %4523 = vmatpush.msrb.mxu0 %v4282_v30 }
 0x4b2   : > { %4119 = vrot.lane.b32.xlu0 %v8807_v14, %s6014_s12  ;;  %4121 = vrot.lane.b32.xlu2 %v8809_v23, %s6014_s12  ;;  %v4270_v23 = vld [vmem:[%s9933_s7 + $0x1c8] sm:$0xff] }
 0x4b3   : > { %4153 = vrot.lane.b32.xlu1 %v8955_v29, %s6015_s13  ;;  %4478 = vmatpush.msrb.mxu3 %v4270_v23 }
 0x4b5   : > { %4479 = vmatpush.msrb.mxu3 %v4269_v12  ;;  %v4314_v12 = vld [vmem:[%s9933_s7 + $0x328] sm:$0xff] }
 0x4b6   : > { %4605 = vmatpush.msra.mxu2 %v4314_v12  ;;  %v4293_v12 = vld [vmem:[%s9933_s7 + $0x280] sm:$0xff] }
 0x4b7   : > { %4480 = vmatpush.msrb.mxu3 %v4268_v27 }
 0x4b9   : > { %4481 = vmatpush.msrb.mxu3 %v4267_v21 }
 0x4ba   : > { %4091 = vrot.lane.b32.xlu0 %v8977_v59, %s6013_s30  ;;  %4123 = vrot.lane.b32.xlu2 %v3956_v25, %s6014_s12  ;;  %v4301_v25 = vld [vmem:[%s9933_s7 + $0x2c0] sm:$0xff] }
 0x4bb   : > { %4482 = vmatpush.msrb.mxu3 %v4266_v28  ;;  %4561 = vmatpush.msrb.mxu1 %v4301_v25  ;;  %v4313_v28 = vld [vmem:[%s9933_s7 + $0x320] sm:$0xff] }
 0x4bc   : > { %v9057_v35 = vpop.permute.xlu2 %5817  ;;  %4606 = vmatpush.msra.mxu2 %v4313_v28  ;;  %v4277_v25 = vld [vmem:[%s9933_s7 + $0x200] sm:$0xff] }
 0x4bd   : > { %4483 = vmatpush.msrb.mxu3 %v4265_v41  ;;  %v5819_v62 = vunpack.i.l.bf16 %v9057_v35 }
 0x4bf   : > { %4484 = vmatpush.msrb.mxu3 %v4264_v50  ;;  %v4312_v50 = vld [vmem:[%s9933_s7 + $0x318] sm:$0xff] }
 0x4c0   : > { %4607 = vmatpush.msra.mxu2 %v4312_v50 }
 0x4c1   : > { %4485 = vmatpush.msrb.mxu3 %v4263_v53 }
 0x4c2   : > { %4155 = vrot.lane.b32.xlu0 %v3964_v20, %s6015_s13 }
 0x4c3   : > { %4486 = vmatpush.msrb.mxu3 %v4262_v61 }
 0x4c5   : > { %v5813_v8 = vpop.permute.xlu1 %5812  ;;  %4487 = vmatpush.msrb.mxu3 %v4261_v37  ;;  %v4296_v37 = vld [vmem:[%s9933_s7 + $0x298] sm:$0xff] }
 0x4c6   : > { %v5814_v7 = vunpack.i.l.bf16 %v5813_v8  ;;  %v5815_v46 = vunpack.i.h.bf16 %v5813_v8 }
 0x4c8   : > { %v4165_v40 = vsel %vm427_vm2, %v3901_v45, %v5814_v7  ;;  %v4173_v36 = vsel %vm2677_vm4, %v5814_v7, %v5804_v33  ;;  %v4166_v23 = vsel %vm427_vm2, %v8662_v15, %v5815_v46  ;;  %v4174_v2 = vsel %vm2677_vm4, %v5815_v46, %v5805_v56  ;;  %v4300_v15 = vld [vmem:[%s9933_s7 + $0x2b8] sm:$0xff]  ;;  %v4297_v7 = vld [vmem:[%s9933_s7 + $0x2a0] sm:$0xff] }
 0x4c9   : > { %4365 = vmatmul.f32.vlgmr.msra.gmra.mxu0 %v4165_v40  ;;  %4406 = vmatmul.f32.vlgmr.msra.gmra.mxu1 %v4173_v36  ;;  %v5820_v45 = vunpack.i.h.bf16 %v9057_v35  ;;  %v4311_v40 = vld [vmem:[%s9933_s7 + $0x310] sm:$0xff]  ;;  %v4280_v36 = vld [vmem:[%s9933_s7 + $0x218] sm:$0xff] }
 0x4ca   : > { %4562 = vmatpush.msrb.mxu1 %v4300_v15  ;;  %4608 = vmatpush.msra.mxu2 %v4311_v40 }
 0x4cc   : > { %v5808_v52 = vpop.permute.xlu0 %5807  ;;  %v9079_v27 = vpop.permute.xlu2 %5832  ;;  %4563 = vmatpush.msrb.mxu1 %v4299_v1  ;;  %4609 = vmatpush.msra.mxu2 %v4310_v4 }
 0x4cd   : > { %v5809_v6 = vunpack.i.l.bf16 %v5808_v52  ;;  %v5810_v60 = vunpack.i.h.bf16 %v5808_v52  ;;  %v5834_v46 = vunpack.i.l.bf16 %v9079_v27 }
 0x4ce   : > { %4610 = vmatpush.msra.mxu2 %v4309_v39 }
 0x4cf   : > { %v4181_v43 = vsel %vm2686_vm5, %v5804_v33, %v5809_v6  ;;  %v4182_v58 = vsel %vm2686_vm5, %v5805_v56, %v5810_v60  ;;  %v4281_v33 = vld [vmem:[%s9933_s7 + $0x220] sm:$0xff]  ;;  %v4278_v56 = vld [vmem:[%s9933_s7 + $0x208] sm:$0xff] }
 0x4d0   : > { %4447 = vmatmul.f32.vlgmr.msrb.gmra.mxu2 %v4181_v43  ;;  %4524 = vmatpush.msrb.mxu0 %v4281_v33  ;;  %v4294_v6 = vld [vmem:[%s9933_s7 + $0x288] sm:$0xff] }
 0x4d1   : > { %4368 = vmatmul.f32.gmra.mxu0 %v4166_v23  ;;  %4409 = vmatmul.f32.gmra.mxu1 %v4174_v2 }
 0x4d2   : > { %4525 = vmatpush.msrb.mxu0 %v4280_v36 }
 0x4d5   : > { %v5828_v38 = vpop.permute.xlu1 %5827 }
 0x4d6   : > { %v5829_v21 = vunpack.i.l.bf16 %v5828_v38  ;;  %v5830_v22 = vunpack.i.h.bf16 %v5828_v38  ;;  %v5835_v38 = vunpack.i.h.bf16 %v9079_v27 }
 0x4d8   : > { %v4167_v20 = vsel %vm427_vm2, %v8664_v16, %v5829_v21  ;;  %v4175_v41 = vsel %vm2677_vm4, %v5829_v21, %v5819_v62  ;;  %4450 = vmatmul.f32.gmra.mxu2 %v4182_v58  ;;  %v4298_v16 = vld [vmem:[%s9933_s7 + $0x2a8] sm:$0xff]  ;;  %v4168_v57 = vsel %vm427_vm2, %v8693_v10, %v5830_v22  ;;  %v4176_v44 = vsel %vm2677_vm4, %v5830_v22, %v5820_v45  ;;  %v4279_v10 = vld [vmem:[%s9933_s7 + $0x210] sm:$0xff] }
 0x4d9   : > { %4371 = vmatmul.f32.gmra.mxu0 %v4167_v20  ;;  %4412 = vmatmul.f32.gmra.mxu1 %v4175_v41 }
 0x4da   : > { %4564 = vmatpush.msrb.mxu1 %v4298_v16  ;;  %4526 = vmatpush.msrb.mxu0 %v4279_v10 }
 0x4dc   : > { %v5823_v51 = vpop.permute.xlu0 %5822  ;;  %v9104_v8 = vpop.permute.xlu2 %5847  ;;  %4565 = vmatpush.msrb.mxu1 %v4297_v7  ;;  %4527 = vmatpush.msrb.mxu0 %v4278_v56 }
 0x4dd   : > { %v5824_v53 = vunpack.i.l.bf16 %v5823_v51  ;;  %v5825_v18 = vunpack.i.h.bf16 %v5823_v51  ;;  %v5849_v30 = vunpack.i.l.bf16 %v9104_v8  ;;  %v5850_v33 = vunpack.i.h.bf16 %v9104_v8 }
 0x4de   : > { %4566 = vmatpush.msrb.mxu1 %v4296_v37  ;;  %4528 = vmatpush.msrb.mxu0 %v4277_v25 }
 0x4df   : > { %v4183_v61 = vsel %vm2686_vm5, %v5819_v62, %v5824_v53 }
 0x4e0   : > { %4453 = vmatmul.f32.gmra.mxu2 %v4183_v61  ;;  %4567 = vmatpush.msrb.mxu1 %v4295_v5 }
 0x4e1   : > { %4374 = vmatmul.f32.gmra.mxu0 %v4168_v57  ;;  %4415 = vmatmul.f32.gmra.mxu1 %v4176_v44 }
 0x4e2   : > { %4568 = vmatpush.msrb.mxu1 %v4294_v6 }
 0x4e4   : > { %v9132_v24 = vpop.permute.xlu2 %5862  ;;  %4569 = vmatpush.msrb.mxu1 %v4293_v12 }
 0x4e5   : > { %v5843_v19 = vpop.permute.xlu1 %5842  ;;  %v5864_v35 = vunpack.i.l.bf16 %v9132_v24  ;;  %v5865_v15 = vunpack.i.h.bf16 %v9132_v24 }
 0x4e6   : > { %v5844_v52 = vunpack.i.l.bf16 %v5843_v19 }
 0x4e7   : > { %v4189_v43 = vsel %vm427_vm2, %v8654_v9, %v5864_v35  ;;  %v5845_v9 = vunpack.i.h.bf16 %v5843_v19  ;;  %v4190_v20 = vsel %vm427_vm2, %v8678_v34, %v5865_v15 }
 0x4e8   : > { %v4169_v23 = vsel %vm427_vm2, %v8695_v13, %v5844_v52  ;;  %v4177_v2 = vsel %vm2677_vm4, %v5844_v52, %v5834_v46  ;;  %v4184_v13 = vsel %vm2686_vm5, %v5820_v45, %v5825_v18  ;;  %4488 = vmatmul.f32.vlgmr.msrb.gmra.mxu3 %v4189_v43 }
 0x4e9   : > { %4377 = vmatmul.f32.gmra.mxu0 %v4169_v23  ;;  %4418 = vmatmul.f32.gmra.mxu1 %v4177_v2  ;;  %v4170_v21 = vsel %vm427_vm2, %v8748_v42, %v5845_v9  ;;  %v4178_v31 = vsel %vm2677_vm4, %v5845_v9, %v5835_v38 }
 0x4ea   : > { %4456 = vmatmul.f32.gmra.mxu2 %v4184_v13 }
 0x4ec   : > { %v5838_v60 = vpop.permute.xlu0 %5837  ;;  %v9170_v41 = vpop.permute.xlu2 %5872 }
 0x4ed   : > { %v5839_v62 = vunpack.i.l.bf16 %v5838_v60  ;;  %v5840_v58 = vunpack.i.h.bf16 %v5838_v60  ;;  %v5874_v27 = vunpack.i.l.bf16 %v9170_v41  ;;  %v5875_v45 = vunpack.i.h.bf16 %v9170_v41 }
 0x4ef   : > { %v4185_v28 = vsel %vm2686_vm5, %v5834_v46, %v5839_v62  ;;  %v4186_v34 = vsel %vm2686_vm5, %v5835_v38, %v5840_v58  ;;  %v4191_v22 = vsel %vm427_vm2, %v8680_v0, %v5874_v27  ;;  %v4192_v0 = vsel %vm427_vm2, %v8715_v63, %v5875_v45 }
 0x4f0   : > { %4491 = vmatmul.f32.gmra.mxu3 %v4190_v20 }
 0x4f1   : > { %4380 = vmatmul.f32.gmra.mxu0 %v4170_v21  ;;  %4421 = vmatmul.f32.gmra.mxu1 %v4178_v31 }
 0x4f2   : > { %4459 = vmatmul.f32.gmra.mxu2 %v4185_v28 }
 0x4f4   : > { %v4146_v52 = vpop.permute.xlu2 %4145 }
 0x4f5   : > { %v5858_v1 = vpop.permute.xlu1 %5857 }
 0x4f6   : > { %v5859_v42 = vunpack.i.l.bf16 %v5858_v1  ;;  %v5860_v51 = vunpack.i.h.bf16 %v5858_v1  ;;  %v3972_v1 = vld [vmem:[#allocation3 + $0x92] sm:$0xff] }
 0x4f8   : > { %v4171_v50 = vsel %vm427_vm2, %v8750_v17, %v5859_v42  ;;  %v4179_v16 = vsel %vm2677_vm4, %v5859_v42, %v5849_v30  ;;  %4494 = vmatmul.f32.gmra.mxu3 %v4191_v22  ;;  %v4172_v17 = vsel %vm427_vm2, %v8807_v14, %v5860_v51  ;;  %v4180_v57 = vsel %vm2677_vm4, %v5860_v51, %v5850_v33 }
 0x4f9   : > { %4383 = vmatmul.f32.gmra.mxu0 %v4171_v50  ;;  %4424 = vmatmul.f32.gmra.mxu1 %v4179_v16 }
 0x4fa   : > { %4462 = vmatmul.f32.gmra.mxu2 %v4186_v34 }
 0x4fc   : > { %v5853_v53 = vpop.permute.xlu0 %5852  ;;  %v4148_v2 = vpop.permute.xlu2 %4147 }
 0x4fd   : > { %v5854_v7 = vunpack.i.l.bf16 %v5853_v53  ;;  %v4142_v61 = vpop.permute.xlu1 %4141  ;;  %v5855_v40 = vunpack.i.h.bf16 %v5853_v53 }
 0x4ff   : > { %v4187_v44 = vsel %vm2686_vm5, %v5849_v30, %v5854_v7  ;;  %v4188_v10 = vsel %vm2686_vm5, %v5850_v33, %v5855_v40 }
 0x500   : > { %4497 = vmatmul.f32.gmra.mxu3 %v4192_v0 }
 0x501   : > { %4386 = vmatmul.f32.gmra.mxu0 %v4172_v17  ;;  %4427 = vmatmul.f32.gmra.mxu1 %v4180_v57 }
 0x502   : > { %4465 = vmatmul.f32.gmra.mxu2 %v4187_v44 }
 0x504   : > { %v5868_v36 = vpop.permute.xlu0 %5867  ;;  %v4090_v39 = vpop.permute.xlu2 %4089 }
 0x505   : > { %v5869_v37 = vunpack.i.l.bf16 %v5868_v36  ;;  %v5870_v5 = vunpack.i.h.bf16 %v5868_v36  ;;  %v4114_v63 = vpop.permute.xlu1 %4113 }
 0x506   : > { %v4199_v4 = vsel %vm2677_vm4, %v5874_v27, %v4114_v63  ;;  %v4207_v23 = vsel %vm2686_vm5, %v4114_v63, %v4146_v52 }
 0x507   : > { %v4197_v8 = vsel %vm2677_vm4, %v5864_v35, %v5869_v37  ;;  %v4205_v14 = vsel %vm2686_vm5, %v5869_v37, %v4142_v61  ;;  %v4198_v19 = vsel %vm2677_vm4, %v5865_v15, %v5870_v5 }
 0x509   : > { %4529 = vmatmul.f32.vlgmr.msrb.gmra.mxu0 %v4197_v8  ;;  %4570 = vmatmul.f32.vlgmr.msrb.gmra.mxu1 %v4205_v14  ;;  %v9253_v8 = vld [vmem:[%s9934_s8] ss:$0 sm:$0xff] }
 0x50a   : > { %4468 = vmatmul.f32.gmra.mxu2 %v4188_v10 }
 0x50c   : > { %v4144_v18 = vpop.permute.xlu0 %4143  ;;  %v4122_v21 = vpop.permute.xlu2 %4121 }
 0x50d   : > { %v4206_v46 = vsel %vm2686_vm5, %v5870_v5, %v4144_v18  ;;  %v4116_v56 = vpop.permute.xlu1 %4115  ;;  %v4203_v28 = vsel %vm2677_vm4, %v4090_v39, %v4122_v21 }
 0x50e   : > { %v4200_v12 = vsel %vm2677_vm4, %v5875_v45, %v4116_v56 }
 0x511   : > { %4532 = vmatmul.f32.gmra.mxu0 %v4198_v19  ;;  %4573 = vmatmul.f32.gmra.mxu1 %v4206_v46 }
 0x512   : > { %5567 = vmatmul.msk.f32.vlgmr.msra.gmra.mxu2 %vm427_vm2, %v8674_v11 }
 0x514   : > { %v5878_v24 = vpop.permute.xlu0 %5877  ;;  %v4124_v20 = vpop.permute.xlu2 %4123 }
 0x515   : > { %v5879_v35 = vunpack.i.l.bf16 %v5878_v24  ;;  %v5880_v43 = vunpack.i.h.bf16 %v5878_v24  ;;  %v4150_v13 = vpop.permute.xlu1 %4149 }
 0x517   : > { %v4193_v6 = vsel %vm427_vm2, %v8717_v48, %v5879_v35  ;;  %v4194_v11 = vsel %vm427_vm2, %v8778_v54, %v5880_v43  ;;  %v4208_v48 = vsel %vm2686_vm5, %v4116_v56, %v4148_v2 }
 0x518   : > { %4500 = vmatmul.f32.gmra.mxu3 %v4193_v6 }
 0x519   : > { %4535 = vmatmul.f32.gmra.mxu0 %v4199_v4  ;;  %4576 = vmatmul.f32.gmra.mxu1 %v4207_v23 }
 0x51a   : > { %5568 = vmatmul.msk.f32.gmra.mxu2 %vm427_vm2, %v8676_v32  ;;  %v4195_v32 = vsel %vm427_vm2, %v8780_v3, %v4090_v39 }
 0x51c   : > { %v4118_v25 = vpop.permute.xlu0 %4117 }
 0x51d   : > { %v4201_v15 = vsel %vm2677_vm4, %v5879_v35, %v4118_v25  ;;  %v4209_v54 = vsel %vm2686_vm5, %v4118_v25, %v4150_v13  ;;  %v4152_v60 = vpop.permute.xlu1 %4151 }
 0x520   : > { %4503 = vmatmul.f32.gmra.mxu3 %v4194_v11 }
 0x521   : > { %4538 = vmatmul.f32.gmra.mxu0 %v4200_v12  ;;  %4579 = vmatmul.f32.gmra.mxu1 %v4208_v48 }
 0x522   : > { %5569 = vmatmul.msk.f32.gmra.mxu2 %vm427_vm2, %v8711_v47 }
 0x524   : > { %v4120_v9 = vpop.permute.xlu0 %4119 }
 0x525   : > { %v4202_v62 = vsel %vm2677_vm4, %v5880_v43, %v4120_v9  ;;  %v4210_v3 = vsel %vm2686_vm5, %v4120_v9, %v4152_v60  ;;  %v4154_v31 = vpop.permute.xlu1 %4153 }
 0x528   : > { %4506 = vmatmul.f32.gmra.mxu3 %v4195_v32 }
 0x529   : > { %4541 = vmatmul.f32.gmra.mxu0 %v4201_v15  ;;  %4582 = vmatmul.f32.gmra.mxu1 %v4209_v54 }
 0x52a   : > { %5570 = vmatmul.msk.f32.gmra.mxu2 %vm427_vm2, %v8713_v49  ;;  %v4211_v49 = vsel %vm2686_vm5, %v4122_v21, %v4154_v31 }
 0x52c   : > { %v4092_v38 = vpop.permute.xlu0 %4091 }
 0x52d   : > { %v4196_v47 = vsel %vm427_vm2, %v8955_v29, %v4092_v38  ;;  %v4204_v58 = vsel %vm2677_vm4, %v4092_v38, %v4124_v20 }
 0x530   : > { %4509 = vmatmul.f32.gmra.mxu3 %v4196_v47 }
 0x531   : > { %4544 = vmatmul.f32.gmra.mxu0 %v4202_v62  ;;  %4585 = vmatmul.f32.gmra.mxu1 %v4210_v3 }
 0x532   : > { %5571 = vmatmul.msk.f32.gmra.mxu2 %vm427_vm2, %v8774_v26 }
 0x534   : > { %v4156_v29 = vpop.permute.xlu0 %4155 }
 0x535   : > { %v4212_v41 = vsel %vm2686_vm5, %v4124_v20, %v4156_v29  ;;  %v4660_v29 = vld [vmem:[#allocation3 + $0x1] sm:$0xff] }
 0x539   : > { %4547 = vmatmul.f32.gmra.mxu0 %v4203_v28  ;;  %4588 = vmatmul.f32.gmra.mxu1 %v4211_v49  ;;  %v4668_v49 = vld [vmem:[#allocation3 + $0x2] sm:$0xff] }
 0x53a   : > { %5572 = vmatmul.msk.f32.gmra.mxu2 %vm427_vm2, %v8776_v55 }
 0x541   : > { %4550 = vmatmul.f32.gmra.mxu0 %v4204_v58  ;;  %4591 = vmatmul.f32.gmra.mxu1 %v4212_v41 }
 0x542   : > { %5573 = vmatmul.msk.f32.gmra.mxu2 %vm427_vm2, %v8977_v59 }
 0x546   : > { %v4366_v26 = vpop.f32.mrf.mxu0  ;;  %v4407_v27 = vpop.f32.mrf.mxu1 }
 0x547   : > { %v4367_v10 = vadd.f32 %v9253_v8, %v4366_v26 }
 0x549   : > { %v4408_v19 = vadd.f32 %v4407_v27, %v4367_v10 }
 0x54a   : > { %5574 = vmatmul.msk.f32.gmra.mxu2 %vm427_vm2, %v3972_v1 }
 0x54e   : > { %v4369_v30 = vpop.f32.mrf.mxu0  ;;  %v4410_v42 = vpop.f32.mrf.mxu1 }
 0x54f   : > { %v4370_v24 = vadd.f32 %v9253_v8, %v4369_v30 }
 0x551   : > { %v4411_v23 = vadd.f32 %v4410_v42, %v4370_v24 }
 0x553   : > { %v4448_v50 = vpop.f32.mrf.mxu2 }
 0x554   : > { %v4449_v46 = vadd.f32 %v4448_v50, %v4408_v19 }
 0x556   : > { %v4372_v55 = vpop.f32.mrf.mxu0  ;;  %v4413_v16 = vpop.f32.mrf.mxu1 }
 0x557   : > { %v4373_v12 = vadd.f32 %v9253_v8, %v4372_v55 }
 0x559   : > { %v4414_v54 = vadd.f32 %v4413_v16, %v4373_v12 }
 0x55b   : > { %v4451_v34 = vpop.f32.mrf.mxu2 }
 0x55c   : > { %v4452_v43 = vadd.f32 %v4451_v34, %v4411_v23 }
 0x55e   : > { %v4375_v22 = vpop.f32.mrf.mxu0  ;;  %v4416_v51 = vpop.f32.mrf.mxu1 }
 0x55f   : > { %v4376_v3 = vadd.f32 %v9253_v8, %v4375_v22 }
 0x561   : > { %v4417_v27 = vadd.f32 %v4416_v51, %v4376_v3 }
 0x563   : > { %v4454_v45 = vpop.f32.mrf.mxu2 }
 0x564   : > { %v4455_v60 = vadd.f32 %v4454_v45, %v4414_v54 }
 0x566   : > { %v9230_v53 = vpop.f32.mrf.mxu0  ;;  %v9232_v33 = vpop.f32.mrf.mxu1 }
 0x567   : > { %v4379_v22 = vadd.f32 %v9253_v8, %v9230_v53 }
 0x56b   : > { %v4489_v37 = vpop.f32.mrf.mxu3 }
 0x56c   : > { %v4490_v35 = vadd.f32 %v4489_v37, %v4449_v46 }
 0x56d   : > { %v4457_v59 = vpop.f32.mrf.mxu2 }
 0x56e   : > { %v9234_v7 = vpop.f32.mrf.mxu0  ;;  %v9236_v17 = vpop.f32.mrf.mxu1  ;;  %v4458_v50 = vadd.f32 %v4457_v59, %v4417_v27  ;;  %v4420_v59 = vadd.f32 %v9232_v33, %v4379_v22  ;;  %v4995_v27 = vld [vmem:[%s9935_s9 + $0xf8] sm:$0xff] }
 0x56f   : > { %5141 = vmatpush.msra.mxu0 %v4995_v27  ;;  %v4989_v27 = vld [vmem:[%s9935_s9 + $0xc8] sm:$0xff] }
 0x573   : > { %v4492_v63 = vpop.f32.mrf.mxu3 }
 0x574   : > { %v4493_v48 = vadd.f32 %v4492_v63, %v4452_v43 }
 0x575   : > { %v9238_v57 = vpop.f32.mrf.mxu2 }
 0x576   : > { %v9240_v44 = vpop.f32.mrf.mxu0  ;;  %v9242_v0 = vpop.f32.mrf.mxu1  ;;  %v4461_v46 = vadd.f32 %v9238_v57, %v4420_v59 }
 0x57b   : > { %v4495_v2 = vpop.f32.mrf.mxu3 }
 0x57c   : > { %v4496_v21 = vadd.f32 %v4495_v2, %v4455_v60 }
 0x57d   : > { %v9244_v61 = vpop.f32.mrf.mxu2 }
 0x57e   : > { %v9246_v40 = vpop.f32.mrf.mxu0  ;;  %v9248_v36 = vpop.f32.mrf.mxu1 }
 0x583   : > { %v4498_v47 = vpop.f32.mrf.mxu3 }
 0x584   : > { %v4499_v45 = vadd.f32 %v4498_v47, %v4458_v50 }
 0x585   : > { %v9255_v14 = vpop.f32.mrf.mxu2 }
 0x586   : > { %v4530_v5 = vpop.f32.mrf.mxu0  ;;  %v4571_v18 = vpop.f32.mrf.mxu1 }
 0x587   : > { %v4531_v4 = vadd.f32 %v4530_v5, %v4490_v35 }
 0x589   : > { %v4572_v25 = vadd.f32 %v4571_v18, %v4531_v4 }
 0x58d   : > { %v9258_v52 = vpop.f32.mrf.mxu2 }
 0x58e   : > { %v4533_v56 = vpop.f32.mrf.mxu0  ;;  %v4574_v6 = vpop.f32.mrf.mxu1 }
 0x58f   : > { %v4534_v9 = vadd.f32 %v4533_v56, %v4493_v48  ;;  %v4382_v56 = vadd.f32 %v9253_v8, %v9234_v7 }
 0x591   : > { %v4575_v38 = vadd.f32 %v4574_v6, %v4534_v9  ;;  %v4423_v48 = vadd.f32 %v9236_v17, %v4382_v56  ;;  %v4975_v56 = vld [vmem:[%s9935_s9 + $0x58] sm:$0xff] }
 0x595   : > { %v4612_v11 = vpop.f32.mrf.mxu2 }
 0x596   : > { %v4613_v13 = vadd.f32 %v4612_v11, %v4572_v25  ;;  %v4536_v39 = vpop.f32.mrf.mxu0  ;;  %v4577_v15 = vpop.f32.mrf.mxu1 }
 0x597   : > { %v4537_v20 = vadd.f32 %v4536_v39, %v4496_v21  ;;  %v4464_v39 = vadd.f32 %v9244_v61, %v4423_v48 }
 0x598   : > { %v4636_v32 = vmax.f32 %v4613_v13, 0.0 }
 0x599   : > { %v4578_v55 = vadd.f32 %v4577_v15, %v4537_v20  ;;  %v4385_v15 = vadd.f32 %v9253_v8, %v9240_v44 }
 0x59a   : > { %4644 = vst.msk [vmem:[#allocation3 + $0x11] sm:$0xff] %vm427_vm2, %v4636_v32  ;;  %v4979_v32 = vld [vmem:[%s9935_s9 + $0x78] sm:$0xff] }
 0x59b   : > { %v4501_v16 = vpop.f32.mrf.mxu3  ;;  %5100 = vmatpush.msra.mxu3 %v4979_v32  ;;  %v4992_v32 = vld [vmem:[%s9935_s9 + $0xe0] sm:$0xff] }
 0x59c   : > { %v4502_v6 = vadd.f32 %v4501_v16, %v4461_v46 }
 0x59d   : > { %v4615_v62 = vpop.f32.mrf.mxu2 }
 0x59e   : > { %v4616_v31 = vadd.f32 %v4615_v62, %v4575_v38  ;;  %v4539_v28 = vpop.f32.mrf.mxu0  ;;  %v4580_v42 = vpop.f32.mrf.mxu1 }
 0x59f   : > { %v4540_v10 = vadd.f32 %v4539_v28, %v4499_v45 }
 0x5a0   : > { %v4637_v41 = vmax.f32 %v4616_v31, 0.0  ;;  %v4426_v31 = vadd.f32 %v9242_v0, %v4385_v15  ;;  %v4977_v0 = vld [vmem:[%s9935_s9 + $0x68] sm:$0xff] }
 0x5a1   : > { %v9264_v58 = vld [vmem:[#allocation3 + $0x12] sm:$0xff]  ;;  %v4581_v24 = vadd.f32 %v4580_v42, %v4540_v10 }
 0x5a2   : > { %v9266_v26 = vld [vmem:[#allocation3 + $0x11] sm:$0xff]  ;;  %4645 = vst.msk [vmem:[#allocation3 + $0x21] sm:$0xff] %vm427_vm2, %v4637_v41  ;;  %v5886_v1 = vpack.i.bf16 %v9264_v58, %v4668_v49  ;;  %v4467_v44 = vadd.f32 %v9255_v14, %v4426_v31 }
 0x5a3   : > { %v5881_v30 = vpack.i.bf16 %v9266_v26, %v4660_v29  ;;  %v9275_v18 = vld [vmem:[#allocation3 + $0x10] sm:$0xff]  ;;  %v4504_v23 = vpop.f32.mrf.mxu3  ;;  %v5011_v42 = vld [vmem:[%s9935_s9 + $0x178] sm:$0xff] }
 0x5a4   : > { %5887 = vrot.lane.b32.xlu2 %v5886_v1, %s6014_s12  ;;  %v4505_v54 = vadd.f32 %v4504_v23, %v4464_v39  ;;  %v4978_v41 = vld [vmem:[%s9935_s9 + $0x70] sm:$0xff]  ;;  %v4388_v1 = vadd.f32 %v9253_v8, %v9246_v40  ;;  %5182 = vmatpush.msra.mxu1 %v5011_v42 }
 0x5a5   : > { %5882 = vrot.lane.b32.xlu1 %v5881_v30, %s6013_s30  ;;  %v4618_v34 = vpop.f32.mrf.mxu2  ;;  %5101 = vmatpush.msra.mxu3 %v4978_v41  ;;  %v5006_v41 = vld [vmem:[%s9935_s9 + $0x150] sm:$0xff] }
 0x5a6   : > { %v4619_v51 = vadd.f32 %v4618_v34, %v4578_v55  ;;  %v4542_v37 = vpop.f32.mrf.mxu0  ;;  %v4583_v53 = vpop.f32.mrf.mxu1  ;;  %v4429_v8 = vadd.f32 %v9248_v36, %v4388_v1  ;;  %v4976_v36 = vld [vmem:[%s9935_s9 + $0x60] sm:$0xff]  ;;  %v5005_v1 = vld [vmem:[%s9935_s9 + $0x148] sm:$0xff] }
 0x5a7   : > { %v4543_v2 = vadd.f32 %v4542_v37, %v4502_v6  ;;  %5102 = vmatpush.msra.mxu3 %v4977_v0  ;;  %v4993_v6 = vld [vmem:[%s9935_s9 + $0xe8] sm:$0xff]  ;;  %v4971_v0 = vld [vmem:[%s9935_s9 + $0x38] sm:$0xff] }
 0x5a8   : > { %v4638_v5 = vmax.f32 %v4619_v51, 0.0 }
 0x5a9   : > { %v9277_v63 = vld [vmem:[#allocation3 + $0x20] sm:$0xff]  ;;  %v4584_v9 = vadd.f32 %v4583_v53, %v4543_v2  ;;  %v5010_v53 = vld [vmem:[%s9935_s9 + $0x170] sm:$0xff]  ;;  %5103 = vmatpush.msra.mxu3 %v4976_v36 }
 0x5aa   : > { %4646 = vst.msk [vmem:[#allocation3 + $0x31] sm:$0xff] %vm427_vm2, %v4638_v5  ;;  %v5891_v19 = vpack.i.bf16 %v9277_v63, %v9275_v18  ;;  %v9287_v43 = vld [vmem:[#allocation3 + $0x22] sm:$0xff]  ;;  %v4470_v5 = vadd.f32 %v9258_v52, %v4429_v8  ;;  %5183 = vmatpush.msra.mxu1 %v5010_v53  ;;  %v5002_v36 = vld [vmem:[%s9935_s9 + $0x130] sm:$0xff] }
 0x5ab   : > { %v9291_v12 = vld [vmem:[#allocation3 + $0x21] sm:$0xff]  ;;  %v4507_v61 = vpop.f32.mrf.mxu3  ;;  %5104 = vmatpush.msra.mxu3 %v4975_v56  ;;  %v4966_v56 = vld [vmem:[%s9935_s9 + $0x10] sm:$0xff] }
 0x5ac   : > { %5892 = vrot.lane.b32.xlu0 %v5891_v19, %s6015_s13  ;;  %v4508_v14 = vadd.f32 %v4507_v61, %v4467_v44  ;;  %v4988_v8 = vld [vmem:[%s9935_s9 + $0xc0] sm:$0xff]  ;;  %v4985_v53 = vld [vmem:[%s9935_s9 + $0xa8] sm:$0xff] }
 0x5ad   : > { %v4621_v35 = vpop.f32.mrf.mxu2 }
 0x5ae   : > { %v4622_v4 = vadd.f32 %v4621_v35, %v4581_v24  ;;  %v4545_v25 = vpop.f32.mrf.mxu0  ;;  %v4586_v38 = vpop.f32.mrf.mxu1  ;;  %v4994_v24 = vld [vmem:[%s9935_s9 + $0xf0] sm:$0xff] }
 0x5af   : > { %v4546_v47 = vadd.f32 %v4545_v25, %v4505_v54  ;;  %5142 = vmatpush.msra.mxu0 %v4994_v24  ;;  %v4973_v54 = vld [vmem:[%s9935_s9 + $0x48] sm:$0xff]  ;;  %v4967_v24 = vld [vmem:[%s9935_s9 + $0x18] sm:$0xff] }
 0x5b0   : > { %v4639_v33 = vmax.f32 %v4622_v4, 0.0  ;;  %v5009_v4 = vld [vmem:[%s9935_s9 + $0x168] sm:$0xff] }
 0x5b1   : > { %v9289_v11 = vld [vmem:[#allocation3 + $0x32] sm:$0xff]  ;;  %v4587_v29 = vadd.f32 %v4586_v38, %v4546_v47  ;;  %5143 = vmatpush.msra.mxu0 %v4993_v6  ;;  %5184 = vmatpush.msra.mxu1 %v5009_v4  ;;  %v4984_v6 = vld [vmem:[%s9935_s9 + $0xa0] sm:$0xff] }
 0x5b2   : > { %v9293_v57 = vld [vmem:[#allocation3 + $0x31] sm:$0xff]  ;;  %4647 = vst.msk [vmem:[#allocation3 + $0x41] sm:$0xff] %vm427_vm2, %v4639_v33  ;;  %v5901_v7 = vpack.i.bf16 %v9289_v11, %v9287_v43  ;;  %v5000_v4 = vld [vmem:[%s9935_s9 + $0x120] sm:$0xff] }
 0x5b3   : > { %v5896_v13 = vpack.i.bf16 %v9293_v57, %v9291_v12  ;;  %v9309_v3 = vld [vmem:[#allocation3 + $0x30] sm:$0xff]  ;;  %v4510_v10 = vpop.f32.mrf.mxu3  ;;  %5144 = vmatpush.msra.mxu0 %v4992_v32  ;;  %v5007_v38 = vld [vmem:[%s9935_s9 + $0x158] sm:$0xff] }
 0x5b4   : > { %5902 = vrot.lane.b32.xlu2 %v5901_v7, %s6014_s12  ;;  %v4511_v52 = vadd.f32 %v4510_v10, %v4470_v5  ;;  %v5003_v10 = vld [vmem:[%s9935_s9 + $0x138] sm:$0xff] }
 0x5b5   : > { %5897 = vrot.lane.b32.xlu1 %v5896_v13, %s6013_s30  ;;  %v4624_v17 = vpop.f32.mrf.mxu2  ;;  %v5027_v32 = vld [vmem:[%s9935_s9 + $0x1f8] sm:$0xff] }
 0x5b6   : > { %v4625_v60 = vadd.f32 %v4624_v17, %v4584_v9  ;;  %v4548_v49 = vpop.f32.mrf.mxu0  ;;  %v4589_v34 = vpop.f32.mrf.mxu1  ;;  %v4974_v9 = vld [vmem:[%s9935_s9 + $0x50] sm:$0xff]  ;;  %v5008_v17 = vld [vmem:[%s9935_s9 + $0x160] sm:$0xff]  ;;  %5223 = vmatpush.msrb.mxu2 %v5027_v32 }
 0x5b7   : > { %v4549_v50 = vadd.f32 %v4548_v49, %v4508_v14  ;;  %5105 = vmatpush.msra.mxu3 %v4974_v9  ;;  %5185 = vmatpush.msra.mxu1 %v5008_v17  ;;  %v4998_v9 = vld [vmem:[%s9935_s9 + $0x110] sm:$0xff]  ;;  %v4980_v17 = vld [vmem:[%s9935_s9 + $0x80] sm:$0xff] }
 0x5b8   : > { %v4640_v62 = vmax.f32 %v4625_v60, 0.0  ;;  %v4991_v60 = vld [vmem:[%s9935_s9 + $0xd8] sm:$0xff]  ;;  %v5018_v32 = vld [vmem:[%s9935_s9 + $0x1b0] sm:$0xff] }
 0x5b9   : > { %v9311_v21 = vld [vmem:[#allocation3 + $0x40] sm:$0xff]  ;;  %v4590_v59 = vadd.f32 %v4589_v34, %v4549_v50  ;;  %5106 = vmatpush.msra.mxu3 %v4973_v54  ;;  %5145 = vmatpush.msra.mxu0 %v4991_v60  ;;  %v5946_v50 = vpack.i.bf16 %v9309_v3, %v9277_v63  ;;  %v4970_v34 = vld [vmem:[%s9935_s9 + $0x30] sm:$0xff]  ;;  %v4997_v54 = vld [vmem:[%s9935_s9 + $0x108] sm:$0xff] }
 0x5ba   : > { %4648 = vst.msk [vmem:[#allocation3 + $0x51] sm:$0xff] %vm427_vm2, %v4640_v62  ;;  %v5906_v28 = vpack.i.bf16 %v9311_v21, %v9309_v3  ;;  %v9333_v16 = vld [vmem:[#allocation3 + $0x42] sm:$0xff]  ;;  %5186 = vmatpush.msra.mxu1 %v5007_v38  ;;  %v5026_v60 = vld [vmem:[%s9935_s9 + $0x1f0] sm:$0xff] }
 0x5bb   : > { %v9337_v45 = vld [vmem:[#allocation3 + $0x41] sm:$0xff]  ;;  %v5042_v38 = vld [vmem:[%s9935_s9 + $0x270] sm:$0xff]  ;;  %5224 = vmatpush.msrb.mxu2 %v5026_v60 }
 0x5bc   : > { %5907 = vrot.lane.b32.xlu0 %v5906_v28, %s6015_s13  ;;  %5187 = vmatpush.msra.mxu1 %v5006_v41  ;;  %v5024_v41 = vld [vmem:[%s9935_s9 + $0x1e0] sm:$0xff] }
 0x5bd   : > { %v4627_v20 = vpop.f32.mrf.mxu2 }
 0x5be   : > { %v4628_v30 = vadd.f32 %v4627_v20, %v4587_v29  ;;  %v4551_v19 = vpop.f32.mrf.mxu0  ;;  %v4592_v33 = vpop.f32.mrf.mxu1  ;;  %v4972_v29 = vld [vmem:[%s9935_s9 + $0x40] sm:$0xff]  ;;  %v4990_v20 = vld [vmem:[%s9935_s9 + $0xd0] sm:$0xff]  ;;  %5188 = vmatpush.msra.mxu1 %v5005_v1 }
 0x5bf   : > { %v4552_v23 = vadd.f32 %v4551_v19, %v4511_v52  ;;  %5107 = vmatpush.msra.mxu3 %v4972_v29  ;;  %5146 = vmatpush.msra.mxu0 %v4990_v20  ;;  %v4968_v19 = vld [vmem:[%s9935_s9 + $0x20] sm:$0xff]  ;;  %v5001_v52 = vld [vmem:[%s9935_s9 + $0x128] sm:$0xff]  ;;  %v5059_v20 = vld [vmem:[%s9935_s9 + $0x2f8] sm:$0xff] }
 0x5c0   : > { %v4641_v55 = vmax.f32 %v4628_v30, 0.0  ;;  %v5041_v29 = vld [vmem:[%s9935_s9 + $0x268] sm:$0xff]  ;;  %v5040_v1 = vld [vmem:[%s9935_s9 + $0x260] sm:$0xff] }
 0x5c1   : > { %v9335_v22 = vld [vmem:[#allocation3 + $0x52] sm:$0xff]  ;;  %v4593_v13 = vadd.f32 %v4592_v33, %v4552_v23  ;;  %5108 = vmatpush.msra.mxu3 %v4971_v0  ;;  %5147 = vmatpush.msra.mxu0 %v4989_v27  ;;  %v4965_v23 = vld [vmem:[%s9935_s9 + $0x8] sm:$0xff] }
 0x5c2   : > { %v9339_v40 = vld [vmem:[#allocation3 + $0x51] sm:$0xff]  ;;  %4649 = vst.msk [vmem:[#allocation3 + $0x61] sm:$0xff] %vm427_vm2, %v4641_v55  ;;  %v5916_v51 = vpack.i.bf16 %v9335_v22, %v9333_v16  ;;  %v5941_v55 = vpack.i.bf16 %v9287_v43, %v9264_v58  ;;  %v5004_v58 = vld [vmem:[%s9935_s9 + $0x140] sm:$0xff] }
 0x5c3   : > { %v5911_v37 = vpack.i.bf16 %v9339_v40, %v9337_v45  ;;  %v9368_v25 = vld [vmem:[#allocation3 + $0x50] sm:$0xff]  ;;  %5109 = vmatpush.msra.mxu3 %v4970_v34  ;;  %5148 = vmatpush.msra.mxu0 %v4988_v8  ;;  %v4999_v33 = vld [vmem:[%s9935_s9 + $0x118] sm:$0xff]  ;;  %v5057_v8 = vld [vmem:[%s9935_s9 + $0x2e8] sm:$0xff] }
 0x5c4   : > { %5917 = vrot.lane.b32.xlu2 %v5916_v51, %s6014_s12  ;;  %v4969_v51 = vld [vmem:[%s9935_s9 + $0x28] sm:$0xff]  ;;  %5189 = vmatpush.msra.mxu1 %v5004_v58  ;;  %v5956_v5 = vpack.i.bf16 %v9368_v25, %v9311_v21  ;;  %v5071_v27 = vld [vmem:[%s9935_s9 + $0x358] sm:$0xff]  ;;  %v5070_v58 = vld [vmem:[%s9935_s9 + $0x350] sm:$0xff] }
 0x5c5   : > { %5912 = vrot.lane.b32.xlu1 %v5911_v37, %s6013_s30  ;;  %v4630_v46 = vpop.f32.mrf.mxu2  ;;  %v4987_v37 = vld [vmem:[%s9935_s9 + $0xb8] sm:$0xff]  ;;  %5110 = vmatpush.msra.mxu3 %v4969_v51  ;;  %v5022_v51 = vld [vmem:[%s9935_s9 + $0x1d0] sm:$0xff] }
 0x5c6   : > { %v4631_v35 = vadd.f32 %v4630_v46, %v4590_v59  ;;  %5149 = vmatpush.msra.mxu0 %v4987_v37  ;;  %5190 = vmatpush.msra.mxu1 %v5003_v10  ;;  %v5951_v59 = vpack.i.bf16 %v9333_v16, %v9289_v11  ;;  %v4986_v46 = vld [vmem:[%s9935_s9 + $0xb0] sm:$0xff]  ;;  %v5039_v34 = vld [vmem:[%s9935_s9 + $0x258] sm:$0xff]  ;;  %v5056_v10 = vld [vmem:[%s9935_s9 + $0x2e0] sm:$0xff] }
 0x5c7   : > { %5111 = vmatpush.msra.mxu3 %v4968_v19  ;;  %v5038_v37 = vld [vmem:[%s9935_s9 + $0x250] sm:$0xff]  ;;  %v5037_v19 = vld [vmem:[%s9935_s9 + $0x248] sm:$0xff] }
 0x5c8   : > { %v4642_v2 = vmax.f32 %v4631_v35, 0.0  ;;  %5150 = vmatpush.msra.mxu0 %v4986_v46  ;;  %5191 = vmatpush.msra.mxu1 %v5002_v36  ;;  %v5055_v46 = vld [vmem:[%s9935_s9 + $0x2d8] sm:$0xff]  ;;  %v5020_v36 = vld [vmem:[%s9935_s9 + $0x1c0] sm:$0xff] }
 0x5c9   : > { %v9370_v48 = vld [vmem:[#allocation3 + $0x60] sm:$0xff]  ;;  %5112 = vmatpush.msra.mxu3 %v4967_v24 }
 0x5ca   : > { %4650 = vst.msk [vmem:[#allocation3 + $0x71] sm:$0xff] %vm427_vm2, %v4642_v2  ;;  %v5921_v7 = vpack.i.bf16 %v9370_v48, %v9368_v25  ;;  %v9394_v62 = vld [vmem:[#allocation3 + $0x62] sm:$0xff]  ;;  %5151 = vmatpush.msra.mxu0 %v4985_v53  ;;  %5192 = vmatpush.msra.mxu1 %v5001_v52  ;;  %v4983_v2 = vld [vmem:[%s9935_s9 + $0x98] sm:$0xff] }
 0x5cb   : > { %v9398_v31 = vld [vmem:[#allocation3 + $0x61] sm:$0xff]  ;;  %v5961_v35 = vpack.i.bf16 %v9394_v62, %v9335_v22  ;;  %5113 = vmatpush.msra.mxu3 %v4966_v56 }
 0x5cc   : > { %5922 = vrot.lane.b32.xlu0 %v5921_v7, %s6015_s13  ;;  %5152 = vmatpush.msra.mxu0 %v4984_v6  ;;  %v4982_v7 = vld [vmem:[%s9935_s9 + $0x90] sm:$0xff]  ;;  %v5068_v53 = vld [vmem:[%s9935_s9 + $0x340] sm:$0xff] }
 0x5cd   : > { %v4633_v39 = vpop.f32.mrf.mxu2  ;;  %5193 = vmatpush.msra.mxu1 %v5000_v4  ;;  %5114 = vmatpush.msra.mxu3 %v4965_v23  ;;  %v5036_v52 = vld [vmem:[%s9935_s9 + $0x240] sm:$0xff] }
 0x5ce   : > { %v4634_v15 = vadd.f32 %v4633_v39, %v4593_v13  ;;  %v4964_v13 = vld [vmem:[%s9935_s9] sm:$0xff]  ;;  %5153 = vmatpush.msra.mxu0 %v4983_v2  ;;  %v4981_v39 = vld [vmem:[%s9935_s9 + $0x88] sm:$0xff]  ;;  %v5019_v2 = vld [vmem:[%s9935_s9 + $0x1b8] sm:$0xff] }
 0x5cf   : > { %5194 = vmatpush.msra.mxu1 %v4999_v33  ;;  %5115 = vmatpush.msra.mxu3 %v4964_v13  ;;  %v4652_v6 = vld [vmem:[#allocation3] sm:$0xff]  ;;  %v5035_v13 = vld [vmem:[%s9935_s9 + $0x238] sm:$0xff] }
 0x5d0   : > { %v4643_v47 = vmax.f32 %v4634_v15, 0.0  ;;  %5154 = vmatpush.msra.mxu0 %v4982_v7  ;;  %v5043_v15 = vld [vmem:[%s9935_s9 + $0x278] sm:$0xff] }
 0x5d1   : > { %v9396_v61 = vld [vmem:[#allocation3 + $0x72] sm:$0xff]  ;;  %5195 = vmatpush.msra.mxu1 %v4998_v9  ;;  %5264 = vmatpush.msrb.mxu3 %v5043_v15  ;;  %v5052_v15 = vld [vmem:[%s9935_s9 + $0x2c0] sm:$0xff] }
 0x5d2   : > { %v9400_v28 = vld [vmem:[#allocation3 + $0x71] sm:$0xff]  ;;  %4651 = vst.msk [vmem:[#allocation3 + $0x81] sm:$0xff] %vm427_vm2, %v4643_v47  ;;  %v5931_v49 = vpack.i.bf16 %v9396_v61, %v9394_v62  ;;  %5155 = vmatpush.msra.mxu0 %v4981_v39  ;;  %v4996_v47 = vld [vmem:[%s9935_s9 + $0x100] sm:$0xff]  ;;  %v5053_v39 = vld [vmem:[%s9935_s9 + $0x2c8] sm:$0xff] }
 0x5d3   : > { %v5926_v44 = vpack.i.bf16 %v9400_v28, %v9398_v31  ;;  %v9427_v14 = vld [vmem:[#allocation3 + $0x70] sm:$0xff]  ;;  %5196 = vmatpush.msra.mxu1 %v4997_v54  ;;  %5265 = vmatpush.msrb.mxu3 %v5042_v38  ;;  %v5067_v9 = vld [vmem:[%s9935_s9 + $0x338] sm:$0xff] }
 0x5d4   : > { %5932 = vrot.lane.b32.xlu2 %v5931_v49, %s6014_s12  ;;  %5156 = vmatpush.msra.mxu0 %v4980_v17  ;;  %v5025_v49 = vld [vmem:[%s9935_s9 + $0x1e8] sm:$0xff]  ;;  %v5034_v17 = vld [vmem:[%s9935_s9 + $0x230] sm:$0xff] }
 0x5d5   : > { %5927 = vrot.lane.b32.xlu1 %v5926_v44, %s6013_s30  ;;  %5197 = vmatpush.msra.mxu1 %v4996_v47  ;;  %v4707_v44 = vld [vmem:[#allocation3 + $0x90] sm:$0xff] }
 0x5d6   : > { %5225 = vmatpush.msrb.mxu2 %v5025_v49  ;;  %5266 = vmatpush.msrb.mxu3 %v5041_v29  ;;  %v5066_v49 = vld [vmem:[%s9935_s9 + $0x330] sm:$0xff] }
 0x5d7   : > { %5305 = vmatpush.msrb.mxu0 %v5059_v20  ;;  %5350 = vmatpush.msrb.mxu1 %v5071_v27  ;;  %v5033_v27 = vld [vmem:[%s9935_s9 + $0x228] sm:$0xff] }
 0x5d8   : > { %5226 = vmatpush.msrb.mxu2 %v5024_v41  ;;  %5267 = vmatpush.msrb.mxu3 %v5040_v1  ;;  %v5051_v1 = vld [vmem:[%s9935_s9 + $0x2b8] sm:$0xff] }
 0x5d9   : > { %v9429_v30 = vld [vmem:[#allocation3 + $0x80] sm:$0xff]  ;;  %5351 = vmatpush.msrb.mxu1 %v5070_v58 }
 0x5da   : > { %v5936_v42 = vpack.i.bf16 %v9429_v30, %v9427_v14  ;;  %v9568_v0 = vld [vmem:[#allocation3 + $0x82] sm:$0xff]  ;;  %5268 = vmatpush.msrb.mxu3 %v5039_v34  ;;  %v5050_v34 = vld [vmem:[%s9935_s9 + $0x2b0] sm:$0xff] }
 0x5dc   : > { %5937 = vrot.lane.b32.xlu0 %v5936_v42, %s6015_s13  ;;  %5947 = vrot.lane.b32.xlu2 %v5946_v50, %s6014_s12  ;;  %v5023_v42 = vld [vmem:[%s9935_s9 + $0x1d8] sm:$0xff]  ;;  %v9585_v50 = vld [vmem:[#allocation3 + $0x81] sm:$0xff] }
 0x5dd   : > { %5942 = vrot.lane.b32.xlu1 %v5941_v55, %s6013_s30  ;;  %5227 = vmatpush.msrb.mxu2 %v5023_v42  ;;  %v4715_v55 = vld [vmem:[#allocation3 + $0x91] sm:$0xff]  ;;  %v5065_v42 = vld [vmem:[%s9935_s9 + $0x328] sm:$0xff] }
 0x5de   : > { %5269 = vmatpush.msrb.mxu3 %v5038_v37 }
 0x5df   : > { %5228 = vmatpush.msrb.mxu2 %v5022_v51 }
 0x5e0   : > { %5270 = vmatpush.msrb.mxu3 %v5037_v19 }
 0x5e2   : > { %5271 = vmatpush.msrb.mxu3 %v5036_v52  ;;  %v5048_v52 = vld [vmem:[%s9935_s9 + $0x2a0] sm:$0xff] }
 0x5e4   : > { %4892 = vrot.lane.b32.xlu0 %v9291_v12, %s6015_s13  ;;  %5957 = vrot.lane.b32.xlu2 %v5956_v5, %s6014_s12  ;;  %v5069_v5 = vld [vmem:[%s9935_s9 + $0x348] sm:$0xff] }
 0x5e5   : > { %5952 = vrot.lane.b32.xlu1 %v5951_v59, %s6013_s30  ;;  %v5021_v59 = vld [vmem:[%s9935_s9 + $0x1c8] sm:$0xff]  ;;  %5352 = vmatpush.msrb.mxu1 %v5069_v5 }
 0x5e6   : > { %5229 = vmatpush.msrb.mxu2 %v5021_v59  ;;  %5272 = vmatpush.msrb.mxu3 %v5035_v13 }
 0x5e7   : > { %5353 = vmatpush.msrb.mxu1 %v5068_v53  ;;  %v5030_v53 = vld [vmem:[%s9935_s9 + $0x210] sm:$0xff] }
 0x5e8   : > { %5230 = vmatpush.msrb.mxu2 %v5020_v36  ;;  %5273 = vmatpush.msrb.mxu3 %v5034_v17  ;;  %v5049_v36 = vld [vmem:[%s9935_s9 + $0x2a8] sm:$0xff] }
 0x5e9   : > { %5354 = vmatpush.msrb.mxu1 %v5067_v9  ;;  %v5029_v9 = vld [vmem:[%s9935_s9 + $0x208] sm:$0xff] }
 0x5ea   : > { %5231 = vmatpush.msrb.mxu2 %v5019_v2  ;;  %5274 = vmatpush.msrb.mxu3 %v5033_v27  ;;  %v5063_v2 = vld [vmem:[%s9935_s9 + $0x318] sm:$0xff] }
 0x5eb   : > { %5355 = vmatpush.msrb.mxu1 %v5066_v49 }
 0x5ec   : > { %4894 = vrot.lane.b32.xlu0 %v9293_v57, %s6015_s13  ;;  %5962 = vrot.lane.b32.xlu2 %v5961_v35, %s6013_s30  ;;  %v5054_v35 = vld [vmem:[%s9935_s9 + $0x2d0] sm:$0xff] }
 0x5ed   : > { %4896 = vrot.lane.b32.xlu1 %v9337_v45, %s6015_s13  ;;  %5232 = vmatpush.msrb.mxu2 %v5018_v32  ;;  %v5047_v32 = vld [vmem:[%s9935_s9 + $0x298] sm:$0xff] }
 0x5ee   : > { %5356 = vmatpush.msrb.mxu1 %v5065_v42 }
 0x5f4   : > { %4868 = vrot.lane.b32.xlu0 %v9370_v48, %s6014_s12  ;;  %4870 = vrot.lane.b32.xlu2 %v9427_v14, %s6014_s12 }
 0x5f5   : > { %4898 = vrot.lane.b32.xlu1 %v9339_v40, %s6015_s13 }
 0x5fc   : > { %4900 = vrot.lane.b32.xlu0 %v9398_v31, %s6015_s13  ;;  %4872 = vrot.lane.b32.xlu2 %v9429_v30, %s6014_s12  ;;  %v5058_v30 = vld [vmem:[%s9935_s9 + $0x2f0] sm:$0xff] }
 0x5fd   : > { %4840 = vrot.lane.b32.xlu1 %v9396_v61, %s6013_s30  ;;  %5306 = vmatpush.msrb.mxu0 %v5058_v30  ;;  %v5016_v30 = vld [vmem:[%s9935_s9 + $0x1a0] sm:$0xff] }
 0x5fe   : > { %v9623_v24 = vpop.permute.xlu2 %5887 }
 0x5ff   : > { %5307 = vmatpush.msrb.mxu0 %v5057_v8  ;;  %v5889_v4 = vunpack.i.l.bf16 %v9623_v24  ;;  %v5890_v38 = vunpack.i.h.bf16 %v9623_v24  ;;  %v5064_v24 = vld [vmem:[%s9935_s9 + $0x320] sm:$0xff] }
 0x600   : > { %5357 = vmatpush.msrb.mxu1 %v5064_v24 }
 0x601   : > { %5308 = vmatpush.msrb.mxu0 %v5056_v10  ;;  %v5015_v10 = vld [vmem:[%s9935_s9 + $0x198] sm:$0xff] }
 0x602   : > { %5358 = vmatpush.msrb.mxu1 %v5063_v2 }
 0x603   : > { %5309 = vmatpush.msrb.mxu0 %v5055_v46  ;;  %v5031_v46 = vld [vmem:[%s9935_s9 + $0x218] sm:$0xff] }
 0x604   : > { %4902 = vrot.lane.b32.xlu0 %v9400_v28, %s6015_s13  ;;  %4874 = vrot.lane.b32.xlu2 %v4707_v44, %s6014_s12  ;;  %v5017_v44 = vld [vmem:[%s9935_s9 + $0x1a8] sm:$0xff] }
 0x605   : > { %4842 = vrot.lane.b32.xlu1 %v9568_v0, %s6013_s30  ;;  %5310 = vmatpush.msrb.mxu0 %v5054_v35 }
 0x606   : > { %5233 = vmatpush.msrb.mxu2 %v5017_v44  ;;  %v5045_v44 = vld [vmem:[%s9935_s9 + $0x288] sm:$0xff] }
 0x607   : > { %5311 = vmatpush.msrb.mxu0 %v5053_v39 }
 0x608   : > { %5234 = vmatpush.msrb.mxu2 %v5016_v30 }
 0x609   : > { %5312 = vmatpush.msrb.mxu0 %v5052_v15  ;;  %v5046_v15 = vld [vmem:[%s9935_s9 + $0x290] sm:$0xff] }
 0x60a   : > { %5235 = vmatpush.msrb.mxu2 %v5015_v10 }
 0x60b   : > { %5313 = vmatpush.msrb.mxu0 %v5051_v1  ;;  %v5061_v1 = vld [vmem:[%s9935_s9 + $0x308] sm:$0xff] }
 0x60c   : > { %4904 = vrot.lane.b32.xlu0 %v9585_v50, %s6015_s13 }
 0x60d   : > { %4906 = vrot.lane.b32.xlu1 %v4715_v55, %s6015_s13  ;;  %v5032_v55 = vld [vmem:[%s9935_s9 + $0x220] sm:$0xff]  ;;  %5314 = vmatpush.msrb.mxu0 %v5050_v34 }
 0x60e   : > { %5275 = vmatpush.msrb.mxu3 %v5032_v55 }
 0x60f   : > { %5315 = vmatpush.msrb.mxu0 %v5049_v36 }
 0x610   : > { %5276 = vmatpush.msrb.mxu3 %v5031_v46 }
 0x611   : > { %5316 = vmatpush.msrb.mxu0 %v5048_v52 }
 0x612   : > { %5277 = vmatpush.msrb.mxu3 %v5030_v53 }
 0x613   : > { %5317 = vmatpush.msrb.mxu0 %v5047_v32 }
 0x614   : > { %5278 = vmatpush.msrb.mxu3 %v5029_v9 }
 0x615   : > { %5318 = vmatpush.msrb.mxu0 %v5046_v15 }
 0x617   : > { %v5883_v56 = vpop.permute.xlu1 %5882  ;;  %5319 = vmatpush.msrb.mxu0 %v5045_v44 }
 0x618   : > { %v5884_v23 = vunpack.i.l.bf16 %v5883_v56  ;;  %v5885_v54 = vunpack.i.h.bf16 %v5883_v56 }
 0x61a   : > { %v4916_v33 = vsel %vm427_vm2, %v4652_v6, %v5884_v23  ;;  %v4924_v7 = vsel %vm2677_vm4, %v5884_v23, %v5889_v4  ;;  %v4917_v29 = vsel %vm427_vm2, %v9275_v18, %v5885_v54  ;;  %v4925_v20 = vsel %vm2677_vm4, %v5885_v54, %v5890_v38  ;;  %v9678_v18 = vpop.permute.xlu2 %5902  ;;  %v5013_v23 = vld [vmem:[%s9935_s9 + $0x188] sm:$0xff]  ;;  %v5028_v54 = vld [vmem:[%s9935_s9 + $0x200] sm:$0xff] }
 0x61b   : > { %5116 = vmatmul.f32.vlgmr.msra.gmra.mxu3 %v4916_v33  ;;  %5157 = vmatmul.f32.vlgmr.msra.gmra.mxu0 %v4924_v7  ;;  %v5904_v51 = vunpack.i.l.bf16 %v9678_v18  ;;  %v5905_v6 = vunpack.i.h.bf16 %v9678_v18  ;;  %v5012_v33 = vld [vmem:[%s9935_s9 + $0x180] sm:$0xff] }
 0x61c   : > { %5279 = vmatpush.msrb.mxu3 %v5028_v54 }
 0x61e   : > { %v5893_v60 = vpop.permute.xlu0 %5892 }
 0x61f   : > { %v5894_v47 = vunpack.i.l.bf16 %v5893_v60  ;;  %v5895_v8 = vunpack.i.h.bf16 %v5893_v60 }
 0x621   : > { %v4932_v41 = vsel %vm2686_vm5, %v5889_v4, %v5894_v47  ;;  %v4933_v19 = vsel %vm2686_vm5, %v5890_v38, %v5895_v8 }
 0x622   : > { %5198 = vmatmul.f32.vlgmr.msra.gmra.mxu1 %v4932_v41  ;;  %v5918_v17 = vpop.permute.xlu2 %5917 }
 0x623   : > { %5119 = vmatmul.f32.gmra.mxu3 %v4917_v29  ;;  %5160 = vmatmul.f32.gmra.mxu0 %v4925_v20  ;;  %v5919_v47 = vunpack.i.l.bf16 %v5918_v17  ;;  %v5044_v29 = vld [vmem:[%s9935_s9 + $0x280] sm:$0xff]  ;;  %v5920_v42 = vunpack.i.h.bf16 %v5918_v17 }
 0x624   : > { %5320 = vmatpush.msrb.mxu0 %v5044_v29 }
 0x627   : > { %v5898_v58 = vpop.permute.xlu1 %5897 }
 0x628   : > { %v5899_v37 = vunpack.i.l.bf16 %v5898_v58  ;;  %v5900_v35 = vunpack.i.h.bf16 %v5898_v58 }
 0x62a   : > { %v4918_v5 = vsel %vm427_vm2, %v9277_v63, %v5899_v37  ;;  %v4926_v59 = vsel %vm2677_vm4, %v5899_v37, %v5904_v51  ;;  %5201 = vmatmul.f32.gmra.mxu1 %v4933_v19  ;;  %v5014_v63 = vld [vmem:[%s9935_s9 + $0x190] sm:$0xff]  ;;  %v4919_v7 = vsel %vm427_vm2, %v9309_v3, %v5900_v35  ;;  %v4927_v13 = vsel %vm2677_vm4, %v5900_v35, %v5905_v6 }
 0x62b   : > { %5122 = vmatmul.f32.gmra.mxu3 %v4918_v5  ;;  %5163 = vmatmul.f32.gmra.mxu0 %v4926_v59  ;;  %v5062_v3 = vld [vmem:[%s9935_s9 + $0x310] sm:$0xff] }
 0x62c   : > { %5236 = vmatpush.msrb.mxu2 %v5014_v63  ;;  %5359 = vmatpush.msrb.mxu1 %v5062_v3 }
 0x62e   : > { %v5908_v56 = vpop.permute.xlu0 %5907  ;;  %5237 = vmatpush.msrb.mxu2 %v5013_v23  ;;  %5360 = vmatpush.msrb.mxu1 %v5061_v1 }
 0x62f   : > { %v5909_v4 = vunpack.i.l.bf16 %v5908_v56  ;;  %v5910_v60 = vunpack.i.h.bf16 %v5908_v56 }
 0x630   : > { %5238 = vmatpush.msrb.mxu2 %v5012_v33 }
 0x631   : > { %v4934_v39 = vsel %vm2686_vm5, %v5904_v51, %v5909_v4  ;;  %v4935_v27 = vsel %vm2686_vm5, %v5905_v6, %v5910_v60  ;;  %v5933_v51 = vpop.permute.xlu2 %5932 }
 0x632   : > { %5204 = vmatmul.f32.gmra.mxu1 %v4934_v39  ;;  %v5934_v5 = vunpack.i.l.bf16 %v5933_v51  ;;  %v5935_v63 = vunpack.i.h.bf16 %v5933_v51 }
 0x633   : > { %5125 = vmatmul.f32.gmra.mxu3 %v4919_v7  ;;  %5166 = vmatmul.f32.gmra.mxu0 %v4927_v13 }
 0x637   : > { %v5913_v38 = vpop.permute.xlu1 %5912 }
 0x638   : > { %v5914_v49 = vunpack.i.l.bf16 %v5913_v38  ;;  %v5915_v30 = vunpack.i.h.bf16 %v5913_v38 }
 0x639   : > { %v5948_v23 = vpop.permute.xlu2 %5947 }
 0x63a   : > { %v4920_v20 = vsel %vm427_vm2, %v9311_v21, %v5914_v49  ;;  %v4928_v41 = vsel %vm2677_vm4, %v5914_v49, %v5919_v47  ;;  %5207 = vmatmul.f32.gmra.mxu1 %v4935_v27  ;;  %v5060_v21 = vld [vmem:[%s9935_s9 + $0x300] sm:$0xff]  ;;  %v4921_v34 = vsel %vm427_vm2, %v9368_v25, %v5915_v30  ;;  %v4929_v8 = vsel %vm2677_vm4, %v5915_v30, %v5920_v42 }
 0x63b   : > { %5128 = vmatmul.f32.gmra.mxu3 %v4920_v20  ;;  %5169 = vmatmul.f32.gmra.mxu0 %v4928_v41  ;;  %v5949_v13 = vunpack.i.l.bf16 %v5948_v23  ;;  %v5950_v15 = vunpack.i.h.bf16 %v5948_v23 }
 0x63c   : > { %5361 = vmatpush.msrb.mxu1 %v5060_v21 }
 0x63e   : > { %v5923_v18 = vpop.permute.xlu0 %5922 }
 0x63f   : > { %v5924_v55 = vunpack.i.l.bf16 %v5923_v18  ;;  %v5925_v37 = vunpack.i.h.bf16 %v5923_v18 }
 0x641   : > { %v4936_v58 = vsel %vm2686_vm5, %v5919_v47, %v5924_v55  ;;  %v4937_v25 = vsel %vm2686_vm5, %v5920_v42, %v5925_v37  ;;  %v5958_v54 = vpop.permute.xlu2 %5957 }
 0x642   : > { %5210 = vmatmul.f32.gmra.mxu1 %v4936_v58  ;;  %v5959_v44 = vunpack.i.l.bf16 %v5958_v54  ;;  %v5960_v30 = vunpack.i.h.bf16 %v5958_v54 }
 0x643   : > { %5131 = vmatmul.f32.gmra.mxu3 %v4921_v34  ;;  %5172 = vmatmul.f32.gmra.mxu0 %v4929_v8 }
 0x647   : > { %v5928_v10 = vpop.permute.xlu1 %5927 }
 0x648   : > { %v5929_v59 = vunpack.i.l.bf16 %v5928_v10  ;;  %v5930_v36 = vunpack.i.h.bf16 %v5928_v10 }
 0x64a   : > { %v4922_v19 = vsel %vm427_vm2, %v9370_v48, %v5929_v59  ;;  %v4930_v46 = vsel %vm2677_vm4, %v5929_v59, %v5934_v5  ;;  %5213 = vmatmul.f32.gmra.mxu1 %v4937_v25  ;;  %v4923_v56 = vsel %vm427_vm2, %v9427_v14, %v5930_v36  ;;  %v4931_v6 = vsel %vm2677_vm4, %v5930_v36, %v5935_v63 }
 0x64b   : > { %5134 = vmatmul.f32.gmra.mxu3 %v4922_v19  ;;  %5175 = vmatmul.f32.gmra.mxu0 %v4930_v46 }
 0x64e   : > { %v5938_v24 = vpop.permute.xlu0 %5937 }
 0x64f   : > { %v5939_v53 = vunpack.i.l.bf16 %v5938_v24  ;;  %v5943_v52 = vpop.permute.xlu1 %5942  ;;  %v5940_v2 = vunpack.i.h.bf16 %v5938_v24 }
 0x650   : > { %v5944_v35 = vunpack.i.l.bf16 %v5943_v52  ;;  %v5945_v33 = vunpack.i.h.bf16 %v5943_v52 }
 0x651   : > { %v4938_v48 = vsel %vm2686_vm5, %v5934_v5, %v5939_v53  ;;  %v4939_v32 = vsel %vm2686_vm5, %v5935_v63, %v5940_v2  ;;  %v4723_v63 = vld [vmem:[#allocation3 + $0x92] sm:$0xff] }
 0x652   : > { %v4940_v4 = vsel %vm427_vm2, %v9266_v26, %v5944_v35  ;;  %5216 = vmatmul.f32.gmra.mxu1 %v4938_v48  ;;  %v4948_v14 = vsel %vm2677_vm4, %v5944_v35, %v5949_v13  ;;  %v4941_v3 = vsel %vm427_vm2, %v9291_v12, %v5945_v33  ;;  %v4949_v60 = vsel %vm2677_vm4, %v5945_v33, %v5950_v15 }
 0x653   : > { %5137 = vmatmul.f32.gmra.mxu3 %v4923_v56  ;;  %5178 = vmatmul.f32.gmra.mxu0 %v4931_v6 }
 0x654   : > { %5239 = vmatmul.f32.vlgmr.msrb.gmra.mxu2 %v4940_v4 }
 0x656   : > { %v4893_v7 = vpop.permute.xlu0 %4892 }
 0x657   : > { %v4956_v39 = vsel %vm2686_vm5, %v5949_v13, %v4893_v7  ;;  %v5953_v9 = vpop.permute.xlu1 %5952 }
 0x658   : > { %v5954_v26 = vunpack.i.l.bf16 %v5953_v9  ;;  %v5955_v49 = vunpack.i.h.bf16 %v5953_v9 }
 0x65a   : > { %5219 = vmatmul.f32.gmra.mxu1 %v4939_v32  ;;  %v4942_v47 = vsel %vm427_vm2, %v9293_v57, %v5954_v26  ;;  %v4950_v20 = vsel %vm2677_vm4, %v5954_v26, %v5959_v44  ;;  %v4943_v27 = vsel %vm427_vm2, %v9337_v45, %v5955_v49  ;;  %v5963_v57 = vpop.permute.xlu2 %5962  ;;  %v4951_v18 = vsel %vm2677_vm4, %v5955_v49, %v5960_v30 }
 0x65b   : > { %5280 = vmatmul.f32.vlgmr.msrb.gmra.mxu3 %v4948_v14  ;;  %5321 = vmatmul.f32.vlgmr.msrb.gmra.mxu0 %v4956_v39  ;;  %v5964_v1 = vunpack.i.l.bf16 %v5963_v57  ;;  %v5965_v45 = vunpack.i.h.bf16 %v5963_v57 }
 0x65c   : > { %5242 = vmatmul.f32.gmra.mxu2 %v4941_v3  ;;  %v9837_v3 = vld [vmem:[%s9936_s10] ss:$0 sm:$0xff] }
 0x65d   : > { %v4944_v21 = vsel %vm427_vm2, %v9339_v40, %v5964_v1  ;;  %v4945_v58 = vsel %vm427_vm2, %v9398_v31, %v5965_v45 }
 0x65e   : > { %v4895_v17 = vpop.permute.xlu0 %4894 }
 0x65f   : > { %v4957_v38 = vsel %vm2686_vm5, %v5950_v15, %v4895_v17  ;;  %v4897_v12 = vpop.permute.xlu1 %4896 }
 0x660   : > { %v4958_v41 = vsel %vm2686_vm5, %v5959_v44, %v4897_v12 }
 0x662   : > { %5575 = vmatmul.msk.f32.vlgmr.msrb.gmra.mxu1 %vm427_vm2, %v9287_v43  ;;  %v4871_v40 = vpop.permute.xlu2 %4870 }
 0x663   : > { %5283 = vmatmul.f32.gmra.mxu3 %v4949_v60  ;;  %5324 = vmatmul.f32.gmra.mxu0 %v4957_v38  ;;  %v4953_v37 = vsel %vm2677_vm4, %v5965_v45, %v4871_v40 }
 0x664   : > { %5245 = vmatmul.f32.gmra.mxu2 %v4942_v47 }
 0x666   : > { %v4869_v29 = vpop.permute.xlu0 %4868 }
 0x667   : > { %v4899_v43 = vpop.permute.xlu1 %4898 }
 0x668   : > { %v4959_v42 = vsel %vm2686_vm5, %v5960_v30, %v4899_v43 }
 0x66a   : > { %5576 = vmatmul.msk.f32.gmra.mxu1 %vm427_vm2, %v9289_v11  ;;  %v4952_v11 = vsel %vm2677_vm4, %v5964_v1, %v4869_v29  ;;  %v4873_v5 = vpop.permute.xlu2 %4872 }
 0x66b   : > { %5286 = vmatmul.f32.gmra.mxu3 %v4950_v20  ;;  %5327 = vmatmul.f32.gmra.mxu0 %v4958_v41 }
 0x66c   : > { %5248 = vmatmul.f32.gmra.mxu2 %v4943_v27 }
 0x66e   : > { %v4901_v55 = vpop.permute.xlu0 %4900 }
 0x66f   : > { %v4960_v34 = vsel %vm2686_vm5, %v4869_v29, %v4901_v55  ;;  %v4841_v8 = vpop.permute.xlu1 %4840 }
 0x670   : > { %v4946_v10 = vsel %vm427_vm2, %v9400_v28, %v4841_v8 }
 0x672   : > { %5577 = vmatmul.msk.f32.gmra.mxu1 %vm427_vm2, %v9333_v16  ;;  %v4875_v25 = vpop.permute.xlu2 %4874 }
 0x673   : > { %5289 = vmatmul.f32.gmra.mxu3 %v4951_v18  ;;  %5330 = vmatmul.f32.gmra.mxu0 %v4959_v42 }
 0x674   : > { %5251 = vmatmul.f32.gmra.mxu2 %v4944_v21 }
 0x676   : > { %v4903_v51 = vpop.permute.xlu0 %4902 }
 0x677   : > { %v4961_v16 = vsel %vm2686_vm5, %v4871_v40, %v4903_v51  ;;  %v4843_v31 = vpop.permute.xlu1 %4842 }
 0x678   : > { %v4947_v46 = vsel %vm427_vm2, %v9585_v50, %v4843_v31  ;;  %v4955_v36 = vsel %vm2677_vm4, %v4843_v31, %v4875_v25 }
 0x67a   : > { %5578 = vmatmul.msk.f32.gmra.mxu1 %vm427_vm2, %v9335_v22  ;;  %v4954_v22 = vsel %vm2677_vm4, %v4841_v8, %v4873_v5 }
 0x67b   : > { %5292 = vmatmul.f32.gmra.mxu3 %v4952_v11  ;;  %5333 = vmatmul.f32.gmra.mxu0 %v4960_v34 }
 0x67c   : > { %5254 = vmatmul.f32.gmra.mxu2 %v4945_v58 }
 0x67e   : > { %v4905_v59 = vpop.permute.xlu0 %4904 }
 0x67f   : > { %v4962_v19 = vsel %vm2686_vm5, %v4873_v5, %v4905_v59  ;;  %v4907_v28 = vpop.permute.xlu1 %4906 }
 0x682   : > { %5579 = vmatmul.msk.f32.gmra.mxu1 %vm427_vm2, %v9394_v62  ;;  %v4963_v62 = vsel %vm2686_vm5, %v4875_v25, %v4907_v28 }
 0x683   : > { %5295 = vmatmul.f32.gmra.mxu3 %v4953_v37  ;;  %5336 = vmatmul.f32.gmra.mxu0 %v4961_v16 }
 0x684   : > { %5257 = vmatmul.f32.gmra.mxu2 %v4946_v10 }
 0x68a   : > { %5580 = vmatmul.msk.f32.gmra.mxu1 %vm427_vm2, %v9396_v61 }
 0x68b   : > { %5298 = vmatmul.f32.gmra.mxu3 %v4954_v22  ;;  %5339 = vmatmul.f32.gmra.mxu0 %v4962_v19 }
 0x68c   : > { %5260 = vmatmul.f32.gmra.mxu2 %v4947_v46 }
 0x692   : > { %5581 = vmatmul.msk.f32.gmra.mxu1 %vm427_vm2, %v9568_v0 }
 0x693   : > { %5301 = vmatmul.f32.gmra.mxu3 %v4955_v36  ;;  %5342 = vmatmul.f32.gmra.mxu0 %v4963_v62 }
 0x698   : > { %v5158_v24 = vpop.f32.mrf.mxu0 }
 0x69a   : > { %5582 = vmatmul.msk.f32.gmra.mxu1 %vm427_vm2, %v4723_v63 }
 0x69e   : > { %v5117_v50 = vpop.f32.mrf.mxu3 }
 0x69f   : > { %v5199_v52 = vpop.f32.mrf.mxu1  ;;  %v5118_v15 = vadd.f32 %v9837_v3, %v5117_v50 }
 0x6a0   : > { %v5161_v53 = vpop.f32.mrf.mxu0 }
 0x6a1   : > { %v5159_v60 = vadd.f32 %v5158_v24, %v5118_v15  ;;  %v5459_v15 = vlaneseq }
 0x6a3   : > { %v5200_v49 = vadd.f32 %v5199_v52, %v5159_v60 }
 0x6a6   : > { %v5120_v35 = vpop.f32.mrf.mxu3 }
 0x6a7   : > { %v5202_v56 = vpop.f32.mrf.mxu1  ;;  %v5121_v44 = vadd.f32 %v9837_v3, %v5120_v35 }
 0x6a8   : > { %v5164_v61 = vpop.f32.mrf.mxu0 }
 0x6a9   : > { %v5162_v41 = vadd.f32 %v5161_v53, %v5121_v44 }
 0x6ab   : > { %v5203_v18 = vadd.f32 %v5202_v56, %v5162_v41 }
 0x6ae   : > { %v5123_v6 = vpop.f32.mrf.mxu3 }
 0x6af   : > { %v5205_v4 = vpop.f32.mrf.mxu1  ;;  %v5124_v42 = vadd.f32 %v9837_v3, %v5123_v6 }
 0x6b0   : > { %v5167_v48 = vpop.f32.mrf.mxu0 }
 0x6b1   : > { %v5165_v34 = vadd.f32 %v5164_v61, %v5124_v42 }
 0x6b3   : > { %v5206_v31 = vadd.f32 %v5205_v4, %v5165_v34 }
 0x6b6   : > { %v5126_v23 = vpop.f32.mrf.mxu3 }
 0x6b7   : > { %v5208_v33 = vpop.f32.mrf.mxu1  ;;  %v5127_v5 = vadd.f32 %v9837_v3, %v5126_v23 }
 0x6b8   : > { %v9820_v2 = vpop.f32.mrf.mxu0 }
 0x6b9   : > { %v5168_v28 = vadd.f32 %v5167_v48, %v5127_v5 }
 0x6bb   : > { %v5209_v56 = vadd.f32 %v5208_v33, %v5168_v28 }
 0x6be   : > { %v5129_v7 = vpop.f32.mrf.mxu3 }
 0x6bf   : > { %v9824_v0 = vpop.f32.mrf.mxu1  ;;  %v5130_v35 = vadd.f32 %v9837_v3, %v5129_v7 }
 0x6c0   : > { %v9822_v13 = vpop.f32.mrf.mxu0 }
 0x6c1   : > { %v5171_v48 = vadd.f32 %v9820_v2, %v5130_v35 }
 0x6c3   : > { %v5212_v41 = vadd.f32 %v9824_v0, %v5171_v48 }
 0x6c6   : > { %v9826_v39 = vpop.f32.mrf.mxu3 }
 0x6c7   : > { %v9830_v9 = vpop.f32.mrf.mxu1 }
 0x6c8   : > { %v9828_v14 = vpop.f32.mrf.mxu0 }
 0x6ce   : > { %v9832_v32 = vpop.f32.mrf.mxu3 }
 0x6cf   : > { %v9841_v17 = vpop.f32.mrf.mxu1 }
 0x6d0   : > { %v9839_v26 = vpop.f32.mrf.mxu0 }
 0x6d6   : > { %v9844_v54 = vpop.f32.mrf.mxu3 }
 0x6d7   : > { %v5240_v38 = vpop.f32.mrf.mxu2  ;;  %v9846_v12 = vpop.f32.mrf.mxu1  ;;  %v5139_v48 = vadd.f32 %v9837_v3, %v9844_v54 }
 0x6d8   : > { %v5322_v47 = vpop.f32.mrf.mxu0  ;;  %v5241_v29 = vadd.f32 %v5240_v38, %v5200_v49 }
 0x6de   : > { %v5281_v20 = vpop.f32.mrf.mxu3 }
 0x6df   : > { %v5243_v27 = vpop.f32.mrf.mxu2  ;;  %v5282_v57 = vadd.f32 %v5281_v20, %v5241_v29  ;;  %v5363_v30 = vpop.f32.mrf.mxu1 }
 0x6e0   : > { %v5325_v1 = vpop.f32.mrf.mxu0  ;;  %v5244_v21 = vadd.f32 %v5243_v27, %v5203_v18  ;;  %v5133_v27 = vadd.f32 %v9837_v3, %v9826_v39 }
 0x6e1   : > { %v5323_v43 = vadd.f32 %v5322_v47, %v5282_v57  ;;  %v9862_v57 = vand.u32 127, %v5459_v15 }
 0x6e2   : > { %v5174_v0 = vadd.f32 %v9822_v13, %v5133_v27 }
 0x6e3   : > { %v5364_v55 = vadd.f32 %v5363_v30, %v5323_v43  ;;  %vm5461_vm6 = vcmp.eq.s32.totalorder %v9862_v57, 1 }
 0x6e5   : > { %v5395_v45 = vand.u32 2147483647, %v5364_v55  ;;  %v5387_v43 = vmax.f32 %v5364_v55, 0.0 }
 0x6e6   : > { %v5284_v11 = vpop.f32.mrf.mxu3 }
 0x6e7   : > { %v5403_v8 = vsub.f32 0.0, %v5395_v45  ;;  %v5246_v58 = vpop.f32.mrf.mxu2  ;;  %v5285_v40 = vadd.f32 %v5284_v11, %v5244_v21  ;;  %v5366_v10 = vpop.f32.mrf.mxu1 }
 0x6e8   : > { %v5328_v51 = vpop.f32.mrf.mxu0  ;;  %v5247_v22 = vadd.f32 %v5246_v58, %v5206_v31  ;;  %v5136_v31 = vadd.f32 %v9837_v3, %v9832_v32 }
 0x6e9   : > { %v5411_v37 = vmul.f32 1.442695, %v5403_v8  ;;  %v5326_v16 = vadd.f32 %v5325_v1, %v5285_v40 }
 0x6eb   : > { %5971 = vpow2.f32 %v5411_v37  ;;  %v9851_v59 = vadd.f32 %v5366_v10, %v5326_v16  ;;  %v5215_v10 = vadd.f32 %v9830_v9, %v5174_v0  ;;  %v5177_v9 = vadd.f32 %v9828_v14, %v5136_v31 }
 0x6ed   : > { %v5396_v19 = vand.u32 2147483647, %v9851_v59 }
 0x6ee   : > { %v5287_v46 = vpop.f32.mrf.mxu3 }
 0x6ef   : > { %v5404_v25 = vsub.f32 0.0, %v5396_v19  ;;  %v5249_v62 = vpop.f32.mrf.mxu2  ;;  %v5288_v36 = vadd.f32 %v5287_v46, %v5247_v22  ;;  %v5369_v52 = vpop.f32.mrf.mxu1  ;;  %v5388_v22 = vmax.f32 %v9851_v59, 0.0 }
 0x6f0   : > { %v5331_v24 = vpop.f32.mrf.mxu0  ;;  %v5250_v4 = vadd.f32 %v5249_v62, %v5209_v56 }
 0x6f1   : > { %v5972_v63 = vpop.eup %5971  ;;  %v5413_v50 = vmul.f32 1.442695, %v5404_v25  ;;  %v5329_v53 = vadd.f32 %v5328_v51, %v5288_v36 }
 0x6f2   : > { %v5427_v61 = vadd.f32 1.0, %v5972_v63 }
 0x6f3   : > { %5973 = vpow2.f32 %v5413_v50  ;;  %v9855_v6 = vadd.f32 %v5369_v52, %v5329_v53 }
 0x6f4   : > { %5975 = vlog2.f32 %v5427_v61 }
 0x6f5   : > { %v5397_v23 = vand.u32 2147483647, %v9855_v6  ;;  %v5389_v15 = vmax.f32 %v9855_v6, 0.0 }
 0x6f6   : > { %v5290_v60 = vpop.f32.mrf.mxu3 }
 0x6f7   : > { %v5405_v38 = vsub.f32 0.0, %v5397_v23  ;;  %v5252_v47 = vpop.f32.mrf.mxu2  ;;  %v5291_v49 = vadd.f32 %v5290_v60, %v5250_v4  ;;  %v5372_v20 = vpop.f32.mrf.mxu1  ;;  %v5218_v23 = vadd.f32 %v9841_v17, %v5177_v9 }
 0x6f8   : > { %v5334_v2 = vpop.f32.mrf.mxu0  ;;  %v5253_v21 = vadd.f32 %v5252_v47, %v5212_v41 }
 0x6f9   : > { %v5974_v44 = vpop.eup %5973  ;;  %v5415_v29 = vmul.f32 1.442695, %v5405_v38  ;;  %v5332_v7 = vadd.f32 %v5331_v24, %v5291_v49 }
 0x6fa   : > { %v5976_v33 = vpop.eup %5975  ;;  %v5428_v1 = vadd.f32 1.0, %v5974_v44 }
 0x6fb   : > { %v5436_v30 = vmul.f32 0.6931472, %v5976_v33  ;;  %5977 = vpow2.f32 %v5415_v29  ;;  %v9864_v18 = vadd.f32 %v5372_v20, %v5332_v7  ;;  %v5180_v29 = vadd.f32 %v9839_v26, %v5139_v48 }
 0x6fc   : > { %5979 = vlog2.f32 %v5428_v1 }
 0x6fd   : > { %v5451_v42 = vadd.f32 %v5436_v30, %v5387_v43  ;;  %v5398_v45 = vand.u32 2147483647, %v9864_v18  ;;  %v5221_v43 = vadd.f32 %v9846_v12, %v5180_v29  ;;  %v5390_v26 = vmax.f32 %v9864_v18, 0.0 }
 0x6fe   : > { %v5293_v39 = vpop.f32.mrf.mxu3 }
 0x6ff   : > { %v5462_v55 = vadd.f32 1.0, %v5451_v42  ;;  %v5406_v11 = vsub.f32 0.0, %v5398_v45  ;;  %v5255_v34 = vpop.f32.mrf.mxu2  ;;  %v5294_v8 = vadd.f32 %v5293_v39, %v5253_v21  ;;  %v5375_v37 = vpop.f32.mrf.mxu1 }
 0x700   : > { %v5337_v28 = vpop.f32.mrf.mxu0  ;;  %v5256_v62 = vadd.f32 %v5255_v34, %v5215_v10 }
 0x701   : > { %v5978_v58 = vpop.eup %5977  ;;  %v5470_v40 = vsel %vm5461_vm6, %v5462_v55, %v5451_v42  ;;  %v5417_v51 = vmul.f32 1.442695, %v5406_v11  ;;  %v5335_v13 = vadd.f32 %v5334_v2, %v5294_v8 }
 0x702   : > { %v5980_v16 = vpop.eup %5979  ;;  %5479 = vst.msk [vmem:[%s9873_s19] sm:$0xff] %vm5478_vm7, %v5470_v40  ;;  %v5429_v5 = vadd.f32 1.0, %v5978_v58 }
 0x703   : > { %v5438_v19 = vmul.f32 0.6931472, %v5980_v16  ;;  %5981 = vpow2.f32 %v5417_v51  ;;  %v9883_v46 = vadd.f32 %v5375_v37, %v5335_v13 }
 0x704   : > { %5983 = vlog2.f32 %v5429_v5 }
 0x705   : > { %v5452_v25 = vadd.f32 %v5438_v19, %v5388_v22  ;;  %v5399_v36 = vand.u32 2147483647, %v9883_v46  ;;  %v5391_v31 = vmax.f32 %v9883_v46, 0.0 }
 0x706   : > { %v5296_v24 = vpop.f32.mrf.mxu3 }
 0x707   : > { %v5463_v32 = vadd.f32 1.0, %v5452_v25  ;;  %v5407_v63 = vsub.f32 0.0, %v5399_v36  ;;  %v5297_v50 = vadd.f32 %v5296_v24, %v5256_v62  ;;  %v5258_v53 = vpop.f32.mrf.mxu2  ;;  %v5378_v56 = vpop.f32.mrf.mxu1 }
 0x708   : > { %v5259_v49 = vadd.f32 %v5258_v53, %v5218_v23  ;;  %v5340_v7 = vpop.f32.mrf.mxu0 }
 0x709   : > { %v5982_v52 = vpop.eup %5981  ;;  %v5471_v59 = vsel %vm5461_vm6, %v5463_v32, %v5452_v25  ;;  %v5419_v35 = vmul.f32 1.442695, %v5407_v63  ;;  %v5338_v61 = vadd.f32 %v5337_v28, %v5297_v50 }
 0x70a   : > { %v5984_v4 = vpop.eup %5983  ;;  %5480 = vst.msk [vmem:[%s9873_s19 + $0x8] sm:$0xff] %vm5478_vm7, %v5471_v59  ;;  %v5430_v14 = vadd.f32 1.0, %v5982_v52 }
 0x70b   : > { %v5440_v60 = vmul.f32 0.6931472, %v5984_v4  ;;  %5985 = vpow2.f32 %v5419_v35  ;;  %v5379_v38 = vadd.f32 %v5378_v56, %v5338_v61 }
 0x70c   : > { %5987 = vlog2.f32 %v5430_v14 }
 0x70d   : > { %v5453_v47 = vadd.f32 %v5440_v60, %v5389_v15  ;;  %v5400_v44 = vand.u32 2147483647, %v5379_v38  ;;  %v5392_v50 = vmax.f32 %v5379_v38, 0.0 }
 0x70e   : > { %v5299_v17 = vpop.f32.mrf.mxu3 }
 0x70f   : > { %v5464_v20 = vadd.f32 1.0, %v5453_v47  ;;  %v5408_v33 = vsub.f32 0.0, %v5400_v44  ;;  %v5300_v3 = vadd.f32 %v5299_v17, %v5259_v49  ;;  %v5381_v1 = vpop.f32.mrf.mxu1  ;;  %v5261_v42 = vpop.f32.mrf.mxu2 }
 0x710   : > { %v5262_v39 = vadd.f32 %v5261_v42, %v5221_v43  ;;  %v5343_v40 = vpop.f32.mrf.mxu0 }
 0x711   : > { %v5986_v54 = vpop.eup %5985  ;;  %v5472_v41 = vsel %vm5461_vm6, %v5464_v20, %v5453_v47  ;;  %v5421_v6 = vmul.f32 1.442695, %v5408_v33  ;;  %v5341_v27 = vadd.f32 %v5340_v7, %v5300_v3 }
 0x712   : > { %v5988_v2 = vpop.eup %5987  ;;  %5481 = vst.msk [vmem:[%s9873_s19 + $0x10] sm:$0xff] %vm5478_vm7, %v5472_v41  ;;  %v5431_v30 = vadd.f32 1.0, %v5986_v54 }
 0x713   : > { %v5442_v21 = vmul.f32 0.6931472, %v5988_v2  ;;  %5989 = vpow2.f32 %v5421_v6  ;;  %v5382_v45 = vadd.f32 %v5381_v1, %v5341_v27 }
 0x714   : > { %5991 = vlog2.f32 %v5431_v30 }
 0x715   : > { %v5454_v0 = vadd.f32 %v5442_v21, %v5390_v26  ;;  %v5401_v55 = vand.u32 2147483647, %v5382_v45  ;;  %v5393_v4 = vmax.f32 %v5382_v45, 0.0 }
 0x716   : > { %v5302_v11 = vpop.f32.mrf.mxu3 }
 0x717   : > { %v5465_v34 = vadd.f32 1.0, %v5454_v0  ;;  %v5409_v8 = vsub.f32 0.0, %v5401_v55  ;;  %v5303_v58 = vadd.f32 %v5302_v11, %v5262_v39  ;;  %v5384_v18 = vpop.f32.mrf.mxu1 }
 0x719   : > { %v5990_v12 = vpop.eup %5989  ;;  %v5473_v51 = vsel %vm5461_vm6, %v5465_v34, %v5454_v0  ;;  %v5423_v13 = vmul.f32 1.442695, %v5409_v8  ;;  %v5344_v37 = vadd.f32 %v5343_v40, %v5303_v58 }
 0x71a   : > { %v5992_v16 = vpop.eup %5991  ;;  %5482 = vst.msk [vmem:[%s9873_s19 + $0x18] sm:$0xff] %vm5478_vm7, %v5473_v51  ;;  %v5432_v10 = vadd.f32 1.0, %v5990_v12 }
 0x71b   : > { %v5444_v5 = vmul.f32 0.6931472, %v5992_v16  ;;  %5993 = vpow2.f32 %v5423_v13  ;;  %v5385_v22 = vadd.f32 %v5384_v18, %v5344_v37 }
 0x71c   : > { %5995 = vlog2.f32 %v5432_v10 }
 0x71d   : > { %v5455_v19 = vadd.f32 %v5444_v5, %v5391_v31  ;;  %v5402_v28 = vand.u32 2147483647, %v5385_v22  ;;  %v5394_v38 = vmax.f32 %v5385_v22, 0.0 }
 0x71f   : > { %v5466_v25 = vadd.f32 1.0, %v5455_v19  ;;  %v5410_v62 = vsub.f32 0.0, %v5402_v28 }
 0x721   : > { %v5994_v36 = vpop.eup %5993  ;;  %v5474_v9 = vsel %vm5461_vm6, %v5466_v25, %v5455_v19  ;;  %v5425_v24 = vmul.f32 1.442695, %v5410_v62 }
 0x722   : > { %v5996_v32 = vpop.eup %5995  ;;  %5483 = vst.msk [vmem:[%s9873_s19 + $0x20] sm:$0xff] %vm5478_vm7, %v5474_v9  ;;  %v5433_v63 = vadd.f32 1.0, %v5994_v36 }
 0x723   : > { %v5446_v46 = vmul.f32 0.6931472, %v5996_v32  ;;  %5997 = vpow2.f32 %v5425_v24 }
 0x724   : > { %5999 = vlog2.f32 %v5433_v63 }
 0x725   : > { %v5456_v53 = vadd.f32 %v5446_v46, %v5392_v50 }
 0x727   : > { %v5467_v52 = vadd.f32 1.0, %v5456_v53 }
 0x729   : > { %v5998_v59 = vpop.eup %5997  ;;  %v5475_v35 = vsel %vm5461_vm6, %v5467_v52, %v5456_v53 }
 0x72a   : > { %v6000_v61 = vpop.eup %5999  ;;  %5484 = vst.msk [vmem:[%s9873_s19 + $0x28] sm:$0xff] %vm5478_vm7, %v5475_v35  ;;  %v5434_v56 = vadd.f32 1.0, %v5998_v59 }
 0x72b   : > { %v5448_v23 = vmul.f32 0.6931472, %v6000_v61 }
 0x72c   : > { %6001 = vlog2.f32 %v5434_v56 }
 0x72d   : > { %v5457_v48 = vadd.f32 %v5448_v23, %v5393_v4 }
 0x72f   : > { %v5468_v14 = vadd.f32 1.0, %v5457_v48 }
 0x731   : > { %v5476_v15 = vsel %vm5461_vm6, %v5468_v14, %v5457_v48 }
 0x732   : > { %v6002_v60 = vpop.eup %6001  ;;  %5485 = vst.msk [vmem:[%s9873_s19 + $0x30] sm:$0xff] %vm5478_vm7, %v5476_v15 }
 0x733   : > { %v5450_v47 = vmul.f32 0.6931472, %v6002_v60 }
 0x735   : > { %v5458_v49 = vadd.f32 %v5450_v47, %v5394_v38 }
 0x737   : > { %v5469_v44 = vadd.f32 1.0, %v5458_v49 }
 0x739   : > { %v5477_v29 = vsel %vm5461_vm6, %v5469_v44, %v5458_v49 }
 0x73a   : > { %5486 = vst.msk [vmem:[%s9873_s19 + $0x38] sm:$0xff] %vm5478_vm7, %v5477_v29 }
 0x73b PF: > { %s21_s17 = sadd.s32 1, %s6010_s17  }
 0x73c   : > { %p18_p4 = scmp.ge.s32.totalorder %s21_s17, 4  }
 0x73e   :  { %20 = sbr.rel (!%p18_p4) target bundleno = 1 (0x1), region = 98 }

</bundles_post_ra>
